<compile_context>
chip_gen: v7x
topology: tpu7x:2x2x1
jax: 0.10.0
libtpu: 0.0.40
codegen_flags: <defaults>
</compile_context>

<pallas_src>
import functools

import jax
import jax.numpy as jnp
from jax.experimental import pallas as pl
from jax.experimental.pallas import tpu as pltpu

BN_EPS = 1e-5  # PyTorch BatchNorm1d/2d default eps


def _round_up(v, m):
    return (v + m - 1) // m * m


def _apply_act(y, activation):
    if activation == "relu":
        return jnp.maximum(y, 0.0)
    if activation == "tanh":
        return jnp.tanh(y)
    return y


# ---------------------------------------------------------------------------
# Fused matmul kernel: (M,K) @ (K,N) + bias, activation.  K untiled.
# ---------------------------------------------------------------------------

def _matmul_kernel(a_ref, b_ref, bias_ref, o_ref, *, activation):
    y = jnp.dot(a_ref[...], b_ref[...], preferred_element_type=jnp.float32)
    y = y + bias_ref[...]
    o_ref[...] = _apply_act(y, activation).astype(o_ref.dtype)


def pallas_matmul(a, b_p, bias_p, n_out, activation="none",
                  out_dtype=jnp.bfloat16):
    """a: (M, K) float. b_p: (Kp, Np) bf16 pre-padded weight.
    bias_p: (1, Np) f32 pre-padded bias. Returns (M, n_out) in out_dtype."""
    M, K = a.shape
    Kp, Np = b_p.shape

    # Tile selection: full K per block; >=2 parallel blocks on M or N.
    tm = 256 if M > 256 else _round_up(max(M, 1), 16)
    tn = 256 if Np % 256 == 0 else 128
    Mp = _round_up(M, tm)

    a = a.astype(jnp.bfloat16)
    if (Mp, Kp) != (M, K):
        a = jnp.pad(a, ((0, Mp - M), (0, Kp - K)))

    grid = (Mp // tm, Np // tn)
    out = pl.pallas_call(
        functools.partial(_matmul_kernel, activation=activation),
        out_shape=jax.ShapeDtypeStruct((Mp, Np), out_dtype),
        grid_spec=pltpu.PrefetchScalarGridSpec(
            num_scalar_prefetch=0,
            grid=grid,
            in_specs=[pl.BlockSpec((tm, Kp), lambda i, j: (i, 0)),
                      pl.BlockSpec((Kp, tn), lambda i, j: (0, j)),
                      pl.BlockSpec((1, tn), lambda i, j: (0, j))],
            out_specs=pl.BlockSpec((tm, tn), lambda i, j: (i, j))),
        compiler_params=pltpu.CompilerParams(
            dimension_semantics=("parallel", "parallel")),
    )(a, b_p, bias_p)
    return out[:M, :n_out]


# ---------------------------------------------------------------------------
# Convolution wrapper: pad (if any) + im2col glue + fused Pallas matmul.
# ---------------------------------------------------------------------------

def conv2d_nhwc(x, layer, pad, activation, out_dtype=jnp.bfloat16):
    """Valid convolution after symmetric spatial padding `pad`. x: (N,H,W,Cin)."""
    kh, kw = layer["kh"], layer["kw"]
    cin, cout = layer["cin"], layer["cout"]
    N, H, W, C = x.shape
    assert C == cin, (C, cin)
    if pad:
        x = jnp.pad(x, ((0, 0), (pad, pad), (pad, pad), (0, 0)))
        H, W = H + 2 * pad, W + 2 * pad
    Ho, Wo = H - kh + 1, W - kw + 1
    if kh == 1 and kw == 1:
        a = x.reshape(N * Ho * Wo, cin)
    else:
        cols = [x[:, ki:ki + Ho, kj:kj + Wo, :]
                for ki in range(kh) for kj in range(kw)]
        a = jnp.concatenate(cols, axis=-1).reshape(N * Ho * Wo, kh * kw * cin)
    out = pallas_matmul(a, layer["w"], layer["b"], cout, activation, out_dtype)
    return out.reshape(N, Ho, Wo, cout)


# ---------------------------------------------------------------------------
# Parameters (deterministic synthetic init; BN folded; padded bf16 weights)
# ---------------------------------------------------------------------------

class ParamGen:
    def __init__(self, seed=0):
        self._key = jax.random.PRNGKey(seed)

    def key(self):
        self._key, k = jax.random.split(self._key)
        return k

    def normal(self, shape, scale=1.0):
        return scale * jax.random.normal(self.key(), shape, jnp.float32)

    def bn(self, c):
        gamma = 1.0 + 0.1 * self.normal((c,))
        beta = 0.05 * self.normal((c,))
        mean = 0.05 * self.normal((c,))
        var = 1.0 + 0.1 * jnp.abs(self.normal((c,)))
        return gamma, beta, mean, var


def _fold_bn(w2d, b, bn):
    """Fold inference BatchNorm over the last (out-channel) axis."""
    gamma, beta, mean, var = bn
    scale = gamma / jnp.sqrt(var + BN_EPS)
    return w2d * scale[None, :], (b - mean) * scale + beta


def _pack(w2d, b):
    """Pad once at init: weight -> bf16 (Kp, Np), bias -> f32 (1, Np)."""
    K, n_out = w2d.shape
    Kp, Np = _round_up(K, 16), _round_up(n_out, 128)
    w_p = jnp.zeros((Kp, Np), jnp.bfloat16).at[:K, :n_out].set(
        w2d.astype(jnp.bfloat16))
    b_p = jnp.zeros((1, Np), jnp.float32).at[0, :n_out].set(b)
    return w_p, b_p


def _linear_layer(g, cin, cout):
    w = g.normal((cin, cout), 1.0 / float(cin) ** 0.5)     # (in, out) layout
    b = 0.01 * g.normal((cout,))
    w, b = _fold_bn(w, b, g.bn(cout))
    w_p, b_p = _pack(w, b)
    return {"w": w_p, "b": b_p, "cin": cin, "cout": cout, "kh": 1, "kw": 1}


def _deconv_layer(g, cin, cout, k):
    # PyTorch ConvTranspose2d weight: (cin, cout, k, k).
    wt = g.normal((cin, cout, k, k), 1.0 / float(cin * k * k) ** 0.5)
    b = 0.01 * g.normal((cout,))
    # Equivalent valid-conv weight on the (k-1)-padded input: flip + transpose.
    wf = jnp.transpose(jnp.flip(wt, axis=(2, 3)), (2, 3, 0, 1))  # (k,k,cin,cout)
    w2d = wf.reshape(k * k * cin, cout)
    w2d, b = _fold_bn(w2d, b, g.bn(cout))
    w_p, b_p = _pack(w2d, b)
    return {"w": w_p, "b": b_p, "cin": cin, "cout": cout, "kh": k, "kw": k}


def _conv_layer(g, cin, cout, k):
    # PyTorch Conv2d weight: (cout, cin, k, k) -> (k, k, cin, cout). No BN.
    wc = g.normal((cout, cin, k, k), 1.0 / float(cin * k * k) ** 0.5)
    b = 0.01 * g.normal((cout,))
    w2d = jnp.transpose(wc, (2, 3, 1, 0)).reshape(k * k * cin, cout)
    w_p, b_p = _pack(w2d, b)
    return {"w": w_p, "b": b_p, "cin": cin, "cout": cout, "kh": k, "kw": k}


DECONV_CHANNELS = [(16, 32), (32, 32), (32, 64), (64, 32),
                   (32, 32), (32, 16), (16, 16)]


def init_params(input_size, output_channels, seed=0):
    g = ParamGen(seed)
    return {
        "fc1": _linear_layer(g, input_size, 2048),
        "fc2": _linear_layer(g, 2048, 4096),
        "deconvs": [_deconv_layer(g, cin, cout, 3)
                    for cin, cout in DECONV_CHANNELS],
        "final": _conv_layer(g, 16, output_channels, 3),
    }


# ---------------------------------------------------------------------------
# Forward pass (mirrors Decoder.forward)
# ---------------------------------------------------------------------------

def decoder_forward(params, x, activation="relu"):
    # x: (N, input_size), like the PyTorch module.
    n_batch = x.shape[0]

    # Linear + BN1d + act  (x2) -> fused matmul kernels.
    fc1 = params["fc1"]
    x = pallas_matmul(x, fc1["w"], fc1["b"], fc1["cout"], activation)
    fc2 = params["fc2"]
    x = pallas_matmul(x, fc2["w"], fc2["b"], fc2["cout"], activation)

    # reshape(-1, 16, 16, 16) is NCHW in PyTorch -> convert to NHWC internally.
    x = x.reshape(n_batch, 16, 16, 16).transpose(0, 2, 3, 1)

    # 7x ConvTranspose2d(k=3, s=1, p=0) + BN2d + act:
    # == valid conv on the (k-1)-padded input with the flipped kernel
    # (flip/fold already baked into the stored weights).
    for layer in params["deconvs"]:
        x = conv2d_nhwc(x, layer, pad=layer["kh"] - 1, activation=activation)

    # Conv2d(16, out_ch, 3) + Identity + Tanh (valid conv), f32 output.
    x = conv2d_nhwc(x, params["final"], pad=0, activation="tanh",
                    out_dtype=jnp.float32)

    # Back to NCHW to match the PyTorch module's output layout.
    return jnp.transpose(x, (0, 3, 1, 2))


if __name__ == "__main__":
    INPUT_SIZE = 64
    OUTPUT_CHANNELS = 3
    BATCH = 2

    key = jax.random.PRNGKey(0)
    x = jax.random.normal(key, (BATCH, INPUT_SIZE), jnp.float32)

    params = init_params(INPUT_SIZE, OUTPUT_CHANNELS, seed=0)
    fwd = jax.jit(lambda inp: decoder_forward(params, inp))

    out = jax.block_until_ready(fwd(x))
    # 16 -> (+2 per transposed conv * 7) -> 30 -> valid 3x3 conv -> 28
    assert out.shape == (BATCH, OUTPUT_CHANNELS, 28, 28), out.shape
    assert bool(jnp.all(jnp.isfinite(out)))
    print("KERNEL_OK")
</pallas_src>

<mosaic_0001>
module attributes {stable_mosaic.version = 11 : i64} {
  func.func @_matmul_kernel(%arg0: i32, %arg1: i32, %arg2: memref<16x64xbf16, #tpu.memory_space<vmem>>, %arg3: memref<64x256xbf16, #tpu.memory_space<vmem>>, %arg4: memref<1x256xf32, #tpu.memory_space<vmem>>, %arg5: memref<16x256xbf16, #tpu.memory_space<vmem>>) attributes {dimension_semantics = [#tpu.dimension_semantics<parallel>, #tpu.dimension_semantics<parallel>], iteration_bounds = array<i64: 1, 8>, scalar_prefetch = 0 : i64, scratch_operands = 0 : i64, tpu.core_type = #tpu.core_type<tc>, window_params = [{transform_indices = @transform_0, window_bounds = array<i64: 16, 64>}, {transform_indices = @transform_1, window_bounds = array<i64: 64, 256>}, {transform_indices = @transform_2, window_bounds = array<i64: 1, 256>}, {transform_indices = @transform_3, window_bounds = array<i64: 16, 256>}]} {
    %c0 = arith.constant 0 : index
    %c0_0 = arith.constant 0 : index
    %0 = vector.load %arg2[%c0, %c0_0] : memref<16x64xbf16, #tpu.memory_space<vmem>>, vector<16x64xbf16>
    %c0_1 = arith.constant 0 : index
    %c0_2 = arith.constant 0 : index
    %1 = vector.load %arg3[%c0_1, %c0_2] : memref<64x256xbf16, #tpu.memory_space<vmem>>, vector<64x256xbf16>
    %cst = arith.constant dense<0.000000e+00> : vector<16x256xf32>
    %2 = tpu.matmul %0, %1, %cst {dimension_numbers = #tpu.dot_dimension_numbers<[1], [0], [0], [1], [0, 0, 1, 1], [], []>} : vector<16x64xbf16>, vector<64x256xbf16>, vector<16x256xf32> -> vector<16x256xf32>
    %c0_3 = arith.constant 0 : index
    %c0_4 = arith.constant 0 : index
    %3 = vector.load %arg4[%c0_3, %c0_4] : memref<1x256xf32, #tpu.memory_space<vmem>>, vector<1x256xf32>
    %4 = vector.broadcast %3 : vector<1x256xf32> to vector<16x256xf32>
    %5 = arith.addf %2, %4 : vector<16x256xf32>
    %cst_5 = arith.constant 0.000000e+00 : f32
    %6 = vector.broadcast %cst_5 : f32 to vector<16x256xf32>
    %7 = arith.maximumf %5, %6 : vector<16x256xf32>
    %8 = arith.truncf %7 : vector<16x256xf32> to vector<16x256xbf16>
    %c0_6 = arith.constant 0 : index
    %c0_7 = arith.constant 0 : index
    %9 = vector.load %arg5[%c0_6, %c0_7] : memref<16x256xbf16, #tpu.memory_space<vmem>>, vector<16x256xbf16>
    tpu.vector_store %arg5[%c0_6, %c0_7], %8 {strides = array<i32>} : memref<16x256xbf16, #tpu.memory_space<vmem>>, vector<16x256xbf16>,
    return
  }
  func.func @transform_0(%arg0: i32, %arg1: i32) -> (i32, i32) {
    %c0_i32 = arith.constant 0 : i32
    %c0_i32_0 = arith.constant 0 : i32
    return %arg0, %c0_i32 : i32, i32
  }
  func.func @transform_1(%arg0: i32, %arg1: i32) -> (i32, i32) {
    %c0_i32 = arith.constant 0 : i32
    %c0_i32_0 = arith.constant 0 : i32
    return %c0_i32, %arg1 : i32, i32
  }
  func.func @transform_2(%arg0: i32, %arg1: i32) -> (i32, i32) {
    %c0_i32 = arith.constant 0 : i32
    %c0_i32_0 = arith.constant 0 : i32
    return %c0_i32, %arg1 : i32, i32
  }
  func.func @transform_3(%arg0: i32, %arg1: i32) -> (i32, i32) {
    %c0_i32 = arith.constant 0 : i32
    return %arg0, %arg1 : i32, i32
  }
}

module attributes {stable_mosaic.version = 11 : i64} {
  func.func @_matmul_kernel(%arg0: i32, %arg1: i32, %arg2: memref<16x2048xbf16, #tpu.memory_space<vmem>>, %arg3: memref<2048x256xbf16, #tpu.memory_space<vmem>>, %arg4: memref<1x256xf32, #tpu.memory_space<vmem>>, %arg5: memref<16x256xbf16, #tpu.memory_space<vmem>>) attributes {dimension_semantics = [#tpu.dimension_semantics<parallel>, #tpu.dimension_semantics<parallel>], iteration_bounds = array<i64: 1, 16>, scalar_prefetch = 0 : i64, scratch_operands = 0 : i64, tpu.core_type = #tpu.core_type<tc>, window_params = [{transform_indices = @transform_0, window_bounds = array<i64: 16, 2048>}, {transform_indices = @transform_1, window_bounds = array<i64: 2048, 256>}, {transform_indices = @transform_2, window_bounds = array<i64: 1, 256>}, {transform_indices = @transform_3, window_bounds = array<i64: 16, 256>}]} {
    %c0 = arith.constant 0 : index
    %c0_0 = arith.constant 0 : index
    %0 = vector.load %arg2[%c0, %c0_0] : memref<16x2048xbf16, #tpu.memory_space<vmem>>, vector<16x2048xbf16>
    %c0_1 = arith.constant 0 : index
    %c0_2 = arith.constant 0 : index
    %1 = vector.load %arg3[%c0_1, %c0_2] : memref<2048x256xbf16, #tpu.memory_space<vmem>>, vector<2048x256xbf16>
    %cst = arith.constant dense<0.000000e+00> : vector<16x256xf32>
    %2 = tpu.matmul %0, %1, %cst {dimension_numbers = #tpu.dot_dimension_numbers<[1], [0], [0], [1], [0, 0, 1, 1], [], []>} : vector<16x2048xbf16>, vector<2048x256xbf16>, vector<16x256xf32> -> vector<16x256xf32>
    %c0_3 = arith.constant 0 : index
    %c0_4 = arith.constant 0 : index
    %3 = vector.load %arg4[%c0_3, %c0_4] : memref<1x256xf32, #tpu.memory_space<vmem>>, vector<1x256xf32>
    %4 = vector.broadcast %3 : vector<1x256xf32> to vector<16x256xf32>
    %5 = arith.addf %2, %4 : vector<16x256xf32>
    %cst_5 = arith.constant 0.000000e+00 : f32
    %6 = vector.broadcast %cst_5 : f32 to vector<16x256xf32>
    %7 = arith.maximumf %5, %6 : vector<16x256xf32>
    %8 = arith.truncf %7 : vector<16x256xf32> to vector<16x256xbf16>
    %c0_6 = arith.constant 0 : index
    %c0_7 = arith.constant 0 : index
    %9 = vector.load %arg5[%c0_6, %c0_7] : memref<16x256xbf16, #tpu.memory_space<vmem>>, vector<16x256xbf16>
    tpu.vector_store %arg5[%c0_6, %c0_7], %8 {strides = array<i32>} : memref<16x256xbf16, #tpu.memory_space<vmem>>, vector<16x256xbf16>,
    return
  }
  func.func @transform_0(%arg0: i32, %arg1: i32) -> (i32, i32) {
    %c0_i32 = arith.constant 0 : i32
    %c0_i32_0 = arith.constant 0 : i32
    return %arg0, %c0_i32 : i32, i32
  }
  func.func @transform_1(%arg0: i32, %arg1: i32) -> (i32, i32) {
    %c0_i32 = arith.constant 0 : i32
    %c0_i32_0 = arith.constant 0 : i32
    return %c0_i32, %arg1 : i32, i32
  }
  func.func @transform_2(%arg0: i32, %arg1: i32) -> (i32, i32) {
    %c0_i32 = arith.constant 0 : i32
    %c0_i32_0 = arith.constant 0 : i32
    return %c0_i32, %arg1 : i32, i32
  }
  func.func @transform_3(%arg0: i32, %arg1: i32) -> (i32, i32) {
    %c0_i32 = arith.constant 0 : i32
    return %arg0, %arg1 : i32, i32
  }
}

module attributes {stable_mosaic.version = 11 : i64} {
  func.func @_matmul_kernel(%arg0: i32, %arg1: i32, %arg2: memref<256x144xbf16, #tpu.memory_space<vmem>>, %arg3: memref<144x128xbf16, #tpu.memory_space<vmem>>, %arg4: memref<1x128xf32, #tpu.memory_space<vmem>>, %arg5: memref<256x128xbf16, #tpu.memory_space<vmem>>) attributes {dimension_semantics = [#tpu.dimension_semantics<parallel>, #tpu.dimension_semantics<parallel>], iteration_bounds = array<i64: 3, 1>, scalar_prefetch = 0 : i64, scratch_operands = 0 : i64, tpu.core_type = #tpu.core_type<tc>, window_params = [{transform_indices = @transform_0, window_bounds = array<i64: 256, 144>}, {transform_indices = @transform_1, window_bounds = array<i64: 144, 128>}, {transform_indices = @transform_2, window_bounds = array<i64: 1, 128>}, {transform_indices = @transform_3, window_bounds = array<i64: 256, 128>}]} {
    %c0 = arith.constant 0 : index
    %c0_0 = arith.constant 0 : index
    %0 = vector.load %arg2[%c0, %c0_0] : memref<256x144xbf16, #tpu.memory_space<vmem>>, vector<256x144xbf16>
    %c0_1 = arith.constant 0 : index
    %c0_2 = arith.constant 0 : index
    %1 = vector.load %arg3[%c0_1, %c0_2] : memref<144x128xbf16, #tpu.memory_space<vmem>>, vector<144x128xbf16>
    %cst = arith.constant dense<0.000000e+00> : vector<256x128xf32>
    %2 = tpu.matmul %0, %1, %cst {dimension_numbers = #tpu.dot_dimension_numbers<[1], [0], [0], [1], [0, 0, 1, 1], [], []>} : vector<256x144xbf16>, vector<144x128xbf16>, vector<256x128xf32> -> vector<256x128xf32>
    %c0_3 = arith.constant 0 : index
    %c0_4 = arith.constant 0 : index
    %3 = vector.load %arg4[%c0_3, %c0_4] : memref<1x128xf32, #tpu.memory_space<vmem>>, vector<1x128xf32>
    %4 = vector.broadcast %3 : vector<1x128xf32> to vector<256x128xf32>
    %5 = arith.addf %2, %4 : vector<256x128xf32>
    %cst_5 = arith.constant 0.000000e+00 : f32
    %6 = vector.broadcast %cst_5 : f32 to vector<256x128xf32>
    %7 = arith.maximumf %5, %6 : vector<256x128xf32>
    %8 = arith.truncf %7 : vector<256x128xf32> to vector<256x128xbf16>
    %c0_6 = arith.constant 0 : index
    %c0_7 = arith.constant 0 : index
    %9 = vector.load %arg5[%c0_6, %c0_7] : memref<256x128xbf16, #tpu.memory_space<vmem>>, vector<256x128xbf16>
    tpu.vector_store %arg5[%c0_6, %c0_7], %8 {strides = array<i32>} : memref<256x128xbf16, #tpu.memory_space<vmem>>, vector<256x128xbf16>,
    return
  }
  func.func @transform_0(%arg0: i32, %arg1: i32) -> (i32, i32) {
    %c0_i32 = arith.constant 0 : i32
    %c0_i32_0 = arith.constant 0 : i32
    return %arg0, %c0_i32 : i32, i32
  }
  func.func @transform_1(%arg0: i32, %arg1: i32) -> (i32, i32) {
    %c0_i32 = arith.constant 0 : i32
    %c0_i32_0 = arith.constant 0 : i32
    return %c0_i32, %arg1 : i32, i32
  }
  func.func @transform_2(%arg0: i32, %arg1: i32) -> (i32, i32) {
    %c0_i32 = arith.constant 0 : i32
    %c0_i32_0 = arith.constant 0 : i32
    return %c0_i32, %arg1 : i32, i32
  }
  func.func @transform_3(%arg0: i32, %arg1: i32) -> (i32, i32) {
    %c0_i32 = arith.constant 0 : i32
    return %arg0, %arg1 : i32, i32
  }
}

module attributes {stable_mosaic.version = 11 : i64} {
  func.func @_matmul_kernel(%arg0: i32, %arg1: i32, %arg2: memref<256x288xbf16, #tpu.memory_space<vmem>>, %arg3: memref<288x128xbf16, #tpu.memory_space<vmem>>, %arg4: memref<1x128xf32, #tpu.memory_space<vmem>>, %arg5: memref<256x128xbf16, #tpu.memory_space<vmem>>) attributes {dimension_semantics = [#tpu.dimension_semantics<parallel>, #tpu.dimension_semantics<parallel>], iteration_bounds = array<i64: 4, 1>, scalar_prefetch = 0 : i64, scratch_operands = 0 : i64, tpu.core_type = #tpu.core_type<tc>, window_params = [{transform_indices = @transform_0, window_bounds = array<i64: 256, 288>}, {transform_indices = @transform_1, window_bounds = array<i64: 288, 128>}, {transform_indices = @transform_2, window_bounds = array<i64: 1, 128>}, {transform_indices = @transform_3, window_bounds = array<i64: 256, 128>}]} {
    %c0 = arith.constant 0 : index
    %c0_0 = arith.constant 0 : index
    %0 = vector.load %arg2[%c0, %c0_0] : memref<256x288xbf16, #tpu.memory_space<vmem>>, vector<256x288xbf16>
    %c0_1 = arith.constant 0 : index
    %c0_2 = arith.constant 0 : index
    %1 = vector.load %arg3[%c0_1, %c0_2] : memref<288x128xbf16, #tpu.memory_space<vmem>>, vector<288x128xbf16>
    %cst = arith.constant dense<0.000000e+00> : vector<256x128xf32>
    %2 = tpu.matmul %0, %1, %cst {dimension_numbers = #tpu.dot_dimension_numbers<[1], [0], [0], [1], [0, 0, 1, 1], [], []>} : vector<256x288xbf16>, vector<288x128xbf16>, vector<256x128xf32> -> vector<256x128xf32>
    %c0_3 = arith.constant 0 : index
    %c0_4 = arith.constant 0 : index
    %3 = vector.load %arg4[%c0_3, %c0_4] : memref<1x128xf32, #tpu.memory_space<vmem>>, vector<1x128xf32>
    %4 = vector.broadcast %3 : vector<1x128xf32> to vector<256x128xf32>
    %5 = arith.addf %2, %4 : vector<256x128xf32>
    %cst_5 = arith.constant 0.000000e+00 : f32
    %6 = vector.broadcast %cst_5 : f32 to vector<256x128xf32>
    %7 = arith.maximumf %5, %6 : vector<256x128xf32>
    %8 = arith.truncf %7 : vector<256x128xf32> to vector<256x128xbf16>
    %c0_6 = arith.constant 0 : index
    %c0_7 = arith.constant 0 : index
    %9 = vector.load %arg5[%c0_6, %c0_7] : memref<256x128xbf16, #tpu.memory_space<vmem>>, vector<256x128xbf16>
    tpu.vector_store %arg5[%c0_6, %c0_7], %8 {strides = array<i32>} : memref<256x128xbf16, #tpu.memory_space<vmem>>, vector<256x128xbf16>,
    return
  }
  func.func @transform_0(%arg0: i32, %arg1: i32) -> (i32, i32) {
    %c0_i32 = arith.constant 0 : i32
    %c0_i32_0 = arith.constant 0 : i32
    return %arg0, %c0_i32 : i32, i32
  }
  func.func @transform_1(%arg0: i32, %arg1: i32) -> (i32, i32) {
    %c0_i32 = arith.constant 0 : i32
    %c0_i32_0 = arith.constant 0 : i32
    return %c0_i32, %arg1 : i32, i32
  }
  func.func @transform_2(%arg0: i32, %arg1: i32) -> (i32, i32) {
    %c0_i32 = arith.constant 0 : i32
    %c0_i32_0 = arith.constant 0 : i32
    return %c0_i32, %arg1 : i32, i32
  }
  func.func @transform_3(%arg0: i32, %arg1: i32) -> (i32, i32) {
    %c0_i32 = arith.constant 0 : i32
    return %arg0, %arg1 : i32, i32
  }
}

module attributes {stable_mosaic.version = 11 : i64} {
  func.func @_matmul_kernel(%arg0: i32, %arg1: i32, %arg2: memref<256x576xbf16, #tpu.memory_space<vmem>>, %arg3: memref<576x128xbf16, #tpu.memory_space<vmem>>, %arg4: memref<1x128xf32, #tpu.memory_space<vmem>>, %arg5: memref<256x128xbf16, #tpu.memory_space<vmem>>) attributes {dimension_semantics = [#tpu.dimension_semantics<parallel>, #tpu.dimension_semantics<parallel>], iteration_bounds = array<i64: 5, 1>, scalar_prefetch = 0 : i64, scratch_operands = 0 : i64, tpu.core_type = #tpu.core_type<tc>, window_params = [{transform_indices = @transform_0, window_bounds = array<i64: 256, 576>}, {transform_indices = @transform_1, window_bounds = array<i64: 576, 128>}, {transform_indices = @transform_2, window_bounds = array<i64: 1, 128>}, {transform_indices = @transform_3, window_bounds = array<i64: 256, 128>}]} {
    %c0 = arith.constant 0 : index
    %c0_0 = arith.constant 0 : index
    %0 = vector.load %arg2[%c0, %c0_0] : memref<256x576xbf16, #tpu.memory_space<vmem>>, vector<256x576xbf16>
    %c0_1 = arith.constant 0 : index
    %c0_2 = arith.constant 0 : index
    %1 = vector.load %arg3[%c0_1, %c0_2] : memref<576x128xbf16, #tpu.memory_space<vmem>>, vector<576x128xbf16>
    %cst = arith.constant dense<0.000000e+00> : vector<256x128xf32>
    %2 = tpu.matmul %0, %1, %cst {dimension_numbers = #tpu.dot_dimension_numbers<[1], [0], [0], [1], [0, 0, 1, 1], [], []>} : vector<256x576xbf16>, vector<576x128xbf16>, vector<256x128xf32> -> vector<256x128xf32>
    %c0_3 = arith.constant 0 : index
    %c0_4 = arith.constant 0 : index
    %3 = vector.load %arg4[%c0_3, %c0_4] : memref<1x128xf32, #tpu.memory_space<vmem>>, vector<1x128xf32>
    %4 = vector.broadcast %3 : vector<1x128xf32> to vector<256x128xf32>
    %5 = arith.addf %2, %4 : vector<256x128xf32>
    %cst_5 = arith.constant 0.000000e+00 : f32
    %6 = vector.broadcast %cst_5 : f32 to vector<256x128xf32>
    %7 = arith.maximumf %5, %6 : vector<256x128xf32>
    %8 = arith.truncf %7 : vector<256x128xf32> to vector<256x128xbf16>
    %c0_6 = arith.constant 0 : index
    %c0_7 = arith.constant 0 : index
    %9 = vector.load %arg5[%c0_6, %c0_7] : memref<256x128xbf16, #tpu.memory_space<vmem>>, vector<256x128xbf16>
    tpu.vector_store %arg5[%c0_6, %c0_7], %8 {strides = array<i32>} : memref<256x128xbf16, #tpu.memory_space<vmem>>, vector<256x128xbf16>,
    return
  }
  func.func @transform_0(%arg0: i32, %arg1: i32) -> (i32, i32) {
    %c0_i32 = arith.constant 0 : i32
    %c0_i32_0 = arith.constant 0 : i32
    return %arg0, %c0_i32 : i32, i32
  }
  func.func @transform_1(%arg0: i32, %arg1: i32) -> (i32, i32) {
    %c0_i32 = arith.constant 0 : i32
    %c0_i32_0 = arith.constant 0 : i32
    return %c0_i32, %arg1 : i32, i32
  }
  func.func @transform_2(%arg0: i32, %arg1: i32) -> (i32, i32) {
    %c0_i32 = arith.constant 0 : i32
    %c0_i32_0 = arith.constant 0 : i32
    return %c0_i32, %arg1 : i32, i32
  }
  func.func @transform_3(%arg0: i32, %arg1: i32) -> (i32, i32) {
    %c0_i32 = arith.constant 0 : i32
    return %arg0, %arg1 : i32, i32
  }
}

module attributes {stable_mosaic.version = 11 : i64} {
  func.func @_matmul_kernel(%arg0: i32, %arg1: i32, %arg2: memref<256x288xbf16, #tpu.memory_space<vmem>>, %arg3: memref<288x128xbf16, #tpu.memory_space<vmem>>, %arg4: memref<1x128xf32, #tpu.memory_space<vmem>>, %arg5: memref<256x128xbf16, #tpu.memory_space<vmem>>) attributes {dimension_semantics = [#tpu.dimension_semantics<parallel>, #tpu.dimension_semantics<parallel>], iteration_bounds = array<i64: 6, 1>, scalar_prefetch = 0 : i64, scratch_operands = 0 : i64, tpu.core_type = #tpu.core_type<tc>, window_params = [{transform_indices = @transform_0, window_bounds = array<i64: 256, 288>}, {transform_indices = @transform_1, window_bounds = array<i64: 288, 128>}, {transform_indices = @transform_2, window_bounds = array<i64: 1, 128>}, {transform_indices = @transform_3, window_bounds = array<i64: 256, 128>}]} {
    %c0 = arith.constant 0 : index
    %c0_0 = arith.constant 0 : index
    %0 = vector.load %arg2[%c0, %c0_0] : memref<256x288xbf16, #tpu.memory_space<vmem>>, vector<256x288xbf16>
    %c0_1 = arith.constant 0 : index
    %c0_2 = arith.constant 0 : index
    %1 = vector.load %arg3[%c0_1, %c0_2] : memref<288x128xbf16, #tpu.memory_space<vmem>>, vector<288x128xbf16>
    %cst = arith.constant dense<0.000000e+00> : vector<256x128xf32>
    %2 = tpu.matmul %0, %1, %cst {dimension_numbers = #tpu.dot_dimension_numbers<[1], [0], [0], [1], [0, 0, 1, 1], [], []>} : vector<256x288xbf16>, vector<288x128xbf16>, vector<256x128xf32> -> vector<256x128xf32>
    %c0_3 = arith.constant 0 : index
    %c0_4 = arith.constant 0 : index
    %3 = vector.load %arg4[%c0_3, %c0_4] : memref<1x128xf32, #tpu.memory_space<vmem>>, vector<1x128xf32>
    %4 = vector.broadcast %3 : vector<1x128xf32> to vector<256x128xf32>
    %5 = arith.addf %2, %4 : vector<256x128xf32>
    %cst_5 = arith.constant 0.000000e+00 : f32
    %6 = vector.broadcast %cst_5 : f32 to vector<256x128xf32>
    %7 = arith.maximumf %5, %6 : vector<256x128xf32>
    %8 = arith.truncf %7 : vector<256x128xf32> to vector<256x128xbf16>
    %c0_6 = arith.constant 0 : index
    %c0_7 = arith.constant 0 : index
    %9 = vector.load %arg5[%c0_6, %c0_7] : memref<256x128xbf16, #tpu.memory_space<vmem>>, vector<256x128xbf16>
    tpu.vector_store %arg5[%c0_6, %c0_7], %8 {strides = array<i32>} : memref<256x128xbf16, #tpu.memory_space<vmem>>, vector<256x128xbf16>,
    return
  }
  func.func @transform_0(%arg0: i32, %arg1: i32) -> (i32, i32) {
    %c0_i32 = arith.constant 0 : i32
    %c0_i32_0 = arith.constant 0 : i32
    return %arg0, %c0_i32 : i32, i32
  }
  func.func @transform_1(%arg0: i32, %arg1: i32) -> (i32, i32) {
    %c0_i32 = arith.constant 0 : i32
    %c0_i32_0 = arith.constant 0 : i32
    return %c0_i32, %arg1 : i32, i32
  }
  func.func @transform_2(%arg0: i32, %arg1: i32) -> (i32, i32) {
    %c0_i32 = arith.constant 0 : i32
    %c0_i32_0 = arith.constant 0 : i32
    return %c0_i32, %arg1 : i32, i32
  }
  func.func @transform_3(%arg0: i32, %arg1: i32) -> (i32, i32) {
    %c0_i32 = arith.constant 0 : i32
    return %arg0, %arg1 : i32, i32
  }
}

module attributes {stable_mosaic.version = 11 : i64} {
  func.func @_matmul_kernel(%arg0: i32, %arg1: i32, %arg2: memref<256x288xbf16, #tpu.memory_space<vmem>>, %arg3: memref<288x128xbf16, #tpu.memory_space<vmem>>, %arg4: memref<1x128xf32, #tpu.memory_space<vmem>>, %arg5: memref<256x128xbf16, #tpu.memory_space<vmem>>) attributes {dimension_semantics = [#tpu.dimension_semantics<parallel>, #tpu.dimension_semantics<parallel>], iteration_bounds = array<i64: 7, 1>, scalar_prefetch = 0 : i64, scratch_operands = 0 : i64, tpu.core_type = #tpu.core_type<tc>, window_params = [{transform_indices = @transform_0, window_bounds = array<i64: 256, 288>}, {transform_indices = @transform_1, window_bounds = array<i64: 288, 128>}, {transform_indices = @transform_2, window_bounds = array<i64: 1, 128>}, {transform_indices = @transform_3, window_bounds = array<i64: 256, 128>}]} {
    %c0 = arith.constant 0 : index
    %c0_0 = arith.constant 0 : index
    %0 = vector.load %arg2[%c0, %c0_0] : memref<256x288xbf16, #tpu.memory_space<vmem>>, vector<256x288xbf16>
    %c0_1 = arith.constant 0 : index
    %c0_2 = arith.constant 0 : index
    %1 = vector.load %arg3[%c0_1, %c0_2] : memref<288x128xbf16, #tpu.memory_space<vmem>>, vector<288x128xbf16>
    %cst = arith.constant dense<0.000000e+00> : vector<256x128xf32>
    %2 = tpu.matmul %0, %1, %cst {dimension_numbers = #tpu.dot_dimension_numbers<[1], [0], [0], [1], [0, 0, 1, 1], [], []>} : vector<256x288xbf16>, vector<288x128xbf16>, vector<256x128xf32> -> vector<256x128xf32>
    %c0_3 = arith.constant 0 : index
    %c0_4 = arith.constant 0 : index
    %3 = vector.load %arg4[%c0_3, %c0_4] : memref<1x128xf32, #tpu.memory_space<vmem>>, vector<1x128xf32>
    %4 = vector.broadcast %3 : vector<1x128xf32> to vector<256x128xf32>
    %5 = arith.addf %2, %4 : vector<256x128xf32>
    %cst_5 = arith.constant 0.000000e+00 : f32
    %6 = vector.broadcast %cst_5 : f32 to vector<256x128xf32>
    %7 = arith.maximumf %5, %6 : vector<256x128xf32>
    %8 = arith.truncf %7 : vector<256x128xf32> to vector<256x128xbf16>
    %c0_6 = arith.constant 0 : index
    %c0_7 = arith.constant 0 : index
    %9 = vector.load %arg5[%c0_6, %c0_7] : memref<256x128xbf16, #tpu.memory_space<vmem>>, vector<256x128xbf16>
    tpu.vector_store %arg5[%c0_6, %c0_7], %8 {strides = array<i32>} : memref<256x128xbf16, #tpu.memory_space<vmem>>, vector<256x128xbf16>,
    return
  }
  func.func @transform_0(%arg0: i32, %arg1: i32) -> (i32, i32) {
    %c0_i32 = arith.constant 0 : i32
    %c0_i32_0 = arith.constant 0 : i32
    return %arg0, %c0_i32 : i32, i32
  }
  func.func @transform_1(%arg0: i32, %arg1: i32) -> (i32, i32) {
    %c0_i32 = arith.constant 0 : i32
    %c0_i32_0 = arith.constant 0 : i32
    return %c0_i32, %arg1 : i32, i32
  }
  func.func @transform_2(%arg0: i32, %arg1: i32) -> (i32, i32) {
    %c0_i32 = arith.constant 0 : i32
    %c0_i32_0 = arith.constant 0 : i32
    return %c0_i32, %arg1 : i32, i32
  }
  func.func @transform_3(%arg0: i32, %arg1: i32) -> (i32, i32) {
    %c0_i32 = arith.constant 0 : i32
    return %arg0, %arg1 : i32, i32
  }
}

module attributes {stable_mosaic.version = 11 : i64} {
  func.func @_matmul_kernel(%arg0: i32, %arg1: i32, %arg2: memref<256x144xbf16, #tpu.memory_space<vmem>>, %arg3: memref<144x128xbf16, #tpu.memory_space<vmem>>, %arg4: memref<1x128xf32, #tpu.memory_space<vmem>>, %arg5: memref<256x128xbf16, #tpu.memory_space<vmem>>) attributes {dimension_semantics = [#tpu.dimension_semantics<parallel>, #tpu.dimension_semantics<parallel>], iteration_bounds = array<i64: 8, 1>, scalar_prefetch = 0 : i64, scratch_operands = 0 : i64, tpu.core_type = #tpu.core_type<tc>, window_params = [{transform_indices = @transform_0, window_bounds = array<i64: 256, 144>}, {transform_indices = @transform_1, window_bounds = array<i64: 144, 128>}, {transform_indices = @transform_2, window_bounds = array<i64: 1, 128>}, {transform_indices = @transform_3, window_bounds = array<i64: 256, 128>}]} {
    %c0 = arith.constant 0 : index
    %c0_0 = arith.constant 0 : index
    %0 = vector.load %arg2[%c0, %c0_0] : memref<256x144xbf16, #tpu.memory_space<vmem>>, vector<256x144xbf16>
    %c0_1 = arith.constant 0 : index
    %c0_2 = arith.constant 0 : index
    %1 = vector.load %arg3[%c0_1, %c0_2] : memref<144x128xbf16, #tpu.memory_space<vmem>>, vector<144x128xbf16>
    %cst = arith.constant dense<0.000000e+00> : vector<256x128xf32>
    %2 = tpu.matmul %0, %1, %cst {dimension_numbers = #tpu.dot_dimension_numbers<[1], [0], [0], [1], [0, 0, 1, 1], [], []>} : vector<256x144xbf16>, vector<144x128xbf16>, vector<256x128xf32> -> vector<256x128xf32>
    %c0_3 = arith.constant 0 : index
    %c0_4 = arith.constant 0 : index
    %3 = vector.load %arg4[%c0_3, %c0_4] : memref<1x128xf32, #tpu.memory_space<vmem>>, vector<1x128xf32>
    %4 = vector.broadcast %3 : vector<1x128xf32> to vector<256x128xf32>
    %5 = arith.addf %2, %4 : vector<256x128xf32>
    %cst_5 = arith.constant 0.000000e+00 : f32
    %6 = vector.broadcast %cst_5 : f32 to vector<256x128xf32>
    %7 = arith.maximumf %5, %6 : vector<256x128xf32>
    %8 = arith.truncf %7 : vector<256x128xf32> to vector<256x128xbf16>
    %c0_6 = arith.constant 0 : index
    %c0_7 = arith.constant 0 : index
    %9 = vector.load %arg5[%c0_6, %c0_7] : memref<256x128xbf16, #tpu.memory_space<vmem>>, vector<256x128xbf16>
    tpu.vector_store %arg5[%c0_6, %c0_7], %8 {strides = array<i32>} : memref<256x128xbf16, #tpu.memory_space<vmem>>, vector<256x128xbf16>,
    return
  }
  func.func @transform_0(%arg0: i32, %arg1: i32) -> (i32, i32) {
    %c0_i32 = arith.constant 0 : i32
    %c0_i32_0 = arith.constant 0 : i32
    return %arg0, %c0_i32 : i32, i32
  }
  func.func @transform_1(%arg0: i32, %arg1: i32) -> (i32, i32) {
    %c0_i32 = arith.constant 0 : i32
    %c0_i32_0 = arith.constant 0 : i32
    return %c0_i32, %arg1 : i32, i32
  }
  func.func @transform_2(%arg0: i32, %arg1: i32) -> (i32, i32) {
    %c0_i32 = arith.constant 0 : i32
    %c0_i32_0 = arith.constant 0 : i32
    return %c0_i32, %arg1 : i32, i32
  }
  func.func @transform_3(%arg0: i32, %arg1: i32) -> (i32, i32) {
    %c0_i32 = arith.constant 0 : i32
    return %arg0, %arg1 : i32, i32
  }
}

module attributes {stable_mosaic.version = 11 : i64} {
  func.func @_matmul_kernel(%arg0: i32, %arg1: i32, %arg2: memref<256x144xbf16, #tpu.memory_space<vmem>>, %arg3: memref<144x128xbf16, #tpu.memory_space<vmem>>, %arg4: memref<1x128xf32, #tpu.memory_space<vmem>>, %arg5: memref<256x128xf32, #tpu.memory_space<vmem>>) attributes {dimension_semantics = [#tpu.dimension_semantics<parallel>, #tpu.dimension_semantics<parallel>], iteration_bounds = array<i64: 7, 1>, scalar_prefetch = 0 : i64, scratch_operands = 0 : i64, tpu.core_type = #tpu.core_type<tc>, window_params = [{transform_indices = @transform_0, window_bounds = array<i64: 256, 144>}, {transform_indices = @transform_1, window_bounds = array<i64: 144, 128>}, {transform_indices = @transform_2, window_bounds = array<i64: 1, 128>}, {transform_indices = @transform_3, window_bounds = array<i64: 256, 128>}]} {
    %c0 = arith.constant 0 : index
    %c0_0 = arith.constant 0 : index
    %0 = vector.load %arg2[%c0, %c0_0] : memref<256x144xbf16, #tpu.memory_space<vmem>>, vector<256x144xbf16>
    %c0_1 = arith.constant 0 : index
    %c0_2 = arith.constant 0 : index
    %1 = vector.load %arg3[%c0_1, %c0_2] : memref<144x128xbf16, #tpu.memory_space<vmem>>, vector<144x128xbf16>
    %cst = arith.constant dense<0.000000e+00> : vector<256x128xf32>
    %2 = tpu.matmul %0, %1, %cst {dimension_numbers = #tpu.dot_dimension_numbers<[1], [0], [0], [1], [0, 0, 1, 1], [], []>} : vector<256x144xbf16>, vector<144x128xbf16>, vector<256x128xf32> -> vector<256x128xf32>
    %c0_3 = arith.constant 0 : index
    %c0_4 = arith.constant 0 : index
    %3 = vector.load %arg4[%c0_3, %c0_4] : memref<1x128xf32, #tpu.memory_space<vmem>>, vector<1x128xf32>
    %4 = vector.broadcast %3 : vector<1x128xf32> to vector<256x128xf32>
    %5 = arith.addf %2, %4 : vector<256x128xf32>
    %6 = math.tanh %5 : vector<256x128xf32>
    %c0_5 = arith.constant 0 : index
    %c0_6 = arith.constant 0 : index
    %7 = vector.load %arg5[%c0_5, %c0_6] : memref<256x128xf32, #tpu.memory_space<vmem>>, vector<256x128xf32>
    tpu.vector_store %arg5[%c0_5, %c0_6], %6 {strides = array<i32>} : memref<256x128xf32, #tpu.memory_space<vmem>>, vector<256x128xf32>,
    return
  }
  func.func @transform_0(%arg0: i32, %arg1: i32) -> (i32, i32) {
    %c0_i32 = arith.constant 0 : i32
    %c0_i32_0 = arith.constant 0 : i32
    return %arg0, %c0_i32 : i32, i32
  }
  func.func @transform_1(%arg0: i32, %arg1: i32) -> (i32, i32) {
    %c0_i32 = arith.constant 0 : i32
    %c0_i32_0 = arith.constant 0 : i32
    return %c0_i32, %arg1 : i32, i32
  }
  func.func @transform_2(%arg0: i32, %arg1: i32) -> (i32, i32) {
    %c0_i32 = arith.constant 0 : i32
    %c0_i32_0 = arith.constant 0 : i32
    return %c0_i32, %arg1 : i32, i32
  }
  func.func @transform_3(%arg0: i32, %arg1: i32) -> (i32, i32) {
    %c0_i32 = arith.constant 0 : i32
    return %arg0, %arg1 : i32, i32
  }
}

</mosaic_0001>

<bundles_post_ra>
// kernel: _lambda_.10
= control target key start
LH: loop header
LB: loop body
LE: loop exit
PB: predicated region body
PF: predicated region fallthrough
CT: control target
= control target key end

     0   :  { %8 = vsyncpa [#allocation4], 0  ;;  %s923_s0 = inlined_call_operand.vmem [shape: bf16[16,64], index: 0, kind: input, shape index: {}]   ;;  %s924_s1 = inlined_call_operand.vmem [shape: bf16[64,2048], index: 1, kind: input, shape index: {}]   ;;  %s925_s2 = inlined_call_operand.hbm [shape: f32[1,2048], index: 2, kind: input, shape index: {}]   ;;  %s926_s3 = inlined_call_operand.vmem [shape: bf16[16,2048], index: 3, kind: output, shape index: {}]  }
   0x1   :  { %10 = vsyncpa [#allocation4 + $0x1], 0  ;;  %s797_s12 = smov 0   ;;  %s799_s13 = smov 0  }
   0x2   :  { %s801_s14 = smov 0   ;;  %s803_s15 = smov 0  }
   0x3   :  { %s805_s16 = smov 0   ;;  %s807_s17 = smov 0  }
   0x4 LB: > { %s594_s18 = sadd.s32 4294967295, %s773_s17   ;;  %s25_s19 = sadd.s32 1, %s769_s16  ;;  %s773_s17 = sphi %s807_s17, %s16_s17   ;;  %s769_s16 = sphi %s805_s16, %s937_s16   ;;  %s765_s15 = sphi %s803_s15, %s936_s15   ;;  %s761_s14 = sphi %s801_s14, %s935_s14   ;;  %s757_s13 = sphi %s799_s13, %s934_s13   ;;  %s753_s12 = sphi %s797_s12, %s933_s12  }
   0x5   : > { %p26_p0 = scmp.ge.s32.totalorder %s25_s19, 8  ;;  %s61_s20 = sadd.s32 1, %s761_s14 }
   0x6   : > { %p68_p1 = scmp.ne.s32.totalorder %s761_s14, %s757_s13  ;;  %p69_p2 = scmp.eq.s32.totalorder %s773_s17, 0 }
   0x7   : > { %s939_s19 = smov (%p26_p0, %s25_s19), 0  ;;  %p100_p4 = scmp.ne.s32.totalorder %s757_s13, %s753_s12 }
   0x8   : > { %p833_p3 = por %p69_p2, %p68_p1  ;;  %s58_s22 = ssub.s32 %s769_s16, %s939_s19 }
   0x9   : > { %p101_p5 = scmp.eq.s32.totalorder %s594_s18, 0  ;;  %p59_p6 = scmp.eq.s32.totalorder %s58_s22, 0 }
   0xa   : > { %p126_p7 = scmp.eq.s32.totalorder %s594_s18, 7  ;;  %p598_p10 = scmp.ge.s32.totalorder %s773_s17, 8 }
   0xb   : > { %p840_p8 = por %p101_p5, %p100_p4 }
   0xc   : > { %s845_s24 = scalar_select %p59_p6, %s761_s14, %s61_s20  }
   0xd   : > { %s929_s23 = scalar_select %p840_p8, 1, 0 }
   0xe   : > { %p847_p9 = por %p126_p7, %p68_p1  ;;  %157 = sbr.rel (%p598_p10) target bundleno = 58 (0x3a), region = 20 }
  0x10   : > { %s930_s25 = scalar_select %p847_p9, 1, 0 }
  0x15   : > { %160 = sbr.rel (!%p833_p3) target bundleno = 33 (0x21), region = 24  ;;  %s162_s26 = sand.u32 (%p833_p3), 1, %s761_s14  }
  0x16   : > { %s626_s27 = sshll.u32 (%p833_p3), %s769_s16, 3  ;;  %s599_s28 = sshll.u32 (%p833_p3), %s162_s26, 6 }
  0x17   : > { %s167_s4 = scalar_lea.vmem (%p833_p3), %s924_s1, %s626_s27  ;;  %s164_s5 = scalar_lea.vmem (%p833_p3), [#allocation2], %s599_s28 }
  0x18   : > { %v209_v0 = vld [vmem:[%s167_s4] sm:$0xff] (%p833_p3) }
  0x19   : > { %v211_v1 = vld [vmem:[%s167_s4 + $0x40] sm:$0xff] (%p833_p3)  ;;  %210 = vst [vmem:[%s164_s5] sm:$0xff] (%p833_p3), %v209_v0 }
  0x1a   : > { %v213_v2 = vld [vmem:[%s167_s4 + $0x80] sm:$0xff] (%p833_p3)  ;;  %212 = vst [vmem:[%s164_s5 + $0x8] sm:$0xff] (%p833_p3), %v211_v1 }
  0x1b   : > { %214 = vst [vmem:[%s164_s5 + $0x10] sm:$0xff] (%p833_p3), %v213_v2  ;;  %v215_v3 = vld [vmem:[%s167_s4 + $0xc0] sm:$0xff] (%p833_p3) }
  0x1c   : > { %v217_v4 = vld [vmem:[%s167_s4 + $0x100] sm:$0xff]  ;;  %216 = vst [vmem:[%s164_s5 + $0x18] sm:$0xff] %v215_v3 }
  0x1d   : > { %v219_v5 = vld [vmem:[%s167_s4 + $0x140] sm:$0xff]  ;;  %218 = vst [vmem:[%s164_s5 + $0x20] sm:$0xff] %v217_v4 }
  0x1e   : > { %220 = vst [vmem:[%s164_s5 + $0x28] sm:$0xff] %v219_v5  ;;  %v221_v6 = vld [vmem:[%s167_s4 + $0x180] sm:$0xff] }
  0x1f   : > { %v223_v7 = vld [vmem:[%s167_s4 + $0x1c0] sm:$0xff]  ;;  %222 = vst [vmem:[%s164_s5 + $0x30] sm:$0xff] %v221_v6 }
  0x20   : > { %224 = vst [vmem:[%s164_s5 + $0x38] sm:$0xff] %v223_v7 }
  0x21 PF: > { %s231_s6 = sand.u32 1, %s761_s14   ;;  %s627_s7 = sshll.u32 %s769_s16, 5 }
  0x22   : > { %s602_s8 = sshll.u32 %s231_s6, 1  ;;  %s864_s11 = scalar_lea.hbm %s925_s2, %s627_s7 }
  0x23   : > { %s235_s12 = scalar_lea.vmem [#allocation3], %s602_s8  ;;  %s232_s20 = scalar_lea.sflag [#allocation4], %s231_s6 }
  0x24   : > { %s243_s18 = sshll.u32 %s235_s12, 4  ;;  %s695_s22 = scalar_lea.hbm %s864_s11, 32  ;;  %s244_s18 = int_to_ptr.vmem [resolvable:$true] %s243_s18 }
  0x25   : > { %p696_p11 = scmp.ne.s32.totalorder %s864_s11, %s695_s22  ;;  %s699_s28 = scalar_lea.hbm %s925_s2, 256 }
  0x26   : > { %p700_p0 = scmp.lt.u32.totalorder %s864_s11, %s925_s2  ;;  %p701_p1 = scmp.lt.u32.totalorder %s699_s28, %s695_s22 }
  0x27   : > { %p697_p12 = pnand %p696_p11, %p833_p3  ;;  %p703_p4 = scmp.lt.u32.totalorder %s695_s22, %s864_s11 }
  0x28   : > { %p702_p2 = por %p701_p1, %p700_p0 }
  0x29   : > { %p698_p13 = pneg %p697_p12 }
  0x2a   : > { %p704_p5 = por %p703_p4, %p702_p2 }
  0x2c   : > { %p705_p6 = pnand %p704_p5, %p698_p13 }
  0x2e   : > { %708 = shalt.err (!%p705_p6)
}
  0x2f   : > { %s709_s4 = scalar_lea.vmem %s244_s18, 32  ;;  %s775_s5 = smov [#allocation3]  }
  0x30   : > { %p710_p7 = scmp.ne.s32.totalorder %s244_s18, %s709_s4  ;;  %s713_s6 = sshll.u32 %s775_s5, 4  ;;  %s714_s6 = int_to_ptr.vmem [resolvable:$false] %s713_s6 }
  0x31   : > { %s715_s7 = scalar_lea.vmem %s714_s6, 64  ;;  %p716_p12 = scmp.lt.s32.totalorder %s244_s18, %s714_s6 }
  0x32   : > { %p711_p10 = pnand %p710_p7, %p833_p3  ;;  %p717_p9 = scmp.lt.s32.totalorder %s715_s7, %s709_s4 }
  0x34   : > { %p712_p11 = pneg %p711_p10  ;;  %p718_p8 = por %p717_p9, %p716_p12 }
  0x36   : > { %p719_p0 = pnand %p718_p8, %p712_p11 }
  0x38   : > { %722 = shalt.err (!%p719_p0)
}
  0x39   : > { %631 = dma.hbm_to_vmem [thread:$0]  (%p833_p3), %s864_s11, 32, %s244_s18, %s232_s20  }
  0x3a PF: > { %p605_p13 = scmp.ge.s32.totalorder %s773_s17, 1  ;;  %p248_p1 = scmp.lt.s32.totalorder %s773_s17, 9 }
  0x3c   : > { %p249_p2 = pnand %p605_p13, %p248_p1 }
  0x3d   : > { %s886_s8 = sand.u32 (!%p249_p2), 1, %s757_s13   ;;  %p931_p3 = scmp.ne.s32.totalorder (!%p249_p2), %s929_s23, 0 }
  0x3e   : > { %252 = sbr.rel (%p249_p2) target bundleno = 317 (0x13d), region = 66  ;;  %s606_s9 = sshll.u32 (!%p249_p2), %s886_s8, 6 }
  0x3f   : > { %s607_s10 = sshll.u32 (!%p249_p2), %s886_s8, 1  ;;  %s257_s12 = scalar_lea.vmem (!%p249_p2), [#allocation2], %s606_s9 }
  0x40   : > { %s262_s21 = scalar_lea.sflag (!%p249_p2), [#allocation4], %s886_s8  ;;  %s265_s22 = scalar_lea.vmem (!%p249_p2), [#allocation3], %s607_s10 }
  0x45   : > { %748 = dma.done.wait (%p931_p3), %s262_s21, 32  }
  0x46   : > { %750 = vsyncadd (%p931_p3), %s262_s21, 4294967264  ;;  %v776_v8 = vmov 0   ;;  %v682_v9 = vld [vmem:[%s257_s12 + $0x4] ss:$8 sps:$4 sm:$0xff]   ;;  %v684_v10 = vld [vmem:[%s257_s12] ss:$8 sps:$4 sm:$0xff]   ;;  %v319_v18 = vlaneseq }
  0x47   : > { %410 = vmatprep.mubr.bf16.mxu0 %v776_v8  ;;  %378 = vmatprep.subr.bf16.mxu0 %v682_v9  ;;  %v685_v11 = vld [vmem:[%s257_s12 + $0x14] ss:$8 sps:$4 sm:$0xff]   ;;  %v687_v12 = vld [vmem:[%s257_s12 + $0x10] ss:$8 sps:$4 sm:$0xff]   ;;  %v688_v13 = vld [vmem:[%s257_s12 + $0x24] ss:$8 sps:$4 sm:$0xff]  }
  0x48   : > { %379 = vmatpush1.bf16.msra.mxu0 %v684_v10  ;;  %v690_v14 = vld [vmem:[%s257_s12 + $0x20] ss:$8 sps:$4 sm:$0xff]   ;;  %v691_v15 = vld [vmem:[%s257_s12 + $0x34] ss:$8 sps:$4 sm:$0xff]   ;;  %v693_v16 = vld [vmem:[%s257_s12 + $0x30] ss:$8 sps:$4 sm:$0xff]  }
  0x49   : > { %380 = vmatprep.subr.bf16.mxu0 %v685_v11  ;;  %v694_v17 = vld [vmem:[%s923_s0] sm:$0xff]   ;;  %vm374_vm0 = vcmask 523264   ;;  %v320_v19 = vshrl.u32 %v319_v18, 7  ;;  %s608_s18 = sshll.u32 %s886_s8, 4  ;;  %p932_p8 = scmp.ne.s32.totalorder %s930_s25, 0 }
  0x4a   : > { %v317_v21 = vld [vmem:[%s265_s22] sm:$0x3]  ;;  %s295_s20 = scalar_lea.vmem [#allocation5], %s608_s18  ;;  %s630_s26 = sshll.u32 (%p932_p8), %s765_s15, 3 }
  0x4b   : > { %v321_v20 = vsub.s32 0, %v320_v19  ;;  %v325_v22 = vsub.s32 1, %v320_v19  ;;  %s451_s29 = scalar_lea.vmem (%p932_p8), %s926_s3, %s630_s26 }
  0x4c   : > { %381 = vmatpush1.bf16.msra.mxu0 %v687_v12 }
  0x4d   : > { %382 = vmatprep.subr.bf16.mxu0 %v688_v13  ;;  %v322_v23 = vrot.slane %v317_v21, %v321_v20  ;;  %v326_v24 = vrot.slane %v317_v21, %v325_v22 }
  0x50   : > { %383 = vmatpush1.bf16.msra.mxu0 %v690_v14 }
  0x51   : > { %384 = vmatprep.subr.bf16.mxu0 %v691_v15 }
  0x54   : > { %385 = vmatpush1.bf16.msra.mxu0 %v693_v16 }
  0x57   : > { %618 = vmatmul.mubr.msk.bf16.vlgmr.msra.gmra.mrb[0].mxu0 %vm374_vm0, %v694_v17 }
 0x12a   : > { %v412_v25 = vpop.f32.mrb[0].mxu0 }
 0x12b   : > { %v413_v26 = vadd.f32 %v412_v25, %v322_v23  ;;  %v414_v27 = vpop.f32.mrb[1].mxu0 }
 0x12c   : > { %v415_v28 = vadd.f32 %v414_v27, %v326_v24  ;;  %v416_v29 = vpop.f32.mrb[2].mxu0 }
 0x12d   : > { %v421_v30 = vmax.f32 %v413_v26, 0.0  ;;  %v417_v31 = vadd.f32 %v416_v29, %v322_v23  ;;  %v418_v32 = vpop.f32.mrb[3].mxu0 }
 0x12e   : > { %v422_v33 = vmax.f32 %v415_v28, 0.0  ;;  %v419_v34 = vadd.f32 %v418_v32, %v326_v24  ;;  %445 = sbr.rel (!%p932_p8) target bundleno = 317 (0x13d), region = 78 }
 0x12f   : > { %v423_v35 = vmax.f32 %v417_v31, 0.0 }
 0x130   : > { %v628_v36 = vpack.c.bf16 %v422_v33, %v421_v30  ;;  %v424_v37 = vmax.f32 %v419_v34, 0.0 }
 0x132   : > { %437 = vst [vmem:[%s295_s20] sm:$0xff] %v628_v36  ;;  %v629_v38 = vpack.c.bf16 %v424_v37, %v423_v35 }
 0x134   : > { %438 = vst [vmem:[%s295_s20 + $0x8] sm:$0xff] %v629_v38 }
 0x139   : > { %v481_v39 = vld [vmem:[%s295_s20] sm:$0xff] }
 0x13a   : > { %482 = vst [vmem:[%s451_s29] sm:$0xff] %v481_v39 }
 0x13b   : > { %v483_v40 = vld [vmem:[%s295_s20 + $0x8] sm:$0xff] }
 0x13c   : > { %484 = vst [vmem:[%s451_s29 + $0x40] sm:$0xff] %v483_v40 }
 0x13d PF: > { %s16_s17 = sadd.s32 1, %s773_s17   ;;  %s933_s12 = smov %s757_s13 }
 0x13e   : > { %p13_p9 = scmp.ge.s32.totalorder %s16_s17, 10   ;;  %s934_s13 = smov %s761_s14 }
 0x13f   : > { %s935_s14 = smov %s845_s24  ;;  %s936_s15 = smov %s769_s16 }
 0x140   : > { %s937_s16 = smov %s939_s19  ;;  %15 = sbr.rel (!%p13_p9) target bundleno = 4 (0x4), region = 159 }
 0x147   :  { %500 = vsyncpa [#allocation4], 1 }
 0x148   :  { %502 = vsyncpa [#allocation4 + $0x1], 1 }

// kernel: _lambda_.11
= control target key start
LH: loop header
LB: loop body
LE: loop exit
PB: predicated region body
PF: predicated region fallthrough
CT: control target
= control target key end

     0   :  { %s4239_s12 = smov 0   ;;  %s4241_s13 = smov 0   ;;  %s5211_s0 = inlined_call_operand.vmem [shape: bf16[16,2048], index: 0, kind: input, shape index: {}]   ;;  %s5212_s1 = inlined_call_operand.vmem [shape: bf16[2048,4096], index: 1, kind: input, shape index: {}]   ;;  %s5213_s2 = inlined_call_operand.vmem [shape: f32[1,4096], index: 2, kind: input, shape index: {}]   ;;  %s5214_s3 = inlined_call_operand.vmem [shape: bf16[16,4096], index: 3, kind: output, shape index: {}]  }
   0x1   :  { %s4243_s14 = smov 0   ;;  %s4245_s15 = smov 0  }
   0x2   :  { %s4247_s16 = smov 0  }
   0x3 LB: > { %s22_s17 = sadd.s32 1, %s4213_s15  ;;  %s3428_s18 = sadd.s32 4294967295, %s4217_s16   ;;  %s4217_s16 = sphi %s4247_s16, %s13_s16   ;;  %s4213_s15 = sphi %s4245_s15, %s5219_s15   ;;  %s4209_s14 = sphi %s4243_s14, %s5218_s14   ;;  %s4205_s13 = sphi %s4241_s13, %s5217_s13   ;;  %s4201_s12 = sphi %s4239_s12, %s5216_s12  }
   0x4   : > { %p23_p0 = scmp.ge.s32.totalorder %s22_s17, 16  ;;  %p65_p1 = scmp.ne.s32.totalorder %s4205_s13, %s4201_s12 }
   0x5   : > { %p66_p2 = scmp.eq.s32.totalorder %s4217_s16, 0  ;;  %p123_p4 = scmp.eq.s32.totalorder %s3428_s18, 15 }
   0x6   : > { %s5221_s17 = smov (%p23_p0, %s22_s17), 0  ;;  %s58_s20 = sadd.s32 1, %s4205_s13 }
   0x7   : > { %p67_p3 = por %p66_p2, %p65_p1  ;;  %s55_s19 = ssub.s32 %s4213_s15, %s5221_s17 }
   0x8   : > { %p56_p5 = scmp.eq.s32.totalorder %s55_s19, 0  ;;  %p4274_p6 = por %p123_p4, %p65_p1 }
   0x9   : > { %p3432_p7 = scmp.ge.s32.totalorder %s4217_s16, 16 }
   0xa   : > { %s4279_s22 = scalar_select %p56_p5, %s4205_s13, %s58_s20  }
   0xb   : > { %155 = sbr.rel (%p3432_p7) target bundleno = 278 (0x116), region = 20 }
  0x12   : > { %158 = sbr.rel (!%p67_p3) target bundleno = 278 (0x116), region = 24  ;;  %s160_s23 = sand.u32 (%p67_p3), 1, %s4205_s13  }
  0x13   : > { %s3719_s24 = sshll.u32 (%p67_p3), %s4213_s15, 3  ;;  %s3433_s25 = sshll.u32 (%p67_p3), %s160_s23, 11 }
  0x14   : > { %s4287_s28 = scalar_lea.vmem (%p67_p3), %s5212_s1, %s3719_s24  ;;  %s4292_s29 = scalar_lea.vmem (%p67_p3), [#allocation2], %s3433_s25 }
  0x15   : > { %v703_v0 = vld [vmem:[%s4287_s28] sm:$0xff] (%p67_p3) }
  0x16   : > { %v705_v1 = vld [vmem:[%s4287_s28 + $0x80] sm:$0xff] (%p67_p3)  ;;  %704 = vst [vmem:[%s4292_s29] sm:$0xff] (%p67_p3), %v703_v0 }
  0x17   : > { %v707_v2 = vld [vmem:[%s4287_s28 + $0x100] sm:$0xff] (%p67_p3)  ;;  %706 = vst [vmem:[%s4292_s29 + $0x8] sm:$0xff] (%p67_p3), %v705_v1 }
  0x18   : > { %708 = vst [vmem:[%s4292_s29 + $0x10] sm:$0xff] (%p67_p3), %v707_v2  ;;  %v709_v3 = vld [vmem:[%s4287_s28 + $0x180] sm:$0xff] (%p67_p3) }
  0x19   : > { %v711_v4 = vld [vmem:[%s4287_s28 + $0x200] sm:$0xff]  ;;  %710 = vst [vmem:[%s4292_s29 + $0x18] sm:$0xff] %v709_v3 }
  0x1a   : > { %v713_v5 = vld [vmem:[%s4287_s28 + $0x280] sm:$0xff]  ;;  %712 = vst [vmem:[%s4292_s29 + $0x20] sm:$0xff] %v711_v4 }
  0x1b   : > { %714 = vst [vmem:[%s4292_s29 + $0x28] sm:$0xff] %v713_v5  ;;  %v715_v6 = vld [vmem:[%s4287_s28 + $0x300] sm:$0xff] }
  0x1c   : > { %v717_v7 = vld [vmem:[%s4287_s28 + $0x380] sm:$0xff]  ;;  %716 = vst [vmem:[%s4292_s29 + $0x30] sm:$0xff] %v715_v6 }
  0x1d   : > { %v719_v8 = vld [vmem:[%s4287_s28 + $0x400] sm:$0xff]  ;;  %718 = vst [vmem:[%s4292_s29 + $0x38] sm:$0xff] %v717_v7 }
  0x1e   : > { %720 = vst [vmem:[%s4292_s29 + $0x40] sm:$0xff] %v719_v8  ;;  %v721_v9 = vld [vmem:[%s4287_s28 + $0x480] sm:$0xff] }
  0x1f   : > { %v723_v10 = vld [vmem:[%s4287_s28 + $0x500] sm:$0xff]  ;;  %722 = vst [vmem:[%s4292_s29 + $0x48] sm:$0xff] %v721_v9 }
  0x20   : > { %v725_v11 = vld [vmem:[%s4287_s28 + $0x580] sm:$0xff]  ;;  %724 = vst [vmem:[%s4292_s29 + $0x50] sm:$0xff] %v723_v10 }
  0x21   : > { %726 = vst [vmem:[%s4292_s29 + $0x58] sm:$0xff] %v725_v11  ;;  %v727_v12 = vld [vmem:[%s4287_s28 + $0x600] sm:$0xff] }
  0x22   : > { %v729_v13 = vld [vmem:[%s4287_s28 + $0x680] sm:$0xff]  ;;  %728 = vst [vmem:[%s4292_s29 + $0x60] sm:$0xff] %v727_v12 }
  0x23   : > { %v731_v14 = vld [vmem:[%s4287_s28 + $0x700] sm:$0xff]  ;;  %730 = vst [vmem:[%s4292_s29 + $0x68] sm:$0xff] %v729_v13 }
  0x24   : > { %732 = vst [vmem:[%s4292_s29 + $0x70] sm:$0xff] %v731_v14  ;;  %v733_v15 = vld [vmem:[%s4287_s28 + $0x780] sm:$0xff] }
  0x25   : > { %v735_v16 = vld [vmem:[%s4287_s28 + $0x800] sm:$0xff]  ;;  %734 = vst [vmem:[%s4292_s29 + $0x78] sm:$0xff] %v733_v15 }
  0x26   : > { %v737_v17 = vld [vmem:[%s4287_s28 + $0x880] sm:$0xff]  ;;  %736 = vst [vmem:[%s4292_s29 + $0x80] sm:$0xff] %v735_v16 }
  0x27   : > { %738 = vst [vmem:[%s4292_s29 + $0x88] sm:$0xff] %v737_v17  ;;  %v739_v18 = vld [vmem:[%s4287_s28 + $0x900] sm:$0xff] }
  0x28   : > { %v741_v19 = vld [vmem:[%s4287_s28 + $0x980] sm:$0xff]  ;;  %740 = vst [vmem:[%s4292_s29 + $0x90] sm:$0xff] %v739_v18 }
  0x29   : > { %v743_v20 = vld [vmem:[%s4287_s28 + $0xa00] sm:$0xff]  ;;  %742 = vst [vmem:[%s4292_s29 + $0x98] sm:$0xff] %v741_v19 }
  0x2a   : > { %744 = vst [vmem:[%s4292_s29 + $0xa0] sm:$0xff] %v743_v20  ;;  %v745_v21 = vld [vmem:[%s4287_s28 + $0xa80] sm:$0xff] }
  0x2b   : > { %v747_v22 = vld [vmem:[%s4287_s28 + $0xb00] sm:$0xff]  ;;  %746 = vst [vmem:[%s4292_s29 + $0xa8] sm:$0xff] %v745_v21 }
  0x2c   : > { %v749_v23 = vld [vmem:[%s4287_s28 + $0xb80] sm:$0xff]  ;;  %748 = vst [vmem:[%s4292_s29 + $0xb0] sm:$0xff] %v747_v22 }
  0x2d   : > { %750 = vst [vmem:[%s4292_s29 + $0xb8] sm:$0xff] %v749_v23  ;;  %v751_v24 = vld [vmem:[%s4287_s28 + $0xc00] sm:$0xff] }
  0x2e   : > { %v753_v25 = vld [vmem:[%s4287_s28 + $0xc80] sm:$0xff]  ;;  %752 = vst [vmem:[%s4292_s29 + $0xc0] sm:$0xff] %v751_v24 }
  0x2f   : > { %v755_v26 = vld [vmem:[%s4287_s28 + $0xd00] sm:$0xff]  ;;  %754 = vst [vmem:[%s4292_s29 + $0xc8] sm:$0xff] %v753_v25 }
  0x30   : > { %756 = vst [vmem:[%s4292_s29 + $0xd0] sm:$0xff] %v755_v26  ;;  %v757_v27 = vld [vmem:[%s4287_s28 + $0xd80] sm:$0xff] }
  0x31   : > { %v759_v28 = vld [vmem:[%s4287_s28 + $0xe00] sm:$0xff]  ;;  %758 = vst [vmem:[%s4292_s29 + $0xd8] sm:$0xff] %v757_v27 }
  0x32   : > { %v761_v29 = vld [vmem:[%s4287_s28 + $0xe80] sm:$0xff]  ;;  %760 = vst [vmem:[%s4292_s29 + $0xe0] sm:$0xff] %v759_v28 }
  0x33   : > { %762 = vst [vmem:[%s4292_s29 + $0xe8] sm:$0xff] %v761_v29  ;;  %v763_v30 = vld [vmem:[%s4287_s28 + $0xf00] sm:$0xff] }
  0x34   : > { %v765_v31 = vld [vmem:[%s4287_s28 + $0xf80] sm:$0xff]  ;;  %764 = vst [vmem:[%s4292_s29 + $0xf0] sm:$0xff] %v763_v30 }
  0x35   : > { %v767_v32 = vld [vmem:[%s4287_s28 + $0x1000] sm:$0xff]  ;;  %766 = vst [vmem:[%s4292_s29 + $0xf8] sm:$0xff] %v765_v31 }
  0x36   : > { %768 = vst [vmem:[%s4292_s29 + $0x100] sm:$0xff] %v767_v32  ;;  %v769_v33 = vld [vmem:[%s4287_s28 + $0x1080] sm:$0xff] }
  0x37   : > { %v771_v34 = vld [vmem:[%s4287_s28 + $0x1100] sm:$0xff]  ;;  %770 = vst [vmem:[%s4292_s29 + $0x108] sm:$0xff] %v769_v33 }
  0x38   : > { %v773_v35 = vld [vmem:[%s4287_s28 + $0x1180] sm:$0xff]  ;;  %772 = vst [vmem:[%s4292_s29 + $0x110] sm:$0xff] %v771_v34 }
  0x39   : > { %774 = vst [vmem:[%s4292_s29 + $0x118] sm:$0xff] %v773_v35  ;;  %v775_v36 = vld [vmem:[%s4287_s28 + $0x1200] sm:$0xff] }
  0x3a   : > { %v777_v37 = vld [vmem:[%s4287_s28 + $0x1280] sm:$0xff]  ;;  %776 = vst [vmem:[%s4292_s29 + $0x120] sm:$0xff] %v775_v36 }
  0x3b   : > { %v779_v38 = vld [vmem:[%s4287_s28 + $0x1300] sm:$0xff]  ;;  %778 = vst [vmem:[%s4292_s29 + $0x128] sm:$0xff] %v777_v37 }
  0x3c   : > { %780 = vst [vmem:[%s4292_s29 + $0x130] sm:$0xff] %v779_v38  ;;  %v781_v39 = vld [vmem:[%s4287_s28 + $0x1380] sm:$0xff] }
  0x3d   : > { %v783_v40 = vld [vmem:[%s4287_s28 + $0x1400] sm:$0xff]  ;;  %782 = vst [vmem:[%s4292_s29 + $0x138] sm:$0xff] %v781_v39 }
  0x3e   : > { %v785_v41 = vld [vmem:[%s4287_s28 + $0x1480] sm:$0xff]  ;;  %784 = vst [vmem:[%s4292_s29 + $0x140] sm:$0xff] %v783_v40 }
  0x3f   : > { %786 = vst [vmem:[%s4292_s29 + $0x148] sm:$0xff] %v785_v41  ;;  %v787_v42 = vld [vmem:[%s4287_s28 + $0x1500] sm:$0xff] }
  0x40   : > { %v789_v43 = vld [vmem:[%s4287_s28 + $0x1580] sm:$0xff]  ;;  %788 = vst [vmem:[%s4292_s29 + $0x150] sm:$0xff] %v787_v42 }
  0x41   : > { %v791_v44 = vld [vmem:[%s4287_s28 + $0x1600] sm:$0xff]  ;;  %790 = vst [vmem:[%s4292_s29 + $0x158] sm:$0xff] %v789_v43 }
  0x42   : > { %792 = vst [vmem:[%s4292_s29 + $0x160] sm:$0xff] %v791_v44  ;;  %v793_v45 = vld [vmem:[%s4287_s28 + $0x1680] sm:$0xff] }
  0x43   : > { %v795_v46 = vld [vmem:[%s4287_s28 + $0x1700] sm:$0xff]  ;;  %794 = vst [vmem:[%s4292_s29 + $0x168] sm:$0xff] %v793_v45 }
  0x44   : > { %v797_v47 = vld [vmem:[%s4287_s28 + $0x1780] sm:$0xff]  ;;  %796 = vst [vmem:[%s4292_s29 + $0x170] sm:$0xff] %v795_v46 }
  0x45   : > { %798 = vst [vmem:[%s4292_s29 + $0x178] sm:$0xff] %v797_v47  ;;  %v799_v48 = vld [vmem:[%s4287_s28 + $0x1800] sm:$0xff] }
  0x46   : > { %v801_v49 = vld [vmem:[%s4287_s28 + $0x1880] sm:$0xff]  ;;  %800 = vst [vmem:[%s4292_s29 + $0x180] sm:$0xff] %v799_v48 }
  0x47   : > { %v803_v50 = vld [vmem:[%s4287_s28 + $0x1900] sm:$0xff]  ;;  %802 = vst [vmem:[%s4292_s29 + $0x188] sm:$0xff] %v801_v49 }
  0x48   : > { %804 = vst [vmem:[%s4292_s29 + $0x190] sm:$0xff] %v803_v50  ;;  %v805_v51 = vld [vmem:[%s4287_s28 + $0x1980] sm:$0xff] }
  0x49   : > { %v807_v52 = vld [vmem:[%s4287_s28 + $0x1a00] sm:$0xff]  ;;  %806 = vst [vmem:[%s4292_s29 + $0x198] sm:$0xff] %v805_v51 }
  0x4a   : > { %v809_v53 = vld [vmem:[%s4287_s28 + $0x1a80] sm:$0xff]  ;;  %808 = vst [vmem:[%s4292_s29 + $0x1a0] sm:$0xff] %v807_v52 }
  0x4b   : > { %810 = vst [vmem:[%s4292_s29 + $0x1a8] sm:$0xff] %v809_v53  ;;  %v811_v54 = vld [vmem:[%s4287_s28 + $0x1b00] sm:$0xff] }
  0x4c   : > { %v813_v55 = vld [vmem:[%s4287_s28 + $0x1b80] sm:$0xff]  ;;  %812 = vst [vmem:[%s4292_s29 + $0x1b0] sm:$0xff] %v811_v54 }
  0x4d   : > { %v815_v56 = vld [vmem:[%s4287_s28 + $0x1c00] sm:$0xff]  ;;  %814 = vst [vmem:[%s4292_s29 + $0x1b8] sm:$0xff] %v813_v55 }
  0x4e   : > { %816 = vst [vmem:[%s4292_s29 + $0x1c0] sm:$0xff] %v815_v56  ;;  %v817_v57 = vld [vmem:[%s4287_s28 + $0x1c80] sm:$0xff] }
  0x4f   : > { %v819_v58 = vld [vmem:[%s4287_s28 + $0x1d00] sm:$0xff]  ;;  %818 = vst [vmem:[%s4292_s29 + $0x1c8] sm:$0xff] %v817_v57 }
  0x50   : > { %v821_v59 = vld [vmem:[%s4287_s28 + $0x1d80] sm:$0xff]  ;;  %820 = vst [vmem:[%s4292_s29 + $0x1d0] sm:$0xff] %v819_v58 }
  0x51   : > { %822 = vst [vmem:[%s4292_s29 + $0x1d8] sm:$0xff] %v821_v59  ;;  %v823_v60 = vld [vmem:[%s4287_s28 + $0x1e00] sm:$0xff] }
  0x52   : > { %v825_v61 = vld [vmem:[%s4287_s28 + $0x1e80] sm:$0xff]  ;;  %824 = vst [vmem:[%s4292_s29 + $0x1e0] sm:$0xff] %v823_v60 }
  0x53   : > { %v827_v62 = vld [vmem:[%s4287_s28 + $0x1f00] sm:$0xff]  ;;  %826 = vst [vmem:[%s4292_s29 + $0x1e8] sm:$0xff] %v825_v61 }
  0x54   : > { %828 = vst [vmem:[%s4292_s29 + $0x1f0] sm:$0xff] %v827_v62  ;;  %v829_v63 = vld [vmem:[%s4287_s28 + $0x1f80] sm:$0xff] }
  0x55   : > { %v831_v0 = vld [vmem:[%s4287_s28 + $0x2000] sm:$0xff]  ;;  %830 = vst [vmem:[%s4292_s29 + $0x1f8] sm:$0xff] %v829_v63 }
  0x56   : > { %v833_v1 = vld [vmem:[%s4287_s28 + $0x2080] sm:$0xff]  ;;  %832 = vst [vmem:[%s4292_s29 + $0x200] sm:$0xff] %v831_v0 }
  0x57   : > { %834 = vst [vmem:[%s4292_s29 + $0x208] sm:$0xff] %v833_v1  ;;  %v835_v2 = vld [vmem:[%s4287_s28 + $0x2100] sm:$0xff] }
  0x58   : > { %v837_v3 = vld [vmem:[%s4287_s28 + $0x2180] sm:$0xff]  ;;  %836 = vst [vmem:[%s4292_s29 + $0x210] sm:$0xff] %v835_v2 }
  0x59   : > { %v839_v4 = vld [vmem:[%s4287_s28 + $0x2200] sm:$0xff]  ;;  %838 = vst [vmem:[%s4292_s29 + $0x218] sm:$0xff] %v837_v3 }
  0x5a   : > { %840 = vst [vmem:[%s4292_s29 + $0x220] sm:$0xff] %v839_v4  ;;  %v841_v5 = vld [vmem:[%s4287_s28 + $0x2280] sm:$0xff] }
  0x5b   : > { %v843_v6 = vld [vmem:[%s4287_s28 + $0x2300] sm:$0xff]  ;;  %842 = vst [vmem:[%s4292_s29 + $0x228] sm:$0xff] %v841_v5 }
  0x5c   : > { %v845_v7 = vld [vmem:[%s4287_s28 + $0x2380] sm:$0xff]  ;;  %844 = vst [vmem:[%s4292_s29 + $0x230] sm:$0xff] %v843_v6 }
  0x5d   : > { %846 = vst [vmem:[%s4292_s29 + $0x238] sm:$0xff] %v845_v7  ;;  %v847_v8 = vld [vmem:[%s4287_s28 + $0x2400] sm:$0xff] }
  0x5e   : > { %v849_v9 = vld [vmem:[%s4287_s28 + $0x2480] sm:$0xff]  ;;  %848 = vst [vmem:[%s4292_s29 + $0x240] sm:$0xff] %v847_v8 }
  0x5f   : > { %v851_v10 = vld [vmem:[%s4287_s28 + $0x2500] sm:$0xff]  ;;  %850 = vst [vmem:[%s4292_s29 + $0x248] sm:$0xff] %v849_v9 }
  0x60   : > { %852 = vst [vmem:[%s4292_s29 + $0x250] sm:$0xff] %v851_v10  ;;  %v853_v11 = vld [vmem:[%s4287_s28 + $0x2580] sm:$0xff] }
  0x61   : > { %v855_v12 = vld [vmem:[%s4287_s28 + $0x2600] sm:$0xff]  ;;  %854 = vst [vmem:[%s4292_s29 + $0x258] sm:$0xff] %v853_v11 }
  0x62   : > { %v857_v13 = vld [vmem:[%s4287_s28 + $0x2680] sm:$0xff]  ;;  %856 = vst [vmem:[%s4292_s29 + $0x260] sm:$0xff] %v855_v12 }
  0x63   : > { %858 = vst [vmem:[%s4292_s29 + $0x268] sm:$0xff] %v857_v13  ;;  %v859_v14 = vld [vmem:[%s4287_s28 + $0x2700] sm:$0xff] }
  0x64   : > { %v861_v15 = vld [vmem:[%s4287_s28 + $0x2780] sm:$0xff]  ;;  %860 = vst [vmem:[%s4292_s29 + $0x270] sm:$0xff] %v859_v14 }
  0x65   : > { %v863_v16 = vld [vmem:[%s4287_s28 + $0x2800] sm:$0xff]  ;;  %862 = vst [vmem:[%s4292_s29 + $0x278] sm:$0xff] %v861_v15 }
  0x66   : > { %864 = vst [vmem:[%s4292_s29 + $0x280] sm:$0xff] %v863_v16  ;;  %v865_v17 = vld [vmem:[%s4287_s28 + $0x2880] sm:$0xff] }
  0x67   : > { %v867_v18 = vld [vmem:[%s4287_s28 + $0x2900] sm:$0xff]  ;;  %866 = vst [vmem:[%s4292_s29 + $0x288] sm:$0xff] %v865_v17 }
  0x68   : > { %v869_v19 = vld [vmem:[%s4287_s28 + $0x2980] sm:$0xff]  ;;  %868 = vst [vmem:[%s4292_s29 + $0x290] sm:$0xff] %v867_v18 }
  0x69   : > { %870 = vst [vmem:[%s4292_s29 + $0x298] sm:$0xff] %v869_v19  ;;  %v871_v20 = vld [vmem:[%s4287_s28 + $0x2a00] sm:$0xff] }
  0x6a   : > { %v873_v21 = vld [vmem:[%s4287_s28 + $0x2a80] sm:$0xff]  ;;  %872 = vst [vmem:[%s4292_s29 + $0x2a0] sm:$0xff] %v871_v20 }
  0x6b   : > { %v875_v22 = vld [vmem:[%s4287_s28 + $0x2b00] sm:$0xff]  ;;  %874 = vst [vmem:[%s4292_s29 + $0x2a8] sm:$0xff] %v873_v21 }
  0x6c   : > { %876 = vst [vmem:[%s4292_s29 + $0x2b0] sm:$0xff] %v875_v22  ;;  %v877_v23 = vld [vmem:[%s4287_s28 + $0x2b80] sm:$0xff] }
  0x6d   : > { %v879_v24 = vld [vmem:[%s4287_s28 + $0x2c00] sm:$0xff]  ;;  %878 = vst [vmem:[%s4292_s29 + $0x2b8] sm:$0xff] %v877_v23 }
  0x6e   : > { %v881_v25 = vld [vmem:[%s4287_s28 + $0x2c80] sm:$0xff]  ;;  %880 = vst [vmem:[%s4292_s29 + $0x2c0] sm:$0xff] %v879_v24 }
  0x6f   : > { %882 = vst [vmem:[%s4292_s29 + $0x2c8] sm:$0xff] %v881_v25  ;;  %v883_v26 = vld [vmem:[%s4287_s28 + $0x2d00] sm:$0xff] }
  0x70   : > { %v885_v27 = vld [vmem:[%s4287_s28 + $0x2d80] sm:$0xff]  ;;  %884 = vst [vmem:[%s4292_s29 + $0x2d0] sm:$0xff] %v883_v26 }
  0x71   : > { %v887_v28 = vld [vmem:[%s4287_s28 + $0x2e00] sm:$0xff]  ;;  %886 = vst [vmem:[%s4292_s29 + $0x2d8] sm:$0xff] %v885_v27 }
  0x72   : > { %888 = vst [vmem:[%s4292_s29 + $0x2e0] sm:$0xff] %v887_v28  ;;  %v889_v29 = vld [vmem:[%s4287_s28 + $0x2e80] sm:$0xff] }
  0x73   : > { %v891_v30 = vld [vmem:[%s4287_s28 + $0x2f00] sm:$0xff]  ;;  %890 = vst [vmem:[%s4292_s29 + $0x2e8] sm:$0xff] %v889_v29 }
  0x74   : > { %v893_v31 = vld [vmem:[%s4287_s28 + $0x2f80] sm:$0xff]  ;;  %892 = vst [vmem:[%s4292_s29 + $0x2f0] sm:$0xff] %v891_v30 }
  0x75   : > { %894 = vst [vmem:[%s4292_s29 + $0x2f8] sm:$0xff] %v893_v31  ;;  %v895_v32 = vld [vmem:[%s4287_s28 + $0x3000] sm:$0xff] }
  0x76   : > { %v897_v33 = vld [vmem:[%s4287_s28 + $0x3080] sm:$0xff]  ;;  %896 = vst [vmem:[%s4292_s29 + $0x300] sm:$0xff] %v895_v32 }
  0x77   : > { %v899_v34 = vld [vmem:[%s4287_s28 + $0x3100] sm:$0xff]  ;;  %898 = vst [vmem:[%s4292_s29 + $0x308] sm:$0xff] %v897_v33 }
  0x78   : > { %900 = vst [vmem:[%s4292_s29 + $0x310] sm:$0xff] %v899_v34  ;;  %v901_v35 = vld [vmem:[%s4287_s28 + $0x3180] sm:$0xff] }
  0x79   : > { %v903_v36 = vld [vmem:[%s4287_s28 + $0x3200] sm:$0xff]  ;;  %902 = vst [vmem:[%s4292_s29 + $0x318] sm:$0xff] %v901_v35 }
  0x7a   : > { %v905_v37 = vld [vmem:[%s4287_s28 + $0x3280] sm:$0xff]  ;;  %904 = vst [vmem:[%s4292_s29 + $0x320] sm:$0xff] %v903_v36 }
  0x7b   : > { %906 = vst [vmem:[%s4292_s29 + $0x328] sm:$0xff] %v905_v37  ;;  %v907_v38 = vld [vmem:[%s4287_s28 + $0x3300] sm:$0xff] }
  0x7c   : > { %v909_v39 = vld [vmem:[%s4287_s28 + $0x3380] sm:$0xff]  ;;  %908 = vst [vmem:[%s4292_s29 + $0x330] sm:$0xff] %v907_v38 }
  0x7d   : > { %v911_v40 = vld [vmem:[%s4287_s28 + $0x3400] sm:$0xff]  ;;  %910 = vst [vmem:[%s4292_s29 + $0x338] sm:$0xff] %v909_v39 }
  0x7e   : > { %912 = vst [vmem:[%s4292_s29 + $0x340] sm:$0xff] %v911_v40  ;;  %v913_v41 = vld [vmem:[%s4287_s28 + $0x3480] sm:$0xff] }
  0x7f   : > { %v915_v42 = vld [vmem:[%s4287_s28 + $0x3500] sm:$0xff]  ;;  %914 = vst [vmem:[%s4292_s29 + $0x348] sm:$0xff] %v913_v41 }
  0x80   : > { %v917_v43 = vld [vmem:[%s4287_s28 + $0x3580] sm:$0xff]  ;;  %916 = vst [vmem:[%s4292_s29 + $0x350] sm:$0xff] %v915_v42 }
  0x81   : > { %918 = vst [vmem:[%s4292_s29 + $0x358] sm:$0xff] %v917_v43  ;;  %v919_v44 = vld [vmem:[%s4287_s28 + $0x3600] sm:$0xff] }
  0x82   : > { %v921_v45 = vld [vmem:[%s4287_s28 + $0x3680] sm:$0xff]  ;;  %920 = vst [vmem:[%s4292_s29 + $0x360] sm:$0xff] %v919_v44 }
  0x83   : > { %v923_v46 = vld [vmem:[%s4287_s28 + $0x3700] sm:$0xff]  ;;  %922 = vst [vmem:[%s4292_s29 + $0x368] sm:$0xff] %v921_v45 }
  0x84   : > { %924 = vst [vmem:[%s4292_s29 + $0x370] sm:$0xff] %v923_v46  ;;  %v925_v47 = vld [vmem:[%s4287_s28 + $0x3780] sm:$0xff] }
  0x85   : > { %v927_v48 = vld [vmem:[%s4287_s28 + $0x3800] sm:$0xff]  ;;  %926 = vst [vmem:[%s4292_s29 + $0x378] sm:$0xff] %v925_v47 }
  0x86   : > { %v929_v49 = vld [vmem:[%s4287_s28 + $0x3880] sm:$0xff]  ;;  %928 = vst [vmem:[%s4292_s29 + $0x380] sm:$0xff] %v927_v48 }
  0x87   : > { %930 = vst [vmem:[%s4292_s29 + $0x388] sm:$0xff] %v929_v49  ;;  %v931_v50 = vld [vmem:[%s4287_s28 + $0x3900] sm:$0xff] }
  0x88   : > { %v933_v51 = vld [vmem:[%s4287_s28 + $0x3980] sm:$0xff]  ;;  %932 = vst [vmem:[%s4292_s29 + $0x390] sm:$0xff] %v931_v50 }
  0x89   : > { %v935_v52 = vld [vmem:[%s4287_s28 + $0x3a00] sm:$0xff]  ;;  %934 = vst [vmem:[%s4292_s29 + $0x398] sm:$0xff] %v933_v51 }
  0x8a   : > { %936 = vst [vmem:[%s4292_s29 + $0x3a0] sm:$0xff] %v935_v52  ;;  %v937_v53 = vld [vmem:[%s4287_s28 + $0x3a80] sm:$0xff] }
  0x8b   : > { %v939_v54 = vld [vmem:[%s4287_s28 + $0x3b00] sm:$0xff]  ;;  %938 = vst [vmem:[%s4292_s29 + $0x3a8] sm:$0xff] %v937_v53 }
  0x8c   : > { %v941_v55 = vld [vmem:[%s4287_s28 + $0x3b80] sm:$0xff]  ;;  %940 = vst [vmem:[%s4292_s29 + $0x3b0] sm:$0xff] %v939_v54 }
  0x8d   : > { %942 = vst [vmem:[%s4292_s29 + $0x3b8] sm:$0xff] %v941_v55  ;;  %v943_v56 = vld [vmem:[%s4287_s28 + $0x3c00] sm:$0xff] }
  0x8e   : > { %v945_v57 = vld [vmem:[%s4287_s28 + $0x3c80] sm:$0xff]  ;;  %944 = vst [vmem:[%s4292_s29 + $0x3c0] sm:$0xff] %v943_v56 }
  0x8f   : > { %v947_v58 = vld [vmem:[%s4287_s28 + $0x3d00] sm:$0xff]  ;;  %946 = vst [vmem:[%s4292_s29 + $0x3c8] sm:$0xff] %v945_v57 }
  0x90   : > { %948 = vst [vmem:[%s4292_s29 + $0x3d0] sm:$0xff] %v947_v58  ;;  %v949_v59 = vld [vmem:[%s4287_s28 + $0x3d80] sm:$0xff] }
  0x91   : > { %v951_v60 = vld [vmem:[%s4287_s28 + $0x3e00] sm:$0xff]  ;;  %950 = vst [vmem:[%s4292_s29 + $0x3d8] sm:$0xff] %v949_v59 }
  0x92   : > { %v953_v61 = vld [vmem:[%s4287_s28 + $0x3e80] sm:$0xff]  ;;  %952 = vst [vmem:[%s4292_s29 + $0x3e0] sm:$0xff] %v951_v60 }
  0x93   : > { %954 = vst [vmem:[%s4292_s29 + $0x3e8] sm:$0xff] %v953_v61  ;;  %v955_v62 = vld [vmem:[%s4287_s28 + $0x3f00] sm:$0xff] }
  0x94   : > { %v957_v63 = vld [vmem:[%s4287_s28 + $0x3f80] sm:$0xff]  ;;  %956 = vst [vmem:[%s4292_s29 + $0x3f0] sm:$0xff] %v955_v62 }
  0x95   : > { %v959_v0 = vld [vmem:[%s4287_s28 + $0x4000] sm:$0xff]  ;;  %958 = vst [vmem:[%s4292_s29 + $0x3f8] sm:$0xff] %v957_v63 }
  0x96   : > { %960 = vst [vmem:[%s4292_s29 + $0x400] sm:$0xff] %v959_v0  ;;  %v961_v1 = vld [vmem:[%s4287_s28 + $0x4080] sm:$0xff] }
  0x97   : > { %v963_v2 = vld [vmem:[%s4287_s28 + $0x4100] sm:$0xff]  ;;  %962 = vst [vmem:[%s4292_s29 + $0x408] sm:$0xff] %v961_v1 }
  0x98   : > { %v965_v3 = vld [vmem:[%s4287_s28 + $0x4180] sm:$0xff]  ;;  %964 = vst [vmem:[%s4292_s29 + $0x410] sm:$0xff] %v963_v2 }
  0x99   : > { %966 = vst [vmem:[%s4292_s29 + $0x418] sm:$0xff] %v965_v3  ;;  %v967_v4 = vld [vmem:[%s4287_s28 + $0x4200] sm:$0xff] }
  0x9a   : > { %v969_v5 = vld [vmem:[%s4287_s28 + $0x4280] sm:$0xff]  ;;  %968 = vst [vmem:[%s4292_s29 + $0x420] sm:$0xff] %v967_v4 }
  0x9b   : > { %v971_v6 = vld [vmem:[%s4287_s28 + $0x4300] sm:$0xff]  ;;  %970 = vst [vmem:[%s4292_s29 + $0x428] sm:$0xff] %v969_v5 }
  0x9c   : > { %972 = vst [vmem:[%s4292_s29 + $0x430] sm:$0xff] %v971_v6  ;;  %v973_v7 = vld [vmem:[%s4287_s28 + $0x4380] sm:$0xff] }
  0x9d   : > { %v975_v8 = vld [vmem:[%s4287_s28 + $0x4400] sm:$0xff]  ;;  %974 = vst [vmem:[%s4292_s29 + $0x438] sm:$0xff] %v973_v7 }
  0x9e   : > { %v977_v9 = vld [vmem:[%s4287_s28 + $0x4480] sm:$0xff]  ;;  %976 = vst [vmem:[%s4292_s29 + $0x440] sm:$0xff] %v975_v8 }
  0x9f   : > { %978 = vst [vmem:[%s4292_s29 + $0x448] sm:$0xff] %v977_v9  ;;  %v979_v10 = vld [vmem:[%s4287_s28 + $0x4500] sm:$0xff] }
  0xa0   : > { %v981_v11 = vld [vmem:[%s4287_s28 + $0x4580] sm:$0xff]  ;;  %980 = vst [vmem:[%s4292_s29 + $0x450] sm:$0xff] %v979_v10 }
  0xa1   : > { %v983_v12 = vld [vmem:[%s4287_s28 + $0x4600] sm:$0xff]  ;;  %982 = vst [vmem:[%s4292_s29 + $0x458] sm:$0xff] %v981_v11 }
  0xa2   : > { %984 = vst [vmem:[%s4292_s29 + $0x460] sm:$0xff] %v983_v12  ;;  %v985_v13 = vld [vmem:[%s4287_s28 + $0x4680] sm:$0xff] }
  0xa3   : > { %v987_v14 = vld [vmem:[%s4287_s28 + $0x4700] sm:$0xff]  ;;  %986 = vst [vmem:[%s4292_s29 + $0x468] sm:$0xff] %v985_v13 }
  0xa4   : > { %v989_v15 = vld [vmem:[%s4287_s28 + $0x4780] sm:$0xff]  ;;  %988 = vst [vmem:[%s4292_s29 + $0x470] sm:$0xff] %v987_v14 }
  0xa5   : > { %990 = vst [vmem:[%s4292_s29 + $0x478] sm:$0xff] %v989_v15  ;;  %v991_v16 = vld [vmem:[%s4287_s28 + $0x4800] sm:$0xff] }
  0xa6   : > { %v993_v17 = vld [vmem:[%s4287_s28 + $0x4880] sm:$0xff]  ;;  %992 = vst [vmem:[%s4292_s29 + $0x480] sm:$0xff] %v991_v16 }
  0xa7   : > { %v995_v18 = vld [vmem:[%s4287_s28 + $0x4900] sm:$0xff]  ;;  %994 = vst [vmem:[%s4292_s29 + $0x488] sm:$0xff] %v993_v17 }
  0xa8   : > { %996 = vst [vmem:[%s4292_s29 + $0x490] sm:$0xff] %v995_v18  ;;  %v997_v19 = vld [vmem:[%s4287_s28 + $0x4980] sm:$0xff] }
  0xa9   : > { %v999_v20 = vld [vmem:[%s4287_s28 + $0x4a00] sm:$0xff]  ;;  %998 = vst [vmem:[%s4292_s29 + $0x498] sm:$0xff] %v997_v19 }
  0xaa   : > { %v1001_v21 = vld [vmem:[%s4287_s28 + $0x4a80] sm:$0xff]  ;;  %1000 = vst [vmem:[%s4292_s29 + $0x4a0] sm:$0xff] %v999_v20 }
  0xab   : > { %1002 = vst [vmem:[%s4292_s29 + $0x4a8] sm:$0xff] %v1001_v21  ;;  %v1003_v22 = vld [vmem:[%s4287_s28 + $0x4b00] sm:$0xff] }
  0xac   : > { %v1005_v23 = vld [vmem:[%s4287_s28 + $0x4b80] sm:$0xff]  ;;  %1004 = vst [vmem:[%s4292_s29 + $0x4b0] sm:$0xff] %v1003_v22 }
  0xad   : > { %v1007_v24 = vld [vmem:[%s4287_s28 + $0x4c00] sm:$0xff]  ;;  %1006 = vst [vmem:[%s4292_s29 + $0x4b8] sm:$0xff] %v1005_v23 }
  0xae   : > { %1008 = vst [vmem:[%s4292_s29 + $0x4c0] sm:$0xff] %v1007_v24  ;;  %v1009_v25 = vld [vmem:[%s4287_s28 + $0x4c80] sm:$0xff] }
  0xaf   : > { %v1011_v26 = vld [vmem:[%s4287_s28 + $0x4d00] sm:$0xff]  ;;  %1010 = vst [vmem:[%s4292_s29 + $0x4c8] sm:$0xff] %v1009_v25 }
  0xb0   : > { %v1013_v27 = vld [vmem:[%s4287_s28 + $0x4d80] sm:$0xff]  ;;  %1012 = vst [vmem:[%s4292_s29 + $0x4d0] sm:$0xff] %v1011_v26 }
  0xb1   : > { %1014 = vst [vmem:[%s4292_s29 + $0x4d8] sm:$0xff] %v1013_v27  ;;  %v1015_v28 = vld [vmem:[%s4287_s28 + $0x4e00] sm:$0xff] }
  0xb2   : > { %v1017_v29 = vld [vmem:[%s4287_s28 + $0x4e80] sm:$0xff]  ;;  %1016 = vst [vmem:[%s4292_s29 + $0x4e0] sm:$0xff] %v1015_v28 }
  0xb3   : > { %v1019_v30 = vld [vmem:[%s4287_s28 + $0x4f00] sm:$0xff]  ;;  %1018 = vst [vmem:[%s4292_s29 + $0x4e8] sm:$0xff] %v1017_v29 }
  0xb4   : > { %1020 = vst [vmem:[%s4292_s29 + $0x4f0] sm:$0xff] %v1019_v30  ;;  %v1021_v31 = vld [vmem:[%s4287_s28 + $0x4f80] sm:$0xff] }
  0xb5   : > { %v1023_v32 = vld [vmem:[%s4287_s28 + $0x5000] sm:$0xff]  ;;  %1022 = vst [vmem:[%s4292_s29 + $0x4f8] sm:$0xff] %v1021_v31 }
  0xb6   : > { %v1025_v33 = vld [vmem:[%s4287_s28 + $0x5080] sm:$0xff]  ;;  %1024 = vst [vmem:[%s4292_s29 + $0x500] sm:$0xff] %v1023_v32 }
  0xb7   : > { %1026 = vst [vmem:[%s4292_s29 + $0x508] sm:$0xff] %v1025_v33  ;;  %v1027_v34 = vld [vmem:[%s4287_s28 + $0x5100] sm:$0xff] }
  0xb8   : > { %v1029_v35 = vld [vmem:[%s4287_s28 + $0x5180] sm:$0xff]  ;;  %1028 = vst [vmem:[%s4292_s29 + $0x510] sm:$0xff] %v1027_v34 }
  0xb9   : > { %v1031_v36 = vld [vmem:[%s4287_s28 + $0x5200] sm:$0xff]  ;;  %1030 = vst [vmem:[%s4292_s29 + $0x518] sm:$0xff] %v1029_v35 }
  0xba   : > { %1032 = vst [vmem:[%s4292_s29 + $0x520] sm:$0xff] %v1031_v36  ;;  %v1033_v37 = vld [vmem:[%s4287_s28 + $0x5280] sm:$0xff] }
  0xbb   : > { %v1035_v38 = vld [vmem:[%s4287_s28 + $0x5300] sm:$0xff]  ;;  %1034 = vst [vmem:[%s4292_s29 + $0x528] sm:$0xff] %v1033_v37 }
  0xbc   : > { %v1037_v39 = vld [vmem:[%s4287_s28 + $0x5380] sm:$0xff]  ;;  %1036 = vst [vmem:[%s4292_s29 + $0x530] sm:$0xff] %v1035_v38 }
  0xbd   : > { %1038 = vst [vmem:[%s4292_s29 + $0x538] sm:$0xff] %v1037_v39  ;;  %v1039_v40 = vld [vmem:[%s4287_s28 + $0x5400] sm:$0xff] }
  0xbe   : > { %v1041_v41 = vld [vmem:[%s4287_s28 + $0x5480] sm:$0xff]  ;;  %1040 = vst [vmem:[%s4292_s29 + $0x540] sm:$0xff] %v1039_v40 }
  0xbf   : > { %v1043_v42 = vld [vmem:[%s4287_s28 + $0x5500] sm:$0xff]  ;;  %1042 = vst [vmem:[%s4292_s29 + $0x548] sm:$0xff] %v1041_v41 }
  0xc0   : > { %1044 = vst [vmem:[%s4292_s29 + $0x550] sm:$0xff] %v1043_v42  ;;  %v1045_v43 = vld [vmem:[%s4287_s28 + $0x5580] sm:$0xff] }
  0xc1   : > { %v1047_v44 = vld [vmem:[%s4287_s28 + $0x5600] sm:$0xff]  ;;  %1046 = vst [vmem:[%s4292_s29 + $0x558] sm:$0xff] %v1045_v43 }
  0xc2   : > { %v1049_v45 = vld [vmem:[%s4287_s28 + $0x5680] sm:$0xff]  ;;  %1048 = vst [vmem:[%s4292_s29 + $0x560] sm:$0xff] %v1047_v44 }
  0xc3   : > { %1050 = vst [vmem:[%s4292_s29 + $0x568] sm:$0xff] %v1049_v45  ;;  %v1051_v46 = vld [vmem:[%s4287_s28 + $0x5700] sm:$0xff] }
  0xc4   : > { %v1053_v47 = vld [vmem:[%s4287_s28 + $0x5780] sm:$0xff]  ;;  %1052 = vst [vmem:[%s4292_s29 + $0x570] sm:$0xff] %v1051_v46 }
  0xc5   : > { %v1055_v48 = vld [vmem:[%s4287_s28 + $0x5800] sm:$0xff]  ;;  %1054 = vst [vmem:[%s4292_s29 + $0x578] sm:$0xff] %v1053_v47 }
  0xc6   : > { %1056 = vst [vmem:[%s4292_s29 + $0x580] sm:$0xff] %v1055_v48  ;;  %v1057_v49 = vld [vmem:[%s4287_s28 + $0x5880] sm:$0xff] }
  0xc7   : > { %v1059_v50 = vld [vmem:[%s4287_s28 + $0x5900] sm:$0xff]  ;;  %1058 = vst [vmem:[%s4292_s29 + $0x588] sm:$0xff] %v1057_v49 }
  0xc8   : > { %v1061_v51 = vld [vmem:[%s4287_s28 + $0x5980] sm:$0xff]  ;;  %1060 = vst [vmem:[%s4292_s29 + $0x590] sm:$0xff] %v1059_v50 }
  0xc9   : > { %1062 = vst [vmem:[%s4292_s29 + $0x598] sm:$0xff] %v1061_v51  ;;  %v1063_v52 = vld [vmem:[%s4287_s28 + $0x5a00] sm:$0xff] }
  0xca   : > { %v1065_v53 = vld [vmem:[%s4287_s28 + $0x5a80] sm:$0xff]  ;;  %1064 = vst [vmem:[%s4292_s29 + $0x5a0] sm:$0xff] %v1063_v52 }
  0xcb   : > { %v1067_v54 = vld [vmem:[%s4287_s28 + $0x5b00] sm:$0xff]  ;;  %1066 = vst [vmem:[%s4292_s29 + $0x5a8] sm:$0xff] %v1065_v53 }
  0xcc   : > { %1068 = vst [vmem:[%s4292_s29 + $0x5b0] sm:$0xff] %v1067_v54  ;;  %v1069_v55 = vld [vmem:[%s4287_s28 + $0x5b80] sm:$0xff] }
  0xcd   : > { %v1071_v56 = vld [vmem:[%s4287_s28 + $0x5c00] sm:$0xff]  ;;  %1070 = vst [vmem:[%s4292_s29 + $0x5b8] sm:$0xff] %v1069_v55 }
  0xce   : > { %v1073_v57 = vld [vmem:[%s4287_s28 + $0x5c80] sm:$0xff]  ;;  %1072 = vst [vmem:[%s4292_s29 + $0x5c0] sm:$0xff] %v1071_v56 }
  0xcf   : > { %1074 = vst [vmem:[%s4292_s29 + $0x5c8] sm:$0xff] %v1073_v57  ;;  %v1075_v58 = vld [vmem:[%s4287_s28 + $0x5d00] sm:$0xff] }
  0xd0   : > { %v1077_v59 = vld [vmem:[%s4287_s28 + $0x5d80] sm:$0xff]  ;;  %1076 = vst [vmem:[%s4292_s29 + $0x5d0] sm:$0xff] %v1075_v58 }
  0xd1   : > { %v1079_v60 = vld [vmem:[%s4287_s28 + $0x5e00] sm:$0xff]  ;;  %1078 = vst [vmem:[%s4292_s29 + $0x5d8] sm:$0xff] %v1077_v59 }
  0xd2   : > { %1080 = vst [vmem:[%s4292_s29 + $0x5e0] sm:$0xff] %v1079_v60  ;;  %v1081_v61 = vld [vmem:[%s4287_s28 + $0x5e80] sm:$0xff] }
  0xd3   : > { %v1083_v62 = vld [vmem:[%s4287_s28 + $0x5f00] sm:$0xff]  ;;  %1082 = vst [vmem:[%s4292_s29 + $0x5e8] sm:$0xff] %v1081_v61 }
  0xd4   : > { %v1085_v63 = vld [vmem:[%s4287_s28 + $0x5f80] sm:$0xff]  ;;  %1084 = vst [vmem:[%s4292_s29 + $0x5f0] sm:$0xff] %v1083_v62 }
  0xd5   : > { %1086 = vst [vmem:[%s4292_s29 + $0x5f8] sm:$0xff] %v1085_v63  ;;  %v1087_v0 = vld [vmem:[%s4287_s28 + $0x6000] sm:$0xff] }
  0xd6   : > { %v1089_v1 = vld [vmem:[%s4287_s28 + $0x6080] sm:$0xff]  ;;  %1088 = vst [vmem:[%s4292_s29 + $0x600] sm:$0xff] %v1087_v0 }
  0xd7   : > { %v1091_v2 = vld [vmem:[%s4287_s28 + $0x6100] sm:$0xff]  ;;  %1090 = vst [vmem:[%s4292_s29 + $0x608] sm:$0xff] %v1089_v1 }
  0xd8   : > { %1092 = vst [vmem:[%s4292_s29 + $0x610] sm:$0xff] %v1091_v2  ;;  %v1093_v3 = vld [vmem:[%s4287_s28 + $0x6180] sm:$0xff] }
  0xd9   : > { %v1095_v4 = vld [vmem:[%s4287_s28 + $0x6200] sm:$0xff]  ;;  %1094 = vst [vmem:[%s4292_s29 + $0x618] sm:$0xff] %v1093_v3 }
  0xda   : > { %v1097_v5 = vld [vmem:[%s4287_s28 + $0x6280] sm:$0xff]  ;;  %1096 = vst [vmem:[%s4292_s29 + $0x620] sm:$0xff] %v1095_v4 }
  0xdb   : > { %1098 = vst [vmem:[%s4292_s29 + $0x628] sm:$0xff] %v1097_v5  ;;  %v1099_v6 = vld [vmem:[%s4287_s28 + $0x6300] sm:$0xff] }
  0xdc   : > { %v1101_v7 = vld [vmem:[%s4287_s28 + $0x6380] sm:$0xff]  ;;  %1100 = vst [vmem:[%s4292_s29 + $0x630] sm:$0xff] %v1099_v6 }
  0xdd   : > { %v1103_v8 = vld [vmem:[%s4287_s28 + $0x6400] sm:$0xff]  ;;  %1102 = vst [vmem:[%s4292_s29 + $0x638] sm:$0xff] %v1101_v7 }
  0xde   : > { %1104 = vst [vmem:[%s4292_s29 + $0x640] sm:$0xff] %v1103_v8  ;;  %v1105_v9 = vld [vmem:[%s4287_s28 + $0x6480] sm:$0xff] }
  0xdf   : > { %v1107_v10 = vld [vmem:[%s4287_s28 + $0x6500] sm:$0xff]  ;;  %1106 = vst [vmem:[%s4292_s29 + $0x648] sm:$0xff] %v1105_v9 }
  0xe0   : > { %v1109_v11 = vld [vmem:[%s4287_s28 + $0x6580] sm:$0xff]  ;;  %1108 = vst [vmem:[%s4292_s29 + $0x650] sm:$0xff] %v1107_v10 }
  0xe1   : > { %1110 = vst [vmem:[%s4292_s29 + $0x658] sm:$0xff] %v1109_v11  ;;  %v1111_v12 = vld [vmem:[%s4287_s28 + $0x6600] sm:$0xff] }
  0xe2   : > { %v1113_v13 = vld [vmem:[%s4287_s28 + $0x6680] sm:$0xff]  ;;  %1112 = vst [vmem:[%s4292_s29 + $0x660] sm:$0xff] %v1111_v12 }
  0xe3   : > { %v1115_v14 = vld [vmem:[%s4287_s28 + $0x6700] sm:$0xff]  ;;  %1114 = vst [vmem:[%s4292_s29 + $0x668] sm:$0xff] %v1113_v13 }
  0xe4   : > { %1116 = vst [vmem:[%s4292_s29 + $0x670] sm:$0xff] %v1115_v14  ;;  %v1117_v15 = vld [vmem:[%s4287_s28 + $0x6780] sm:$0xff] }
  0xe5   : > { %v1119_v16 = vld [vmem:[%s4287_s28 + $0x6800] sm:$0xff]  ;;  %1118 = vst [vmem:[%s4292_s29 + $0x678] sm:$0xff] %v1117_v15 }
  0xe6   : > { %v1121_v17 = vld [vmem:[%s4287_s28 + $0x6880] sm:$0xff]  ;;  %1120 = vst [vmem:[%s4292_s29 + $0x680] sm:$0xff] %v1119_v16 }
  0xe7   : > { %1122 = vst [vmem:[%s4292_s29 + $0x688] sm:$0xff] %v1121_v17  ;;  %v1123_v18 = vld [vmem:[%s4287_s28 + $0x6900] sm:$0xff] }
  0xe8   : > { %v1125_v19 = vld [vmem:[%s4287_s28 + $0x6980] sm:$0xff]  ;;  %1124 = vst [vmem:[%s4292_s29 + $0x690] sm:$0xff] %v1123_v18 }
  0xe9   : > { %v1127_v20 = vld [vmem:[%s4287_s28 + $0x6a00] sm:$0xff]  ;;  %1126 = vst [vmem:[%s4292_s29 + $0x698] sm:$0xff] %v1125_v19 }
  0xea   : > { %1128 = vst [vmem:[%s4292_s29 + $0x6a0] sm:$0xff] %v1127_v20  ;;  %v1129_v21 = vld [vmem:[%s4287_s28 + $0x6a80] sm:$0xff] }
  0xeb   : > { %v1131_v22 = vld [vmem:[%s4287_s28 + $0x6b00] sm:$0xff]  ;;  %1130 = vst [vmem:[%s4292_s29 + $0x6a8] sm:$0xff] %v1129_v21 }
  0xec   : > { %v1133_v23 = vld [vmem:[%s4287_s28 + $0x6b80] sm:$0xff]  ;;  %1132 = vst [vmem:[%s4292_s29 + $0x6b0] sm:$0xff] %v1131_v22 }
  0xed   : > { %1134 = vst [vmem:[%s4292_s29 + $0x6b8] sm:$0xff] %v1133_v23  ;;  %v1135_v24 = vld [vmem:[%s4287_s28 + $0x6c00] sm:$0xff] }
  0xee   : > { %v1137_v25 = vld [vmem:[%s4287_s28 + $0x6c80] sm:$0xff]  ;;  %1136 = vst [vmem:[%s4292_s29 + $0x6c0] sm:$0xff] %v1135_v24 }
  0xef   : > { %v1139_v26 = vld [vmem:[%s4287_s28 + $0x6d00] sm:$0xff]  ;;  %1138 = vst [vmem:[%s4292_s29 + $0x6c8] sm:$0xff] %v1137_v25 }
  0xf0   : > { %1140 = vst [vmem:[%s4292_s29 + $0x6d0] sm:$0xff] %v1139_v26  ;;  %v1141_v27 = vld [vmem:[%s4287_s28 + $0x6d80] sm:$0xff] }
  0xf1   : > { %v1143_v28 = vld [vmem:[%s4287_s28 + $0x6e00] sm:$0xff]  ;;  %1142 = vst [vmem:[%s4292_s29 + $0x6d8] sm:$0xff] %v1141_v27 }
  0xf2   : > { %v1145_v29 = vld [vmem:[%s4287_s28 + $0x6e80] sm:$0xff]  ;;  %1144 = vst [vmem:[%s4292_s29 + $0x6e0] sm:$0xff] %v1143_v28 }
  0xf3   : > { %1146 = vst [vmem:[%s4292_s29 + $0x6e8] sm:$0xff] %v1145_v29  ;;  %v1147_v30 = vld [vmem:[%s4287_s28 + $0x6f00] sm:$0xff] }
  0xf4   : > { %v1149_v31 = vld [vmem:[%s4287_s28 + $0x6f80] sm:$0xff]  ;;  %1148 = vst [vmem:[%s4292_s29 + $0x6f0] sm:$0xff] %v1147_v30 }
  0xf5   : > { %v1151_v32 = vld [vmem:[%s4287_s28 + $0x7000] sm:$0xff]  ;;  %1150 = vst [vmem:[%s4292_s29 + $0x6f8] sm:$0xff] %v1149_v31 }
  0xf6   : > { %1152 = vst [vmem:[%s4292_s29 + $0x700] sm:$0xff] %v1151_v32  ;;  %v1153_v33 = vld [vmem:[%s4287_s28 + $0x7080] sm:$0xff] }
  0xf7   : > { %v1155_v34 = vld [vmem:[%s4287_s28 + $0x7100] sm:$0xff]  ;;  %1154 = vst [vmem:[%s4292_s29 + $0x708] sm:$0xff] %v1153_v33 }
  0xf8   : > { %v1157_v35 = vld [vmem:[%s4287_s28 + $0x7180] sm:$0xff]  ;;  %1156 = vst [vmem:[%s4292_s29 + $0x710] sm:$0xff] %v1155_v34 }
  0xf9   : > { %1158 = vst [vmem:[%s4292_s29 + $0x718] sm:$0xff] %v1157_v35  ;;  %v1159_v36 = vld [vmem:[%s4287_s28 + $0x7200] sm:$0xff] }
  0xfa   : > { %v1161_v37 = vld [vmem:[%s4287_s28 + $0x7280] sm:$0xff]  ;;  %1160 = vst [vmem:[%s4292_s29 + $0x720] sm:$0xff] %v1159_v36 }
  0xfb   : > { %v1163_v38 = vld [vmem:[%s4287_s28 + $0x7300] sm:$0xff]  ;;  %1162 = vst [vmem:[%s4292_s29 + $0x728] sm:$0xff] %v1161_v37 }
  0xfc   : > { %1164 = vst [vmem:[%s4292_s29 + $0x730] sm:$0xff] %v1163_v38  ;;  %v1165_v39 = vld [vmem:[%s4287_s28 + $0x7380] sm:$0xff] }
  0xfd   : > { %v1167_v40 = vld [vmem:[%s4287_s28 + $0x7400] sm:$0xff]  ;;  %1166 = vst [vmem:[%s4292_s29 + $0x738] sm:$0xff] %v1165_v39 }
  0xfe   : > { %v1169_v41 = vld [vmem:[%s4287_s28 + $0x7480] sm:$0xff]  ;;  %1168 = vst [vmem:[%s4292_s29 + $0x740] sm:$0xff] %v1167_v40 }
  0xff   : > { %1170 = vst [vmem:[%s4292_s29 + $0x748] sm:$0xff] %v1169_v41  ;;  %v1171_v42 = vld [vmem:[%s4287_s28 + $0x7500] sm:$0xff] }
 0x100   : > { %v1173_v43 = vld [vmem:[%s4287_s28 + $0x7580] sm:$0xff]  ;;  %1172 = vst [vmem:[%s4292_s29 + $0x750] sm:$0xff] %v1171_v42 }
 0x101   : > { %v1175_v44 = vld [vmem:[%s4287_s28 + $0x7600] sm:$0xff]  ;;  %1174 = vst [vmem:[%s4292_s29 + $0x758] sm:$0xff] %v1173_v43 }
 0x102   : > { %1176 = vst [vmem:[%s4292_s29 + $0x760] sm:$0xff] %v1175_v44  ;;  %v1177_v45 = vld [vmem:[%s4287_s28 + $0x7680] sm:$0xff] }
 0x103   : > { %v1179_v46 = vld [vmem:[%s4287_s28 + $0x7700] sm:$0xff]  ;;  %1178 = vst [vmem:[%s4292_s29 + $0x768] sm:$0xff] %v1177_v45 }
 0x104   : > { %v1181_v47 = vld [vmem:[%s4287_s28 + $0x7780] sm:$0xff]  ;;  %1180 = vst [vmem:[%s4292_s29 + $0x770] sm:$0xff] %v1179_v46 }
 0x105   : > { %1182 = vst [vmem:[%s4292_s29 + $0x778] sm:$0xff] %v1181_v47  ;;  %v1183_v48 = vld [vmem:[%s4287_s28 + $0x7800] sm:$0xff] }
 0x106   : > { %v1185_v49 = vld [vmem:[%s4287_s28 + $0x7880] sm:$0xff]  ;;  %1184 = vst [vmem:[%s4292_s29 + $0x780] sm:$0xff] %v1183_v48 }
 0x107   : > { %v1187_v50 = vld [vmem:[%s4287_s28 + $0x7900] sm:$0xff]  ;;  %1186 = vst [vmem:[%s4292_s29 + $0x788] sm:$0xff] %v1185_v49 }
 0x108   : > { %1188 = vst [vmem:[%s4292_s29 + $0x790] sm:$0xff] %v1187_v50  ;;  %v1189_v51 = vld [vmem:[%s4287_s28 + $0x7980] sm:$0xff] }
 0x109   : > { %v1191_v52 = vld [vmem:[%s4287_s28 + $0x7a00] sm:$0xff]  ;;  %1190 = vst [vmem:[%s4292_s29 + $0x798] sm:$0xff] %v1189_v51 }
 0x10a   : > { %v1193_v53 = vld [vmem:[%s4287_s28 + $0x7a80] sm:$0xff]  ;;  %1192 = vst [vmem:[%s4292_s29 + $0x7a0] sm:$0xff] %v1191_v52 }
 0x10b   : > { %1194 = vst [vmem:[%s4292_s29 + $0x7a8] sm:$0xff] %v1193_v53  ;;  %v1195_v54 = vld [vmem:[%s4287_s28 + $0x7b00] sm:$0xff] }
 0x10c   : > { %v1197_v55 = vld [vmem:[%s4287_s28 + $0x7b80] sm:$0xff]  ;;  %1196 = vst [vmem:[%s4292_s29 + $0x7b0] sm:$0xff] %v1195_v54 }
 0x10d   : > { %v1199_v56 = vld [vmem:[%s4287_s28 + $0x7c00] sm:$0xff]  ;;  %1198 = vst [vmem:[%s4292_s29 + $0x7b8] sm:$0xff] %v1197_v55 }
 0x10e   : > { %1200 = vst [vmem:[%s4292_s29 + $0x7c0] sm:$0xff] %v1199_v56  ;;  %v1201_v57 = vld [vmem:[%s4287_s28 + $0x7c80] sm:$0xff] }
 0x10f   : > { %v1203_v58 = vld [vmem:[%s4287_s28 + $0x7d00] sm:$0xff]  ;;  %1202 = vst [vmem:[%s4292_s29 + $0x7c8] sm:$0xff] %v1201_v57 }
 0x110   : > { %v1205_v59 = vld [vmem:[%s4287_s28 + $0x7d80] sm:$0xff]  ;;  %1204 = vst [vmem:[%s4292_s29 + $0x7d0] sm:$0xff] %v1203_v58 }
 0x111   : > { %1206 = vst [vmem:[%s4292_s29 + $0x7d8] sm:$0xff] %v1205_v59  ;;  %v1207_v60 = vld [vmem:[%s4287_s28 + $0x7e00] sm:$0xff] }
 0x112   : > { %v1209_v61 = vld [vmem:[%s4287_s28 + $0x7e80] sm:$0xff]  ;;  %1208 = vst [vmem:[%s4292_s29 + $0x7e0] sm:$0xff] %v1207_v60 }
 0x113   : > { %v1211_v62 = vld [vmem:[%s4287_s28 + $0x7f00] sm:$0xff]  ;;  %1210 = vst [vmem:[%s4292_s29 + $0x7e8] sm:$0xff] %v1209_v61 }
 0x114   : > { %1212 = vst [vmem:[%s4292_s29 + $0x7f0] sm:$0xff] %v1211_v62  ;;  %v1213_v63 = vld [vmem:[%s4287_s28 + $0x7f80] sm:$0xff] }
 0x115   : > { %1214 = vst [vmem:[%s4292_s29 + $0x7f8] sm:$0xff] %v1213_v63 }
 0x116 PF: > { %p3436_p8 = scmp.ge.s32.totalorder %s4217_s16, 1  ;;  %p1227_p9 = scmp.lt.s32.totalorder %s4217_s16, 17 }
 0x118   : > { %p1228_p10 = pnand %p3436_p8, %p1227_p9 }
 0x119   : > { %s1234_s30 = sand.u32 (!%p1228_p10), 1, %s4201_s12   ;;  %v4809_v0 = vld [vmem:[%s5211_s0] sm:$0xff] (!%p1228_p10)  ;;  %s3439_s29 = sshll.u32 (!%p1228_p10), %s4209_s14, 1 }
 0x11a   : > { %1231 = sbr.rel (%p1228_p10) target bundleno = 775 (0x307), region = 66  ;;  %v4814_v1 = vld [vmem:[%s5211_s0 + $0x40] sm:$0xff] (!%p1228_p10)  ;;  %s3437_s10 = sshll.u32 (!%p1228_p10), %s1234_s30, 11 }
 0x11b   : > { %v4819_v2 = vld [vmem:[%s5211_s0 + $0x20] sm:$0xff] (!%p1228_p10)  ;;  %v3440_v3 = vcombine.low (!%p1228_p10), %v4809_v0, %v4814_v1  ;;  %v3441_v4 = vcombine.high (!%p1228_p10), %v4809_v0, %v4814_v1  ;;  %s4836_s19 = scalar_lea.vmem (!%p1228_p10), [#allocation2], %s3437_s10  ;;  %p1275_p11 = scmp.lt.s32.totalorder (!%p1228_p10), %s3439_s29, 31 }
 0x11c   : > { %v4830_v5 = vld [vmem:[%s5211_s0 + $0x60] sm:$0xff] (!%p1228_p10)  ;;  %v3801_v12 = vld [vmem:[%s4836_s19 + $0x14] ss:$8 sps:$4 sm:$0xff] (!%p1228_p10)   ;;  %v3805_v14 = vld [vmem:[%s4836_s19 + $0x10] ss:$8 sps:$4 sm:$0xff] (!%p1228_p10)   ;;  %s3438_s6 = sshll.u32 (!%p1228_p10), %s1234_s30, 4 }
 0x11d   : > { %v3448_v6 = vcombine.low (!%p1228_p10), %v4819_v2, %v4830_v5  ;;  %v3449_v7 = vcombine.high (!%p1228_p10), %v4819_v2, %v4830_v5  ;;  %v3795_v8 = vld [vmem:[%s4836_s19 + $0x4] ss:$8 sps:$4 sm:$0xff] (!%p1228_p10)   ;;  %2957 = vmatprep.mubr.bf16.mxu1 (!%p1228_p10), %v3441_v4  ;;  %v3799_v10 = vld [vmem:[%s4836_s19] ss:$8 sps:$4 sm:$0xff] (!%p1228_p10)   ;;  %v3803_v13 = vld [vmem:[%s4836_s19 + $0x414] ss:$8 sps:$4 sm:$0xff] (!%p1228_p10)  }
 0x11e   : > { %v3797_v9 = vld [vmem:[%s4836_s19 + $0x404] ss:$8 sps:$4 sm:$0xff] (!%p1228_p10)   ;;  %2925 = vmatprep.subr.bf16.mxu1 (!%p1228_p10), %v3795_v8  ;;  %v3800_v11 = vld [vmem:[%s4836_s19 + $0x400] ss:$8 sps:$4 sm:$0xff] (!%p1228_p10)   ;;  %v3806_v15 = vld [vmem:[%s4836_s19 + $0x410] ss:$8 sps:$4 sm:$0xff] (!%p1228_p10)  }
 0x11f   : > { %3129 = vmatprep.mubr.bf16.mxu0 (!%p1228_p10), %v3449_v7  ;;  %3097 = vmatprep.subr.bf16.mxu0 (!%p1228_p10), %v3797_v9  ;;  %v3807_v16 = vld [vmem:[%s4836_s19 + $0x24] ss:$8 sps:$4 sm:$0xff] (!%p1228_p10)   ;;  %v3811_v18 = vld [vmem:[%s4836_s19 + $0x20] ss:$8 sps:$4 sm:$0xff] (!%p1228_p10)   ;;  %v3813_v20 = vld [vmem:[%s4836_s19 + $0x34] ss:$8 sps:$4 sm:$0xff] (!%p1228_p10)  }
 0x120   : > { %2926 = vmatpush1.bf16.msra.mxu1 (!%p1228_p10), %v3799_v10  ;;  %3098 = vmatpush1.bf16.msra.mxu0 (!%p1228_p10), %v3800_v11  ;;  %v3809_v17 = vld [vmem:[%s4836_s19 + $0x424] ss:$8 sps:$4 sm:$0xff] (!%p1228_p10)   ;;  %v3812_v19 = vld [vmem:[%s4836_s19 + $0x420] ss:$8 sps:$4 sm:$0xff] (!%p1228_p10)   ;;  %v3815_v21 = vld [vmem:[%s4836_s19 + $0x434] ss:$8 sps:$4 sm:$0xff] (!%p1228_p10)  }
 0x121   : > { %2927 = vmatprep.subr.bf16.mxu1 %v3801_v12  ;;  %3099 = vmatprep.subr.bf16.mxu0 %v3803_v13  ;;  %v3817_v22 = vld [vmem:[%s4836_s19 + $0x30] ss:$8 sps:$4 sm:$0xff]   ;;  %v3819_v24 = vld [vmem:[%s4836_s19 + $0x44] ss:$8 sps:$4 sm:$0xff]   ;;  %v3823_v26 = vld [vmem:[%s4836_s19 + $0x40] ss:$8 sps:$4 sm:$0xff]  }
 0x122   : > { %v3818_v23 = vld [vmem:[%s4836_s19 + $0x430] ss:$8 sps:$4 sm:$0xff]   ;;  %v3821_v25 = vld [vmem:[%s4836_s19 + $0x444] ss:$8 sps:$4 sm:$0xff]   ;;  %v3824_v27 = vld [vmem:[%s4836_s19 + $0x440] ss:$8 sps:$4 sm:$0xff]  }
 0x123   : > { %v3825_v28 = vld [vmem:[%s4836_s19 + $0x54] ss:$8 sps:$4 sm:$0xff]   ;;  %v3829_v30 = vld [vmem:[%s4836_s19 + $0x50] ss:$8 sps:$4 sm:$0xff]   ;;  %v3831_v32 = vld [vmem:[%s4836_s19 + $0x64] ss:$8 sps:$4 sm:$0xff]  }
 0x124   : > { %2928 = vmatpush1.bf16.msra.mxu1 %v3805_v14  ;;  %3100 = vmatpush1.bf16.msra.mxu0 %v3806_v15  ;;  %v3827_v29 = vld [vmem:[%s4836_s19 + $0x454] ss:$8 sps:$4 sm:$0xff]   ;;  %v3830_v31 = vld [vmem:[%s4836_s19 + $0x450] ss:$8 sps:$4 sm:$0xff]   ;;  %v3833_v33 = vld [vmem:[%s4836_s19 + $0x464] ss:$8 sps:$4 sm:$0xff]  }
 0x125   : > { %2929 = vmatprep.subr.bf16.mxu1 %v3807_v16  ;;  %3101 = vmatprep.subr.bf16.mxu0 %v3809_v17  ;;  %v3835_v34 = vld [vmem:[%s4836_s19 + $0x60] ss:$8 sps:$4 sm:$0xff]   ;;  %v3837_v36 = vld [vmem:[%s4836_s19 + $0x74] ss:$8 sps:$4 sm:$0xff]   ;;  %v3841_v38 = vld [vmem:[%s4836_s19 + $0x70] ss:$8 sps:$4 sm:$0xff]  }
 0x126   : > { %v3836_v35 = vld [vmem:[%s4836_s19 + $0x460] ss:$8 sps:$4 sm:$0xff]   ;;  %v3839_v37 = vld [vmem:[%s4836_s19 + $0x474] ss:$8 sps:$4 sm:$0xff]   ;;  %v3842_v39 = vld [vmem:[%s4836_s19 + $0x470] ss:$8 sps:$4 sm:$0xff]  }
 0x127   : > { %v3843_v40 = vld [vmem:[%s4836_s19 + $0x84] ss:$8 sps:$4 sm:$0xff]   ;;  %v3847_v42 = vld [vmem:[%s4836_s19 + $0x80] ss:$8 sps:$4 sm:$0xff]   ;;  %v3849_v44 = vld [vmem:[%s4836_s19 + $0x94] ss:$8 sps:$4 sm:$0xff]  }
 0x128   : > { %2930 = vmatpush1.bf16.msra.mxu1 %v3811_v18  ;;  %3102 = vmatpush1.bf16.msra.mxu0 %v3812_v19  ;;  %v3845_v41 = vld [vmem:[%s4836_s19 + $0x484] ss:$8 sps:$4 sm:$0xff]   ;;  %v3848_v43 = vld [vmem:[%s4836_s19 + $0x480] ss:$8 sps:$4 sm:$0xff]   ;;  %v3851_v45 = vld [vmem:[%s4836_s19 + $0x494] ss:$8 sps:$4 sm:$0xff]  }
 0x129   : > { %2931 = vmatprep.subr.bf16.mxu1 %v3813_v20  ;;  %3103 = vmatprep.subr.bf16.mxu0 %v3815_v21  ;;  %v3853_v46 = vld [vmem:[%s4836_s19 + $0x90] ss:$8 sps:$4 sm:$0xff]   ;;  %v3855_v48 = vld [vmem:[%s4836_s19 + $0xa4] ss:$8 sps:$4 sm:$0xff]   ;;  %v3859_v50 = vld [vmem:[%s4836_s19 + $0xa0] ss:$8 sps:$4 sm:$0xff]  }
 0x12a   : > { %v3854_v47 = vld [vmem:[%s4836_s19 + $0x490] ss:$8 sps:$4 sm:$0xff]   ;;  %v3857_v49 = vld [vmem:[%s4836_s19 + $0x4a4] ss:$8 sps:$4 sm:$0xff]   ;;  %v3860_v51 = vld [vmem:[%s4836_s19 + $0x4a0] ss:$8 sps:$4 sm:$0xff]  }
 0x12b   : > { %v3861_v52 = vld [vmem:[%s4836_s19 + $0xb4] ss:$8 sps:$4 sm:$0xff]   ;;  %v3865_v54 = vld [vmem:[%s4836_s19 + $0xb0] ss:$8 sps:$4 sm:$0xff]   ;;  %v3867_v56 = vld [vmem:[%s4836_s19 + $0xc4] ss:$8 sps:$4 sm:$0xff]  }
 0x12c   : > { %2932 = vmatpush1.bf16.msra.mxu1 %v3817_v22  ;;  %3104 = vmatpush1.bf16.msra.mxu0 %v3818_v23  ;;  %v3863_v53 = vld [vmem:[%s4836_s19 + $0x4b4] ss:$8 sps:$4 sm:$0xff]   ;;  %v3866_v55 = vld [vmem:[%s4836_s19 + $0x4b0] ss:$8 sps:$4 sm:$0xff]   ;;  %v3869_v57 = vld [vmem:[%s4836_s19 + $0x4c4] ss:$8 sps:$4 sm:$0xff]  }
 0x12d   : > { %2933 = vmatprep.subr.bf16.mxu1 %v3819_v24  ;;  %3105 = vmatprep.subr.bf16.mxu0 %v3821_v25  ;;  %v3871_v58 = vld [vmem:[%s4836_s19 + $0xc0] ss:$8 sps:$4 sm:$0xff]   ;;  %v3873_v60 = vld [vmem:[%s4836_s19 + $0xd4] ss:$8 sps:$4 sm:$0xff]   ;;  %v3877_v62 = vld [vmem:[%s4836_s19 + $0xd0] ss:$8 sps:$4 sm:$0xff]  }
 0x12e   : > { %v3872_v59 = vld [vmem:[%s4836_s19 + $0x4c0] ss:$8 sps:$4 sm:$0xff]   ;;  %v3875_v61 = vld [vmem:[%s4836_s19 + $0x4d4] ss:$8 sps:$4 sm:$0xff]   ;;  %v3878_v63 = vld [vmem:[%s4836_s19 + $0x4d0] ss:$8 sps:$4 sm:$0xff]  }
 0x12f   : > { %v3879_v4 = vld [vmem:[%s4836_s19 + $0xe4] ss:$8 sps:$4 sm:$0xff]   ;;  %v3883_v8 = vld [vmem:[%s4836_s19 + $0xe0] ss:$8 sps:$4 sm:$0xff]   ;;  %v3885_v10 = vld [vmem:[%s4836_s19 + $0xf4] ss:$8 sps:$4 sm:$0xff]  }
 0x130   : > { %2934 = vmatpush1.bf16.msra.mxu1 %v3823_v26  ;;  %3106 = vmatpush1.bf16.msra.mxu0 %v3824_v27  ;;  %v3881_v7 = vld [vmem:[%s4836_s19 + $0x4e4] ss:$8 sps:$4 sm:$0xff]   ;;  %v3884_v9 = vld [vmem:[%s4836_s19 + $0x4e0] ss:$8 sps:$4 sm:$0xff]   ;;  %v3887_v11 = vld [vmem:[%s4836_s19 + $0x4f4] ss:$8 sps:$4 sm:$0xff]  }
 0x131   : > { %2935 = vmatprep.subr.bf16.mxu1 %v3825_v28  ;;  %3107 = vmatprep.subr.bf16.mxu0 %v3827_v29  ;;  %v3889_v12 = vld [vmem:[%s4836_s19 + $0xf0] ss:$8 sps:$4 sm:$0xff]   ;;  %v3893_v14 = vld [vmem:[%s4836_s19 + $0x104] ss:$8 sps:$4 sm:$0xff]   ;;  %v3891_v16 = vld [vmem:[%s4836_s19 + $0x100] ss:$8 sps:$4 sm:$0xff]  }
 0x132   : > { %v3890_v13 = vld [vmem:[%s4836_s19 + $0x4f0] ss:$8 sps:$4 sm:$0xff]   ;;  %v3896_v15 = vld [vmem:[%s4836_s19 + $0x504] ss:$8 sps:$4 sm:$0xff]   ;;  %v3894_v17 = vld [vmem:[%s4836_s19 + $0x500] ss:$8 sps:$4 sm:$0xff]  }
 0x133   : > { %v3899_v18 = vld [vmem:[%s4836_s19 + $0x114] ss:$8 sps:$4 sm:$0xff]   ;;  %v3897_v20 = vld [vmem:[%s4836_s19 + $0x110] ss:$8 sps:$4 sm:$0xff]   ;;  %v3905_v22 = vld [vmem:[%s4836_s19 + $0x124] ss:$8 sps:$4 sm:$0xff]  }
 0x134   : > { %2936 = vmatpush1.bf16.msra.mxu1 %v3829_v30  ;;  %3108 = vmatpush1.bf16.msra.mxu0 %v3830_v31  ;;  %v3902_v19 = vld [vmem:[%s4836_s19 + $0x514] ss:$8 sps:$4 sm:$0xff]   ;;  %v3900_v21 = vld [vmem:[%s4836_s19 + $0x510] ss:$8 sps:$4 sm:$0xff]   ;;  %v3908_v23 = vld [vmem:[%s4836_s19 + $0x524] ss:$8 sps:$4 sm:$0xff]  }
 0x135   : > { %2937 = vmatprep.subr.bf16.mxu1 %v3831_v32  ;;  %3109 = vmatprep.subr.bf16.mxu0 %v3833_v33  ;;  %v3903_v24 = vld [vmem:[%s4836_s19 + $0x120] ss:$8 sps:$4 sm:$0xff]   ;;  %v3911_v1 = vld [vmem:[%s4836_s19 + $0x134] ss:$8 sps:$4 sm:$0xff]   ;;  %v3912_v5 = vld [vmem:[%s4836_s19 + $0x530] ss:$8 sps:$4 sm:$0xff]  }
 0x136   : > { %v3906_v0 = vld [vmem:[%s4836_s19 + $0x520] ss:$8 sps:$4 sm:$0xff]   ;;  %v3914_v2 = vld [vmem:[%s4836_s19 + $0x534] ss:$8 sps:$4 sm:$0xff]   ;;  %v3920_v25 = vld [vmem:[%s4836_s19 + $0x544] ss:$8 sps:$4 sm:$0xff]  }
 0x137   : > { %v3915_v26 = vld [vmem:[%s4836_s19 + $0x140] ss:$8 sps:$4 sm:$0xff]   ;;  %v3923_v28 = vld [vmem:[%s4836_s19 + $0x154] ss:$8 sps:$4 sm:$0xff]   ;;  %v3921_v30 = vld [vmem:[%s4836_s19 + $0x150] ss:$8 sps:$4 sm:$0xff]  }
 0x138   : > { %2938 = vmatpush1.bf16.msra.mxu1 %v3835_v34  ;;  %3110 = vmatpush1.bf16.msra.mxu0 %v3836_v35  ;;  %v3918_v27 = vld [vmem:[%s4836_s19 + $0x540] ss:$8 sps:$4 sm:$0xff]   ;;  %v3926_v29 = vld [vmem:[%s4836_s19 + $0x554] ss:$8 sps:$4 sm:$0xff]   ;;  %v3924_v31 = vld [vmem:[%s4836_s19 + $0x550] ss:$8 sps:$4 sm:$0xff]  }
 0x139   : > { %2939 = vmatprep.subr.bf16.mxu1 %v3837_v36  ;;  %3111 = vmatprep.subr.bf16.mxu0 %v3839_v37  ;;  %v3929_v32 = vld [vmem:[%s4836_s19 + $0x164] ss:$8 sps:$4 sm:$0xff]   ;;  %v3927_v36 = vld [vmem:[%s4836_s19 + $0x160] ss:$8 sps:$4 sm:$0xff]   ;;  %s5223_s29 = smov (!%p1275_p11, %s3439_s29), 31  ;;  %s1265_s7 = scalar_lea.vmem [#allocation3], %s3438_s6 }
 0x13a   : > { %v3932_v33 = vld [vmem:[%s4836_s19 + $0x564] ss:$8 sps:$4 sm:$0xff]   ;;  %s3722_s8 = sshll.u32 (%p4274_p6), %s4209_s14, 3 }
 0x13b   : > { %v4937_v34 = vld [vmem:[%s5211_s0 + $0x8] sm:$0xff]  ;;  %s3299_s9 = scalar_lea.vmem (%p4274_p6), %s5214_s3, %s3722_s8 }
 0x13c   : > { %2940 = vmatpush1.bf16.msra.mxu1 %v3841_v38  ;;  %3112 = vmatpush1.bf16.msra.mxu0 %v3842_v39  ;;  %v4942_v35 = vld [vmem:[%s5211_s0 + $0x48] sm:$0xff] }
 0x13d   : > { %2941 = vmatprep.subr.bf16.mxu1 %v3843_v40  ;;  %3113 = vmatprep.subr.bf16.mxu0 %v3845_v41  ;;  %v3443_v37 = vcombine.high %v4937_v34, %v4942_v35  ;;  %v3930_v38 = vld [vmem:[%s4836_s19 + $0x560] ss:$8 sps:$4 sm:$0xff]   ;;  %v3935_v41 = vld [vmem:[%s4836_s19 + $0x174] ss:$8 sps:$4 sm:$0xff]  }
 0x13e   : > { %v4951_v39 = vld [vmem:[%s5211_s0 + $0x28] sm:$0xff] }
 0x13f   : > { %v4956_v40 = vld [vmem:[%s5211_s0 + $0x68] sm:$0xff] }
 0x140   : > { %2942 = vmatpush1.bf16.msra.mxu1 %v3847_v42  ;;  %3114 = vmatpush1.bf16.msra.mxu0 %v3848_v43  ;;  %v3451_v42 = vcombine.high %v4951_v39, %v4956_v40  ;;  %v3938_v43 = vld [vmem:[%s4836_s19 + $0x574] ss:$8 sps:$4 sm:$0xff]  }
 0x141   : > { %2943 = vmatprep.subr.bf16.mxu1 %v3849_v44  ;;  %3115 = vmatprep.subr.bf16.mxu0 %v3851_v45  ;;  %v3933_v44 = vld [vmem:[%s4836_s19 + $0x170] ss:$8 sps:$4 sm:$0xff]  }
 0x142   : > { %v3936_v45 = vld [vmem:[%s4836_s19 + $0x570] ss:$8 sps:$4 sm:$0xff]  }
 0x144   : > { %2944 = vmatpush1.bf16.msra.mxu1 %v3853_v46  ;;  %3116 = vmatpush1.bf16.msra.mxu0 %v3854_v47  ;;  %v3941_v46 = vld [vmem:[%s4836_s19 + $0x184] ss:$8 sps:$4 sm:$0xff]  }
 0x145   : > { %2945 = vmatprep.subr.bf16.mxu1 %v3855_v48  ;;  %3117 = vmatprep.subr.bf16.mxu0 %v3857_v49  ;;  %v3944_v47 = vld [vmem:[%s4836_s19 + $0x584] ss:$8 sps:$4 sm:$0xff]   ;;  %v3939_v48 = vld [vmem:[%s4836_s19 + $0x180] ss:$8 sps:$4 sm:$0xff]  }
 0x146   : > { %v3942_v49 = vld [vmem:[%s4836_s19 + $0x580] ss:$8 sps:$4 sm:$0xff]  }
 0x148   : > { %2946 = vmatpush1.bf16.msra.mxu1 %v3859_v50  ;;  %3118 = vmatpush1.bf16.msra.mxu0 %v3860_v51  ;;  %v3947_v50 = vld [vmem:[%s4836_s19 + $0x194] ss:$8 sps:$4 sm:$0xff]  }
 0x149   : > { %2947 = vmatprep.subr.bf16.mxu1 %v3861_v52  ;;  %3119 = vmatprep.subr.bf16.mxu0 %v3863_v53  ;;  %v3950_v51 = vld [vmem:[%s4836_s19 + $0x594] ss:$8 sps:$4 sm:$0xff]   ;;  %v3945_v52 = vld [vmem:[%s4836_s19 + $0x190] ss:$8 sps:$4 sm:$0xff]  }
 0x14a   : > { %v3948_v53 = vld [vmem:[%s4836_s19 + $0x590] ss:$8 sps:$4 sm:$0xff]  }
 0x14c   : > { %2948 = vmatpush1.bf16.msra.mxu1 %v3865_v54  ;;  %3120 = vmatpush1.bf16.msra.mxu0 %v3866_v55  ;;  %v3953_v54 = vld [vmem:[%s4836_s19 + $0x1a4] ss:$8 sps:$4 sm:$0xff]  }
 0x14d   : > { %2949 = vmatprep.subr.bf16.mxu1 %v3867_v56  ;;  %3121 = vmatprep.subr.bf16.mxu0 %v3869_v57  ;;  %v3956_v55 = vld [vmem:[%s4836_s19 + $0x5a4] ss:$8 sps:$4 sm:$0xff]   ;;  %v3951_v56 = vld [vmem:[%s4836_s19 + $0x1a0] ss:$8 sps:$4 sm:$0xff]  }
 0x14e   : > { %v3954_v57 = vld [vmem:[%s4836_s19 + $0x5a0] ss:$8 sps:$4 sm:$0xff]  }
 0x150   : > { %2950 = vmatpush1.bf16.msra.mxu1 %v3871_v58  ;;  %3122 = vmatpush1.bf16.msra.mxu0 %v3872_v59  ;;  %v3959_v58 = vld [vmem:[%s4836_s19 + $0x1b4] ss:$8 sps:$4 sm:$0xff]  }
 0x151   : > { %2951 = vmatprep.subr.bf16.mxu1 %v3873_v60  ;;  %3123 = vmatprep.subr.bf16.mxu0 %v3875_v61  ;;  %v3962_v59 = vld [vmem:[%s4836_s19 + $0x5b4] ss:$8 sps:$4 sm:$0xff]   ;;  %v3957_v60 = vld [vmem:[%s4836_s19 + $0x1b0] ss:$8 sps:$4 sm:$0xff]  }
 0x152   : > { %v3960_v61 = vld [vmem:[%s4836_s19 + $0x5b0] ss:$8 sps:$4 sm:$0xff]  }
 0x154   : > { %2952 = vmatpush1.bf16.msra.mxu1 %v3877_v62  ;;  %3124 = vmatpush1.bf16.msra.mxu0 %v3878_v63  ;;  %v3965_v62 = vld [vmem:[%s4836_s19 + $0x1c4] ss:$8 sps:$4 sm:$0xff]  }
 0x155   : > { %2953 = vmatprep.subr.bf16.mxu1 %v3879_v4  ;;  %3125 = vmatprep.subr.bf16.mxu0 %v3881_v7  ;;  %v3968_v63 = vld [vmem:[%s4836_s19 + $0x5c4] ss:$8 sps:$4 sm:$0xff]   ;;  %v3963_v4 = vld [vmem:[%s4836_s19 + $0x1c0] ss:$8 sps:$4 sm:$0xff]  }
 0x156   : > { %v3966_v7 = vld [vmem:[%s4836_s19 + $0x5c0] ss:$8 sps:$4 sm:$0xff]  }
 0x158   : > { %2954 = vmatpush1.bf16.msra.mxu1 %v3883_v8  ;;  %3126 = vmatpush1.bf16.msra.mxu0 %v3884_v9  ;;  %v3971_v8 = vld [vmem:[%s4836_s19 + $0x1d4] ss:$8 sps:$4 sm:$0xff]  }
 0x159   : > { %2955 = vmatprep.subr.bf16.mxu1 %v3885_v10  ;;  %3127 = vmatprep.subr.bf16.mxu0 %v3887_v11  ;;  %v3974_v9 = vld [vmem:[%s4836_s19 + $0x5d4] ss:$8 sps:$4 sm:$0xff]   ;;  %v3969_v10 = vld [vmem:[%s4836_s19 + $0x1d0] ss:$8 sps:$4 sm:$0xff]  }
 0x15a   : > { %v3972_v11 = vld [vmem:[%s4836_s19 + $0x5d0] ss:$8 sps:$4 sm:$0xff]  }
 0x15c   : > { %2956 = vmatpush1.bf16.msra.mxu1 %v3889_v12  ;;  %3128 = vmatpush1.bf16.msra.mxu0 %v3890_v13  ;;  %v3977_v12 = vld [vmem:[%s4836_s19 + $0x1e4] ss:$8 sps:$4 sm:$0xff]  }
 0x15d   : > { %2968 = vmatprep.subr.bf16.mxu1 %v3893_v14  ;;  %3140 = vmatprep.subr.bf16.mxu0 %v3896_v15  ;;  %v3980_v13 = vld [vmem:[%s4836_s19 + $0x5e4] ss:$8 sps:$4 sm:$0xff]   ;;  %v3975_v14 = vld [vmem:[%s4836_s19 + $0x1e0] ss:$8 sps:$4 sm:$0xff]  }
 0x15e   : > { %v3978_v15 = vld [vmem:[%s4836_s19 + $0x5e0] ss:$8 sps:$4 sm:$0xff]  }
 0x15f   : > { %2958 = vmatmul.mubr.bf16.vlgmr.msra.gmra.mrb[0].mxu1 %v3440_v3  ;;  %3130 = vmatmul.mubr.bf16.vlgmr.msra.gmra.mrb[0].mxu0 %v3448_v6  ;;  %v3909_v3 = vld [vmem:[%s4836_s19 + $0x130] ss:$8 sps:$4 sm:$0xff]   ;;  %v3917_v6 = vld [vmem:[%s4836_s19 + $0x144] ss:$8 sps:$4 sm:$0xff]  }
 0x160   : > { %2969 = vmatpush1.bf16.msra.mxu1 %v3891_v16  ;;  %3141 = vmatpush1.bf16.msra.mxu0 %v3894_v17  ;;  %v3983_v16 = vld [vmem:[%s4836_s19 + $0x1f4] ss:$8 sps:$4 sm:$0xff]  }
 0x161   : > { %2970 = vmatprep.subr.bf16.mxu1 %v3899_v18  ;;  %3142 = vmatprep.subr.bf16.mxu0 %v3902_v19  ;;  %v3986_v17 = vld [vmem:[%s4836_s19 + $0x5f4] ss:$8 sps:$4 sm:$0xff]   ;;  %v3981_v18 = vld [vmem:[%s4836_s19 + $0x1f0] ss:$8 sps:$4 sm:$0xff]  }
 0x162   : > { %3000 = vmatprep.mubr.bf16.mxu1 %v3443_v37  ;;  %3172 = vmatprep.mubr.bf16.mxu0 %v3451_v42  ;;  %v3984_v19 = vld [vmem:[%s4836_s19 + $0x5f0] ss:$8 sps:$4 sm:$0xff]   ;;  %v4019_v42 = vld [vmem:[%s4836_s19 + $0x254] ss:$8 sps:$4 sm:$0xff]  }
 0x163   : > { %v4008_v37 = vld [vmem:[%s4836_s19 + $0x630] ss:$8 sps:$4 sm:$0xff]  }
 0x164   : > { %2971 = vmatpush1.bf16.msra.mxu1 %v3897_v20  ;;  %3143 = vmatpush1.bf16.msra.mxu0 %v3900_v21  ;;  %v3989_v20 = vld [vmem:[%s4836_s19 + $0x204] ss:$8 sps:$4 sm:$0xff]  }
 0x165   : > { %2972 = vmatprep.subr.bf16.mxu1 %v3905_v22  ;;  %3144 = vmatprep.subr.bf16.mxu0 %v3908_v23  ;;  %v3992_v21 = vld [vmem:[%s4836_s19 + $0x604] ss:$8 sps:$4 sm:$0xff]   ;;  %v3442_v22 = vcombine.low %v4937_v34, %v4942_v35  ;;  %v3987_v23 = vld [vmem:[%s4836_s19 + $0x200] ss:$8 sps:$4 sm:$0xff]   ;;  %v4007_v34 = vld [vmem:[%s4836_s19 + $0x234] ss:$8 sps:$4 sm:$0xff]  }
 0x166   : > { %v4010_v35 = vld [vmem:[%s4836_s19 + $0x634] ss:$8 sps:$4 sm:$0xff]  }
 0x168   : > { %2973 = vmatpush1.bf16.msra.mxu1 %v3903_v24  ;;  %3145 = vmatpush1.bf16.msra.mxu0 %v3906_v0  ;;  %v3450_v24 = vcombine.low %v4951_v39, %v4956_v40  ;;  %v3990_v0 = vld [vmem:[%s4836_s19 + $0x600] ss:$8 sps:$4 sm:$0xff]   ;;  %v4016_v39 = vld [vmem:[%s4836_s19 + $0x644] ss:$8 sps:$4 sm:$0xff]  }
 0x169   : > { %2974 = vmatprep.subr.bf16.mxu1 %v3911_v1  ;;  %3146 = vmatprep.subr.bf16.mxu0 %v3914_v2  ;;  %v3995_v1 = vld [vmem:[%s4836_s19 + $0x214] ss:$8 sps:$4 sm:$0xff]   ;;  %v4011_v40 = vld [vmem:[%s4836_s19 + $0x240] ss:$8 sps:$4 sm:$0xff]  }
 0x16a   : > { %v3998_v2 = vld [vmem:[%s4836_s19 + $0x614] ss:$8 sps:$4 sm:$0xff]  }
 0x16c   : > { %2975 = vmatpush1.bf16.msra.mxu1 %v3909_v3  ;;  %3147 = vmatpush1.bf16.msra.mxu0 %v3912_v5  ;;  %v5009_v3 = vld [vmem:[%s5211_s0 + $0x10] sm:$0xff] }
 0x16d   : > { %2976 = vmatprep.subr.bf16.mxu1 %v3917_v6  ;;  %3148 = vmatprep.subr.bf16.mxu0 %v3920_v25  ;;  %v5014_v5 = vld [vmem:[%s5211_s0 + $0x50] sm:$0xff] }
 0x16e   : > { %v3993_v6 = vld [vmem:[%s4836_s19 + $0x210] ss:$8 sps:$4 sm:$0xff]   ;;  %v3445_v25 = vcombine.high %v5009_v3, %v5014_v5 }
 0x170   : > { %2977 = vmatpush1.bf16.msra.mxu1 %v3915_v26  ;;  %3149 = vmatpush1.bf16.msra.mxu0 %v3918_v27  ;;  %v3996_v26 = vld [vmem:[%s4836_s19 + $0x610] ss:$8 sps:$4 sm:$0xff]  }
 0x171   : > { %2978 = vmatprep.subr.bf16.mxu1 %v3923_v28  ;;  %3150 = vmatprep.subr.bf16.mxu0 %v3926_v29  ;;  %v5023_v27 = vld [vmem:[%s5211_s0 + $0x30] sm:$0xff]  ;;  %v4001_v29 = vld [vmem:[%s4836_s19 + $0x224] ss:$8 sps:$4 sm:$0xff]  }
 0x172   : > { %v5028_v28 = vld [vmem:[%s5211_s0 + $0x70] sm:$0xff] }
 0x174   : > { %2979 = vmatpush1.bf16.msra.mxu1 %v3921_v30  ;;  %3151 = vmatpush1.bf16.msra.mxu0 %v3924_v31  ;;  %v3453_v30 = vcombine.high %v5023_v27, %v5028_v28  ;;  %v4004_v31 = vld [vmem:[%s4836_s19 + $0x624] ss:$8 sps:$4 sm:$0xff]  }
 0x175   : > { %2980 = vmatprep.subr.bf16.mxu1 %v3929_v32  ;;  %3152 = vmatprep.subr.bf16.mxu0 %v3932_v33  ;;  %v3999_v32 = vld [vmem:[%s4836_s19 + $0x220] ss:$8 sps:$4 sm:$0xff]  }
 0x176   : > { %v4002_v33 = vld [vmem:[%s4836_s19 + $0x620] ss:$8 sps:$4 sm:$0xff]  }
 0x178   : > { %2981 = vmatpush1.bf16.msra.mxu1 %v3927_v36  ;;  %3153 = vmatpush1.bf16.msra.mxu0 %v3930_v38  ;;  %v4005_v36 = vld [vmem:[%s4836_s19 + $0x230] ss:$8 sps:$4 sm:$0xff]   ;;  %v4013_v38 = vld [vmem:[%s4836_s19 + $0x244] ss:$8 sps:$4 sm:$0xff]  }
 0x179   : > { %2982 = vmatprep.subr.bf16.mxu1 %v3935_v41  ;;  %3154 = vmatprep.subr.bf16.mxu0 %v3938_v43  ;;  %v4014_v41 = vld [vmem:[%s4836_s19 + $0x640] ss:$8 sps:$4 sm:$0xff]   ;;  %v4022_v43 = vld [vmem:[%s4836_s19 + $0x654] ss:$8 sps:$4 sm:$0xff]  }
 0x17c   : > { %2983 = vmatpush1.bf16.msra.mxu1 %v3933_v44  ;;  %3155 = vmatpush1.bf16.msra.mxu0 %v3936_v45  ;;  %v4017_v44 = vld [vmem:[%s4836_s19 + $0x250] ss:$8 sps:$4 sm:$0xff]  }
 0x17d   : > { %2984 = vmatprep.subr.bf16.mxu1 %v3941_v46  ;;  %3156 = vmatprep.subr.bf16.mxu0 %v3944_v47  ;;  %v4020_v45 = vld [vmem:[%s4836_s19 + $0x650] ss:$8 sps:$4 sm:$0xff]   ;;  %v4025_v46 = vld [vmem:[%s4836_s19 + $0x264] ss:$8 sps:$4 sm:$0xff]  }
 0x17e   : > { %v4028_v47 = vld [vmem:[%s4836_s19 + $0x664] ss:$8 sps:$4 sm:$0xff]  }
 0x180   : > { %2985 = vmatpush1.bf16.msra.mxu1 %v3939_v48  ;;  %3157 = vmatpush1.bf16.msra.mxu0 %v3942_v49  ;;  %v4023_v48 = vld [vmem:[%s4836_s19 + $0x260] ss:$8 sps:$4 sm:$0xff]  }
 0x181   : > { %2986 = vmatprep.subr.bf16.mxu1 %v3947_v50  ;;  %3158 = vmatprep.subr.bf16.mxu0 %v3950_v51  ;;  %v4026_v49 = vld [vmem:[%s4836_s19 + $0x660] ss:$8 sps:$4 sm:$0xff]   ;;  %v4031_v50 = vld [vmem:[%s4836_s19 + $0x274] ss:$8 sps:$4 sm:$0xff]  }
 0x182   : > { %v4034_v51 = vld [vmem:[%s4836_s19 + $0x674] ss:$8 sps:$4 sm:$0xff]  }
 0x184   : > { %2987 = vmatpush1.bf16.msra.mxu1 %v3945_v52  ;;  %3159 = vmatpush1.bf16.msra.mxu0 %v3948_v53  ;;  %v4029_v52 = vld [vmem:[%s4836_s19 + $0x270] ss:$8 sps:$4 sm:$0xff]  }
 0x185   : > { %2988 = vmatprep.subr.bf16.mxu1 %v3953_v54  ;;  %3160 = vmatprep.subr.bf16.mxu0 %v3956_v55  ;;  %v4032_v53 = vld [vmem:[%s4836_s19 + $0x670] ss:$8 sps:$4 sm:$0xff]   ;;  %v4037_v54 = vld [vmem:[%s4836_s19 + $0x284] ss:$8 sps:$4 sm:$0xff]  }
 0x186   : > { %v4040_v55 = vld [vmem:[%s4836_s19 + $0x684] ss:$8 sps:$4 sm:$0xff]  }
 0x188   : > { %2989 = vmatpush1.bf16.msra.mxu1 %v3951_v56  ;;  %3161 = vmatpush1.bf16.msra.mxu0 %v3954_v57  ;;  %v4035_v56 = vld [vmem:[%s4836_s19 + $0x280] ss:$8 sps:$4 sm:$0xff]  }
 0x189   : > { %2990 = vmatprep.subr.bf16.mxu1 %v3959_v58  ;;  %3162 = vmatprep.subr.bf16.mxu0 %v3962_v59  ;;  %v4038_v57 = vld [vmem:[%s4836_s19 + $0x680] ss:$8 sps:$4 sm:$0xff]   ;;  %v4043_v58 = vld [vmem:[%s4836_s19 + $0x294] ss:$8 sps:$4 sm:$0xff]  }
 0x18a   : > { %v4046_v59 = vld [vmem:[%s4836_s19 + $0x694] ss:$8 sps:$4 sm:$0xff]  }
 0x18c   : > { %2991 = vmatpush1.bf16.msra.mxu1 %v3957_v60  ;;  %3163 = vmatpush1.bf16.msra.mxu0 %v3960_v61  ;;  %v4041_v60 = vld [vmem:[%s4836_s19 + $0x290] ss:$8 sps:$4 sm:$0xff]  }
 0x18d   : > { %2992 = vmatprep.subr.bf16.mxu1 %v3965_v62  ;;  %3164 = vmatprep.subr.bf16.mxu0 %v3968_v63  ;;  %v4044_v61 = vld [vmem:[%s4836_s19 + $0x690] ss:$8 sps:$4 sm:$0xff]   ;;  %v4049_v62 = vld [vmem:[%s4836_s19 + $0x2a4] ss:$8 sps:$4 sm:$0xff]  }
 0x18e   : > { %v4052_v63 = vld [vmem:[%s4836_s19 + $0x6a4] ss:$8 sps:$4 sm:$0xff]  }
 0x190   : > { %2993 = vmatpush1.bf16.msra.mxu1 %v3963_v4  ;;  %3165 = vmatpush1.bf16.msra.mxu0 %v3966_v7  ;;  %v4047_v4 = vld [vmem:[%s4836_s19 + $0x2a0] ss:$8 sps:$4 sm:$0xff]  }
 0x191   : > { %2994 = vmatprep.subr.bf16.mxu1 %v3971_v8  ;;  %3166 = vmatprep.subr.bf16.mxu0 %v3974_v9  ;;  %v4050_v7 = vld [vmem:[%s4836_s19 + $0x6a0] ss:$8 sps:$4 sm:$0xff]   ;;  %v4055_v8 = vld [vmem:[%s4836_s19 + $0x2b4] ss:$8 sps:$4 sm:$0xff]  }
 0x192   : > { %v4058_v9 = vld [vmem:[%s4836_s19 + $0x6b4] ss:$8 sps:$4 sm:$0xff]  }
 0x194   : > { %2995 = vmatpush1.bf16.msra.mxu1 %v3969_v10  ;;  %3167 = vmatpush1.bf16.msra.mxu0 %v3972_v11  ;;  %v4053_v10 = vld [vmem:[%s4836_s19 + $0x2b0] ss:$8 sps:$4 sm:$0xff]  }
 0x195   : > { %2996 = vmatprep.subr.bf16.mxu1 %v3977_v12  ;;  %3168 = vmatprep.subr.bf16.mxu0 %v3980_v13  ;;  %v4056_v11 = vld [vmem:[%s4836_s19 + $0x6b0] ss:$8 sps:$4 sm:$0xff]   ;;  %v4061_v12 = vld [vmem:[%s4836_s19 + $0x2c4] ss:$8 sps:$4 sm:$0xff]  }
 0x196   : > { %v4064_v13 = vld [vmem:[%s4836_s19 + $0x6c4] ss:$8 sps:$4 sm:$0xff]  }
 0x198   : > { %2997 = vmatpush1.bf16.msra.mxu1 %v3975_v14  ;;  %3169 = vmatpush1.bf16.msra.mxu0 %v3978_v15  ;;  %v4059_v14 = vld [vmem:[%s4836_s19 + $0x2c0] ss:$8 sps:$4 sm:$0xff]  }
 0x199   : > { %2998 = vmatprep.subr.bf16.mxu1 %v3983_v16  ;;  %3170 = vmatprep.subr.bf16.mxu0 %v3986_v17  ;;  %v4062_v15 = vld [vmem:[%s4836_s19 + $0x6c0] ss:$8 sps:$4 sm:$0xff]   ;;  %v4067_v16 = vld [vmem:[%s4836_s19 + $0x2d4] ss:$8 sps:$4 sm:$0xff]  }
 0x19a   : > { %v4070_v17 = vld [vmem:[%s4836_s19 + $0x6d4] ss:$8 sps:$4 sm:$0xff]  }
 0x19c   : > { %2999 = vmatpush1.bf16.msra.mxu1 %v3981_v18  ;;  %3171 = vmatpush1.bf16.msra.mxu0 %v3984_v19  ;;  %v4065_v18 = vld [vmem:[%s4836_s19 + $0x2d0] ss:$8 sps:$4 sm:$0xff]  }
 0x19d   : > { %3011 = vmatprep.subr.bf16.mxu1 %v3989_v20  ;;  %3183 = vmatprep.subr.bf16.mxu0 %v3992_v21  ;;  %v4068_v19 = vld [vmem:[%s4836_s19 + $0x6d0] ss:$8 sps:$4 sm:$0xff]   ;;  %v4073_v20 = vld [vmem:[%s4836_s19 + $0x2e4] ss:$8 sps:$4 sm:$0xff]  }
 0x19e   : > { %v4076_v21 = vld [vmem:[%s4836_s19 + $0x6e4] ss:$8 sps:$4 sm:$0xff]  }
 0x19f   : > { %3001 = vmatmul.mubr.bf16.vlgmr.msra.gmra.mrb[0].mxu1 %v3442_v22  ;;  %3173 = vmatmul.mubr.bf16.vlgmr.msra.gmra.mrb[0].mxu0 %v3450_v24  ;;  %v4071_v22 = vld [vmem:[%s4836_s19 + $0x2e0] ss:$8 sps:$4 sm:$0xff]   ;;  %v4079_v24 = vld [vmem:[%s4836_s19 + $0x2f4] ss:$8 sps:$4 sm:$0xff]  }
 0x1a0   : > { %3012 = vmatpush1.bf16.msra.mxu1 %v3987_v23  ;;  %3184 = vmatpush1.bf16.msra.mxu0 %v3990_v0  ;;  %v4074_v23 = vld [vmem:[%s4836_s19 + $0x6e0] ss:$8 sps:$4 sm:$0xff]   ;;  %v4082_v0 = vld [vmem:[%s4836_s19 + $0x6f4] ss:$8 sps:$4 sm:$0xff]  }
 0x1a1   : > { %3013 = vmatprep.subr.bf16.mxu1 %v3995_v1  ;;  %3185 = vmatprep.subr.bf16.mxu0 %v3998_v2  ;;  %v4077_v1 = vld [vmem:[%s4836_s19 + $0x2f0] ss:$8 sps:$4 sm:$0xff]  }
 0x1a2   : > { %3043 = vmatprep.mubr.bf16.mxu1 %v3445_v25  ;;  %3215 = vmatprep.mubr.bf16.mxu0 %v3453_v30  ;;  %v4080_v2 = vld [vmem:[%s4836_s19 + $0x6f0] ss:$8 sps:$4 sm:$0xff]   ;;  %v4088_v25 = vld [vmem:[%s4836_s19 + $0x704] ss:$8 sps:$4 sm:$0xff]   ;;  %v3452_v30 = vcombine.low %v5023_v27, %v5028_v28  ;;  %v4091_v27 = vld [vmem:[%s4836_s19 + $0x314] ss:$8 sps:$4 sm:$0xff]  }
 0x1a3   : > { %v4094_v28 = vld [vmem:[%s4836_s19 + $0x714] ss:$8 sps:$4 sm:$0xff]  }
 0x1a4   : > { %3014 = vmatpush1.bf16.msra.mxu1 %v3993_v6  ;;  %3186 = vmatpush1.bf16.msra.mxu0 %v3996_v26  ;;  %v4085_v6 = vld [vmem:[%s4836_s19 + $0x304] ss:$8 sps:$4 sm:$0xff]   ;;  %v5093_v26 = vld [vmem:[%s5211_s0 + $0x18] sm:$0xff] }
 0x1a5   : > { %3015 = vmatprep.subr.bf16.mxu1 %v4001_v29  ;;  %3187 = vmatprep.subr.bf16.mxu0 %v4004_v31  ;;  %v3444_v29 = vcombine.low %v5009_v3, %v5014_v5  ;;  %v5102_v31 = vld [vmem:[%s5211_s0 + $0x58] sm:$0xff]  ;;  %v4083_v3 = vld [vmem:[%s4836_s19 + $0x300] ss:$8 sps:$4 sm:$0xff]  }
 0x1a6   : > { %v4086_v5 = vld [vmem:[%s4836_s19 + $0x700] ss:$8 sps:$4 sm:$0xff]  }
 0x1a8   : > { %3016 = vmatpush1.bf16.msra.mxu1 %v3999_v32  ;;  %3188 = vmatpush1.bf16.msra.mxu0 %v4002_v33  ;;  %v5107_v32 = vld [vmem:[%s5211_s0 + $0x38] sm:$0xff] }
 0x1a9   : > { %3017 = vmatprep.subr.bf16.mxu1 %v4007_v34  ;;  %3189 = vmatprep.subr.bf16.mxu0 %v4010_v35  ;;  %v5112_v33 = vld [vmem:[%s5211_s0 + $0x78] sm:$0xff]  ;;  %v3447_v34 = vcombine.high %v5093_v26, %v5102_v31 }
 0x1aa   : > { %v3455_v35 = vcombine.high %v5107_v32, %v5112_v33 }
 0x1ac   : > { %3018 = vmatpush1.bf16.msra.mxu1 %v4005_v36  ;;  %3190 = vmatpush1.bf16.msra.mxu0 %v4008_v37  ;;  %v4089_v36 = vld [vmem:[%s4836_s19 + $0x310] ss:$8 sps:$4 sm:$0xff]  }
 0x1ad   : > { %3019 = vmatprep.subr.bf16.mxu1 %v4013_v38  ;;  %3191 = vmatprep.subr.bf16.mxu0 %v4016_v39  ;;  %v4092_v37 = vld [vmem:[%s4836_s19 + $0x710] ss:$8 sps:$4 sm:$0xff]   ;;  %v4097_v38 = vld [vmem:[%s4836_s19 + $0x324] ss:$8 sps:$4 sm:$0xff]  }
 0x1ae   : > { %v4100_v39 = vld [vmem:[%s4836_s19 + $0x724] ss:$8 sps:$4 sm:$0xff]  }
 0x1b0   : > { %3020 = vmatpush1.bf16.msra.mxu1 %v4011_v40  ;;  %3192 = vmatpush1.bf16.msra.mxu0 %v4014_v41  ;;  %v4095_v40 = vld [vmem:[%s4836_s19 + $0x320] ss:$8 sps:$4 sm:$0xff]  }
 0x1b1   : > { %3021 = vmatprep.subr.bf16.mxu1 %v4019_v42  ;;  %3193 = vmatprep.subr.bf16.mxu0 %v4022_v43  ;;  %v4098_v41 = vld [vmem:[%s4836_s19 + $0x720] ss:$8 sps:$4 sm:$0xff]   ;;  %v4103_v42 = vld [vmem:[%s4836_s19 + $0x334] ss:$8 sps:$4 sm:$0xff]  }
 0x1b2   : > { %v4106_v43 = vld [vmem:[%s4836_s19 + $0x734] ss:$8 sps:$4 sm:$0xff]  }
 0x1b4   : > { %3022 = vmatpush1.bf16.msra.mxu1 %v4017_v44  ;;  %3194 = vmatpush1.bf16.msra.mxu0 %v4020_v45  ;;  %v4101_v44 = vld [vmem:[%s4836_s19 + $0x330] ss:$8 sps:$4 sm:$0xff]  }
 0x1b5   : > { %3023 = vmatprep.subr.bf16.mxu1 %v4025_v46  ;;  %3195 = vmatprep.subr.bf16.mxu0 %v4028_v47  ;;  %v4104_v45 = vld [vmem:[%s4836_s19 + $0x730] ss:$8 sps:$4 sm:$0xff]   ;;  %v4109_v46 = vld [vmem:[%s4836_s19 + $0x344] ss:$8 sps:$4 sm:$0xff]  }
 0x1b6   : > { %v4112_v47 = vld [vmem:[%s4836_s19 + $0x744] ss:$8 sps:$4 sm:$0xff]  }
 0x1b8   : > { %3024 = vmatpush1.bf16.msra.mxu1 %v4023_v48  ;;  %3196 = vmatpush1.bf16.msra.mxu0 %v4026_v49  ;;  %v4107_v48 = vld [vmem:[%s4836_s19 + $0x340] ss:$8 sps:$4 sm:$0xff]  }
 0x1b9   : > { %3025 = vmatprep.subr.bf16.mxu1 %v4031_v50  ;;  %3197 = vmatprep.subr.bf16.mxu0 %v4034_v51  ;;  %v4110_v49 = vld [vmem:[%s4836_s19 + $0x740] ss:$8 sps:$4 sm:$0xff]   ;;  %v4115_v50 = vld [vmem:[%s4836_s19 + $0x354] ss:$8 sps:$4 sm:$0xff]  }
 0x1ba   : > { %v4118_v51 = vld [vmem:[%s4836_s19 + $0x754] ss:$8 sps:$4 sm:$0xff]  }
 0x1bc   : > { %3026 = vmatpush1.bf16.msra.mxu1 %v4029_v52  ;;  %3198 = vmatpush1.bf16.msra.mxu0 %v4032_v53  ;;  %v4113_v52 = vld [vmem:[%s4836_s19 + $0x350] ss:$8 sps:$4 sm:$0xff]  }
 0x1bd   : > { %3027 = vmatprep.subr.bf16.mxu1 %v4037_v54  ;;  %3199 = vmatprep.subr.bf16.mxu0 %v4040_v55  ;;  %v4116_v53 = vld [vmem:[%s4836_s19 + $0x750] ss:$8 sps:$4 sm:$0xff]   ;;  %v4121_v54 = vld [vmem:[%s4836_s19 + $0x364] ss:$8 sps:$4 sm:$0xff]  }
 0x1be   : > { %v4124_v55 = vld [vmem:[%s4836_s19 + $0x764] ss:$8 sps:$4 sm:$0xff]  }
 0x1c0   : > { %3028 = vmatpush1.bf16.msra.mxu1 %v4035_v56  ;;  %3200 = vmatpush1.bf16.msra.mxu0 %v4038_v57  ;;  %v4119_v56 = vld [vmem:[%s4836_s19 + $0x360] ss:$8 sps:$4 sm:$0xff]  }
 0x1c1   : > { %3029 = vmatprep.subr.bf16.mxu1 %v4043_v58  ;;  %3201 = vmatprep.subr.bf16.mxu0 %v4046_v59  ;;  %v4122_v57 = vld [vmem:[%s4836_s19 + $0x760] ss:$8 sps:$4 sm:$0xff]   ;;  %v4127_v58 = vld [vmem:[%s4836_s19 + $0x374] ss:$8 sps:$4 sm:$0xff]  }
 0x1c2   : > { %v4130_v59 = vld [vmem:[%s4836_s19 + $0x774] ss:$8 sps:$4 sm:$0xff]  }
 0x1c4   : > { %3030 = vmatpush1.bf16.msra.mxu1 %v4041_v60  ;;  %3202 = vmatpush1.bf16.msra.mxu0 %v4044_v61  ;;  %v4125_v60 = vld [vmem:[%s4836_s19 + $0x370] ss:$8 sps:$4 sm:$0xff]  }
 0x1c5   : > { %3031 = vmatprep.subr.bf16.mxu1 %v4049_v62  ;;  %3203 = vmatprep.subr.bf16.mxu0 %v4052_v63  ;;  %v4128_v61 = vld [vmem:[%s4836_s19 + $0x770] ss:$8 sps:$4 sm:$0xff]   ;;  %v4133_v62 = vld [vmem:[%s4836_s19 + $0x384] ss:$8 sps:$4 sm:$0xff]  }
 0x1c6   : > { %v4136_v63 = vld [vmem:[%s4836_s19 + $0x784] ss:$8 sps:$4 sm:$0xff]  }
 0x1c8   : > { %3032 = vmatpush1.bf16.msra.mxu1 %v4047_v4  ;;  %3204 = vmatpush1.bf16.msra.mxu0 %v4050_v7  ;;  %v4131_v4 = vld [vmem:[%s4836_s19 + $0x380] ss:$8 sps:$4 sm:$0xff]  }
 0x1c9   : > { %3033 = vmatprep.subr.bf16.mxu1 %v4055_v8  ;;  %3205 = vmatprep.subr.bf16.mxu0 %v4058_v9  ;;  %v4134_v7 = vld [vmem:[%s4836_s19 + $0x780] ss:$8 sps:$4 sm:$0xff]   ;;  %v4139_v8 = vld [vmem:[%s4836_s19 + $0x394] ss:$8 sps:$4 sm:$0xff]  }
 0x1ca   : > { %v4142_v9 = vld [vmem:[%s4836_s19 + $0x794] ss:$8 sps:$4 sm:$0xff]  }
 0x1cc   : > { %3034 = vmatpush1.bf16.msra.mxu1 %v4053_v10  ;;  %3206 = vmatpush1.bf16.msra.mxu0 %v4056_v11  ;;  %v4137_v10 = vld [vmem:[%s4836_s19 + $0x390] ss:$8 sps:$4 sm:$0xff]  }
 0x1cd   : > { %3035 = vmatprep.subr.bf16.mxu1 %v4061_v12  ;;  %3207 = vmatprep.subr.bf16.mxu0 %v4064_v13  ;;  %v4140_v11 = vld [vmem:[%s4836_s19 + $0x790] ss:$8 sps:$4 sm:$0xff]   ;;  %v4145_v12 = vld [vmem:[%s4836_s19 + $0x3a4] ss:$8 sps:$4 sm:$0xff]  }
 0x1ce   : > { %v4148_v13 = vld [vmem:[%s4836_s19 + $0x7a4] ss:$8 sps:$4 sm:$0xff]  }
 0x1d0   : > { %3036 = vmatpush1.bf16.msra.mxu1 %v4059_v14  ;;  %3208 = vmatpush1.bf16.msra.mxu0 %v4062_v15  ;;  %v4143_v14 = vld [vmem:[%s4836_s19 + $0x3a0] ss:$8 sps:$4 sm:$0xff]  }
 0x1d1   : > { %3037 = vmatprep.subr.bf16.mxu1 %v4067_v16  ;;  %3209 = vmatprep.subr.bf16.mxu0 %v4070_v17  ;;  %v4146_v15 = vld [vmem:[%s4836_s19 + $0x7a0] ss:$8 sps:$4 sm:$0xff]   ;;  %v4151_v16 = vld [vmem:[%s4836_s19 + $0x3b4] ss:$8 sps:$4 sm:$0xff]  }
 0x1d2   : > { %v4154_v17 = vld [vmem:[%s4836_s19 + $0x7b4] ss:$8 sps:$4 sm:$0xff]  }
 0x1d4   : > { %3038 = vmatpush1.bf16.msra.mxu1 %v4065_v18  ;;  %3210 = vmatpush1.bf16.msra.mxu0 %v4068_v19  ;;  %v4149_v18 = vld [vmem:[%s4836_s19 + $0x3b0] ss:$8 sps:$4 sm:$0xff]  }
 0x1d5   : > { %3039 = vmatprep.subr.bf16.mxu1 %v4073_v20  ;;  %3211 = vmatprep.subr.bf16.mxu0 %v4076_v21  ;;  %v4152_v19 = vld [vmem:[%s4836_s19 + $0x7b0] ss:$8 sps:$4 sm:$0xff]   ;;  %v4157_v20 = vld [vmem:[%s4836_s19 + $0x3c4] ss:$8 sps:$4 sm:$0xff]  }
 0x1d6   : > { %v4160_v21 = vld [vmem:[%s4836_s19 + $0x7c4] ss:$8 sps:$4 sm:$0xff]  }
 0x1d8   : > { %3040 = vmatpush1.bf16.msra.mxu1 %v4071_v22  ;;  %3212 = vmatpush1.bf16.msra.mxu0 %v4074_v23  ;;  %v4155_v22 = vld [vmem:[%s4836_s19 + $0x3c0] ss:$8 sps:$4 sm:$0xff]  }
 0x1d9   : > { %3041 = vmatprep.subr.bf16.mxu1 %v4079_v24  ;;  %3213 = vmatprep.subr.bf16.mxu0 %v4082_v0  ;;  %v4158_v23 = vld [vmem:[%s4836_s19 + $0x7c0] ss:$8 sps:$4 sm:$0xff]   ;;  %v4163_v24 = vld [vmem:[%s4836_s19 + $0x3d4] ss:$8 sps:$4 sm:$0xff]  }
 0x1da   : > { %v4166_v0 = vld [vmem:[%s4836_s19 + $0x7d4] ss:$8 sps:$4 sm:$0xff]  }
 0x1dc   : > { %3042 = vmatpush1.bf16.msra.mxu1 %v4077_v1  ;;  %3214 = vmatpush1.bf16.msra.mxu0 %v4080_v2  ;;  %v4161_v1 = vld [vmem:[%s4836_s19 + $0x3d0] ss:$8 sps:$4 sm:$0xff]  }
 0x1dd   : > { %3054 = vmatprep.subr.bf16.mxu1 %v4085_v6  ;;  %3226 = vmatprep.subr.bf16.mxu0 %v4088_v25  ;;  %v4164_v2 = vld [vmem:[%s4836_s19 + $0x7d0] ss:$8 sps:$4 sm:$0xff]   ;;  %v4169_v6 = vld [vmem:[%s4836_s19 + $0x3e4] ss:$8 sps:$4 sm:$0xff]  }
 0x1de   : > { %v4172_v25 = vld [vmem:[%s4836_s19 + $0x7e4] ss:$8 sps:$4 sm:$0xff]  }
 0x1df   : > { %3044 = vmatmul.mubr.bf16.vlgmr.msra.gmra.mrb[0].mxu1 %v3444_v29  ;;  %3216 = vmatmul.mubr.bf16.vlgmr.msra.gmra.mrb[0].mxu0 %v3452_v30  ;;  %v4167_v29 = vld [vmem:[%s4836_s19 + $0x3e0] ss:$8 sps:$4 sm:$0xff]  }
 0x1e0   : > { %3055 = vmatpush1.bf16.msra.mxu1 %v4083_v3  ;;  %3227 = vmatpush1.bf16.msra.mxu0 %v4086_v5  ;;  %v4170_v30 = vld [vmem:[%s4836_s19 + $0x7e0] ss:$8 sps:$4 sm:$0xff]   ;;  %v4175_v3 = vld [vmem:[%s4836_s19 + $0x3f4] ss:$8 sps:$4 sm:$0xff]  }
 0x1e1   : > { %3056 = vmatprep.subr.bf16.mxu1 %v4091_v27  ;;  %3228 = vmatprep.subr.bf16.mxu0 %v4094_v28  ;;  %v4178_v5 = vld [vmem:[%s4836_s19 + $0x7f4] ss:$8 sps:$4 sm:$0xff]   ;;  %v4173_v27 = vld [vmem:[%s4836_s19 + $0x3f0] ss:$8 sps:$4 sm:$0xff]  }
 0x1e2   : > { %3086 = vmatprep.mubr.bf16.mxu1 %v3447_v34  ;;  %3258 = vmatprep.mubr.bf16.mxu0 %v3455_v35  ;;  %v4176_v28 = vld [vmem:[%s4836_s19 + $0x7f0] ss:$8 sps:$4 sm:$0xff]   ;;  %v3446_v34 = vcombine.low %v5093_v26, %v5102_v31  ;;  %v3454_v35 = vcombine.low %v5107_v32, %v5112_v33  ;;  %s1277_s19 = scalar_lea.vmem %s5213_s2, %s5223_s29 }
 0x1e4   : > { %3057 = vmatpush1.bf16.msra.mxu1 %v4089_v36  ;;  %3229 = vmatpush1.bf16.msra.mxu0 %v4092_v37  ;;  %v1555_v36 = vlaneseq }
 0x1e5   : > { %3058 = vmatprep.subr.bf16.mxu1 %v4097_v38  ;;  %3230 = vmatprep.subr.bf16.mxu0 %v4100_v39  ;;  %v1553_v39 = vld [vmem:[%s1277_s19] sm:$0x3] }
 0x1e6   : > { %v1556_v37 = vshrl.u32 %v1555_v36, 7 }
 0x1e8   : > { %3059 = vmatpush1.bf16.msra.mxu1 %v4095_v40  ;;  %3231 = vmatpush1.bf16.msra.mxu0 %v4098_v41  ;;  %v1557_v38 = vsub.s32 0, %v1556_v37  ;;  %v1561_v26 = vsub.s32 1, %v1556_v37 }
 0x1e9   : > { %3060 = vmatprep.subr.bf16.mxu1 %v4103_v42  ;;  %3232 = vmatprep.subr.bf16.mxu0 %v4106_v43 }
 0x1ea   : > { %v1558_v31 = vrot.slane %v1553_v39, %v1557_v38  ;;  %v1562_v40 = vrot.slane %v1553_v39, %v1561_v26 }
 0x1ec   : > { %3061 = vmatpush1.bf16.msra.mxu1 %v4101_v44  ;;  %3233 = vmatpush1.bf16.msra.mxu0 %v4104_v45 }
 0x1ed   : > { %3062 = vmatprep.subr.bf16.mxu1 %v4109_v46  ;;  %3234 = vmatprep.subr.bf16.mxu0 %v4112_v47 }
 0x1f0   : > { %3063 = vmatpush1.bf16.msra.mxu1 %v4107_v48  ;;  %3235 = vmatpush1.bf16.msra.mxu0 %v4110_v49 }
 0x1f1   : > { %3064 = vmatprep.subr.bf16.mxu1 %v4115_v50  ;;  %3236 = vmatprep.subr.bf16.mxu0 %v4118_v51 }
 0x1f4   : > { %3065 = vmatpush1.bf16.msra.mxu1 %v4113_v52  ;;  %3237 = vmatpush1.bf16.msra.mxu0 %v4116_v53 }
 0x1f5   : > { %3066 = vmatprep.subr.bf16.mxu1 %v4121_v54  ;;  %3238 = vmatprep.subr.bf16.mxu0 %v4124_v55 }
 0x1f8   : > { %3067 = vmatpush1.bf16.msra.mxu1 %v4119_v56  ;;  %3239 = vmatpush1.bf16.msra.mxu0 %v4122_v57 }
 0x1f9   : > { %3068 = vmatprep.subr.bf16.mxu1 %v4127_v58  ;;  %3240 = vmatprep.subr.bf16.mxu0 %v4130_v59 }
 0x1fc   : > { %3069 = vmatpush1.bf16.msra.mxu1 %v4125_v60  ;;  %3241 = vmatpush1.bf16.msra.mxu0 %v4128_v61 }
 0x1fd   : > { %3070 = vmatprep.subr.bf16.mxu1 %v4133_v62  ;;  %3242 = vmatprep.subr.bf16.mxu0 %v4136_v63 }
 0x200   : > { %3071 = vmatpush1.bf16.msra.mxu1 %v4131_v4  ;;  %3243 = vmatpush1.bf16.msra.mxu0 %v4134_v7 }
 0x201   : > { %3072 = vmatprep.subr.bf16.mxu1 %v4139_v8  ;;  %3244 = vmatprep.subr.bf16.mxu0 %v4142_v9 }
 0x204   : > { %3073 = vmatpush1.bf16.msra.mxu1 %v4137_v10  ;;  %3245 = vmatpush1.bf16.msra.mxu0 %v4140_v11 }
 0x205   : > { %3074 = vmatprep.subr.bf16.mxu1 %v4145_v12  ;;  %3246 = vmatprep.subr.bf16.mxu0 %v4148_v13 }
 0x208   : > { %3075 = vmatpush1.bf16.msra.mxu1 %v4143_v14  ;;  %3247 = vmatpush1.bf16.msra.mxu0 %v4146_v15 }
 0x209   : > { %3076 = vmatprep.subr.bf16.mxu1 %v4151_v16  ;;  %3248 = vmatprep.subr.bf16.mxu0 %v4154_v17 }
 0x20c   : > { %3077 = vmatpush1.bf16.msra.mxu1 %v4149_v18  ;;  %3249 = vmatpush1.bf16.msra.mxu0 %v4152_v19 }
 0x20d   : > { %3078 = vmatprep.subr.bf16.mxu1 %v4157_v20  ;;  %3250 = vmatprep.subr.bf16.mxu0 %v4160_v21 }
 0x210   : > { %3079 = vmatpush1.bf16.msra.mxu1 %v4155_v22  ;;  %3251 = vmatpush1.bf16.msra.mxu0 %v4158_v23 }
 0x211   : > { %3080 = vmatprep.subr.bf16.mxu1 %v4163_v24  ;;  %3252 = vmatprep.subr.bf16.mxu0 %v4166_v0 }
 0x214   : > { %3081 = vmatpush1.bf16.msra.mxu1 %v4161_v1  ;;  %3253 = vmatpush1.bf16.msra.mxu0 %v4164_v2 }
 0x215   : > { %3082 = vmatprep.subr.bf16.mxu1 %v4169_v6  ;;  %3254 = vmatprep.subr.bf16.mxu0 %v4172_v25 }
 0x218   : > { %3083 = vmatpush1.bf16.msra.mxu1 %v4167_v29  ;;  %3255 = vmatpush1.bf16.msra.mxu0 %v4170_v30 }
 0x219   : > { %3084 = vmatprep.subr.bf16.mxu1 %v4175_v3  ;;  %3256 = vmatprep.subr.bf16.mxu0 %v4178_v5 }
 0x21c   : > { %3085 = vmatpush1.bf16.msra.mxu1 %v4173_v27  ;;  %3257 = vmatpush1.bf16.msra.mxu0 %v4176_v28 }
 0x21f   : > { %3087 = vmatmul.mubr.bf16.vlgmr.msra.gmra.mrb[0].mxu1 %v3446_v34  ;;  %3259 = vmatmul.mubr.bf16.vlgmr.msra.gmra.mrb[0].mxu0 %v3454_v35 }
 0x2f2   : > { %v3088_v32 = vpop.f32.mrb[0].mxu1  ;;  %v3260_v33 = vpop.f32.mrb[0].mxu0 }
 0x2f3   : > { %v3723_v41 = vadd.f32 %v3088_v32, %v1558_v31  ;;  %v3090_v42 = vpop.f32.mrb[1].mxu1  ;;  %v3262_v43 = vpop.f32.mrb[1].mxu0 }
 0x2f4   : > { %v3725_v44 = vadd.f32 %v3090_v42, %v1562_v40  ;;  %v3092_v45 = vpop.f32.mrb[2].mxu1  ;;  %v3264_v46 = vpop.f32.mrb[2].mxu0 }
 0x2f5   : > { %v3724_v47 = vadd.f32 %v3723_v41, %v3260_v33  ;;  %v3727_v48 = vadd.f32 %v3092_v45, %v1558_v31  ;;  %v3094_v49 = vpop.f32.mrb[3].mxu1  ;;  %v3266_v50 = vpop.f32.mrb[3].mxu0 }
 0x2f6   : > { %v3726_v51 = vadd.f32 %v3725_v44, %v3262_v43  ;;  %v3729_v52 = vadd.f32 %v3094_v49, %v1562_v40 }
 0x2f7   : > { %v3269_v53 = vmax.f32 %v3724_v47, 0.0  ;;  %v3728_v54 = vadd.f32 %v3727_v48, %v3264_v46 }
 0x2f8   : > { %v3270_v55 = vmax.f32 %v3726_v51, 0.0  ;;  %v3730_v56 = vadd.f32 %v3729_v52, %v3266_v50  ;;  %3293 = sbr.rel (!%p4274_p6) target bundleno = 775 (0x307), region = 74 }
 0x2f9   : > { %v3271_v57 = vmax.f32 %v3728_v54, 0.0 }
 0x2fa   : > { %v3720_v58 = vpack.c.bf16 %v3270_v55, %v3269_v53  ;;  %v3272_v59 = vmax.f32 %v3730_v56, 0.0 }
 0x2fc   : > { %3285 = vst [vmem:[%s1265_s7] sm:$0xff] %v3720_v58  ;;  %v3721_v60 = vpack.c.bf16 %v3272_v59, %v3271_v57 }
 0x2fe   : > { %3286 = vst [vmem:[%s1265_s7 + $0x8] sm:$0xff] %v3721_v60 }
 0x303   : > { %v3329_v61 = vld [vmem:[%s1265_s7] sm:$0xff] }
 0x304   : > { %3330 = vst [vmem:[%s3299_s9] sm:$0xff] %v3329_v61 }
 0x305   : > { %v3331_v62 = vld [vmem:[%s1265_s7 + $0x8] sm:$0xff] }
 0x306   : > { %3332 = vst [vmem:[%s3299_s9 + $0x80] sm:$0xff] %v3331_v62 }
 0x307 PF: > { %s13_s16 = sadd.s32 1, %s4217_s16   ;;  %s5216_s12 = smov %s4205_s13 }
 0x308   : > { %p10_p12 = scmp.ge.s32.totalorder %s13_s16, 18   ;;  %s5217_s13 = smov %s4279_s22 }
 0x309   : > { %s5218_s14 = smov %s4213_s15  ;;  %s5219_s15 = smov %s5221_s17 }
 0x30a   :  { %12 = sbr.rel (!%p10_p12) target bundleno = 3 (0x3), region = 149 }

// kernel: _lambda_.12
= control target key start
LH: loop header
LB: loop body
LE: loop exit
PB: predicated region body
PF: predicated region fallthrough
CT: control target
= control target key end

     0   :  { %s1365_s12 = smov 0   ;;  %s1367_s13 = smov 0   ;;  %s1534_s0 = inlined_call_operand.vmem [shape: bf16[768,144], index: 0, kind: input, shape index: {}]   ;;  %s1535_s1 = inlined_call_operand.vmem [shape: bf16[144,128], index: 1, kind: input, shape index: {}]   ;;  %s1536_s2 = inlined_call_operand.vmem [shape: f32[1,128], index: 2, kind: input, shape index: {}]   ;;  %s1537_s3 = inlined_call_operand.vmem [shape: bf16[768,128], index: 3, kind: output, shape index: {}]  }
   0x1   :  { %s1369_s14 = smov 0  }
   0x2 LB: > { %s25_s15 = sadd.s32 1, %s1338_s13  ;;  %p994_p0 = scmp.ge.s32.totalorder %s1342_s14, 1  ;;  %s1342_s14 = sphi %s1369_s14, %s13_s14   ;;  %s1338_s13 = sphi %s1367_s13, %s1539_s13   ;;  %s1334_s12 = sphi %s1365_s12, %s1538_s12  }
   0x3   : > { %p27_p1 = scmp.ge.s32.totalorder %s25_s15, 3  ;;  %p170_p2 = scmp.lt.s32.totalorder %s1342_s14, 4 }
   0x5   : > { %s1541_s15 = smov (%p27_p1, %s25_s15), 0  ;;  %p171_p3 = pnand %p994_p0, %p170_p2 }
   0x6   : > { %v1263_v0 = vld [vmem:[%s1535_s1] sm:$0xff] (!%p171_p3)   ;;  %v1344_v1 = vmov (!%p171_p3), 0   ;;  %s995_s18 = sshll.u32 (!%p171_p3), %s1334_s12, 5  ;;  %v1264_v2 = vld [vmem:[%s1535_s1 + $0x8] sm:$0xff] (!%p171_p3)   ;;  %v1265_v3 = vld [vmem:[%s1535_s1 + $0x10] sm:$0xff] (!%p171_p3)   ;;  %vm484_vm0 = vcmask (!%p171_p3), 130048  }
   0x7   : > { %174 = sbr.rel (%p171_p3) target bundleno = 320 (0x140), region = 32  ;;  %533 = vmatprep.subr.bf16.mxu0 (!%p171_p3), %v1344_v1  ;;  %1220 = vmatprep.subr.bf16.mxu1 (!%p171_p3), %v1344_v1  ;;  %p206_p4 = scmp.lt.s32.totalorder (!%p171_p3), %s995_s18, 95  ;;  %v1266_v4 = vld [vmem:[%s1535_s1 + $0x18] sm:$0xff] (!%p171_p3)   ;;  %v1267_v7 = vld [vmem:[%s1535_s1 + $0x20] sm:$0xff] (!%p171_p3)   ;;  %v1268_v8 = vld [vmem:[%s1535_s1 + $0x28] sm:$0xff] (!%p171_p3)  }
   0x8   : > { %534 = vmatpush1.bf16.msra.mxu0 (!%p171_p3), %v1263_v0  ;;  %1229 = vmatpush1.bf16.msra.mxu1 (!%p171_p3), %v1263_v0  ;;  %v1269_v9 = vld [vmem:[%s1535_s1 + $0x30] sm:$0xff] (!%p171_p3)   ;;  %v1270_v10 = vld [vmem:[%s1535_s1 + $0x38] sm:$0xff] (!%p171_p3)   ;;  %v1271_v11 = vld [vmem:[%s1535_s1 + $0x40] sm:$0xff] (!%p171_p3)  }
   0x9   : > { %535 = vmatprep.subr.bf16.mxu0 (!%p171_p3), %v1344_v1  ;;  %1221 = vmatprep.subr.bf16.mxu1 (!%p171_p3), %v1344_v1  ;;  %v1469_v42 = vld [vmem:[%s1536_s2] ss:$0 sm:$0xff] (!%p171_p3) }
   0xc   : > { %536 = vmatpush1.bf16.msra.mxu0 (!%p171_p3), %v1264_v2  ;;  %1230 = vmatpush1.bf16.msra.mxu1 (!%p171_p3), %v1264_v2 }
   0xd   : > { %537 = vmatprep.subr.bf16.mxu0 (!%p171_p3), %v1344_v1  ;;  %1222 = vmatprep.subr.bf16.mxu1 (!%p171_p3), %v1344_v1 }
   0xe   : > { %s1543_s18 = smov (!%p206_p4, %s995_s18), 95 }
   0xf   : > { %s1092_s23 = sshll.u32 %s1543_s18, 3  ;;  %s999_s17 = sshll.u32 %s1543_s18, 2 }
  0x10   : > { %s1398_s26 = scalar_lea.vmem %s1534_s0, %s1092_s23  ;;  %538 = vmatpush1.bf16.msra.mxu0 %v1265_v3  ;;  %1231 = vmatpush1.bf16.msra.mxu1 %v1265_v3  ;;  %s1479_s21 = scalar_lea.vmem %s1537_s3, %s999_s17 }
  0x11   : > { %v1274_v5 = vld [vmem:[%s1398_s26 + $0x4] ss:$8 sps:$4 sm:$0xff]   ;;  %539 = vmatprep.subr.bf16.mxu0 %v1344_v1  ;;  %1223 = vmatprep.subr.bf16.mxu1 %v1344_v1  ;;  %v1272_v12 = vld [vmem:[%s1398_s26] ss:$8 sps:$4 sm:$0xff]   ;;  %v1278_v14 = vld [vmem:[%s1398_s26 + $0x14] ss:$8 sps:$4 sm:$0xff]  }
  0x12   : > { %v1277_v6 = vld [vmem:[%s1398_s26 + $0x84] ss:$8 sps:$4 sm:$0xff]   ;;  %1042 = vmatprep.mubr.msk.bf16.mxu0 %vm484_vm0, %v1274_v5  ;;  %v1275_v13 = vld [vmem:[%s1398_s26 + $0x80] ss:$8 sps:$4 sm:$0xff]   ;;  %v1280_v15 = vld [vmem:[%s1398_s26 + $0x94] ss:$8 sps:$4 sm:$0xff]  }
  0x13   : > { %1050 = vmatprep.mubr.msk.bf16.mxu1 %vm484_vm0, %v1277_v6  ;;  %v1282_v16 = vld [vmem:[%s1398_s26 + $0x10] ss:$8 sps:$4 sm:$0xff]   ;;  %v1284_v18 = vld [vmem:[%s1398_s26 + $0x24] ss:$8 sps:$4 sm:$0xff]   ;;  %v1288_v20 = vld [vmem:[%s1398_s26 + $0x20] ss:$8 sps:$4 sm:$0xff]  }
  0x14   : > { %540 = vmatpush1.bf16.msra.mxu0 %v1266_v4  ;;  %1232 = vmatpush1.bf16.msra.mxu1 %v1266_v4  ;;  %v1283_v17 = vld [vmem:[%s1398_s26 + $0x90] ss:$8 sps:$4 sm:$0xff]   ;;  %v1286_v19 = vld [vmem:[%s1398_s26 + $0xa4] ss:$8 sps:$4 sm:$0xff]   ;;  %v1289_v21 = vld [vmem:[%s1398_s26 + $0xa0] ss:$8 sps:$4 sm:$0xff]  }
  0x15   : > { %541 = vmatprep.subr.bf16.mxu0 %v1344_v1  ;;  %1224 = vmatprep.subr.bf16.mxu1 %v1344_v1  ;;  %v1290_v22 = vld [vmem:[%s1398_s26 + $0x34] ss:$8 sps:$4 sm:$0xff]   ;;  %v1294_v24 = vld [vmem:[%s1398_s26 + $0x30] ss:$8 sps:$4 sm:$0xff]   ;;  %v1296_v26 = vld [vmem:[%s1398_s26 + $0x44] ss:$8 sps:$4 sm:$0xff]  }
  0x16   : > { %v1292_v23 = vld [vmem:[%s1398_s26 + $0xb4] ss:$8 sps:$4 sm:$0xff]   ;;  %v1295_v25 = vld [vmem:[%s1398_s26 + $0xb0] ss:$8 sps:$4 sm:$0xff]   ;;  %v1298_v27 = vld [vmem:[%s1398_s26 + $0xc4] ss:$8 sps:$4 sm:$0xff]  }
  0x17   : > { %v1300_v28 = vld [vmem:[%s1398_s26 + $0x40] ss:$8 sps:$4 sm:$0xff]   ;;  %v1302_v30 = vld [vmem:[%s1398_s26 + $0x54] ss:$8 sps:$4 sm:$0xff]   ;;  %v1306_v32 = vld [vmem:[%s1398_s26 + $0x50] ss:$8 sps:$4 sm:$0xff]  }
  0x18   : > { %542 = vmatpush1.bf16.msra.mxu0 %v1267_v7  ;;  %1233 = vmatpush1.bf16.msra.mxu1 %v1267_v7  ;;  %v1301_v29 = vld [vmem:[%s1398_s26 + $0xc0] ss:$8 sps:$4 sm:$0xff]   ;;  %v1304_v31 = vld [vmem:[%s1398_s26 + $0xd4] ss:$8 sps:$4 sm:$0xff]   ;;  %v1307_v33 = vld [vmem:[%s1398_s26 + $0xd0] ss:$8 sps:$4 sm:$0xff]  }
  0x19   : > { %543 = vmatprep.subr.bf16.mxu0 %v1344_v1  ;;  %1225 = vmatprep.subr.bf16.mxu1 %v1344_v1  ;;  %v1308_v34 = vld [vmem:[%s1398_s26 + $0x64] ss:$8 sps:$4 sm:$0xff]   ;;  %v1312_v36 = vld [vmem:[%s1398_s26 + $0x60] ss:$8 sps:$4 sm:$0xff]   ;;  %v1314_v38 = vld [vmem:[%s1398_s26 + $0x74] ss:$8 sps:$4 sm:$0xff]  }
  0x1a   : > { %v1310_v35 = vld [vmem:[%s1398_s26 + $0xe4] ss:$8 sps:$4 sm:$0xff]   ;;  %v1313_v37 = vld [vmem:[%s1398_s26 + $0xe0] ss:$8 sps:$4 sm:$0xff]   ;;  %v1316_v39 = vld [vmem:[%s1398_s26 + $0xf4] ss:$8 sps:$4 sm:$0xff]  }
  0x1b   : > { %v1318_v40 = vld [vmem:[%s1398_s26 + $0x70] ss:$8 sps:$4 sm:$0xff]  }
  0x1c   : > { %544 = vmatpush1.bf16.msra.mxu0 %v1268_v8  ;;  %1234 = vmatpush1.bf16.msra.mxu1 %v1268_v8  ;;  %v1319_v41 = vld [vmem:[%s1398_s26 + $0xf0] ss:$8 sps:$4 sm:$0xff]  }
  0x1d   : > { %545 = vmatprep.subr.bf16.mxu0 %v1344_v1  ;;  %1226 = vmatprep.subr.bf16.mxu1 %v1344_v1 }
  0x20   : > { %546 = vmatpush1.bf16.msra.mxu0 %v1269_v9  ;;  %1235 = vmatpush1.bf16.msra.mxu1 %v1269_v9 }
  0x21   : > { %547 = vmatprep.subr.bf16.mxu0 %v1344_v1  ;;  %1227 = vmatprep.subr.bf16.mxu1 %v1344_v1 }
  0x24   : > { %548 = vmatpush1.bf16.msra.mxu0 %v1270_v10  ;;  %1236 = vmatpush1.bf16.msra.mxu1 %v1270_v10 }
  0x25   : > { %549 = vmatprep.subr.bf16.mxu0 %v1344_v1  ;;  %1228 = vmatprep.subr.bf16.mxu1 %v1344_v1 }
  0x28   : > { %550 = vmatpush1.bf16.msra.mxu0 %v1271_v11  ;;  %1237 = vmatpush1.bf16.msra.mxu1 %v1271_v11 }
  0x2b   : > { %566 = vmatmul.mubr.bf16.vlgmr.msra.gmra.mrb[0].mxu0 %v1272_v12  ;;  %630 = vmatmul.mubr.bf16.vlgmr.msra.gmra.mrb[0].mxu1 %v1275_v13 }
  0x2c   : > { %1043 = vmatprep.mubr.msk.bf16.mxu0 %vm484_vm0, %v1278_v14  ;;  %1051 = vmatprep.mubr.msk.bf16.mxu1 %vm484_vm0, %v1280_v15 }
  0x33   : > { %574 = vmatmul.mubr.bf16.gmra.mrb[4].mxu0 %v1282_v16  ;;  %638 = vmatmul.mubr.bf16.gmra.mrb[4].mxu1 %v1283_v17 }
  0x34   : > { %1044 = vmatprep.mubr.msk.bf16.mxu0 %vm484_vm0, %v1284_v18  ;;  %1052 = vmatprep.mubr.msk.bf16.mxu1 %vm484_vm0, %v1286_v19 }
  0x3b   : > { %582 = vmatmul.mubr.bf16.gmra.mrb[8].mxu0 %v1288_v20  ;;  %646 = vmatmul.mubr.bf16.gmra.mrb[8].mxu1 %v1289_v21 }
  0x3c   : > { %1045 = vmatprep.mubr.msk.bf16.mxu0 %vm484_vm0, %v1290_v22  ;;  %1053 = vmatprep.mubr.msk.bf16.mxu1 %vm484_vm0, %v1292_v23 }
  0x43   : > { %590 = vmatmul.mubr.bf16.gmra.mrb[12].mxu0 %v1294_v24  ;;  %654 = vmatmul.mubr.bf16.gmra.mrb[12].mxu1 %v1295_v25 }
  0x44   : > { %1046 = vmatprep.mubr.msk.bf16.mxu0 %vm484_vm0, %v1296_v26  ;;  %1054 = vmatprep.mubr.msk.bf16.mxu1 %vm484_vm0, %v1298_v27 }
  0x4b   : > { %598 = vmatmul.mubr.bf16.gmra.mrb[16].mxu0 %v1300_v28  ;;  %662 = vmatmul.mubr.bf16.gmra.mrb[16].mxu1 %v1301_v29 }
  0x4c   : > { %1047 = vmatprep.mubr.msk.bf16.mxu0 %vm484_vm0, %v1302_v30  ;;  %1055 = vmatprep.mubr.msk.bf16.mxu1 %vm484_vm0, %v1304_v31 }
  0x53   : > { %606 = vmatmul.mubr.bf16.gmra.mrb[20].mxu0 %v1306_v32  ;;  %670 = vmatmul.mubr.bf16.gmra.mrb[20].mxu1 %v1307_v33 }
  0x54   : > { %1048 = vmatprep.mubr.msk.bf16.mxu0 %vm484_vm0, %v1308_v34  ;;  %1056 = vmatprep.mubr.msk.bf16.mxu1 %vm484_vm0, %v1310_v35 }
  0x5b   : > { %614 = vmatmul.mubr.bf16.gmra.mrb[24].mxu0 %v1312_v36  ;;  %678 = vmatmul.mubr.bf16.gmra.mrb[24].mxu1 %v1313_v37 }
  0x5c   : > { %1049 = vmatprep.mubr.msk.bf16.mxu0 %vm484_vm0, %v1314_v38  ;;  %1057 = vmatprep.mubr.msk.bf16.mxu1 %vm484_vm0, %v1316_v39 }
  0x63   : > { %622 = vmatmul.mubr.bf16.gmra.mrb[28].mxu0 %v1318_v40  ;;  %686 = vmatmul.mubr.bf16.gmra.mrb[28].mxu1 %v1319_v41 }
  0xfe   : > { %v567_v43 = vpop.f32.mrb[0].mxu0  ;;  %v631_v44 = vpop.f32.mrb[0].mxu1 }
  0xff   : > { %v568_v45 = vadd.f32 %v1469_v42, %v567_v43  ;;  %v632_v46 = vadd.f32 %v1469_v42, %v631_v44  ;;  %v569_v47 = vpop.f32.mrb[1].mxu0  ;;  %v633_v48 = vpop.f32.mrb[1].mxu1 }
 0x100   : > { %v570_v49 = vpop.f32.mrb[2].mxu0  ;;  %v634_v50 = vpop.f32.mrb[2].mxu1 }
 0x101   : > { %v571_v51 = vadd.f32 %v1469_v42, %v570_v49  ;;  %v635_v52 = vadd.f32 %v1469_v42, %v634_v50  ;;  %v572_v53 = vpop.f32.mrb[3].mxu0  ;;  %v636_v54 = vpop.f32.mrb[3].mxu1  ;;  %v694_v55 = vmax.f32 %v568_v45, 0.0  ;;  %v710_v56 = vmax.f32 %v632_v46, 0.0 }
 0x103   : > { %v695_v57 = vmax.f32 %v571_v51, 0.0  ;;  %v711_v58 = vmax.f32 %v635_v52, 0.0 }
 0x105   : > { %v1128_v59 = vpack.c.bf16 %v695_v57, %v694_v55  ;;  %v1168_v60 = vpack.c.bf16 %v711_v58, %v710_v56 }
 0x106   : > { %v575_v61 = vpop.f32.mrb[4].mxu0  ;;  %v639_v62 = vpop.f32.mrb[4].mxu1 }
 0x107   : > { %1129 = vst [vmem:[%s1479_s21] sm:$0xff] %v1128_v59   ;;  %1212 = vst [vmem:[%s1479_s21 + $0x40] sm:$0xff] %v1168_v60   ;;  %v576_v63 = vadd.f32 %v1469_v42, %v575_v61  ;;  %v640_v0 = vadd.f32 %v1469_v42, %v639_v62  ;;  %v577_v1 = vpop.f32.mrb[5].mxu0  ;;  %v641_v2 = vpop.f32.mrb[5].mxu1 }
 0x108   : > { %v578_v3 = vpop.f32.mrb[6].mxu0  ;;  %v642_v4 = vpop.f32.mrb[6].mxu1 }
 0x109   : > { %v579_v5 = vadd.f32 %v1469_v42, %v578_v3  ;;  %v643_v6 = vadd.f32 %v1469_v42, %v642_v4  ;;  %v580_v7 = vpop.f32.mrb[7].mxu0  ;;  %v644_v8 = vpop.f32.mrb[7].mxu1  ;;  %v696_v9 = vmax.f32 %v576_v63, 0.0  ;;  %v712_v10 = vmax.f32 %v640_v0, 0.0 }
 0x10b   : > { %v697_v11 = vmax.f32 %v579_v5, 0.0  ;;  %v713_v12 = vmax.f32 %v643_v6, 0.0 }
 0x10d   : > { %v1133_v13 = vpack.c.bf16 %v697_v11, %v696_v9  ;;  %v1173_v14 = vpack.c.bf16 %v713_v12, %v712_v10 }
 0x10e   : > { %v583_v15 = vpop.f32.mrb[8].mxu0  ;;  %v647_v16 = vpop.f32.mrb[8].mxu1 }
 0x10f   : > { %1205 = vst [vmem:[%s1479_s21 + $0x8] sm:$0xff] %v1133_v13   ;;  %1213 = vst [vmem:[%s1479_s21 + $0x48] sm:$0xff] %v1173_v14   ;;  %v584_v17 = vadd.f32 %v1469_v42, %v583_v15  ;;  %v648_v18 = vadd.f32 %v1469_v42, %v647_v16  ;;  %v585_v19 = vpop.f32.mrb[9].mxu0  ;;  %v649_v20 = vpop.f32.mrb[9].mxu1 }
 0x110   : > { %v586_v21 = vpop.f32.mrb[10].mxu0  ;;  %v650_v22 = vpop.f32.mrb[10].mxu1 }
 0x111   : > { %v587_v23 = vadd.f32 %v1469_v42, %v586_v21  ;;  %v651_v24 = vadd.f32 %v1469_v42, %v650_v22  ;;  %v588_v25 = vpop.f32.mrb[11].mxu0  ;;  %v652_v26 = vpop.f32.mrb[11].mxu1  ;;  %v698_v27 = vmax.f32 %v584_v17, 0.0  ;;  %v714_v28 = vmax.f32 %v648_v18, 0.0 }
 0x113   : > { %v699_v29 = vmax.f32 %v587_v23, 0.0  ;;  %v715_v30 = vmax.f32 %v651_v24, 0.0 }
 0x115   : > { %v1138_v31 = vpack.c.bf16 %v699_v29, %v698_v27  ;;  %v1178_v32 = vpack.c.bf16 %v715_v30, %v714_v28 }
 0x116   : > { %v591_v33 = vpop.f32.mrb[12].mxu0  ;;  %v655_v34 = vpop.f32.mrb[12].mxu1 }
 0x117   : > { %1206 = vst [vmem:[%s1479_s21 + $0x10] sm:$0xff] %v1138_v31   ;;  %1214 = vst [vmem:[%s1479_s21 + $0x50] sm:$0xff] %v1178_v32   ;;  %v592_v35 = vadd.f32 %v1469_v42, %v591_v33  ;;  %v656_v36 = vadd.f32 %v1469_v42, %v655_v34  ;;  %v593_v37 = vpop.f32.mrb[13].mxu0  ;;  %v657_v38 = vpop.f32.mrb[13].mxu1 }
 0x118   : > { %v594_v39 = vpop.f32.mrb[14].mxu0  ;;  %v658_v40 = vpop.f32.mrb[14].mxu1 }
 0x119   : > { %v595_v41 = vadd.f32 %v1469_v42, %v594_v39  ;;  %v659_v43 = vadd.f32 %v1469_v42, %v658_v40  ;;  %v596_v44 = vpop.f32.mrb[15].mxu0  ;;  %v660_v45 = vpop.f32.mrb[15].mxu1  ;;  %v700_v46 = vmax.f32 %v592_v35, 0.0  ;;  %v716_v47 = vmax.f32 %v656_v36, 0.0 }
 0x11b   : > { %v701_v48 = vmax.f32 %v595_v41, 0.0  ;;  %v717_v49 = vmax.f32 %v659_v43, 0.0 }
 0x11d   : > { %v1143_v50 = vpack.c.bf16 %v701_v48, %v700_v46  ;;  %v1183_v51 = vpack.c.bf16 %v717_v49, %v716_v47 }
 0x11e   : > { %v599_v52 = vpop.f32.mrb[16].mxu0  ;;  %v663_v53 = vpop.f32.mrb[16].mxu1 }
 0x11f   : > { %1207 = vst [vmem:[%s1479_s21 + $0x18] sm:$0xff] %v1143_v50   ;;  %1215 = vst [vmem:[%s1479_s21 + $0x58] sm:$0xff] %v1183_v51   ;;  %v600_v54 = vadd.f32 %v1469_v42, %v599_v52  ;;  %v664_v55 = vadd.f32 %v1469_v42, %v663_v53  ;;  %v601_v56 = vpop.f32.mrb[17].mxu0  ;;  %v665_v57 = vpop.f32.mrb[17].mxu1 }
 0x120   : > { %v602_v58 = vpop.f32.mrb[18].mxu0  ;;  %v666_v59 = vpop.f32.mrb[18].mxu1 }
 0x121   : > { %v603_v60 = vadd.f32 %v1469_v42, %v602_v58  ;;  %v667_v61 = vadd.f32 %v1469_v42, %v666_v59  ;;  %v604_v62 = vpop.f32.mrb[19].mxu0  ;;  %v668_v63 = vpop.f32.mrb[19].mxu1  ;;  %v702_v0 = vmax.f32 %v600_v54, 0.0  ;;  %v718_v1 = vmax.f32 %v664_v55, 0.0 }
 0x123   : > { %v703_v2 = vmax.f32 %v603_v60, 0.0  ;;  %v719_v3 = vmax.f32 %v667_v61, 0.0 }
 0x125   : > { %v1148_v4 = vpack.c.bf16 %v703_v2, %v702_v0  ;;  %v1188_v5 = vpack.c.bf16 %v719_v3, %v718_v1 }
 0x126   : > { %v607_v6 = vpop.f32.mrb[20].mxu0  ;;  %v671_v7 = vpop.f32.mrb[20].mxu1 }
 0x127   : > { %1208 = vst [vmem:[%s1479_s21 + $0x20] sm:$0xff] %v1148_v4   ;;  %1216 = vst [vmem:[%s1479_s21 + $0x60] sm:$0xff] %v1188_v5   ;;  %v608_v8 = vadd.f32 %v1469_v42, %v607_v6  ;;  %v672_v9 = vadd.f32 %v1469_v42, %v671_v7  ;;  %v609_v10 = vpop.f32.mrb[21].mxu0  ;;  %v673_v11 = vpop.f32.mrb[21].mxu1 }
 0x128   : > { %v610_v12 = vpop.f32.mrb[22].mxu0  ;;  %v674_v13 = vpop.f32.mrb[22].mxu1 }
 0x129   : > { %v611_v14 = vadd.f32 %v1469_v42, %v610_v12  ;;  %v675_v15 = vadd.f32 %v1469_v42, %v674_v13  ;;  %v612_v16 = vpop.f32.mrb[23].mxu0  ;;  %v676_v17 = vpop.f32.mrb[23].mxu1  ;;  %v704_v18 = vmax.f32 %v608_v8, 0.0  ;;  %v720_v19 = vmax.f32 %v672_v9, 0.0 }
 0x12b   : > { %v705_v20 = vmax.f32 %v611_v14, 0.0  ;;  %v721_v21 = vmax.f32 %v675_v15, 0.0 }
 0x12d   : > { %v1153_v22 = vpack.c.bf16 %v705_v20, %v704_v18  ;;  %v1193_v23 = vpack.c.bf16 %v721_v21, %v720_v19 }
 0x12e   : > { %v615_v24 = vpop.f32.mrb[24].mxu0  ;;  %v679_v25 = vpop.f32.mrb[24].mxu1 }
 0x12f   : > { %1209 = vst [vmem:[%s1479_s21 + $0x28] sm:$0xff] %v1153_v22   ;;  %1217 = vst [vmem:[%s1479_s21 + $0x68] sm:$0xff] %v1193_v23   ;;  %v616_v26 = vadd.f32 %v1469_v42, %v615_v24  ;;  %v680_v27 = vadd.f32 %v1469_v42, %v679_v25  ;;  %v617_v28 = vpop.f32.mrb[25].mxu0  ;;  %v681_v29 = vpop.f32.mrb[25].mxu1 }
 0x130   : > { %v618_v30 = vpop.f32.mrb[26].mxu0  ;;  %v682_v31 = vpop.f32.mrb[26].mxu1 }
 0x131   : > { %v619_v32 = vadd.f32 %v1469_v42, %v618_v30  ;;  %v683_v33 = vadd.f32 %v1469_v42, %v682_v31  ;;  %v620_v34 = vpop.f32.mrb[27].mxu0  ;;  %v684_v35 = vpop.f32.mrb[27].mxu1  ;;  %v706_v36 = vmax.f32 %v616_v26, 0.0  ;;  %v722_v37 = vmax.f32 %v680_v27, 0.0 }
 0x133   : > { %v707_v38 = vmax.f32 %v619_v32, 0.0  ;;  %v723_v39 = vmax.f32 %v683_v33, 0.0 }
 0x135   : > { %v1158_v40 = vpack.c.bf16 %v707_v38, %v706_v36  ;;  %v1198_v41 = vpack.c.bf16 %v723_v39, %v722_v37 }
 0x136   : > { %v623_v43 = vpop.f32.mrb[28].mxu0  ;;  %v687_v44 = vpop.f32.mrb[28].mxu1 }
 0x137   : > { %1210 = vst [vmem:[%s1479_s21 + $0x30] sm:$0xff] %v1158_v40   ;;  %1218 = vst [vmem:[%s1479_s21 + $0x70] sm:$0xff] %v1198_v41   ;;  %v624_v45 = vadd.f32 %v1469_v42, %v623_v43  ;;  %v688_v46 = vadd.f32 %v1469_v42, %v687_v44  ;;  %v625_v47 = vpop.f32.mrb[29].mxu0  ;;  %v689_v48 = vpop.f32.mrb[29].mxu1 }
 0x138   : > { %v626_v49 = vpop.f32.mrb[30].mxu0  ;;  %v690_v50 = vpop.f32.mrb[30].mxu1 }
 0x139   : > { %v627_v51 = vadd.f32 %v1469_v42, %v626_v49  ;;  %v691_v52 = vadd.f32 %v1469_v42, %v690_v50  ;;  %v628_v53 = vpop.f32.mrb[31].mxu0  ;;  %v692_v54 = vpop.f32.mrb[31].mxu1  ;;  %v708_v55 = vmax.f32 %v624_v45, 0.0  ;;  %v724_v56 = vmax.f32 %v688_v46, 0.0 }
 0x13b   : > { %v709_v57 = vmax.f32 %v627_v51, 0.0  ;;  %v725_v58 = vmax.f32 %v691_v52, 0.0 }
 0x13d   : > { %v1163_v59 = vpack.c.bf16 %v709_v57, %v708_v55  ;;  %v1203_v60 = vpack.c.bf16 %v725_v58, %v724_v56 }
 0x13f   : > { %1211 = vst [vmem:[%s1479_s21 + $0x38] sm:$0xff] %v1163_v59   ;;  %1219 = vst [vmem:[%s1479_s21 + $0x78] sm:$0xff] %v1203_v60  }
 0x140 PF: > { %s13_s14 = sadd.s32 1, %s1342_s14   ;;  %s1538_s12 = smov %s1338_s13 }
 0x141   : > { %p10_p5 = scmp.ge.s32.totalorder %s13_s14, 5   ;;  %s1539_s13 = smov %s1541_s15 }
 0x143   :  { %12 = sbr.rel (!%p10_p5) target bundleno = 2 (0x2), region = 68 }

// kernel: _lambda_.13
= control target key start
LH: loop header
LB: loop body
LE: loop exit
PB: predicated region body
PF: predicated region fallthrough
CT: control target
= control target key end

     0   :  { %s1937_s12 = smov 0   ;;  %s1939_s13 = smov 0   ;;  %s2179_s0 = inlined_call_operand.vmem [shape: bf16[1024,288], index: 0, kind: input, shape index: {}]   ;;  %s2180_s1 = inlined_call_operand.vmem [shape: bf16[288,128], index: 1, kind: input, shape index: {}]   ;;  %s2181_s2 = inlined_call_operand.vmem [shape: f32[1,128], index: 2, kind: input, shape index: {}]   ;;  %s2182_s3 = inlined_call_operand.vmem [shape: bf16[1024,128], index: 3, kind: output, shape index: {}]  }
   0x1   :  { %s1941_s14 = smov 0  }
   0x2 LB: > { %s25_s15 = sadd.s32 1, %s1911_s13  ;;  %p1355_p0 = scmp.ge.s32.totalorder %s1915_s14, 1  ;;  %s1915_s14 = sphi %s1941_s14, %s13_s14   ;;  %s1911_s13 = sphi %s1939_s13, %s2184_s13   ;;  %s1907_s12 = sphi %s1937_s12, %s2183_s12  }
   0x3   : > { %p27_p1 = scmp.ge.s32.totalorder %s25_s15, 4  ;;  %p170_p2 = scmp.lt.s32.totalorder %s1915_s14, 5 }
   0x5   : > { %s2186_s15 = smov (%p27_p1, %s25_s15), 0  ;;  %p171_p3 = pnand %p1355_p0, %p170_p2 }
   0x6   : > { %v1811_v0 = vld [vmem:[%s2180_s1 + $0x40] sm:$0xff] (!%p171_p3)   ;;  %s1356_s18 = sshll.u32 (!%p171_p3), %s1907_s12, 5  ;;  %v1813_v2 = vld [vmem:[%s2180_s1 + $0x48] sm:$0xff] (!%p171_p3)   ;;  %v1815_v4 = vld [vmem:[%s2180_s1 + $0x50] sm:$0xff] (!%p171_p3)   ;;  %vm684_vm0 = vcmask (!%p171_p3), 261120  }
   0x7   : > { %174 = sbr.rel (%p171_p3) target bundleno = 353 (0x161), region = 32  ;;  %v1812_v1 = vld [vmem:[%s2180_s1] sm:$0xff] (!%p171_p3)   ;;  %1604 = vmatprep.subr.bf16.mxu0 (!%p171_p3), %v1811_v0  ;;  %1770 = vmatprep.subr.bf16.mxu1 (!%p171_p3), %v1811_v0  ;;  %p206_p4 = scmp.lt.s32.totalorder (!%p171_p3), %s1356_s18, 127  ;;  %v1814_v3 = vld [vmem:[%s2180_s1 + $0x8] sm:$0xff] (!%p171_p3)   ;;  %v1816_v5 = vld [vmem:[%s2180_s1 + $0x10] sm:$0xff] (!%p171_p3)  }
   0x8   : > { %1605 = vmatpush3.bf16.msra.mxu0 (!%p171_p3), %v1812_v1  ;;  %1778 = vmatpush3.bf16.msra.mxu1 (!%p171_p3), %v1812_v1  ;;  %v1817_v6 = vld [vmem:[%s2180_s1 + $0x58] sm:$0xff] (!%p171_p3)   ;;  %v1819_v8 = vld [vmem:[%s2180_s1 + $0x60] sm:$0xff] (!%p171_p3)   ;;  %v1821_v10 = vld [vmem:[%s2180_s1 + $0x68] sm:$0xff] (!%p171_p3)  }
   0x9   : > { %1606 = vmatprep.subr.bf16.mxu0 (!%p171_p3), %v1813_v2  ;;  %1771 = vmatprep.subr.bf16.mxu1 (!%p171_p3), %v1813_v2  ;;  %v1818_v7 = vld [vmem:[%s2180_s1 + $0x18] sm:$0xff] (!%p171_p3)   ;;  %v1820_v9 = vld [vmem:[%s2180_s1 + $0x20] sm:$0xff] (!%p171_p3)   ;;  %v1822_v13 = vld [vmem:[%s2180_s1 + $0x28] sm:$0xff] (!%p171_p3)  }
   0xa   : > { %v1823_v14 = vld [vmem:[%s2180_s1 + $0x70] sm:$0xff] (!%p171_p3)   ;;  %v1825_v16 = vld [vmem:[%s2180_s1 + $0x78] sm:$0xff] (!%p171_p3)   ;;  %v1833_v18 = vld [vmem:[%s2180_s1 + $0x80] sm:$0xff] (!%p171_p3)  }
   0xb   : > { %v1824_v15 = vld [vmem:[%s2180_s1 + $0x30] sm:$0xff] (!%p171_p3)   ;;  %v1826_v17 = vld [vmem:[%s2180_s1 + $0x38] sm:$0xff] (!%p171_p3)   ;;  %v1846_v23 = vld [vmem:[%s2180_s1 + $0x88] sm:$0xff] (!%p171_p3)  }
   0xc   : > { %1607 = vmatpush3.bf16.msra.mxu0 (!%p171_p3), %v1814_v3  ;;  %1779 = vmatpush3.bf16.msra.mxu1 (!%p171_p3), %v1814_v3 }
   0xd   : > { %1608 = vmatprep.subr.bf16.mxu0 (!%p171_p3), %v1815_v4  ;;  %1772 = vmatprep.subr.bf16.mxu1 (!%p171_p3), %v1815_v4 }
   0xe   : > { %s2188_s18 = smov (!%p206_p4, %s1356_s18), 127 }
   0xf   : > { %s1786_s4 = smul.u32 12, %s2188_s18  ;;  %s1359_s9 = sshll.u32 %s2188_s18, 2 }
  0x10   : > { %1609 = vmatpush3.bf16.msra.mxu0 %v1816_v5  ;;  %1780 = vmatpush3.bf16.msra.mxu1 %v1816_v5  ;;  %s2110_s12 = scalar_lea.vmem %s2182_s3, %s1359_s9 }
  0x11   : > { %1610 = vmatprep.subr.bf16.mxu0 %v1817_v6  ;;  %1773 = vmatprep.subr.bf16.mxu1 %v1817_v6  ;;  %s1988_s11 = scalar_lea.vmem %s2179_s0, %s1786_s4 }
  0x12   : > { %v1829_v11 = vld [vmem:[%s1988_s11 + $0x4] ss:$12 sps:$4 sm:$0xff]   ;;  %v1827_v19 = vld [vmem:[%s1988_s11] ss:$12 sps:$4 sm:$0xff]   ;;  %v1834_v21 = vld [vmem:[%s1988_s11 + $0x1c] ss:$12 sps:$4 sm:$0xff]  }
  0x13   : > { %v1832_v12 = vld [vmem:[%s1988_s11 + $0x124] ss:$12 sps:$4 sm:$0xff]   ;;  %765 = vmatprep.mubr.bf16.mxu0 %v1829_v11  ;;  %v1830_v20 = vld [vmem:[%s1988_s11 + $0x120] ss:$12 sps:$4 sm:$0xff]   ;;  %v1836_v22 = vld [vmem:[%s1988_s11 + $0x13c] ss:$12 sps:$4 sm:$0xff]  }
  0x14   : > { %1611 = vmatpush3.bf16.msra.mxu0 %v1818_v7  ;;  %1781 = vmatpush3.bf16.msra.mxu1 %v1818_v7  ;;  %v1838_v24 = vld [vmem:[%s1988_s11 + $0x18] ss:$12 sps:$4 sm:$0xff]   ;;  %v1840_v26 = vld [vmem:[%s1988_s11 + $0x34] ss:$12 sps:$4 sm:$0xff]   ;;  %v1844_v28 = vld [vmem:[%s1988_s11 + $0x30] ss:$12 sps:$4 sm:$0xff]  }
  0x15   : > { %1612 = vmatprep.subr.bf16.mxu0 %v1819_v8  ;;  %1774 = vmatprep.subr.bf16.mxu1 %v1819_v8  ;;  %v1839_v25 = vld [vmem:[%s1988_s11 + $0x138] ss:$12 sps:$4 sm:$0xff]   ;;  %v1842_v27 = vld [vmem:[%s1988_s11 + $0x154] ss:$12 sps:$4 sm:$0xff]   ;;  %v1845_v29 = vld [vmem:[%s1988_s11 + $0x150] ss:$12 sps:$4 sm:$0xff]  }
  0x16   : > { %861 = vmatprep.mubr.bf16.mxu1 %v1832_v12  ;;  %v1847_v30 = vld [vmem:[%s1988_s11 + $0x4c] ss:$12 sps:$4 sm:$0xff]   ;;  %v1851_v32 = vld [vmem:[%s1988_s11 + $0x48] ss:$12 sps:$4 sm:$0xff]   ;;  %v1853_v34 = vld [vmem:[%s1988_s11 + $0x64] ss:$12 sps:$4 sm:$0xff]  }
  0x17   : > { %v1849_v31 = vld [vmem:[%s1988_s11 + $0x16c] ss:$12 sps:$4 sm:$0xff]   ;;  %v1852_v33 = vld [vmem:[%s1988_s11 + $0x168] ss:$12 sps:$4 sm:$0xff]   ;;  %v1862_v41 = vld [vmem:[%s1988_s11 + $0x50] ss:$12 sps:$4 sm:$0xff]  }
  0x18   : > { %1613 = vmatpush3.bf16.msra.mxu0 %v1820_v9  ;;  %1782 = vmatpush3.bf16.msra.mxu1 %v1820_v9  ;;  %v1855_v35 = vld [vmem:[%s1988_s11 + $0x8] ss:$12 sps:$4 sm:$0xff]   ;;  %v1856_v36 = vld [vmem:[%s1988_s11 + $0x60] ss:$12 sps:$4 sm:$0xff]   ;;  %v1860_v39 = vld [vmem:[%s1988_s11 + $0x38] ss:$12 sps:$4 sm:$0xff]  }
  0x19   : > { %1614 = vmatprep.subr.bf16.mxu0 %v1821_v10  ;;  %1775 = vmatprep.subr.bf16.mxu1 %v1821_v10  ;;  %v1857_v37 = vld [vmem:[%s1988_s11 + $0x20] ss:$12 sps:$4 sm:$0xff]   ;;  %v1858_v38 = vld [vmem:[%s1988_s11 + $0x7c] ss:$12 sps:$4 sm:$0xff]   ;;  %v1861_v40 = vld [vmem:[%s1988_s11 + $0x78] ss:$12 sps:$4 sm:$0xff]  }
  0x1a   : > { %v1863_v42 = vld [vmem:[%s1988_s11 + $0x94] ss:$12 sps:$4 sm:$0xff]   ;;  %v1866_v44 = vld [vmem:[%s1988_s11 + $0x90] ss:$12 sps:$4 sm:$0xff]   ;;  %v1868_v46 = vld [vmem:[%s1988_s11 + $0xac] ss:$12 sps:$4 sm:$0xff]  }
  0x1b   : > { %v1865_v43 = vld [vmem:[%s1988_s11 + $0x68] ss:$12 sps:$4 sm:$0xff]   ;;  %v1867_v45 = vld [vmem:[%s1988_s11 + $0x80] ss:$12 sps:$4 sm:$0xff]   ;;  %v1870_v47 = vld [vmem:[%s1988_s11 + $0x98] ss:$12 sps:$4 sm:$0xff]  }
  0x1c   : > { %1615 = vmatpush3.bf16.msra.mxu0 %v1822_v13  ;;  %1783 = vmatpush3.bf16.msra.mxu1 %v1822_v13  ;;  %v1871_v48 = vld [vmem:[%s1988_s11 + $0xa8] ss:$12 sps:$4 sm:$0xff]   ;;  %v1872_v49 = vld [vmem:[%s1988_s11 + $0xb0] ss:$12 sps:$4 sm:$0xff]   ;;  %v1876_v52 = vld [vmem:[%s1988_s11 + $0xc0] ss:$12 sps:$4 sm:$0xff]  }
  0x1d   : > { %1616 = vmatprep.subr.bf16.mxu0 %v1823_v14  ;;  %1776 = vmatprep.subr.bf16.mxu1 %v1823_v14  ;;  %v1873_v50 = vld [vmem:[%s1988_s11 + $0xc4] ss:$12 sps:$4 sm:$0xff]   ;;  %v1875_v51 = vld [vmem:[%s1988_s11 + $0xc8] ss:$12 sps:$4 sm:$0xff]   ;;  %v1877_v53 = vld [vmem:[%s1988_s11 + $0xe0] ss:$12 sps:$4 sm:$0xff]  }
  0x1e   : > { %v1878_v54 = vld [vmem:[%s1988_s11 + $0xdc] ss:$12 sps:$4 sm:$0xff]   ;;  %v1880_v55 = vld [vmem:[%s1988_s11 + $0xf8] ss:$12 sps:$4 sm:$0xff]   ;;  %v1883_v58 = vld [vmem:[%s1988_s11 + $0xf4] ss:$12 sps:$4 sm:$0xff]  }
  0x1f   : > { %v1881_v56 = vld [vmem:[%s1988_s11 + $0xd8] ss:$12 sps:$4 sm:$0xff]   ;;  %v1882_v57 = vld [vmem:[%s1988_s11 + $0x110] ss:$12 sps:$4 sm:$0xff]   ;;  %v1885_v59 = vld [vmem:[%s1988_s11 + $0x128] ss:$12 sps:$4 sm:$0xff]  }
  0x20   : > { %1617 = vmatpush3.bf16.msra.mxu0 %v1824_v15  ;;  %1784 = vmatpush3.bf16.msra.mxu1 %v1824_v15  ;;  %v1886_v60 = vld [vmem:[%s1988_s11 + $0xf0] ss:$12 sps:$4 sm:$0xff]   ;;  %v1887_v61 = vld [vmem:[%s1988_s11 + $0x140] ss:$12 sps:$4 sm:$0xff]   ;;  %v1890_v63 = vld [vmem:[%s1988_s11 + $0x158] ss:$12 sps:$4 sm:$0xff]  }
  0x21   : > { %1618 = vmatprep.subr.bf16.mxu0 %v1825_v16  ;;  %1777 = vmatprep.subr.bf16.mxu1 %v1825_v16  ;;  %v1888_v62 = vld [vmem:[%s1988_s11 + $0x10c] ss:$12 sps:$4 sm:$0xff]   ;;  %v1891_v0 = vld [vmem:[%s1988_s11 + $0x108] ss:$12 sps:$4 sm:$0xff]   ;;  %v1892_v1 = vld [vmem:[%s1988_s11 + $0x170] ss:$12 sps:$4 sm:$0xff]  }
  0x24   : > { %1619 = vmatpush3.bf16.msra.mxu0 %v1826_v17  ;;  %1785 = vmatpush3.bf16.msra.mxu1 %v1826_v17 }
  0x25   : > { %1734 = vmatprep.subr.bf16.mxu1 %v1833_v18 }
  0x27   : > { %766 = vmatmul.mubr.bf16.vlgmr.msra.gmra.mrb[0].mxu0 %v1827_v19  ;;  %862 = vmatmul.mubr.bf16.vlgmr.msra.gmra.mrb[0].mxu1 %v1830_v20 }
  0x28   : > { %1735 = vmatpush3.bf16.msra.mxu1 %v1833_v18  ;;  %773 = vmatprep.mubr.bf16.mxu0 %v1834_v21 }
  0x29   : > { %869 = vmatprep.mubr.bf16.mxu1 %v1836_v22  ;;  %1736 = vmatprep.subr.bf16.mxu1 %v1846_v23 }
  0x2c   : > { %1737 = vmatpush3.bf16.msra.mxu1 %v1846_v23 }
  0x2f   : > { %774 = vmatmul.mubr.bf16.gmra.mrb[4].mxu0 %v1838_v24  ;;  %870 = vmatmul.mubr.bf16.gmra.mrb[4].mxu1 %v1839_v25 }
  0x30   : > { %781 = vmatprep.mubr.bf16.mxu0 %v1840_v26  ;;  %877 = vmatprep.mubr.bf16.mxu1 %v1842_v27 }
  0x37   : > { %782 = vmatmul.mubr.bf16.gmra.mrb[8].mxu0 %v1844_v28  ;;  %878 = vmatmul.mubr.bf16.gmra.mrb[8].mxu1 %v1845_v29 }
  0x38   : > { %789 = vmatprep.mubr.bf16.mxu0 %v1847_v30  ;;  %885 = vmatprep.mubr.bf16.mxu1 %v1849_v31 }
  0x3f   : > { %790 = vmatmul.mubr.bf16.gmra.mrb[12].mxu0 %v1851_v32  ;;  %886 = vmatmul.mubr.bf16.gmra.mrb[12].mxu1 %v1852_v33 }
  0x40   : > { %797 = vmatprep.mubr.bf16.mxu0 %v1853_v34  ;;  %1738 = vmatprep.mubr.msk.bf16.mxu1 %vm684_vm0, %v1855_v35 }
  0x47   : > { %798 = vmatmul.mubr.bf16.gmra.mrb[16].mxu0 %v1856_v36  ;;  %1739 = vmatmul.mubr.msk.bf16.vlgmr.msra.gmra.mrb[16].mxu1 %vm684_vm0, %v1857_v37 }
  0x48   : > { %805 = vmatprep.mubr.bf16.mxu0 %v1858_v38  ;;  %1742 = vmatprep.mubr.msk.bf16.mxu1 %vm684_vm0, %v1860_v39 }
  0x4f   : > { %806 = vmatmul.mubr.bf16.gmra.mrb[20].mxu0 %v1861_v40  ;;  %1743 = vmatmul.mubr.msk.bf16.gmra.mrb[20].mxu1 %vm684_vm0, %v1862_v41 }
  0x50   : > { %813 = vmatprep.mubr.bf16.mxu0 %v1863_v42  ;;  %1746 = vmatprep.mubr.msk.bf16.mxu1 %vm684_vm0, %v1865_v43 }
  0x57   : > { %814 = vmatmul.mubr.bf16.gmra.mrb[24].mxu0 %v1866_v44  ;;  %1747 = vmatmul.mubr.msk.bf16.gmra.mrb[24].mxu1 %vm684_vm0, %v1867_v45 }
  0x58   : > { %821 = vmatprep.mubr.bf16.mxu0 %v1868_v46  ;;  %1750 = vmatprep.mubr.msk.bf16.mxu1 %vm684_vm0, %v1870_v47 }
  0x5f   : > { %822 = vmatmul.mubr.bf16.gmra.mrb[28].mxu0 %v1871_v48  ;;  %1751 = vmatmul.mubr.msk.bf16.gmra.mrb[28].mxu1 %vm684_vm0, %v1872_v49 }
  0x60   : > { %829 = vmatprep.mubr.bf16.mxu0 %v1873_v50  ;;  %1754 = vmatprep.mubr.msk.bf16.mxu1 %vm684_vm0, %v1875_v51  ;;  %v2100_v50 = vld [vmem:[%s2181_s2] ss:$0 sm:$0xff] }
  0x67   : > { %830 = vmatmul.mubr.bf16.gmra.mrb[32].mxu0 %v1876_v52  ;;  %1755 = vmatmul.mubr.msk.bf16.gmra.mrb[32].mxu1 %vm684_vm0, %v1877_v53 }
  0x68   : > { %837 = vmatprep.mubr.bf16.mxu0 %v1878_v54  ;;  %1758 = vmatprep.mubr.msk.bf16.mxu1 %vm684_vm0, %v1880_v55 }
  0x6f   : > { %838 = vmatmul.mubr.bf16.gmra.mrb[36].mxu0 %v1881_v56  ;;  %1759 = vmatmul.mubr.msk.bf16.gmra.mrb[36].mxu1 %vm684_vm0, %v1882_v57 }
  0x70   : > { %845 = vmatprep.mubr.bf16.mxu0 %v1883_v58  ;;  %1762 = vmatprep.mubr.msk.bf16.mxu1 %vm684_vm0, %v1885_v59 }
  0x77   : > { %846 = vmatmul.mubr.bf16.gmra.mrb[40].mxu0 %v1886_v60  ;;  %1763 = vmatmul.mubr.msk.bf16.gmra.mrb[40].mxu1 %vm684_vm0, %v1887_v61 }
  0x78   : > { %853 = vmatprep.mubr.bf16.mxu0 %v1888_v62  ;;  %1766 = vmatprep.mubr.msk.bf16.mxu1 %vm684_vm0, %v1890_v63 }
  0x7f   : > { %854 = vmatmul.mubr.bf16.gmra.mrb[44].mxu0 %v1891_v0  ;;  %1767 = vmatmul.mubr.msk.bf16.gmra.mrb[44].mxu1 %vm684_vm0, %v1892_v1 }
  0xfa   : > { %v1620_v2 = vpop.f32.mrb[0].mxu0  ;;  %v1692_v3 = vpop.f32.mrb[0].mxu1 }
  0xfb   : > { %v1621_v4 = vpop.f32.mrb[1].mxu0  ;;  %v1693_v5 = vpop.f32.mrb[1].mxu1 }
  0xfc   : > { %v1622_v6 = vadd.f32 %v1621_v4, %v1620_v2  ;;  %v1623_v7 = vpop.f32.mrb[2].mxu0  ;;  %v2081_v8 = vadd.f32 %v1693_v5, %v1692_v3  ;;  %v1695_v9 = vpop.f32.mrb[2].mxu1 }
  0xfd   : > { %v1624_v10 = vpop.f32.mrb[3].mxu0  ;;  %v1696_v11 = vpop.f32.mrb[3].mxu1 }
  0xfe   : > { %v1625_v12 = vadd.f32 %v1624_v10, %v1623_v7  ;;  %v2083_v13 = vadd.f32 %v1696_v11, %v1695_v9  ;;  %v768_v54 = vadd.f32 %v1622_v6, %v2100_v50 }
 0x100   : > { %v771_v63 = vadd.f32 %v1625_v12, %v2100_v50 }
 0x102   : > { %v1626_v14 = vpop.f32.mrb[4].mxu0  ;;  %v1698_v15 = vpop.f32.mrb[4].mxu1 }
 0x103   : > { %v1627_v16 = vpop.f32.mrb[5].mxu0  ;;  %v1699_v17 = vpop.f32.mrb[5].mxu1 }
 0x104   : > { %v1628_v18 = vadd.f32 %v1627_v16, %v1626_v14  ;;  %v1629_v19 = vpop.f32.mrb[6].mxu0  ;;  %v2085_v20 = vadd.f32 %v1699_v17, %v1698_v15  ;;  %v1701_v21 = vpop.f32.mrb[6].mxu1 }
 0x105   : > { %v1630_v22 = vpop.f32.mrb[7].mxu0  ;;  %v1702_v23 = vpop.f32.mrb[7].mxu1 }
 0x106   : > { %v1631_v24 = vadd.f32 %v1630_v22, %v1629_v19  ;;  %v2087_v25 = vadd.f32 %v1702_v23, %v1701_v21  ;;  %v776_v51 = vadd.f32 %v1628_v18, %v2100_v50 }
 0x108   : > { %v779_v58 = vadd.f32 %v1631_v24, %v2100_v50 }
 0x10a   : > { %v1632_v26 = vpop.f32.mrb[8].mxu0  ;;  %v1704_v27 = vpop.f32.mrb[8].mxu1 }
 0x10b   : > { %v1633_v28 = vpop.f32.mrb[9].mxu0  ;;  %v1705_v29 = vpop.f32.mrb[9].mxu1 }
 0x10c   : > { %v1634_v30 = vadd.f32 %v1633_v28, %v1632_v26  ;;  %v1635_v31 = vpop.f32.mrb[10].mxu0  ;;  %v2089_v32 = vadd.f32 %v1705_v29, %v1704_v27  ;;  %v1707_v33 = vpop.f32.mrb[10].mxu1 }
 0x10d   : > { %v1636_v34 = vpop.f32.mrb[11].mxu0  ;;  %v1708_v35 = vpop.f32.mrb[11].mxu1 }
 0x10e   : > { %v1637_v36 = vadd.f32 %v1636_v34, %v1635_v31  ;;  %v2091_v37 = vadd.f32 %v1708_v35, %v1707_v33  ;;  %v784_v16 = vadd.f32 %v1634_v30, %v2100_v50 }
 0x110   : > { %v787_v27 = vadd.f32 %v1637_v36, %v2100_v50 }
 0x112   : > { %v1638_v38 = vpop.f32.mrb[12].mxu0  ;;  %v1710_v39 = vpop.f32.mrb[12].mxu1 }
 0x113   : > { %v1639_v40 = vpop.f32.mrb[13].mxu0  ;;  %v1711_v41 = vpop.f32.mrb[13].mxu1 }
 0x114   : > { %v1640_v42 = vadd.f32 %v1639_v40, %v1638_v38  ;;  %v1641_v43 = vpop.f32.mrb[14].mxu0  ;;  %v2093_v44 = vadd.f32 %v1711_v41, %v1710_v39  ;;  %v1713_v45 = vpop.f32.mrb[14].mxu1 }
 0x115   : > { %v1642_v46 = vpop.f32.mrb[15].mxu0  ;;  %v1714_v47 = vpop.f32.mrb[15].mxu1 }
 0x116   : > { %v1643_v48 = vadd.f32 %v1642_v46, %v1641_v43  ;;  %v2095_v49 = vadd.f32 %v1714_v47, %v1713_v45  ;;  %v792_v11 = vadd.f32 %v1640_v42, %v2100_v50 }
 0x118   : > { %v795_v21 = vadd.f32 %v1643_v48, %v2100_v50 }
 0x11a   : > { %v1644_v52 = vpop.f32.mrb[16].mxu0  ;;  %v1740_v53 = vpop.f32.mrb[16].mxu1 }
 0x11b   : > { %v937_v55 = vadd.f32 %v1740_v53, %v776_v51  ;;  %v1645_v56 = vpop.f32.mrb[17].mxu0  ;;  %v928_v57 = vpop.f32.mrb[17].mxu1 }
 0x11c   : > { %v1646_v59 = vadd.f32 %v1645_v56, %v1644_v52  ;;  %v929_v60 = vadd.f32 %v928_v57, %v768_v54  ;;  %v1647_v61 = vpop.f32.mrb[18].mxu0  ;;  %v1741_v62 = vpop.f32.mrb[18].mxu1 }
 0x11d   : > { %v940_v0 = vadd.f32 %v1741_v62, %v779_v58  ;;  %v1648_v1 = vpop.f32.mrb[19].mxu0  ;;  %v931_v2 = vpop.f32.mrb[19].mxu1  ;;  %v1057_v5 = vmax.f32 %v937_v55, 0.0 }
 0x11e   : > { %v1649_v3 = vadd.f32 %v1648_v1, %v1647_v61  ;;  %v932_v4 = vadd.f32 %v931_v2, %v771_v63  ;;  %v1055_v6 = vmax.f32 %v929_v60, 0.0  ;;  %v800_v46 = vadd.f32 %v1646_v59, %v2100_v50 }
 0x11f   : > { %v1058_v7 = vmax.f32 %v940_v0, 0.0 }
 0x120   : > { %v1056_v9 = vmax.f32 %v932_v4, 0.0  ;;  %v803_v56 = vadd.f32 %v1649_v3, %v2100_v50 }
 0x121   : > { %v1517_v10 = vpack.c.bf16 %v1058_v7, %v1057_v5 }
 0x122   : > { %v1512_v12 = vpack.c.bf16 %v1056_v9, %v1055_v6  ;;  %v1650_v14 = vpop.f32.mrb[20].mxu0  ;;  %v1744_v15 = vpop.f32.mrb[20].mxu1 }
 0x123   : > { %1589 = vst [vmem:[%s2110_s12 + $0x8] sm:$0xff] %v1517_v10   ;;  %v953_v17 = vadd.f32 %v1744_v15, %v792_v11  ;;  %v1651_v18 = vpop.f32.mrb[21].mxu0  ;;  %v944_v19 = vpop.f32.mrb[21].mxu1 }
 0x124   : > { %1513 = vst [vmem:[%s2110_s12] sm:$0xff] %v1512_v12   ;;  %v1652_v22 = vadd.f32 %v1651_v18, %v1650_v14  ;;  %v945_v23 = vadd.f32 %v944_v19, %v784_v16  ;;  %v1653_v24 = vpop.f32.mrb[22].mxu0  ;;  %v1745_v26 = vpop.f32.mrb[22].mxu1 }
 0x125   : > { %v956_v28 = vadd.f32 %v1745_v26, %v795_v21  ;;  %v1654_v29 = vpop.f32.mrb[23].mxu0  ;;  %v947_v31 = vpop.f32.mrb[23].mxu1  ;;  %v1061_v30 = vmax.f32 %v953_v17, 0.0 }
 0x126   : > { %v1655_v33 = vadd.f32 %v1654_v29, %v1653_v24  ;;  %v948_v34 = vadd.f32 %v947_v31, %v787_v27  ;;  %v1059_v38 = vmax.f32 %v945_v23, 0.0  ;;  %v808_v41 = vadd.f32 %v1652_v22, %v2100_v50 }
 0x127   : > { %v1062_v35 = vmax.f32 %v956_v28, 0.0 }
 0x128   : > { %v1060_v39 = vmax.f32 %v948_v34, 0.0  ;;  %v811_v51 = vadd.f32 %v1655_v33, %v2100_v50 }
 0x129   : > { %v1527_v40 = vpack.c.bf16 %v1062_v35, %v1061_v30 }
 0x12a   : > { %v1522_v42 = vpack.c.bf16 %v1060_v39, %v1059_v38  ;;  %v1656_v43 = vpop.f32.mrb[24].mxu0  ;;  %v1748_v45 = vpop.f32.mrb[24].mxu1 }
 0x12b   : > { %1591 = vst [vmem:[%s2110_s12 + $0x18] sm:$0xff] %v1527_v40   ;;  %v969_v36 = vadd.f32 %v1748_v45, %v808_v41  ;;  %v1657_v47 = vpop.f32.mrb[25].mxu0  ;;  %v960_v48 = vpop.f32.mrb[25].mxu1 }
 0x12c   : > { %1590 = vst [vmem:[%s2110_s12 + $0x10] sm:$0xff] %v1522_v42   ;;  %v1658_v52 = vadd.f32 %v1657_v47, %v1656_v43  ;;  %v961_v53 = vadd.f32 %v960_v48, %v800_v46  ;;  %v1659_v54 = vpop.f32.mrb[26].mxu0  ;;  %v1749_v55 = vpop.f32.mrb[26].mxu1 }
 0x12d   : > { %v972_v57 = vadd.f32 %v1749_v55, %v811_v51  ;;  %v1660_v58 = vpop.f32.mrb[27].mxu0  ;;  %v963_v60 = vpop.f32.mrb[27].mxu1  ;;  %v1065_v62 = vmax.f32 %v969_v36, 0.0 }
 0x12e   : > { %v1661_v61 = vadd.f32 %v1660_v58, %v1659_v54  ;;  %v964_v59 = vadd.f32 %v963_v60, %v803_v56  ;;  %v1063_v0 = vmax.f32 %v961_v53, 0.0  ;;  %v816_v6 = vadd.f32 %v1658_v52, %v2100_v50 }
 0x12f   : > { %v1066_v63 = vmax.f32 %v972_v57, 0.0 }
 0x130   : > { %v1064_v1 = vmax.f32 %v964_v59, 0.0  ;;  %v819_v15 = vadd.f32 %v1661_v61, %v2100_v50 }
 0x131   : > { %v1537_v2 = vpack.c.bf16 %v1066_v63, %v1065_v62 }
 0x132   : > { %v1532_v4 = vpack.c.bf16 %v1064_v1, %v1063_v0  ;;  %v1662_v5 = vpop.f32.mrb[28].mxu0  ;;  %v1752_v7 = vpop.f32.mrb[28].mxu1 }
 0x133   : > { %1593 = vst [vmem:[%s2110_s12 + $0x28] sm:$0xff] %v1537_v2   ;;  %v1663_v9 = vpop.f32.mrb[29].mxu0  ;;  %v976_v10 = vpop.f32.mrb[29].mxu1 }
 0x134   : > { %1592 = vst [vmem:[%s2110_s12 + $0x20] sm:$0xff] %v1532_v4   ;;  %v1664_v3 = vadd.f32 %v1663_v9, %v1662_v5  ;;  %v977_v11 = vadd.f32 %v976_v10, %v816_v6  ;;  %v1665_v12 = vpop.f32.mrb[30].mxu0  ;;  %v1753_v14 = vpop.f32.mrb[30].mxu1  ;;  %v872_v4 = vadd.f32 %v2085_v20, %v2100_v50  ;;  %v864_v9 = vadd.f32 %v2081_v8, %v2100_v50 }
 0x135   : > { %v1666_v16 = vpop.f32.mrb[31].mxu0  ;;  %v979_v17 = vpop.f32.mrb[31].mxu1 }
 0x136   : > { %v824_v18 = vadd.f32 %v1664_v3, %v2100_v50  ;;  %v1667_v19 = vadd.f32 %v1666_v16, %v1665_v12  ;;  %v980_v21 = vadd.f32 %v979_v17, %v819_v15  ;;  %v1067_v23 = vmax.f32 %v977_v11, 0.0 }
 0x137   : > { %v875_v12 = vadd.f32 %v2087_v25, %v2100_v50 }
 0x138   : > { %v985_v22 = vadd.f32 %v1752_v7, %v824_v18  ;;  %v827_v24 = vadd.f32 %v1667_v19, %v2100_v50  ;;  %v1068_v26 = vmax.f32 %v980_v21, 0.0 }
 0x13a   : > { %v988_v27 = vadd.f32 %v1753_v14, %v827_v24  ;;  %v1542_v28 = vpack.c.bf16 %v1068_v26, %v1067_v23  ;;  %v1668_v29 = vpop.f32.mrb[32].mxu0  ;;  %v1756_v31 = vpop.f32.mrb[32].mxu1  ;;  %v1069_v30 = vmax.f32 %v985_v22, 0.0  ;;  %v867_v22 = vadd.f32 %v2083_v13, %v2100_v50 }
 0x13b   : > { %v1669_v33 = vpop.f32.mrb[33].mxu0  ;;  %v992_v34 = vpop.f32.mrb[33].mxu1 }
 0x13c   : > { %v1070_v35 = vmax.f32 %v988_v27, 0.0  ;;  %1594 = vst [vmem:[%s2110_s12 + $0x30] sm:$0xff] %v1542_v28   ;;  %v1670_v38 = vadd.f32 %v1669_v33, %v1668_v29  ;;  %v1671_v39 = vpop.f32.mrb[34].mxu0  ;;  %v1757_v40 = vpop.f32.mrb[34].mxu1 }
 0x13d   : > { %v1672_v41 = vpop.f32.mrb[35].mxu0  ;;  %v995_v42 = vpop.f32.mrb[35].mxu1 }
 0x13e   : > { %v1547_v43 = vpack.c.bf16 %v1070_v35, %v1069_v30  ;;  %v832_v45 = vadd.f32 %v1670_v38, %v2100_v50  ;;  %v1673_v46 = vadd.f32 %v1672_v41, %v1671_v39  ;;  %v888_v35 = vadd.f32 %v2093_v44, %v2100_v50 }
 0x140   : > { %1595 = vst [vmem:[%s2110_s12 + $0x38] sm:$0xff] %v1547_v43   ;;  %v993_v36 = vadd.f32 %v992_v34, %v832_v45  ;;  %v835_v47 = vadd.f32 %v1673_v46, %v2100_v50  ;;  %v891_v46 = vadd.f32 %v2095_v49, %v2100_v50 }
 0x142   : > { %v996_v48 = vadd.f32 %v995_v42, %v835_v47  ;;  %v1674_v51 = vpop.f32.mrb[36].mxu0  ;;  %v2134_v52 = vpop.f32.mrb[36].mxu1  ;;  %v1071_v55 = vmax.f32 %v993_v36, 0.0 }
 0x143   : > { %v1675_v53 = vpop.f32.mrb[37].mxu0  ;;  %v1008_v54 = vpop.f32.mrb[37].mxu1 }
 0x144   : > { %v1072_v56 = vmax.f32 %v996_v48, 0.0  ;;  %v1676_v57 = vadd.f32 %v1675_v53, %v1674_v51  ;;  %v1677_v58 = vpop.f32.mrb[38].mxu0  ;;  %v2136_v60 = vpop.f32.mrb[38].mxu1 }
 0x145   : > { %v1678_v61 = vpop.f32.mrb[39].mxu0  ;;  %v1011_v59 = vpop.f32.mrb[39].mxu1 }
 0x146   : > { %v1552_v62 = vpack.c.bf16 %v1072_v56, %v1071_v55  ;;  %v840_v63 = vadd.f32 %v1676_v57, %v2100_v50  ;;  %v1679_v0 = vadd.f32 %v1678_v61, %v1677_v58 }
 0x148   : > { %1596 = vst [vmem:[%s2110_s12 + $0x40] sm:$0xff] %v1552_v62   ;;  %v1001_v1 = vadd.f32 %v1756_v31, %v840_v63  ;;  %v843_v2 = vadd.f32 %v1679_v0, %v2100_v50 }
 0x14a   : > { %v1004_v5 = vadd.f32 %v1757_v40, %v843_v2  ;;  %v1680_v7 = vpop.f32.mrb[40].mxu0  ;;  %v1764_v6 = vpop.f32.mrb[40].mxu1  ;;  %v1073_v14 = vmax.f32 %v1001_v1, 0.0  ;;  %v880_v40 = vadd.f32 %v2089_v32, %v2100_v50  ;;  %v883_v32 = vadd.f32 %v2091_v37, %v2100_v50 }
 0x14b   : > { %v1033_v10 = vadd.f32 %v1764_v6, %v872_v4  ;;  %v1681_v3 = vpop.f32.mrb[41].mxu0  ;;  %v1024_v11 = vpop.f32.mrb[41].mxu1 }
 0x14c   : > { %v1074_v15 = vmax.f32 %v1004_v5, 0.0  ;;  %v1682_v16 = vadd.f32 %v1681_v3, %v1680_v7  ;;  %v1025_v17 = vadd.f32 %v1024_v11, %v864_v9  ;;  %v1683_v18 = vpop.f32.mrb[42].mxu0  ;;  %v1765_v19 = vpop.f32.mrb[42].mxu1 }
 0x14d   : > { %v1036_v20 = vadd.f32 %v1765_v19, %v875_v12  ;;  %v1684_v21 = vpop.f32.mrb[43].mxu0  ;;  %v1027_v23 = vpop.f32.mrb[43].mxu1  ;;  %v1081_v27 = vmax.f32 %v1033_v10, 0.0 }
 0x14e   : > { %v1557_v8 = vpack.c.bf16 %v1074_v15, %v1073_v14  ;;  %v848_v24 = vadd.f32 %v1682_v16, %v2100_v50  ;;  %v1685_v26 = vadd.f32 %v1684_v21, %v1683_v18  ;;  %v1028_v28 = vadd.f32 %v1027_v23, %v867_v22 }
 0x14f   : > { %v1082_v25 = vmax.f32 %v1036_v20, 0.0  ;;  %v1079_v33 = vmax.f32 %v1025_v17, 0.0 }
 0x150   : > { %1597 = vst [vmem:[%s2110_s12 + $0x48] sm:$0xff] %v1557_v8   ;;  %v1009_v29 = vadd.f32 %v1008_v54, %v848_v24  ;;  %v851_v31 = vadd.f32 %v1685_v26, %v2100_v50  ;;  %v1080_v30 = vmax.f32 %v1028_v28, 0.0 }
 0x151   : > { %v1577_v34 = vpack.c.bf16 %v1082_v25, %v1081_v27 }
 0x152   : > { %v1012_v13 = vadd.f32 %v1011_v59, %v851_v31  ;;  %v1686_v38 = vpop.f32.mrb[44].mxu0  ;;  %v1768_v39 = vpop.f32.mrb[44].mxu1  ;;  %v1572_v41 = vpack.c.bf16 %v1080_v30, %v1079_v33  ;;  %v1075_v36 = vmax.f32 %v1009_v29, 0.0 }
 0x153   : > { %1601 = vst [vmem:[%s2110_s12 + $0x68] sm:$0xff] %v1577_v34   ;;  %v1049_v42 = vadd.f32 %v1768_v39, %v888_v35  ;;  %v1687_v43 = vpop.f32.mrb[45].mxu0  ;;  %v1040_v45 = vpop.f32.mrb[45].mxu1 }
 0x154   : > { %v1076_v47 = vmax.f32 %v1012_v13, 0.0  ;;  %v1688_v48 = vadd.f32 %v1687_v43, %v1686_v38  ;;  %v1041_v44 = vadd.f32 %v1040_v45, %v880_v40  ;;  %v1689_v51 = vpop.f32.mrb[46].mxu0  ;;  %v1769_v53 = vpop.f32.mrb[46].mxu1  ;;  %1600 = vst [vmem:[%s2110_s12 + $0x60] sm:$0xff] %v1572_v41  }
 0x155   : > { %v1052_v54 = vadd.f32 %v1769_v53, %v891_v46  ;;  %v1690_v55 = vpop.f32.mrb[47].mxu0  ;;  %v1043_v56 = vpop.f32.mrb[47].mxu1  ;;  %v1085_v61 = vmax.f32 %v1049_v42, 0.0 }
 0x156   : > { %v1562_v57 = vpack.c.bf16 %v1076_v47, %v1075_v36  ;;  %v856_v58 = vadd.f32 %v1688_v48, %v2100_v50  ;;  %v1691_v49 = vadd.f32 %v1690_v55, %v1689_v51  ;;  %v1044_v62 = vadd.f32 %v1043_v56, %v883_v32 }
 0x157   : > { %v1086_v59 = vmax.f32 %v1052_v54, 0.0  ;;  %v1083_v1 = vmax.f32 %v1041_v44, 0.0 }
 0x158   : > { %1598 = vst [vmem:[%s2110_s12 + $0x50] sm:$0xff] %v1562_v57   ;;  %v1017_v63 = vadd.f32 %v2134_v52, %v856_v58  ;;  %v859_v0 = vadd.f32 %v1691_v49, %v2100_v50  ;;  %v1084_v4 = vmax.f32 %v1044_v62, 0.0 }
 0x159   : > { %v1587_v2 = vpack.c.bf16 %v1086_v59, %v1085_v61 }
 0x15a   : > { %v1020_v37 = vadd.f32 %v2136_v60, %v859_v0  ;;  %v1582_v5 = vpack.c.bf16 %v1084_v4, %v1083_v1  ;;  %v1077_v7 = vmax.f32 %v1017_v63, 0.0 }
 0x15b   : > { %1603 = vst [vmem:[%s2110_s12 + $0x78] sm:$0xff] %v1587_v2  }
 0x15c   : > { %v1078_v6 = vmax.f32 %v1020_v37, 0.0  ;;  %1602 = vst [vmem:[%s2110_s12 + $0x70] sm:$0xff] %v1582_v5  }
 0x15e   : > { %v1567_v9 = vpack.c.bf16 %v1078_v6, %v1077_v7 }
 0x160   : > { %1599 = vst [vmem:[%s2110_s12 + $0x58] sm:$0xff] %v1567_v9  }
 0x161 PF: > { %s13_s14 = sadd.s32 1, %s1915_s14   ;;  %s2183_s12 = smov %s1911_s13 }
 0x162   : > { %p10_p5 = scmp.ge.s32.totalorder %s13_s14, 6   ;;  %s2184_s13 = smov %s2186_s15 }
 0x164   :  { %12 = sbr.rel (!%p10_p5) target bundleno = 2 (0x2), region = 68 }

// kernel: _lambda_.15
= control target key start
LH: loop header
LB: loop body
LE: loop exit
PB: predicated region body
PF: predicated region fallthrough
CT: control target
= control target key end

     0   :  { %s2668_s12 = smov 0   ;;  %s2670_s13 = smov 0   ;;  %s3077_s0 = inlined_call_operand.vmem [shape: bf16[1280,576], index: 0, kind: input, shape index: {}]   ;;  %s3078_s1 = inlined_call_operand.vmem [shape: bf16[576,128], index: 1, kind: input, shape index: {}]   ;;  %s3079_s2 = inlined_call_operand.vmem [shape: f32[1,128], index: 2, kind: input, shape index: {}]   ;;  %s3080_s3 = inlined_call_operand.vmem [shape: bf16[1280,128], index: 3, kind: output, shape index: {}]  }
   0x1   :  { %s2672_s14 = smov 0  }
   0x2 LB: > { %s25_s15 = sadd.s32 1, %s2642_s13  ;;  %p1852_p0 = scmp.ge.s32.totalorder %s2646_s14, 1  ;;  %s2646_s14 = sphi %s2672_s14, %s13_s14   ;;  %s2642_s13 = sphi %s2670_s13, %s3082_s13   ;;  %s2638_s12 = sphi %s2668_s12, %s3081_s12  }
   0x3   : > { %p27_p1 = scmp.ge.s32.totalorder %s25_s15, 5  ;;  %p170_p2 = scmp.lt.s32.totalorder %s2646_s14, 6 }
   0x5   : > { %s3084_s15 = smov (%p27_p1, %s25_s15), 0  ;;  %p171_p3 = pnand %p1852_p0, %p170_p2 }
   0x6   : > { %v2476_v0 = vld [vmem:[%s3078_s1 + $0x40] sm:$0xff] (!%p171_p3)   ;;  %s1853_s18 = sshll.u32 (!%p171_p3), %s2638_s12, 5  ;;  %v2478_v2 = vld [vmem:[%s3078_s1 + $0x48] sm:$0xff] (!%p171_p3)   ;;  %v2480_v4 = vld [vmem:[%s3078_s1 + $0x50] sm:$0xff] (!%p171_p3)   ;;  %vm1020_vm0 = vcmask (!%p171_p3), 523264  }
   0x7   : > { %174 = sbr.rel (%p171_p3) target bundleno = 417 (0x1a1), region = 32  ;;  %v2477_v1 = vld [vmem:[%s3078_s1] sm:$0xff] (!%p171_p3)   ;;  %2151 = vmatprep.subr.bf16.mxu0 (!%p171_p3), %v2476_v0  ;;  %2435 = vmatprep.subr.bf16.mxu1 (!%p171_p3), %v2476_v0  ;;  %p206_p4 = scmp.lt.s32.totalorder (!%p171_p3), %s1853_s18, 159  ;;  %v2479_v3 = vld [vmem:[%s3078_s1 + $0x8] sm:$0xff] (!%p171_p3)   ;;  %v2481_v5 = vld [vmem:[%s3078_s1 + $0x10] sm:$0xff] (!%p171_p3)  }
   0x8   : > { %2152 = vmatpush3.bf16.msra.mxu0 (!%p171_p3), %v2477_v1  ;;  %2443 = vmatpush3.bf16.msra.mxu1 (!%p171_p3), %v2477_v1  ;;  %v2482_v6 = vld [vmem:[%s3078_s1 + $0x58] sm:$0xff] (!%p171_p3)   ;;  %v2484_v8 = vld [vmem:[%s3078_s1 + $0x60] sm:$0xff] (!%p171_p3)   ;;  %v2486_v10 = vld [vmem:[%s3078_s1 + $0x68] sm:$0xff] (!%p171_p3)  }
   0x9   : > { %2153 = vmatprep.subr.bf16.mxu0 (!%p171_p3), %v2478_v2  ;;  %2436 = vmatprep.subr.bf16.mxu1 (!%p171_p3), %v2478_v2  ;;  %v2483_v7 = vld [vmem:[%s3078_s1 + $0x18] sm:$0xff] (!%p171_p3)   ;;  %v2485_v9 = vld [vmem:[%s3078_s1 + $0x20] sm:$0xff] (!%p171_p3)   ;;  %v2487_v13 = vld [vmem:[%s3078_s1 + $0x28] sm:$0xff] (!%p171_p3)  }
   0xa   : > { %v2488_v14 = vld [vmem:[%s3078_s1 + $0x70] sm:$0xff] (!%p171_p3)   ;;  %v2490_v16 = vld [vmem:[%s3078_s1 + $0x78] sm:$0xff] (!%p171_p3)   ;;  %v2498_v18 = vld [vmem:[%s3078_s1 + $0xc0] sm:$0xff] (!%p171_p3)  }
   0xb   : > { %v2489_v15 = vld [vmem:[%s3078_s1 + $0x30] sm:$0xff] (!%p171_p3)   ;;  %v2491_v17 = vld [vmem:[%s3078_s1 + $0x38] sm:$0xff] (!%p171_p3)   ;;  %v2501_v19 = vld [vmem:[%s3078_s1 + $0x100] sm:$0xff] (!%p171_p3)  }
   0xc   : > { %2154 = vmatpush3.bf16.msra.mxu0 (!%p171_p3), %v2479_v3  ;;  %2444 = vmatpush3.bf16.msra.mxu1 (!%p171_p3), %v2479_v3  ;;  %v2499_v22 = vld [vmem:[%s3078_s1 + $0x80] sm:$0xff] (!%p171_p3)   ;;  %v2500_v23 = vld [vmem:[%s3078_s1 + $0xc8] sm:$0xff] (!%p171_p3)   ;;  %v2509_v28 = vld [vmem:[%s3078_s1 + $0xd0] sm:$0xff] (!%p171_p3)  }
   0xd   : > { %2155 = vmatprep.subr.bf16.mxu0 (!%p171_p3), %v2480_v4  ;;  %2437 = vmatprep.subr.bf16.mxu1 (!%p171_p3), %v2480_v4  ;;  %v2502_v26 = vld [vmem:[%s3078_s1 + $0x88] sm:$0xff] (!%p171_p3)   ;;  %v2510_v30 = vld [vmem:[%s3078_s1 + $0x90] sm:$0xff] (!%p171_p3)   ;;  %v2511_v31 = vld [vmem:[%s3078_s1 + $0xd8] sm:$0xff] (!%p171_p3)  }
   0xe   : > { %s3086_s18 = smov (!%p206_p4, %s1853_s18), 159  ;;  %v2512_v34 = vld [vmem:[%s3078_s1 + $0x98] sm:$0xff]   ;;  %v2532_v35 = vld [vmem:[%s3078_s1 + $0x108] sm:$0xff]   ;;  %v2519_v37 = vld [vmem:[%s3078_s1 + $0xe0] sm:$0xff]  }
   0xf   : > { %s2451_s4 = smul.u32 20, %s3086_s18  ;;  %v2520_v39 = vld [vmem:[%s3078_s1 + $0xa0] sm:$0xff]   ;;  %v2521_v40 = vld [vmem:[%s3078_s1 + $0xe8] sm:$0xff]   ;;  %v2529_v46 = vld [vmem:[%s3078_s1 + $0xf0] sm:$0xff]   ;;  %s1856_s27 = sshll.u32 %s3086_s18, 2 }
  0x10   : > { %2156 = vmatpush3.bf16.msra.mxu0 %v2481_v5  ;;  %2445 = vmatpush3.bf16.msra.mxu1 %v2481_v5  ;;  %v2522_v43 = vld [vmem:[%s3078_s1 + $0xa8] sm:$0xff]   ;;  %v2552_v47 = vld [vmem:[%s3078_s1 + $0x110] sm:$0xff]   ;;  %v2531_v49 = vld [vmem:[%s3078_s1 + $0xf8] sm:$0xff]   ;;  %s2994_s30 = scalar_lea.vmem %s3080_s3, %s1856_s27 }
  0x11   : > { %2157 = vmatprep.subr.bf16.mxu0 %v2482_v6  ;;  %2438 = vmatprep.subr.bf16.mxu1 %v2482_v6  ;;  %s2719_s11 = scalar_lea.vmem %s3077_s0, %s2451_s4  ;;  %v2530_v48 = vld [vmem:[%s3078_s1 + $0xb0] sm:$0xff]   ;;  %v2533_v52 = vld [vmem:[%s3078_s1 + $0xb8] sm:$0xff]  }
  0x12   : > { %v2494_v11 = vld [vmem:[%s2719_s11 + $0x4] ss:$20 sps:$4 sm:$0xff]   ;;  %v2492_v20 = vld [vmem:[%s2719_s11] ss:$20 sps:$4 sm:$0xff]   ;;  %v2507_v27 = vld [vmem:[%s2719_s11 + $0x28] ss:$20 sps:$4 sm:$0xff]  }
  0x13   : > { %v2497_v12 = vld [vmem:[%s2719_s11 + $0x1e4] ss:$20 sps:$4 sm:$0xff]   ;;  %1101 = vmatprep.mubr.bf16.mxu0 %v2494_v11  ;;  %v2495_v21 = vld [vmem:[%s2719_s11 + $0x1e0] ss:$20 sps:$4 sm:$0xff]   ;;  %v2508_v29 = vld [vmem:[%s2719_s11 + $0x208] ss:$20 sps:$4 sm:$0xff]  }
  0x14   : > { %2158 = vmatpush3.bf16.msra.mxu0 %v2483_v7  ;;  %2446 = vmatpush3.bf16.msra.mxu1 %v2483_v7  ;;  %v2503_v24 = vld [vmem:[%s2719_s11 + $0x2c] ss:$20 sps:$4 sm:$0xff]   ;;  %v2513_v32 = vld [vmem:[%s2719_s11 + $0x54] ss:$20 sps:$4 sm:$0xff]   ;;  %v2517_v36 = vld [vmem:[%s2719_s11 + $0x50] ss:$20 sps:$4 sm:$0xff]  }
  0x15   : > { %2159 = vmatprep.subr.bf16.mxu0 %v2484_v8  ;;  %2439 = vmatprep.subr.bf16.mxu1 %v2484_v8  ;;  %v2505_v25 = vld [vmem:[%s2719_s11 + $0x20c] ss:$20 sps:$4 sm:$0xff]   ;;  %v2515_v33 = vld [vmem:[%s2719_s11 + $0x234] ss:$20 sps:$4 sm:$0xff]   ;;  %v2518_v38 = vld [vmem:[%s2719_s11 + $0x230] ss:$20 sps:$4 sm:$0xff]  }
  0x16   : > { %1197 = vmatprep.mubr.bf16.mxu1 %v2497_v12  ;;  %v2523_v41 = vld [vmem:[%s2719_s11 + $0x7c] ss:$20 sps:$4 sm:$0xff]   ;;  %v2527_v44 = vld [vmem:[%s2719_s11 + $0x78] ss:$20 sps:$4 sm:$0xff]   ;;  %v2539_v54 = vld [vmem:[%s2719_s11 + $0xa0] ss:$20 sps:$4 sm:$0xff]  }
  0x17   : > { %v2525_v42 = vld [vmem:[%s2719_s11 + $0x25c] ss:$20 sps:$4 sm:$0xff]   ;;  %v2528_v45 = vld [vmem:[%s2719_s11 + $0x258] ss:$20 sps:$4 sm:$0xff]   ;;  %v2542_v57 = vld [vmem:[%s2719_s11 + $0x34] ss:$20 sps:$4 sm:$0xff]  }
  0x18   : > { %2160 = vmatpush3.bf16.msra.mxu0 %v2485_v9  ;;  %2447 = vmatpush3.bf16.msra.mxu1 %v2485_v9  ;;  %v2534_v50 = vld [vmem:[%s2719_s11 + $0xa4] ss:$20 sps:$4 sm:$0xff]   ;;  %v2538_v51 = vld [vmem:[%s2719_s11 + $0xc] ss:$20 sps:$4 sm:$0xff]   ;;  %v2536_v53 = vld [vmem:[%s2719_s11 + $0x8] ss:$20 sps:$4 sm:$0xff]  }
  0x19   : > { %2161 = vmatprep.subr.bf16.mxu0 %v2486_v10  ;;  %2440 = vmatprep.subr.bf16.mxu1 %v2486_v10  ;;  %v2540_v55 = vld [vmem:[%s2719_s11 + $0xcc] ss:$20 sps:$4 sm:$0xff]   ;;  %v2571_v56 = vld [vmem:[%s3078_s1 + $0x118] sm:$0xff]   ;;  %v2545_v59 = vld [vmem:[%s2719_s11 + $0x30] ss:$20 sps:$4 sm:$0xff]  }
  0x1a   : > { %v2544_v58 = vld [vmem:[%s2719_s11 + $0xc8] ss:$20 sps:$4 sm:$0xff]   ;;  %v2550_v62 = vld [vmem:[%s2719_s11 + $0xf0] ss:$20 sps:$4 sm:$0xff]   ;;  %v2551_v63 = vld [vmem:[%s2719_s11 + $0x58] ss:$20 sps:$4 sm:$0xff]  }
  0x1b   : > { %v2546_v60 = vld [vmem:[%s2719_s11 + $0xf4] ss:$20 sps:$4 sm:$0xff]   ;;  %v2548_v61 = vld [vmem:[%s2719_s11 + $0x5c] ss:$20 sps:$4 sm:$0xff]   ;;  %v2555_v1 = vld [vmem:[%s2719_s11 + $0x84] ss:$20 sps:$4 sm:$0xff]  }
  0x1c   : > { %2162 = vmatpush3.bf16.msra.mxu0 %v2487_v13  ;;  %2448 = vmatpush3.bf16.msra.mxu1 %v2487_v13  ;;  %v2553_v0 = vld [vmem:[%s2719_s11 + $0x11c] ss:$20 sps:$4 sm:$0xff]   ;;  %v2557_v2 = vld [vmem:[%s2719_s11 + $0x118] ss:$20 sps:$4 sm:$0xff]   ;;  %v2558_v3 = vld [vmem:[%s2719_s11 + $0x80] ss:$20 sps:$4 sm:$0xff]  }
  0x1d   : > { %2163 = vmatprep.subr.bf16.mxu0 %v2488_v14  ;;  %2441 = vmatprep.subr.bf16.mxu1 %v2488_v14  ;;  %v2559_v4 = vld [vmem:[%s2719_s11 + $0x144] ss:$20 sps:$4 sm:$0xff]   ;;  %v2561_v5 = vld [vmem:[%s2719_s11 + $0xac] ss:$20 sps:$4 sm:$0xff]   ;;  %v2564_v7 = vld [vmem:[%s2719_s11 + $0xa8] ss:$20 sps:$4 sm:$0xff]  }
  0x1e   : > { %v2563_v6 = vld [vmem:[%s2719_s11 + $0x140] ss:$20 sps:$4 sm:$0xff]   ;;  %v2569_v10 = vld [vmem:[%s2719_s11 + $0x168] ss:$20 sps:$4 sm:$0xff]   ;;  %v2570_v11 = vld [vmem:[%s2719_s11 + $0xd0] ss:$20 sps:$4 sm:$0xff]  }
  0x1f   : > { %v2565_v8 = vld [vmem:[%s2719_s11 + $0x16c] ss:$20 sps:$4 sm:$0xff]   ;;  %v2567_v9 = vld [vmem:[%s2719_s11 + $0xd4] ss:$20 sps:$4 sm:$0xff]   ;;  %v2574_v13 = vld [vmem:[%s2719_s11 + $0xfc] ss:$20 sps:$4 sm:$0xff]  }
  0x20   : > { %2164 = vmatpush3.bf16.msra.mxu0 %v2489_v15  ;;  %2449 = vmatpush3.bf16.msra.mxu1 %v2489_v15  ;;  %v2572_v12 = vld [vmem:[%s2719_s11 + $0x194] ss:$20 sps:$4 sm:$0xff]   ;;  %v2576_v14 = vld [vmem:[%s2719_s11 + $0x190] ss:$20 sps:$4 sm:$0xff]   ;;  %v2577_v15 = vld [vmem:[%s2719_s11 + $0xf8] ss:$20 sps:$4 sm:$0xff]  }
  0x21   : > { %2165 = vmatprep.subr.bf16.mxu0 %v2490_v16  ;;  %2442 = vmatprep.subr.bf16.mxu1 %v2490_v16  ;;  %v2578_v16 = vld [vmem:[%s2719_s11 + $0x1bc] ss:$20 sps:$4 sm:$0xff]  }
  0x24   : > { %2166 = vmatpush3.bf16.msra.mxu0 %v2491_v17  ;;  %2450 = vmatpush3.bf16.msra.mxu1 %v2491_v17  ;;  %v2580_v17 = vld [vmem:[%s2719_s11 + $0x124] ss:$20 sps:$4 sm:$0xff]  }
  0x25   : > { %2263 = vmatprep.subr.bf16.mxu1 %v2498_v18  ;;  %2395 = vmatprep.subr.bf16.mxu0 %v2501_v19  ;;  %v2582_v18 = vld [vmem:[%s2719_s11 + $0x1b8] ss:$20 sps:$4 sm:$0xff]  }
  0x27   : > { %1102 = vmatmul.mubr.bf16.vlgmr.msra.gmra.mrb[0].mxu0 %v2492_v20  ;;  %1198 = vmatmul.mubr.bf16.vlgmr.msra.gmra.mrb[0].mxu1 %v2495_v21  ;;  %v2584_v20 = vld [vmem:[%s2719_s11 + $0x14c] ss:$20 sps:$4 sm:$0xff]   ;;  %v2586_v21 = vld [vmem:[%s2719_s11 + $0x10] ss:$20 sps:$4 sm:$0xff]  }
  0x28   : > { %2264 = vmatpush3.bf16.msra.mxu1 %v2499_v22  ;;  %2396 = vmatpush3.bf16.msra.mxu0 %v2501_v19  ;;  %v2583_v19 = vld [vmem:[%s2719_s11 + $0x120] ss:$20 sps:$4 sm:$0xff]   ;;  %v2587_v22 = vld [vmem:[%s2719_s11 + $0x148] ss:$20 sps:$4 sm:$0xff]  }
  0x29   : > { %2265 = vmatprep.subr.bf16.mxu1 %v2500_v23  ;;  %1109 = vmatprep.mubr.bf16.mxu0 %v2503_v24  ;;  %v2588_v23 = vld [vmem:[%s2719_s11 + $0x38] ss:$20 sps:$4 sm:$0xff]   ;;  %v2589_v24 = vld [vmem:[%s2719_s11 + $0x174] ss:$20 sps:$4 sm:$0xff]  }
  0x2a   : > { %1205 = vmatprep.mubr.bf16.mxu1 %v2505_v25  ;;  %2397 = vmatprep.subr.bf16.mxu0 %v2532_v35  ;;  %v2591_v25 = vld [vmem:[%s2719_s11 + $0x60] ss:$20 sps:$4 sm:$0xff]  }
  0x2c   : > { %2266 = vmatpush3.bf16.msra.mxu1 %v2502_v26  ;;  %2398 = vmatpush3.bf16.msra.mxu0 %v2532_v35  ;;  %v2592_v26 = vld [vmem:[%s2719_s11 + $0x170] ss:$20 sps:$4 sm:$0xff]   ;;  %v2603_v35 = vld [vmem:[%s2719_s11 + $0x128] ss:$20 sps:$4 sm:$0xff]  }
  0x2d   : > { %2267 = vmatprep.subr.bf16.mxu1 %v2509_v28  ;;  %2399 = vmatprep.subr.bf16.mxu0 %v2552_v47  ;;  %v2594_v28 = vld [vmem:[%s2719_s11 + $0x19c] ss:$20 sps:$4 sm:$0xff]  }
  0x2f   : > { %1110 = vmatmul.mubr.bf16.gmra.mrb[4].mxu0 %v2507_v27  ;;  %1206 = vmatmul.mubr.bf16.gmra.mrb[4].mxu1 %v2508_v29  ;;  %v2593_v27 = vld [vmem:[%s2719_s11 + $0x88] ss:$20 sps:$4 sm:$0xff]   ;;  %v2596_v29 = vld [vmem:[%s2719_s11 + $0xb0] ss:$20 sps:$4 sm:$0xff]  }
  0x30   : > { %2268 = vmatpush3.bf16.msra.mxu1 %v2510_v30  ;;  %1117 = vmatprep.mubr.bf16.mxu0 %v2513_v32  ;;  %v2597_v30 = vld [vmem:[%s2719_s11 + $0x198] ss:$20 sps:$4 sm:$0xff]  }
  0x31   : > { %2269 = vmatprep.subr.bf16.mxu1 %v2511_v31  ;;  %1213 = vmatprep.mubr.bf16.mxu1 %v2515_v33  ;;  %v2598_v31 = vld [vmem:[%s2719_s11 + $0xd8] ss:$20 sps:$4 sm:$0xff]   ;;  %v2601_v33 = vld [vmem:[%s2719_s11 + $0x100] ss:$20 sps:$4 sm:$0xff]  }
  0x32   : > { %2400 = vmatpush3.bf16.msra.mxu0 %v2552_v47  ;;  %v2599_v32 = vld [vmem:[%s2719_s11 + $0x1c4] ss:$20 sps:$4 sm:$0xff]  }
  0x33   : > { %2401 = vmatprep.subr.bf16.mxu0 %v2571_v56  ;;  %v2618_v47 = vld [vmem:[%s2719_s11 + $0x218] ss:$20 sps:$4 sm:$0xff]  }
  0x34   : > { %2270 = vmatpush3.bf16.msra.mxu1 %v2512_v34  ;;  %v2602_v34 = vld [vmem:[%s2719_s11 + $0x1c0] ss:$20 sps:$4 sm:$0xff]  }
  0x35   : > { %2271 = vmatprep.subr.bf16.mxu1 %v2519_v37  ;;  %v2606_v37 = vld [vmem:[%s2719_s11 + $0x150] ss:$20 sps:$4 sm:$0xff]  }
  0x36   : > { %2402 = vmatpush3.bf16.msra.mxu0 %v2571_v56 }
  0x37   : > { %1118 = vmatmul.mubr.bf16.gmra.mrb[8].mxu0 %v2517_v36  ;;  %1214 = vmatmul.mubr.bf16.gmra.mrb[8].mxu1 %v2518_v38  ;;  %v2604_v36 = vld [vmem:[%s2719_s11 + $0x1ec] ss:$20 sps:$4 sm:$0xff]   ;;  %v2607_v38 = vld [vmem:[%s2719_s11 + $0x1e8] ss:$20 sps:$4 sm:$0xff]  }
  0x38   : > { %2272 = vmatpush3.bf16.msra.mxu1 %v2520_v39  ;;  %1125 = vmatprep.mubr.bf16.mxu0 %v2523_v41  ;;  %v2608_v39 = vld [vmem:[%s2719_s11 + $0x178] ss:$20 sps:$4 sm:$0xff]   ;;  %v2611_v41 = vld [vmem:[%s2719_s11 + $0x1a0] ss:$20 sps:$4 sm:$0xff]  }
  0x39   : > { %2273 = vmatprep.subr.bf16.mxu1 %v2521_v40  ;;  %1221 = vmatprep.mubr.bf16.mxu1 %v2525_v42  ;;  %v2609_v40 = vld [vmem:[%s2719_s11 + $0x214] ss:$20 sps:$4 sm:$0xff]   ;;  %v2612_v42 = vld [vmem:[%s2719_s11 + $0x210] ss:$20 sps:$4 sm:$0xff]  }
  0x3c   : > { %2274 = vmatpush3.bf16.msra.mxu1 %v2522_v43  ;;  %v2613_v43 = vld [vmem:[%s2719_s11 + $0x1c8] ss:$20 sps:$4 sm:$0xff]  }
  0x3d   : > { %2275 = vmatprep.subr.bf16.mxu1 %v2529_v46  ;;  %v2617_v46 = vld [vmem:[%s2719_s11 + $0x238] ss:$20 sps:$4 sm:$0xff]  }
  0x3f   : > { %1126 = vmatmul.mubr.bf16.gmra.mrb[12].mxu0 %v2527_v44  ;;  %1222 = vmatmul.mubr.bf16.gmra.mrb[12].mxu1 %v2528_v45  ;;  %v2614_v44 = vld [vmem:[%s2719_s11 + $0x23c] ss:$20 sps:$4 sm:$0xff]  }
  0x40   : > { %2276 = vmatpush3.bf16.msra.mxu1 %v2530_v48  ;;  %1133 = vmatprep.mubr.bf16.mxu0 %v2534_v50  ;;  %v2616_v45 = vld [vmem:[%s2719_s11 + $0x1f0] ss:$20 sps:$4 sm:$0xff]   ;;  %v2622_v50 = vld [vmem:[%s2719_s11 + $0x260] ss:$20 sps:$4 sm:$0xff]  }
  0x41   : > { %2277 = vmatprep.subr.bf16.mxu1 %v2531_v49  ;;  %1262 = vmatprep.mubr.bf16.mxu1 %v2538_v51  ;;  %v2619_v48 = vld [vmem:[%s2719_s11 + $0x264] ss:$20 sps:$4 sm:$0xff]   ;;  %v2621_v49 = vld [vmem:[%s2719_s11 + $0x240] ss:$20 sps:$4 sm:$0xff]   ;;  %v2623_v51 = vld [vmem:[%s2719_s11 + $0x268] ss:$20 sps:$4 sm:$0xff]  }
  0x44   : > { %2278 = vmatpush3.bf16.msra.mxu1 %v2533_v52 }
  0x47   : > { %1134 = vmatmul.mubr.bf16.gmra.mrb[16].mxu0 %v2539_v54  ;;  %1263 = vmatmul.mubr.bf16.vlgmr.msra.gmra.mrb[16].mxu1 %v2536_v53 }
  0x48   : > { %1141 = vmatprep.mubr.bf16.mxu0 %v2540_v55  ;;  %1270 = vmatprep.mubr.bf16.mxu1 %v2542_v57 }
  0x4f   : > { %1142 = vmatmul.mubr.bf16.gmra.mrb[20].mxu0 %v2544_v58  ;;  %1271 = vmatmul.mubr.bf16.gmra.mrb[20].mxu1 %v2545_v59 }
  0x50   : > { %1149 = vmatprep.mubr.bf16.mxu0 %v2546_v60  ;;  %1278 = vmatprep.mubr.bf16.mxu1 %v2548_v61 }
  0x57   : > { %1150 = vmatmul.mubr.bf16.gmra.mrb[24].mxu0 %v2550_v62  ;;  %1279 = vmatmul.mubr.bf16.gmra.mrb[24].mxu1 %v2551_v63 }
  0x58   : > { %1157 = vmatprep.mubr.bf16.mxu0 %v2553_v0  ;;  %1286 = vmatprep.mubr.bf16.mxu1 %v2555_v1 }
  0x5f   : > { %1158 = vmatmul.mubr.bf16.gmra.mrb[28].mxu0 %v2557_v2  ;;  %1287 = vmatmul.mubr.bf16.gmra.mrb[28].mxu1 %v2558_v3 }
  0x60   : > { %1165 = vmatprep.mubr.bf16.mxu0 %v2559_v4  ;;  %1294 = vmatprep.mubr.bf16.mxu1 %v2561_v5 }
  0x67   : > { %1166 = vmatmul.mubr.bf16.gmra.mrb[32].mxu0 %v2563_v6  ;;  %1295 = vmatmul.mubr.bf16.gmra.mrb[32].mxu1 %v2564_v7 }
  0x68   : > { %1173 = vmatprep.mubr.bf16.mxu0 %v2565_v8  ;;  %1302 = vmatprep.mubr.bf16.mxu1 %v2567_v9 }
  0x6f   : > { %1174 = vmatmul.mubr.bf16.gmra.mrb[36].mxu0 %v2569_v10  ;;  %1303 = vmatmul.mubr.bf16.gmra.mrb[36].mxu1 %v2570_v11 }
  0x70   : > { %1181 = vmatprep.mubr.bf16.mxu0 %v2572_v12  ;;  %1310 = vmatprep.mubr.bf16.mxu1 %v2574_v13 }
  0x77   : > { %1182 = vmatmul.mubr.bf16.gmra.mrb[40].mxu0 %v2576_v14  ;;  %1311 = vmatmul.mubr.bf16.gmra.mrb[40].mxu1 %v2577_v15 }
  0x78   : > { %1189 = vmatprep.mubr.bf16.mxu0 %v2578_v16  ;;  %1318 = vmatprep.mubr.bf16.mxu1 %v2580_v17 }
  0x7f   : > { %1190 = vmatmul.mubr.bf16.gmra.mrb[44].mxu0 %v2582_v18  ;;  %1319 = vmatmul.mubr.bf16.gmra.mrb[44].mxu1 %v2583_v19 }
  0x80   : > { %1326 = vmatprep.mubr.bf16.mxu1 %v2584_v20  ;;  %2403 = vmatprep.mubr.msk.bf16.mxu0 %vm1020_vm0, %v2586_v21 }
  0x87   : > { %1327 = vmatmul.mubr.bf16.gmra.mrb[48].mxu1 %v2587_v22  ;;  %2404 = vmatmul.mubr.msk.bf16.vlgmr.msra.gmra.mrb[48].mxu0 %vm1020_vm0, %v2588_v23 }
  0x88   : > { %1334 = vmatprep.mubr.bf16.mxu1 %v2589_v24  ;;  %2407 = vmatprep.mubr.msk.bf16.mxu0 %vm1020_vm0, %v2591_v25 }
  0x8f   : > { %1335 = vmatmul.mubr.bf16.gmra.mrb[52].mxu1 %v2592_v26  ;;  %2408 = vmatmul.mubr.msk.bf16.gmra.mrb[52].mxu0 %vm1020_vm0, %v2593_v27 }
  0x90   : > { %1342 = vmatprep.mubr.bf16.mxu1 %v2594_v28  ;;  %2411 = vmatprep.mubr.msk.bf16.mxu0 %vm1020_vm0, %v2596_v29 }
  0x97   : > { %1343 = vmatmul.mubr.bf16.gmra.mrb[56].mxu1 %v2597_v30  ;;  %2412 = vmatmul.mubr.msk.bf16.gmra.mrb[56].mxu0 %vm1020_vm0, %v2598_v31 }
  0x98   : > { %1350 = vmatprep.mubr.bf16.mxu1 %v2599_v32  ;;  %2415 = vmatprep.mubr.msk.bf16.mxu0 %vm1020_vm0, %v2601_v33 }
  0x9f   : > { %1351 = vmatmul.mubr.bf16.gmra.mrb[60].mxu1 %v2602_v34  ;;  %2416 = vmatmul.mubr.msk.bf16.gmra.mrb[60].mxu0 %vm1020_vm0, %v2603_v35 }
  0xa0   : > { %1358 = vmatprep.mubr.bf16.mxu1 %v2604_v36  ;;  %2419 = vmatprep.mubr.msk.bf16.mxu0 %vm1020_vm0, %v2606_v37 }
  0xa7   : > { %1359 = vmatmul.mubr.bf16.gmra.mrb[64].mxu1 %v2607_v38  ;;  %2420 = vmatmul.mubr.msk.bf16.gmra.mrb[64].mxu0 %vm1020_vm0, %v2608_v39  ;;  %v2917_v38 = vld [vmem:[%s3079_s2] ss:$0 sm:$0xff] }
  0xa8   : > { %1366 = vmatprep.mubr.bf16.mxu1 %v2609_v40  ;;  %2423 = vmatprep.mubr.msk.bf16.mxu0 %vm1020_vm0, %v2611_v41 }
  0xaf   : > { %1367 = vmatmul.mubr.bf16.gmra.mrb[68].mxu1 %v2612_v42  ;;  %2424 = vmatmul.mubr.msk.bf16.gmra.mrb[68].mxu0 %vm1020_vm0, %v2613_v43 }
  0xb0   : > { %1374 = vmatprep.mubr.bf16.mxu1 %v2614_v44  ;;  %2427 = vmatprep.mubr.msk.bf16.mxu0 %vm1020_vm0, %v2616_v45 }
  0xb7   : > { %1375 = vmatmul.mubr.bf16.gmra.mrb[72].mxu1 %v2617_v46  ;;  %2428 = vmatmul.mubr.msk.bf16.gmra.mrb[72].mxu0 %vm1020_vm0, %v2618_v47 }
  0xb8   : > { %1382 = vmatprep.mubr.bf16.mxu1 %v2619_v48  ;;  %2431 = vmatprep.mubr.msk.bf16.mxu0 %vm1020_vm0, %v2621_v49 }
  0xbf   : > { %1383 = vmatmul.mubr.bf16.gmra.mrb[76].mxu1 %v2622_v50  ;;  %2432 = vmatmul.mubr.msk.bf16.gmra.mrb[76].mxu0 %vm1020_vm0, %v2623_v51 }
  0xfa   : > { %v2239_v52 = vpop.f32.mrb[0].mxu1  ;;  %v2167_v53 = vpop.f32.mrb[0].mxu0 }
  0xfb   : > { %v2240_v54 = vpop.f32.mrb[1].mxu1  ;;  %v2168_v55 = vpop.f32.mrb[1].mxu0 }
  0xfc   : > { %v2898_v56 = vadd.f32 %v2240_v54, %v2239_v52  ;;  %v2242_v57 = vpop.f32.mrb[2].mxu1  ;;  %v2169_v58 = vadd.f32 %v2168_v55, %v2167_v53  ;;  %v2170_v59 = vpop.f32.mrb[2].mxu0 }
  0xfd   : > { %v2243_v60 = vpop.f32.mrb[3].mxu1  ;;  %v2171_v61 = vpop.f32.mrb[3].mxu0 }
  0xfe   : > { %v2900_v62 = vadd.f32 %v2243_v60, %v2242_v57  ;;  %v2172_v63 = vadd.f32 %v2171_v61, %v2170_v59  ;;  %v1104_v41 = vadd.f32 %v2169_v58, %v2917_v38 }
 0x100   : > { %v1107_v48 = vadd.f32 %v2172_v63, %v2917_v38 }
 0x102   : > { %v2245_v0 = vpop.f32.mrb[4].mxu1  ;;  %v2173_v1 = vpop.f32.mrb[4].mxu0 }
 0x103   : > { %v2246_v2 = vpop.f32.mrb[5].mxu1  ;;  %v2174_v3 = vpop.f32.mrb[5].mxu0 }
 0x104   : > { %v2902_v4 = vadd.f32 %v2246_v2, %v2245_v0  ;;  %v2248_v5 = vpop.f32.mrb[6].mxu1  ;;  %v2175_v6 = vadd.f32 %v2174_v3, %v2173_v1  ;;  %v2176_v7 = vpop.f32.mrb[6].mxu0 }
 0x105   : > { %v2249_v8 = vpop.f32.mrb[7].mxu1  ;;  %v2177_v9 = vpop.f32.mrb[7].mxu0 }
 0x106   : > { %v2904_v10 = vadd.f32 %v2249_v8, %v2248_v5  ;;  %v2178_v11 = vadd.f32 %v2177_v9, %v2176_v7  ;;  %v1112_v58 = vadd.f32 %v2175_v6, %v2917_v38 }
 0x108   : > { %v1115_v63 = vadd.f32 %v2178_v11, %v2917_v38 }
 0x10a   : > { %v2251_v12 = vpop.f32.mrb[8].mxu1  ;;  %v2179_v13 = vpop.f32.mrb[8].mxu0 }
 0x10b   : > { %v2252_v14 = vpop.f32.mrb[9].mxu1  ;;  %v2180_v15 = vpop.f32.mrb[9].mxu0 }
 0x10c   : > { %v2906_v16 = vadd.f32 %v2252_v14, %v2251_v12  ;;  %v2254_v17 = vpop.f32.mrb[10].mxu1  ;;  %v2181_v18 = vadd.f32 %v2180_v15, %v2179_v13  ;;  %v2182_v19 = vpop.f32.mrb[10].mxu0 }
 0x10d   : > { %v2255_v20 = vpop.f32.mrb[11].mxu1  ;;  %v2183_v21 = vpop.f32.mrb[11].mxu0 }
 0x10e   : > { %v2908_v22 = vadd.f32 %v2255_v20, %v2254_v17  ;;  %v2184_v23 = vadd.f32 %v2183_v21, %v2182_v19  ;;  %v1120_v6 = vadd.f32 %v2181_v18, %v2917_v38 }
 0x110   : > { %v1123_v11 = vadd.f32 %v2184_v23, %v2917_v38 }
 0x112   : > { %v2257_v24 = vpop.f32.mrb[12].mxu1  ;;  %v2185_v25 = vpop.f32.mrb[12].mxu0 }
 0x113   : > { %v2258_v26 = vpop.f32.mrb[13].mxu1  ;;  %v2186_v27 = vpop.f32.mrb[13].mxu0 }
 0x114   : > { %v2910_v28 = vadd.f32 %v2258_v26, %v2257_v24  ;;  %v2260_v29 = vpop.f32.mrb[14].mxu1  ;;  %v2187_v30 = vadd.f32 %v2186_v27, %v2185_v25  ;;  %v2188_v31 = vpop.f32.mrb[14].mxu0 }
 0x115   : > { %v2261_v32 = vpop.f32.mrb[15].mxu1  ;;  %v2189_v33 = vpop.f32.mrb[15].mxu0 }
 0x116   : > { %v2912_v34 = vadd.f32 %v2261_v32, %v2260_v29  ;;  %v2190_v35 = vadd.f32 %v2189_v33, %v2188_v31  ;;  %v1128_v18 = vadd.f32 %v2187_v30, %v2917_v38 }
 0x118   : > { %v1131_v23 = vadd.f32 %v2190_v35, %v2917_v38 }
 0x11a   : > { %v2279_v36 = vpop.f32.mrb[16].mxu1  ;;  %v2191_v37 = vpop.f32.mrb[16].mxu0 }
 0x11b   : > { %v2280_v39 = vpop.f32.mrb[17].mxu1  ;;  %v2192_v40 = vpop.f32.mrb[17].mxu0 }
 0x11c   : > { %v2281_v42 = vadd.f32 %v2280_v39, %v2279_v36  ;;  %v2282_v43 = vpop.f32.mrb[18].mxu1  ;;  %v2193_v44 = vadd.f32 %v2192_v40, %v2191_v37  ;;  %v2194_v45 = vpop.f32.mrb[18].mxu0 }
 0x11d   : > { %v2283_v46 = vpop.f32.mrb[19].mxu1  ;;  %v2195_v47 = vpop.f32.mrb[19].mxu0 }
 0x11e   : > { %v2284_v49 = vadd.f32 %v2283_v46, %v2282_v43  ;;  %v2196_v50 = vadd.f32 %v2195_v47, %v2194_v45  ;;  %v2921_v51 = vadd.f32 %v2281_v42, %v1104_v41  ;;  %v1136_v30 = vadd.f32 %v2193_v44, %v2917_v38 }
 0x120   : > { %v2923_v52 = vadd.f32 %v2284_v49, %v1107_v48  ;;  %v1139_v35 = vadd.f32 %v2196_v50, %v2917_v38 }
 0x122   : > { %v2285_v53 = vpop.f32.mrb[20].mxu1  ;;  %v2197_v54 = vpop.f32.mrb[20].mxu0 }
 0x123   : > { %v2286_v55 = vpop.f32.mrb[21].mxu1  ;;  %v2198_v57 = vpop.f32.mrb[21].mxu0 }
 0x124   : > { %v2287_v59 = vadd.f32 %v2286_v55, %v2285_v53  ;;  %v2288_v60 = vpop.f32.mrb[22].mxu1  ;;  %v2199_v61 = vadd.f32 %v2198_v57, %v2197_v54  ;;  %v2200_v0 = vpop.f32.mrb[22].mxu0 }
 0x125   : > { %v2289_v1 = vpop.f32.mrb[23].mxu1  ;;  %v2201_v2 = vpop.f32.mrb[23].mxu0 }
 0x126   : > { %v2290_v3 = vadd.f32 %v2289_v1, %v2288_v60  ;;  %v2202_v5 = vadd.f32 %v2201_v2, %v2200_v0  ;;  %v2927_v7 = vadd.f32 %v2287_v59, %v1112_v58  ;;  %v1144_v44 = vadd.f32 %v2199_v61, %v2917_v38 }
 0x128   : > { %v2929_v8 = vadd.f32 %v2290_v3, %v1115_v63 }
 0x12a   : > { %v2291_v9 = vpop.f32.mrb[24].mxu1  ;;  %v2203_v12 = vpop.f32.mrb[24].mxu0 }
 0x12b   : > { %v2292_v13 = vpop.f32.mrb[25].mxu1  ;;  %v2204_v14 = vpop.f32.mrb[25].mxu0 }
 0x12c   : > { %v2293_v15 = vadd.f32 %v2292_v13, %v2291_v9  ;;  %v2294_v17 = vpop.f32.mrb[26].mxu1  ;;  %v2205_v19 = vadd.f32 %v2204_v14, %v2203_v12  ;;  %v2206_v20 = vpop.f32.mrb[26].mxu0 }
 0x12d   : > { %v2295_v21 = vpop.f32.mrb[27].mxu1  ;;  %v2207_v24 = vpop.f32.mrb[27].mxu0 }
 0x12e   : > { %v2296_v25 = vadd.f32 %v2295_v21, %v2294_v17  ;;  %v2208_v26 = vadd.f32 %v2207_v24, %v2206_v20  ;;  %v2933_v27 = vadd.f32 %v2293_v15, %v1120_v6 }
 0x130   : > { %v2935_v29 = vadd.f32 %v2296_v25, %v1123_v11  ;;  %v1147_v11 = vadd.f32 %v2202_v5, %v2917_v38 }
 0x132   : > { %v2297_v31 = vpop.f32.mrb[28].mxu1  ;;  %v2209_v32 = vpop.f32.mrb[28].mxu0 }
 0x133   : > { %v2298_v33 = vpop.f32.mrb[29].mxu1  ;;  %v2210_v36 = vpop.f32.mrb[29].mxu0 }
 0x134   : > { %v2299_v37 = vadd.f32 %v2298_v33, %v2297_v31  ;;  %v2300_v39 = vpop.f32.mrb[30].mxu1  ;;  %v2211_v40 = vadd.f32 %v2210_v36, %v2209_v32  ;;  %v2212_v41 = vpop.f32.mrb[30].mxu0 }
 0x135   : > { %v2301_v42 = vpop.f32.mrb[31].mxu1  ;;  %v2213_v43 = vpop.f32.mrb[31].mxu0 }
 0x136   : > { %v2302_v45 = vadd.f32 %v2301_v42, %v2300_v39  ;;  %v2214_v46 = vadd.f32 %v2213_v43, %v2212_v41  ;;  %v2939_v47 = vadd.f32 %v2299_v37, %v1128_v18  ;;  %v1152_v39 = vadd.f32 %v2205_v19, %v2917_v38 }
 0x138   : > { %v2941_v48 = vadd.f32 %v2302_v45, %v1131_v23 }
 0x13a   : > { %v2303_v49 = vpop.f32.mrb[32].mxu1  ;;  %v2215_v53 = vpop.f32.mrb[32].mxu0 }
 0x13b   : > { %v2304_v54 = vpop.f32.mrb[33].mxu1  ;;  %v2216_v55 = vpop.f32.mrb[33].mxu0 }
 0x13c   : > { %v2305_v57 = vadd.f32 %v2304_v54, %v2303_v49  ;;  %v2306_v58 = vpop.f32.mrb[34].mxu1  ;;  %v2217_v59 = vadd.f32 %v2216_v55, %v2215_v53  ;;  %v2218_v60 = vpop.f32.mrb[34].mxu0  ;;  %v1155_v49 = vadd.f32 %v2208_v26, %v2917_v38 }
 0x13d   : > { %v2307_v0 = vpop.f32.mrb[35].mxu1  ;;  %v2219_v1 = vpop.f32.mrb[35].mxu0 }
 0x13e   : > { %v2308_v2 = vadd.f32 %v2307_v0, %v2306_v58  ;;  %v2945_v63 = vadd.f32 %v2219_v1, %v2218_v60  ;;  %v2947_v3 = vadd.f32 %v2305_v57, %v1136_v30  ;;  %v1160_v0 = vadd.f32 %v2211_v40, %v2917_v38 }
 0x140   : > { %v2949_v9 = vadd.f32 %v2308_v2, %v1139_v35 }
 0x142   : > { %v2309_v12 = vpop.f32.mrb[36].mxu1  ;;  %v2221_v13 = vpop.f32.mrb[36].mxu0 }
 0x143   : > { %v2310_v14 = vpop.f32.mrb[37].mxu1  ;;  %v2222_v6 = vpop.f32.mrb[37].mxu0 }
 0x144   : > { %v2311_v15 = vadd.f32 %v2310_v14, %v2309_v12  ;;  %v2312_v17 = vpop.f32.mrb[38].mxu1  ;;  %v2952_v20 = vadd.f32 %v2222_v6, %v2221_v13  ;;  %v2224_v21 = vpop.f32.mrb[38].mxu0  ;;  %v1163_v14 = vadd.f32 %v2214_v46, %v2917_v38 }
 0x145   : > { %v2313_v24 = vpop.f32.mrb[39].mxu1  ;;  %v2225_v50 = vpop.f32.mrb[39].mxu0 }
 0x146   : > { %v2314_v25 = vadd.f32 %v2313_v24, %v2312_v17  ;;  %v2955_v31 = vadd.f32 %v2225_v50, %v2224_v21  ;;  %v2957_v32 = vadd.f32 %v2311_v15, %v1144_v44 }
 0x148   : > { %v2959_v33 = vadd.f32 %v2314_v25, %v1147_v11  ;;  %v1168_v25 = vadd.f32 %v2217_v59, %v2917_v38 }
 0x14a   : > { %v2315_v36 = vpop.f32.mrb[40].mxu1  ;;  %v2227_v18 = vpop.f32.mrb[40].mxu0 }
 0x14b   : > { %v2316_v37 = vpop.f32.mrb[41].mxu1  ;;  %v2228_v61 = vpop.f32.mrb[41].mxu0 }
 0x14c   : > { %v2317_v41 = vadd.f32 %v2316_v37, %v2315_v36  ;;  %v2318_v42 = vpop.f32.mrb[42].mxu1  ;;  %v2962_v43 = vadd.f32 %v2228_v61, %v2227_v18  ;;  %v2230_v23 = vpop.f32.mrb[42].mxu0 }
 0x14d   : > { %v2319_v45 = vpop.f32.mrb[43].mxu1  ;;  %v2231_v5 = vpop.f32.mrb[43].mxu0 }
 0x14e   : > { %v2320_v53 = vadd.f32 %v2319_v45, %v2318_v42  ;;  %v2965_v54 = vadd.f32 %v2231_v5, %v2230_v23  ;;  %v2967_v55 = vadd.f32 %v2317_v41, %v1152_v39  ;;  %v1171_v42 = vadd.f32 %v2945_v63, %v2917_v38 }
 0x150   : > { %v2969_v30 = vadd.f32 %v2320_v53, %v1155_v49 }
 0x152   : > { %v2321_v57 = vpop.f32.mrb[44].mxu1  ;;  %v2233_v58 = vpop.f32.mrb[44].mxu0 }
 0x153   : > { %v2322_v60 = vpop.f32.mrb[45].mxu1  ;;  %v2234_v19 = vpop.f32.mrb[45].mxu0 }
 0x154   : > { %v2323_v1 = vadd.f32 %v2322_v60, %v2321_v57  ;;  %v2324_v35 = vpop.f32.mrb[46].mxu1  ;;  %v2972_v2 = vadd.f32 %v2234_v19, %v2233_v58  ;;  %v2236_v12 = vpop.f32.mrb[46].mxu0 }
 0x155   : > { %v2325_v13 = vpop.f32.mrb[47].mxu1  ;;  %v2237_v26 = vpop.f32.mrb[47].mxu0 }
 0x156   : > { %v2326_v6 = vadd.f32 %v2325_v13, %v2324_v35  ;;  %v2975_v44 = vadd.f32 %v2237_v26, %v2236_v12  ;;  %v2977_v15 = vadd.f32 %v2323_v1, %v1160_v0  ;;  %v1176_v0 = vadd.f32 %v2952_v20, %v2917_v38 }
 0x158   : > { %v2979_v17 = vadd.f32 %v2326_v6, %v1163_v14 }
 0x15a   : > { %v2327_v21 = vpop.f32.mrb[48].mxu1  ;;  %v2405_v24 = vpop.f32.mrb[48].mxu0 }
 0x15b   : > { %v1434_v40 = vadd.f32 %v2405_v24, %v2927_v7  ;;  %v2328_v50 = vpop.f32.mrb[49].mxu1  ;;  %v1425_v11 = vpop.f32.mrb[49].mxu0 }
 0x15c   : > { %v2329_v36 = vadd.f32 %v2328_v50, %v2327_v21  ;;  %v1426_v18 = vadd.f32 %v1425_v11, %v2921_v51  ;;  %v2330_v37 = vpop.f32.mrb[50].mxu1  ;;  %v2406_v46 = vpop.f32.mrb[50].mxu0  ;;  %v1179_v21 = vadd.f32 %v2955_v31, %v2917_v38 }
 0x15d   : > { %v1437_v61 = vadd.f32 %v2406_v46, %v2929_v8  ;;  %v2331_v39 = vpop.f32.mrb[51].mxu1  ;;  %v1428_v41 = vpop.f32.mrb[51].mxu0  ;;  %v1554_v5 = vmax.f32 %v1434_v40, 0.0 }
 0x15e   : > { %v2332_v23 = vadd.f32 %v2331_v39, %v2330_v37  ;;  %v1429_v7 = vadd.f32 %v1428_v41, %v2923_v52  ;;  %v2989_v45 = vadd.f32 %v2329_v36, %v1168_v25  ;;  %v1552_v49 = vmax.f32 %v1426_v18, 0.0 }
 0x15f   : > { %v1555_v59 = vmax.f32 %v1437_v61, 0.0 }
 0x160   : > { %v1553_v51 = vmax.f32 %v1429_v7, 0.0  ;;  %v2996_v8 = vadd.f32 %v2332_v23, %v1171_v42 }
 0x161   : > { %v2064_v53 = vpack.c.bf16 %v1555_v59, %v1554_v5 }
 0x162   : > { %v2059_v63 = vpack.c.bf16 %v1553_v51, %v1552_v49  ;;  %v2333_v57 = vpop.f32.mrb[52].mxu1  ;;  %v2409_v58 = vpop.f32.mrb[52].mxu0  ;;  %v1187_v49 = vadd.f32 %v2965_v54, %v2917_v38 }
 0x163   : > { %2136 = vst [vmem:[%s2994_s30 + $0x8] sm:$0xff] %v2064_v53   ;;  %v1450_v52 = vadd.f32 %v2409_v58, %v2939_v47  ;;  %v2334_v60 = vpop.f32.mrb[53].mxu1  ;;  %v1441_v19 = vpop.f32.mrb[53].mxu0 }
 0x164   : > { %2060 = vst [vmem:[%s2994_s30] sm:$0xff] %v2059_v63   ;;  %v2335_v1 = vadd.f32 %v2334_v60, %v2333_v57  ;;  %v1442_v35 = vadd.f32 %v1441_v19, %v2933_v27  ;;  %v2336_v12 = vpop.f32.mrb[54].mxu1  ;;  %v2410_v13 = vpop.f32.mrb[54].mxu0 }
 0x165   : > { %v1453_v26 = vadd.f32 %v2410_v13, %v2941_v48  ;;  %v2337_v14 = vpop.f32.mrb[55].mxu1  ;;  %v1444_v6 = vpop.f32.mrb[55].mxu0  ;;  %v1558_v20 = vmax.f32 %v1450_v52, 0.0 }
 0x166   : > { %v2338_v47 = vadd.f32 %v2337_v14, %v2336_v12  ;;  %v1445_v24 = vadd.f32 %v1444_v6, %v2935_v29  ;;  %v3008_v40 = vadd.f32 %v2335_v1, %v1176_v0  ;;  %v1556_v11 = vmax.f32 %v1442_v35, 0.0 }
 0x167   : > { %v1559_v50 = vmax.f32 %v1453_v26, 0.0  ;;  %v1184_v29 = vadd.f32 %v2962_v43, %v2917_v38 }
 0x168   : > { %v1557_v27 = vmax.f32 %v1445_v24, 0.0  ;;  %v3010_v25 = vadd.f32 %v2338_v47, %v1179_v21  ;;  %v1195_v47 = vadd.f32 %v2975_v44, %v2917_v38  ;;  %v1200_v44 = vadd.f32 %v2898_v56, %v2917_v38 }
 0x169   : > { %v2074_v36 = vpack.c.bf16 %v1559_v50, %v1558_v20 }
 0x16a   : > { %v2069_v48 = vpack.c.bf16 %v1557_v27, %v1556_v11  ;;  %v2339_v18 = vpop.f32.mrb[56].mxu1  ;;  %v2413_v37 = vpop.f32.mrb[56].mxu0 }
 0x16b   : > { %2138 = vst [vmem:[%s2994_s30 + $0x18] sm:$0xff] %v2074_v36   ;;  %v1466_v46 = vadd.f32 %v2413_v37, %v2957_v32  ;;  %v2340_v31 = vpop.f32.mrb[57].mxu1  ;;  %v1457_v61 = vpop.f32.mrb[57].mxu0 }
 0x16c   : > { %2137 = vst [vmem:[%s2994_s30 + $0x10] sm:$0xff] %v2069_v48   ;;  %v2341_v39 = vadd.f32 %v2340_v31, %v2339_v18  ;;  %v1458_v41 = vadd.f32 %v1457_v61, %v2947_v3  ;;  %v2342_v42 = vpop.f32.mrb[58].mxu1  ;;  %v2414_v23 = vpop.f32.mrb[58].mxu0 }
 0x16d   : > { %v1469_v7 = vadd.f32 %v2414_v23, %v2959_v33  ;;  %v2343_v5 = vpop.f32.mrb[59].mxu1  ;;  %v1460_v59 = vpop.f32.mrb[59].mxu0  ;;  %v1562_v43 = vmax.f32 %v1466_v46, 0.0 }
 0x16e   : > { %v2344_v32 = vadd.f32 %v2343_v5, %v2342_v42  ;;  %v1461_v51 = vadd.f32 %v1460_v59, %v2949_v9  ;;  %v3022_v53 = vadd.f32 %v2341_v39, %v1184_v29  ;;  %v1560_v57 = vmax.f32 %v1458_v41, 0.0 }
 0x16f   : > { %v1563_v63 = vmax.f32 %v1469_v7, 0.0  ;;  %v1192_v9 = vadd.f32 %v2972_v2, %v2917_v38  ;;  %v1203_v7 = vadd.f32 %v2900_v62, %v2917_v38  ;;  %v1208_v62 = vadd.f32 %v2902_v4, %v2917_v38 }
 0x170   : > { %v1561_v3 = vmax.f32 %v1461_v51, 0.0  ;;  %v3024_v58 = vadd.f32 %v2344_v32, %v1187_v49 }
 0x171   : > { %v2084_v52 = vpack.c.bf16 %v1563_v63, %v1562_v43 }
 0x172   : > { %v2079_v33 = vpack.c.bf16 %v1561_v3, %v1560_v57  ;;  %v2345_v60 = vpop.f32.mrb[60].mxu1  ;;  %v2417_v19 = vpop.f32.mrb[60].mxu0 }
 0x173   : > { %2140 = vst [vmem:[%s2994_s30 + $0x28] sm:$0xff] %v2084_v52   ;;  %v1482_v0 = vadd.f32 %v2417_v19, %v2977_v15  ;;  %v2346_v54 = vpop.f32.mrb[61].mxu1  ;;  %v1473_v1 = vpop.f32.mrb[61].mxu0 }
 0x174   : > { %2139 = vst [vmem:[%s2994_s30 + $0x20] sm:$0xff] %v2079_v33   ;;  %v2347_v35 = vadd.f32 %v2346_v54, %v2345_v60  ;;  %v1474_v12 = vadd.f32 %v1473_v1, %v2967_v55  ;;  %v2348_v13 = vpop.f32.mrb[62].mxu1  ;;  %v2418_v26 = vpop.f32.mrb[62].mxu0 }
 0x175   : > { %v1485_v14 = vadd.f32 %v2418_v26, %v2979_v17  ;;  %v2349_v6 = vpop.f32.mrb[63].mxu1  ;;  %v1476_v21 = vpop.f32.mrb[63].mxu0  ;;  %v1566_v2 = vmax.f32 %v1482_v0, 0.0 }
 0x176   : > { %v2350_v15 = vadd.f32 %v2349_v6, %v2348_v13  ;;  %v1477_v24 = vadd.f32 %v1476_v21, %v2969_v30  ;;  %v1353_v20 = vadd.f32 %v2347_v35, %v1192_v9  ;;  %v1564_v11 = vmax.f32 %v1474_v12, 0.0 }
 0x177   : > { %v1567_v50 = vmax.f32 %v1485_v14, 0.0  ;;  %v1211_v35 = vadd.f32 %v2904_v10, %v2917_v38  ;;  %v1216_v10 = vadd.f32 %v2906_v16, %v2917_v38 }
 0x178   : > { %v1565_v27 = vmax.f32 %v1477_v24, 0.0  ;;  %v1356_v55 = vadd.f32 %v2350_v15, %v1195_v47 }
 0x179   : > { %v2094_v36 = vpack.c.bf16 %v1567_v50, %v1566_v2 }
 0x17a   : > { %v2089_v48 = vpack.c.bf16 %v1565_v27, %v1564_v11  ;;  %v2351_v18 = vpop.f32.mrb[64].mxu1  ;;  %v2421_v17 = vpop.f32.mrb[64].mxu0 }
 0x17b   : > { %2142 = vst [vmem:[%s2994_s30 + $0x38] sm:$0xff] %v2094_v36   ;;  %v1498_v37 = vadd.f32 %v2421_v17, %v3008_v40  ;;  %v2352_v46 = vpop.f32.mrb[65].mxu1  ;;  %v1489_v31 = vpop.f32.mrb[65].mxu0 }
 0x17c   : > { %2141 = vst [vmem:[%s2994_s30 + $0x30] sm:$0xff] %v2089_v48   ;;  %v2353_v30 = vadd.f32 %v2352_v46, %v2351_v18  ;;  %v1490_v61 = vadd.f32 %v1489_v31, %v2989_v45  ;;  %v2354_v29 = vpop.f32.mrb[66].mxu1  ;;  %v2422_v39 = vpop.f32.mrb[66].mxu0 }
 0x17d   : > { %v1501_v41 = vadd.f32 %v2422_v39, %v3010_v25  ;;  %v2355_v42 = vpop.f32.mrb[67].mxu1  ;;  %v1492_v23 = vpop.f32.mrb[67].mxu0  ;;  %v1570_v56 = vmax.f32 %v1498_v37, 0.0  ;;  %v1219_v37 = vadd.f32 %v2908_v22, %v2917_v38 }
 0x17e   : > { %v2356_v40 = vadd.f32 %v2355_v42, %v2354_v29  ;;  %v1493_v5 = vadd.f32 %v1492_v23, %v2996_v8  ;;  %v1361_v59 = vadd.f32 %v2353_v30, %v1200_v44  ;;  %v1568_v32 = vmax.f32 %v1490_v61, 0.0 }
 0x17f   : > { %v1571_v49 = vmax.f32 %v1501_v41, 0.0 }
 0x180   : > { %v1569_v51 = vmax.f32 %v1493_v5, 0.0  ;;  %v1364_v45 = vadd.f32 %v2356_v40, %v1203_v7 }
 0x181   : > { %v2104_v43 = vpack.c.bf16 %v1571_v49, %v1570_v56 }
 0x182   : > { %v2099_v63 = vpack.c.bf16 %v1569_v51, %v1568_v32  ;;  %v2357_v57 = vpop.f32.mrb[68].mxu1  ;;  %v2425_v25 = vpop.f32.mrb[68].mxu0 }
 0x183   : > { %2144 = vst [vmem:[%s2994_s30 + $0x48] sm:$0xff] %v2104_v43   ;;  %v1514_v3 = vadd.f32 %v2425_v25, %v1353_v20  ;;  %v2358_v52 = vpop.f32.mrb[69].mxu1  ;;  %v1505_v33 = vpop.f32.mrb[69].mxu0  ;;  %v1227_v43 = vadd.f32 %v2912_v34, %v2917_v38 }
 0x184   : > { %2143 = vst [vmem:[%s2994_s30 + $0x40] sm:$0xff] %v2099_v63   ;;  %v2359_v8 = vadd.f32 %v2358_v52, %v2357_v57  ;;  %v1506_v60 = vadd.f32 %v1505_v33, %v3022_v53  ;;  %v2360_v19 = vpop.f32.mrb[70].mxu1  ;;  %v2426_v0 = vpop.f32.mrb[70].mxu0 }
 0x185   : > { %v1517_v54 = vadd.f32 %v2426_v0, %v1356_v55  ;;  %v2361_v1 = vpop.f32.mrb[71].mxu1  ;;  %v1508_v9 = vpop.f32.mrb[71].mxu0  ;;  %v1574_v14 = vmax.f32 %v1514_v3, 0.0 }
 0x186   : > { %v2362_v12 = vadd.f32 %v2361_v1, %v2360_v19  ;;  %v1509_v13 = vadd.f32 %v1508_v9, %v3024_v58  ;;  %v1369_v26 = vadd.f32 %v2359_v8, %v1208_v62  ;;  %v1572_v6 = vmax.f32 %v1506_v60, 0.0 }
 0x187   : > { %v1575_v4 = vmax.f32 %v1517_v54, 0.0 }
 0x188   : > { %v1573_v21 = vmax.f32 %v1509_v13, 0.0  ;;  %v1372_v47 = vadd.f32 %v2362_v12, %v1211_v35 }
 0x189   : > { %v2114_v53 = vpack.c.bf16 %v1575_v4, %v1574_v14 }
 0x18a   : > { %v2109_v15 = vpack.c.bf16 %v1573_v21, %v1572_v6  ;;  %v2363_v24 = vpop.f32.mrb[72].mxu1  ;;  %v2429_v20 = vpop.f32.mrb[72].mxu0 }
 0x18b   : > { %2146 = vst [vmem:[%s2994_s30 + $0x58] sm:$0xff] %v2114_v53   ;;  %v1530_v2 = vadd.f32 %v2429_v20, %v1369_v26  ;;  %v2364_v50 = vpop.f32.mrb[73].mxu1  ;;  %v1521_v11 = vpop.f32.mrb[73].mxu0 }
 0x18c   : > { %2145 = vst [vmem:[%s2994_s30 + $0x50] sm:$0xff] %v2109_v15   ;;  %v2365_v58 = vadd.f32 %v2364_v50, %v2363_v24  ;;  %v1522_v27 = vadd.f32 %v1521_v11, %v1361_v59  ;;  %v2366_v55 = vpop.f32.mrb[74].mxu1  ;;  %v2430_v36 = vpop.f32.mrb[74].mxu0  ;;  %v1224_v59 = vadd.f32 %v2910_v28, %v2917_v38 }
 0x18d   : > { %v1533_v48 = vadd.f32 %v2430_v36, %v1372_v47  ;;  %v2367_v18 = vpop.f32.mrb[75].mxu1  ;;  %v1524_v17 = vpop.f32.mrb[75].mxu0  ;;  %v1578_v30 = vmax.f32 %v1530_v2, 0.0 }
 0x18e   : > { %v2368_v46 = vadd.f32 %v2367_v18, %v2366_v55  ;;  %v1525_v31 = vadd.f32 %v1524_v17, %v1364_v45  ;;  %v1377_v44 = vadd.f32 %v2365_v58, %v1216_v10  ;;  %v1576_v29 = vmax.f32 %v1522_v27, 0.0 }
 0x18f   : > { %v1579_v61 = vmax.f32 %v1533_v48, 0.0 }
 0x190   : > { %v1577_v16 = vmax.f32 %v1525_v31, 0.0  ;;  %v1380_v39 = vadd.f32 %v2368_v46, %v1219_v37 }
 0x191   : > { %v2124_v41 = vpack.c.bf16 %v1579_v61, %v1578_v30 }
 0x192   : > { %v2119_v42 = vpack.c.bf16 %v1577_v16, %v1576_v29  ;;  %v2369_v23 = vpop.f32.mrb[76].mxu1  ;;  %v2433_v7 = vpop.f32.mrb[76].mxu0 }
 0x193   : > { %2148 = vst [vmem:[%s2994_s30 + $0x68] sm:$0xff] %v2124_v41   ;;  %v2370_v40 = vpop.f32.mrb[77].mxu1  ;;  %v1537_v5 = vpop.f32.mrb[77].mxu0 }
 0x194   : > { %2147 = vst [vmem:[%s2994_s30 + $0x60] sm:$0xff] %v2119_v42   ;;  %v2371_v22 = vadd.f32 %v2370_v40, %v2369_v23  ;;  %v1538_v56 = vadd.f32 %v1537_v5, %v1377_v44  ;;  %v2372_v49 = vpop.f32.mrb[78].mxu1  ;;  %v2434_v32 = vpop.f32.mrb[78].mxu0 }
 0x195   : > { %v2373_v51 = vpop.f32.mrb[79].mxu1  ;;  %v1540_v45 = vpop.f32.mrb[79].mxu0 }
 0x196   : > { %v1385_v63 = vadd.f32 %v2371_v22, %v1224_v59  ;;  %v2374_v57 = vadd.f32 %v2373_v51, %v2372_v49  ;;  %v1541_v25 = vadd.f32 %v1540_v45, %v1380_v39  ;;  %v1580_v52 = vmax.f32 %v1538_v56, 0.0 }
 0x198   : > { %v1546_v3 = vadd.f32 %v2433_v7, %v1385_v63  ;;  %v1388_v33 = vadd.f32 %v2374_v57, %v1227_v43  ;;  %v1581_v62 = vmax.f32 %v1541_v25, 0.0 }
 0x19a   : > { %v1549_v28 = vadd.f32 %v2434_v32, %v1388_v33  ;;  %v2129_v8 = vpack.c.bf16 %v1581_v62, %v1580_v52  ;;  %v1582_v60 = vmax.f32 %v1546_v3, 0.0 }
 0x19c   : > { %v1583_v19 = vmax.f32 %v1549_v28, 0.0  ;;  %2149 = vst [vmem:[%s2994_s30 + $0x70] sm:$0xff] %v2129_v8  }
 0x19e   : > { %v2134_v0 = vpack.c.bf16 %v1583_v19, %v1582_v60 }
 0x1a0   : > { %2150 = vst [vmem:[%s2994_s30 + $0x78] sm:$0xff] %v2134_v0  }
 0x1a1 PF: > { %s13_s14 = sadd.s32 1, %s2646_s14   ;;  %s3081_s12 = smov %s2642_s13 }
 0x1a2   : > { %p10_p5 = scmp.ge.s32.totalorder %s13_s14, 7   ;;  %s3082_s13 = smov %s3084_s15 }
 0x1a4   :  { %12 = sbr.rel (!%p10_p5) target bundleno = 2 (0x2), region = 68 }

// kernel: _lambda_.16
= control target key start
LH: loop header
LB: loop body
LE: loop exit
PB: predicated region body
PF: predicated region fallthrough
CT: control target
= control target key end

     0   :  { %s1937_s12 = smov 0   ;;  %s1939_s13 = smov 0   ;;  %s2179_s0 = inlined_call_operand.vmem [shape: bf16[1536,288], index: 0, kind: input, shape index: {}]   ;;  %s2180_s1 = inlined_call_operand.vmem [shape: bf16[288,128], index: 1, kind: input, shape index: {}]   ;;  %s2181_s2 = inlined_call_operand.vmem [shape: f32[1,128], index: 2, kind: input, shape index: {}]   ;;  %s2182_s3 = inlined_call_operand.vmem [shape: bf16[1536,128], index: 3, kind: output, shape index: {}]  }
   0x1   :  { %s1941_s14 = smov 0  }
   0x2 LB: > { %s25_s15 = sadd.s32 1, %s1911_s13  ;;  %p1355_p0 = scmp.ge.s32.totalorder %s1915_s14, 1  ;;  %s1915_s14 = sphi %s1941_s14, %s13_s14   ;;  %s1911_s13 = sphi %s1939_s13, %s2184_s13   ;;  %s1907_s12 = sphi %s1937_s12, %s2183_s12  }
   0x3   : > { %p27_p1 = scmp.ge.s32.totalorder %s25_s15, 6  ;;  %p170_p2 = scmp.lt.s32.totalorder %s1915_s14, 7 }
   0x5   : > { %s2186_s15 = smov (%p27_p1, %s25_s15), 0  ;;  %p171_p3 = pnand %p1355_p0, %p170_p2 }
   0x6   : > { %v1811_v0 = vld [vmem:[%s2180_s1 + $0x40] sm:$0xff] (!%p171_p3)   ;;  %s1356_s18 = sshll.u32 (!%p171_p3), %s1907_s12, 5  ;;  %v1813_v2 = vld [vmem:[%s2180_s1 + $0x48] sm:$0xff] (!%p171_p3)   ;;  %v1815_v4 = vld [vmem:[%s2180_s1 + $0x50] sm:$0xff] (!%p171_p3)   ;;  %vm684_vm0 = vcmask (!%p171_p3), 261120  }
   0x7   : > { %174 = sbr.rel (%p171_p3) target bundleno = 353 (0x161), region = 32  ;;  %v1812_v1 = vld [vmem:[%s2180_s1] sm:$0xff] (!%p171_p3)   ;;  %1604 = vmatprep.subr.bf16.mxu0 (!%p171_p3), %v1811_v0  ;;  %1770 = vmatprep.subr.bf16.mxu1 (!%p171_p3), %v1811_v0  ;;  %p206_p4 = scmp.lt.s32.totalorder (!%p171_p3), %s1356_s18, 191  ;;  %v1814_v3 = vld [vmem:[%s2180_s1 + $0x8] sm:$0xff] (!%p171_p3)   ;;  %v1816_v5 = vld [vmem:[%s2180_s1 + $0x10] sm:$0xff] (!%p171_p3)  }
   0x8   : > { %1605 = vmatpush3.bf16.msra.mxu0 (!%p171_p3), %v1812_v1  ;;  %1778 = vmatpush3.bf16.msra.mxu1 (!%p171_p3), %v1812_v1  ;;  %v1817_v6 = vld [vmem:[%s2180_s1 + $0x58] sm:$0xff] (!%p171_p3)   ;;  %v1819_v8 = vld [vmem:[%s2180_s1 + $0x60] sm:$0xff] (!%p171_p3)   ;;  %v1821_v10 = vld [vmem:[%s2180_s1 + $0x68] sm:$0xff] (!%p171_p3)  }
   0x9   : > { %1606 = vmatprep.subr.bf16.mxu0 (!%p171_p3), %v1813_v2  ;;  %1771 = vmatprep.subr.bf16.mxu1 (!%p171_p3), %v1813_v2  ;;  %v1818_v7 = vld [vmem:[%s2180_s1 + $0x18] sm:$0xff] (!%p171_p3)   ;;  %v1820_v9 = vld [vmem:[%s2180_s1 + $0x20] sm:$0xff] (!%p171_p3)   ;;  %v1822_v13 = vld [vmem:[%s2180_s1 + $0x28] sm:$0xff] (!%p171_p3)  }
   0xa   : > { %v1823_v14 = vld [vmem:[%s2180_s1 + $0x70] sm:$0xff] (!%p171_p3)   ;;  %v1825_v16 = vld [vmem:[%s2180_s1 + $0x78] sm:$0xff] (!%p171_p3)   ;;  %v1833_v18 = vld [vmem:[%s2180_s1 + $0x80] sm:$0xff] (!%p171_p3)  }
   0xb   : > { %v1824_v15 = vld [vmem:[%s2180_s1 + $0x30] sm:$0xff] (!%p171_p3)   ;;  %v1826_v17 = vld [vmem:[%s2180_s1 + $0x38] sm:$0xff] (!%p171_p3)   ;;  %v1846_v23 = vld [vmem:[%s2180_s1 + $0x88] sm:$0xff] (!%p171_p3)  }
   0xc   : > { %1607 = vmatpush3.bf16.msra.mxu0 (!%p171_p3), %v1814_v3  ;;  %1779 = vmatpush3.bf16.msra.mxu1 (!%p171_p3), %v1814_v3 }
   0xd   : > { %1608 = vmatprep.subr.bf16.mxu0 (!%p171_p3), %v1815_v4  ;;  %1772 = vmatprep.subr.bf16.mxu1 (!%p171_p3), %v1815_v4 }
   0xe   : > { %s2188_s18 = smov (!%p206_p4, %s1356_s18), 191 }
   0xf   : > { %s1786_s4 = smul.u32 12, %s2188_s18  ;;  %s1359_s9 = sshll.u32 %s2188_s18, 2 }
  0x10   : > { %1609 = vmatpush3.bf16.msra.mxu0 %v1816_v5  ;;  %1780 = vmatpush3.bf16.msra.mxu1 %v1816_v5  ;;  %s2110_s12 = scalar_lea.vmem %s2182_s3, %s1359_s9 }
  0x11   : > { %1610 = vmatprep.subr.bf16.mxu0 %v1817_v6  ;;  %1773 = vmatprep.subr.bf16.mxu1 %v1817_v6  ;;  %s1988_s11 = scalar_lea.vmem %s2179_s0, %s1786_s4 }
  0x12   : > { %v1829_v11 = vld [vmem:[%s1988_s11 + $0x4] ss:$12 sps:$4 sm:$0xff]   ;;  %v1827_v19 = vld [vmem:[%s1988_s11] ss:$12 sps:$4 sm:$0xff]   ;;  %v1834_v21 = vld [vmem:[%s1988_s11 + $0x1c] ss:$12 sps:$4 sm:$0xff]  }
  0x13   : > { %v1832_v12 = vld [vmem:[%s1988_s11 + $0x124] ss:$12 sps:$4 sm:$0xff]   ;;  %765 = vmatprep.mubr.bf16.mxu0 %v1829_v11  ;;  %v1830_v20 = vld [vmem:[%s1988_s11 + $0x120] ss:$12 sps:$4 sm:$0xff]   ;;  %v1836_v22 = vld [vmem:[%s1988_s11 + $0x13c] ss:$12 sps:$4 sm:$0xff]  }
  0x14   : > { %1611 = vmatpush3.bf16.msra.mxu0 %v1818_v7  ;;  %1781 = vmatpush3.bf16.msra.mxu1 %v1818_v7  ;;  %v1838_v24 = vld [vmem:[%s1988_s11 + $0x18] ss:$12 sps:$4 sm:$0xff]   ;;  %v1840_v26 = vld [vmem:[%s1988_s11 + $0x34] ss:$12 sps:$4 sm:$0xff]   ;;  %v1844_v28 = vld [vmem:[%s1988_s11 + $0x30] ss:$12 sps:$4 sm:$0xff]  }
  0x15   : > { %1612 = vmatprep.subr.bf16.mxu0 %v1819_v8  ;;  %1774 = vmatprep.subr.bf16.mxu1 %v1819_v8  ;;  %v1839_v25 = vld [vmem:[%s1988_s11 + $0x138] ss:$12 sps:$4 sm:$0xff]   ;;  %v1842_v27 = vld [vmem:[%s1988_s11 + $0x154] ss:$12 sps:$4 sm:$0xff]   ;;  %v1845_v29 = vld [vmem:[%s1988_s11 + $0x150] ss:$12 sps:$4 sm:$0xff]  }
  0x16   : > { %861 = vmatprep.mubr.bf16.mxu1 %v1832_v12  ;;  %v1847_v30 = vld [vmem:[%s1988_s11 + $0x4c] ss:$12 sps:$4 sm:$0xff]   ;;  %v1851_v32 = vld [vmem:[%s1988_s11 + $0x48] ss:$12 sps:$4 sm:$0xff]   ;;  %v1853_v34 = vld [vmem:[%s1988_s11 + $0x64] ss:$12 sps:$4 sm:$0xff]  }
  0x17   : > { %v1849_v31 = vld [vmem:[%s1988_s11 + $0x16c] ss:$12 sps:$4 sm:$0xff]   ;;  %v1852_v33 = vld [vmem:[%s1988_s11 + $0x168] ss:$12 sps:$4 sm:$0xff]   ;;  %v1862_v41 = vld [vmem:[%s1988_s11 + $0x50] ss:$12 sps:$4 sm:$0xff]  }
  0x18   : > { %1613 = vmatpush3.bf16.msra.mxu0 %v1820_v9  ;;  %1782 = vmatpush3.bf16.msra.mxu1 %v1820_v9  ;;  %v1855_v35 = vld [vmem:[%s1988_s11 + $0x8] ss:$12 sps:$4 sm:$0xff]   ;;  %v1856_v36 = vld [vmem:[%s1988_s11 + $0x60] ss:$12 sps:$4 sm:$0xff]   ;;  %v1860_v39 = vld [vmem:[%s1988_s11 + $0x38] ss:$12 sps:$4 sm:$0xff]  }
  0x19   : > { %1614 = vmatprep.subr.bf16.mxu0 %v1821_v10  ;;  %1775 = vmatprep.subr.bf16.mxu1 %v1821_v10  ;;  %v1857_v37 = vld [vmem:[%s1988_s11 + $0x20] ss:$12 sps:$4 sm:$0xff]   ;;  %v1858_v38 = vld [vmem:[%s1988_s11 + $0x7c] ss:$12 sps:$4 sm:$0xff]   ;;  %v1861_v40 = vld [vmem:[%s1988_s11 + $0x78] ss:$12 sps:$4 sm:$0xff]  }
  0x1a   : > { %v1863_v42 = vld [vmem:[%s1988_s11 + $0x94] ss:$12 sps:$4 sm:$0xff]   ;;  %v1866_v44 = vld [vmem:[%s1988_s11 + $0x90] ss:$12 sps:$4 sm:$0xff]   ;;  %v1868_v46 = vld [vmem:[%s1988_s11 + $0xac] ss:$12 sps:$4 sm:$0xff]  }
  0x1b   : > { %v1865_v43 = vld [vmem:[%s1988_s11 + $0x68] ss:$12 sps:$4 sm:$0xff]   ;;  %v1867_v45 = vld [vmem:[%s1988_s11 + $0x80] ss:$12 sps:$4 sm:$0xff]   ;;  %v1870_v47 = vld [vmem:[%s1988_s11 + $0x98] ss:$12 sps:$4 sm:$0xff]  }
  0x1c   : > { %1615 = vmatpush3.bf16.msra.mxu0 %v1822_v13  ;;  %1783 = vmatpush3.bf16.msra.mxu1 %v1822_v13  ;;  %v1871_v48 = vld [vmem:[%s1988_s11 + $0xa8] ss:$12 sps:$4 sm:$0xff]   ;;  %v1872_v49 = vld [vmem:[%s1988_s11 + $0xb0] ss:$12 sps:$4 sm:$0xff]   ;;  %v1876_v52 = vld [vmem:[%s1988_s11 + $0xc0] ss:$12 sps:$4 sm:$0xff]  }
  0x1d   : > { %1616 = vmatprep.subr.bf16.mxu0 %v1823_v14  ;;  %1776 = vmatprep.subr.bf16.mxu1 %v1823_v14  ;;  %v1873_v50 = vld [vmem:[%s1988_s11 + $0xc4] ss:$12 sps:$4 sm:$0xff]   ;;  %v1875_v51 = vld [vmem:[%s1988_s11 + $0xc8] ss:$12 sps:$4 sm:$0xff]   ;;  %v1877_v53 = vld [vmem:[%s1988_s11 + $0xe0] ss:$12 sps:$4 sm:$0xff]  }
  0x1e   : > { %v1878_v54 = vld [vmem:[%s1988_s11 + $0xdc] ss:$12 sps:$4 sm:$0xff]   ;;  %v1880_v55 = vld [vmem:[%s1988_s11 + $0xf8] ss:$12 sps:$4 sm:$0xff]   ;;  %v1883_v58 = vld [vmem:[%s1988_s11 + $0xf4] ss:$12 sps:$4 sm:$0xff]  }
  0x1f   : > { %v1881_v56 = vld [vmem:[%s1988_s11 + $0xd8] ss:$12 sps:$4 sm:$0xff]   ;;  %v1882_v57 = vld [vmem:[%s1988_s11 + $0x110] ss:$12 sps:$4 sm:$0xff]   ;;  %v1885_v59 = vld [vmem:[%s1988_s11 + $0x128] ss:$12 sps:$4 sm:$0xff]  }
  0x20   : > { %1617 = vmatpush3.bf16.msra.mxu0 %v1824_v15  ;;  %1784 = vmatpush3.bf16.msra.mxu1 %v1824_v15  ;;  %v1886_v60 = vld [vmem:[%s1988_s11 + $0xf0] ss:$12 sps:$4 sm:$0xff]   ;;  %v1887_v61 = vld [vmem:[%s1988_s11 + $0x140] ss:$12 sps:$4 sm:$0xff]   ;;  %v1890_v63 = vld [vmem:[%s1988_s11 + $0x158] ss:$12 sps:$4 sm:$0xff]  }
  0x21   : > { %1618 = vmatprep.subr.bf16.mxu0 %v1825_v16  ;;  %1777 = vmatprep.subr.bf16.mxu1 %v1825_v16  ;;  %v1888_v62 = vld [vmem:[%s1988_s11 + $0x10c] ss:$12 sps:$4 sm:$0xff]   ;;  %v1891_v0 = vld [vmem:[%s1988_s11 + $0x108] ss:$12 sps:$4 sm:$0xff]   ;;  %v1892_v1 = vld [vmem:[%s1988_s11 + $0x170] ss:$12 sps:$4 sm:$0xff]  }
  0x24   : > { %1619 = vmatpush3.bf16.msra.mxu0 %v1826_v17  ;;  %1785 = vmatpush3.bf16.msra.mxu1 %v1826_v17 }
  0x25   : > { %1734 = vmatprep.subr.bf16.mxu1 %v1833_v18 }
  0x27   : > { %766 = vmatmul.mubr.bf16.vlgmr.msra.gmra.mrb[0].mxu0 %v1827_v19  ;;  %862 = vmatmul.mubr.bf16.vlgmr.msra.gmra.mrb[0].mxu1 %v1830_v20 }
  0x28   : > { %1735 = vmatpush3.bf16.msra.mxu1 %v1833_v18  ;;  %773 = vmatprep.mubr.bf16.mxu0 %v1834_v21 }
  0x29   : > { %869 = vmatprep.mubr.bf16.mxu1 %v1836_v22  ;;  %1736 = vmatprep.subr.bf16.mxu1 %v1846_v23 }
  0x2c   : > { %1737 = vmatpush3.bf16.msra.mxu1 %v1846_v23 }
  0x2f   : > { %774 = vmatmul.mubr.bf16.gmra.mrb[4].mxu0 %v1838_v24  ;;  %870 = vmatmul.mubr.bf16.gmra.mrb[4].mxu1 %v1839_v25 }
  0x30   : > { %781 = vmatprep.mubr.bf16.mxu0 %v1840_v26  ;;  %877 = vmatprep.mubr.bf16.mxu1 %v1842_v27 }
  0x37   : > { %782 = vmatmul.mubr.bf16.gmra.mrb[8].mxu0 %v1844_v28  ;;  %878 = vmatmul.mubr.bf16.gmra.mrb[8].mxu1 %v1845_v29 }
  0x38   : > { %789 = vmatprep.mubr.bf16.mxu0 %v1847_v30  ;;  %885 = vmatprep.mubr.bf16.mxu1 %v1849_v31 }
  0x3f   : > { %790 = vmatmul.mubr.bf16.gmra.mrb[12].mxu0 %v1851_v32  ;;  %886 = vmatmul.mubr.bf16.gmra.mrb[12].mxu1 %v1852_v33 }
  0x40   : > { %797 = vmatprep.mubr.bf16.mxu0 %v1853_v34  ;;  %1738 = vmatprep.mubr.msk.bf16.mxu1 %vm684_vm0, %v1855_v35 }
  0x47   : > { %798 = vmatmul.mubr.bf16.gmra.mrb[16].mxu0 %v1856_v36  ;;  %1739 = vmatmul.mubr.msk.bf16.vlgmr.msra.gmra.mrb[16].mxu1 %vm684_vm0, %v1857_v37 }
  0x48   : > { %805 = vmatprep.mubr.bf16.mxu0 %v1858_v38  ;;  %1742 = vmatprep.mubr.msk.bf16.mxu1 %vm684_vm0, %v1860_v39 }
  0x4f   : > { %806 = vmatmul.mubr.bf16.gmra.mrb[20].mxu0 %v1861_v40  ;;  %1743 = vmatmul.mubr.msk.bf16.gmra.mrb[20].mxu1 %vm684_vm0, %v1862_v41 }
  0x50   : > { %813 = vmatprep.mubr.bf16.mxu0 %v1863_v42  ;;  %1746 = vmatprep.mubr.msk.bf16.mxu1 %vm684_vm0, %v1865_v43 }
  0x57   : > { %814 = vmatmul.mubr.bf16.gmra.mrb[24].mxu0 %v1866_v44  ;;  %1747 = vmatmul.mubr.msk.bf16.gmra.mrb[24].mxu1 %vm684_vm0, %v1867_v45 }
  0x58   : > { %821 = vmatprep.mubr.bf16.mxu0 %v1868_v46  ;;  %1750 = vmatprep.mubr.msk.bf16.mxu1 %vm684_vm0, %v1870_v47 }
  0x5f   : > { %822 = vmatmul.mubr.bf16.gmra.mrb[28].mxu0 %v1871_v48  ;;  %1751 = vmatmul.mubr.msk.bf16.gmra.mrb[28].mxu1 %vm684_vm0, %v1872_v49 }
  0x60   : > { %829 = vmatprep.mubr.bf16.mxu0 %v1873_v50  ;;  %1754 = vmatprep.mubr.msk.bf16.mxu1 %vm684_vm0, %v1875_v51  ;;  %v2100_v50 = vld [vmem:[%s2181_s2] ss:$0 sm:$0xff] }
  0x67   : > { %830 = vmatmul.mubr.bf16.gmra.mrb[32].mxu0 %v1876_v52  ;;  %1755 = vmatmul.mubr.msk.bf16.gmra.mrb[32].mxu1 %vm684_vm0, %v1877_v53 }
  0x68   : > { %837 = vmatprep.mubr.bf16.mxu0 %v1878_v54  ;;  %1758 = vmatprep.mubr.msk.bf16.mxu1 %vm684_vm0, %v1880_v55 }
  0x6f   : > { %838 = vmatmul.mubr.bf16.gmra.mrb[36].mxu0 %v1881_v56  ;;  %1759 = vmatmul.mubr.msk.bf16.gmra.mrb[36].mxu1 %vm684_vm0, %v1882_v57 }
  0x70   : > { %845 = vmatprep.mubr.bf16.mxu0 %v1883_v58  ;;  %1762 = vmatprep.mubr.msk.bf16.mxu1 %vm684_vm0, %v1885_v59 }
  0x77   : > { %846 = vmatmul.mubr.bf16.gmra.mrb[40].mxu0 %v1886_v60  ;;  %1763 = vmatmul.mubr.msk.bf16.gmra.mrb[40].mxu1 %vm684_vm0, %v1887_v61 }
  0x78   : > { %853 = vmatprep.mubr.bf16.mxu0 %v1888_v62  ;;  %1766 = vmatprep.mubr.msk.bf16.mxu1 %vm684_vm0, %v1890_v63 }
  0x7f   : > { %854 = vmatmul.mubr.bf16.gmra.mrb[44].mxu0 %v1891_v0  ;;  %1767 = vmatmul.mubr.msk.bf16.gmra.mrb[44].mxu1 %vm684_vm0, %v1892_v1 }
  0xfa   : > { %v1620_v2 = vpop.f32.mrb[0].mxu0  ;;  %v1692_v3 = vpop.f32.mrb[0].mxu1 }
  0xfb   : > { %v1621_v4 = vpop.f32.mrb[1].mxu0  ;;  %v1693_v5 = vpop.f32.mrb[1].mxu1 }
  0xfc   : > { %v1622_v6 = vadd.f32 %v1621_v4, %v1620_v2  ;;  %v1623_v7 = vpop.f32.mrb[2].mxu0  ;;  %v2081_v8 = vadd.f32 %v1693_v5, %v1692_v3  ;;  %v1695_v9 = vpop.f32.mrb[2].mxu1 }
  0xfd   : > { %v1624_v10 = vpop.f32.mrb[3].mxu0  ;;  %v1696_v11 = vpop.f32.mrb[3].mxu1 }
  0xfe   : > { %v1625_v12 = vadd.f32 %v1624_v10, %v1623_v7  ;;  %v2083_v13 = vadd.f32 %v1696_v11, %v1695_v9  ;;  %v768_v54 = vadd.f32 %v1622_v6, %v2100_v50 }
 0x100   : > { %v771_v63 = vadd.f32 %v1625_v12, %v2100_v50 }
 0x102   : > { %v1626_v14 = vpop.f32.mrb[4].mxu0  ;;  %v1698_v15 = vpop.f32.mrb[4].mxu1 }
 0x103   : > { %v1627_v16 = vpop.f32.mrb[5].mxu0  ;;  %v1699_v17 = vpop.f32.mrb[5].mxu1 }
 0x104   : > { %v1628_v18 = vadd.f32 %v1627_v16, %v1626_v14  ;;  %v1629_v19 = vpop.f32.mrb[6].mxu0  ;;  %v2085_v20 = vadd.f32 %v1699_v17, %v1698_v15  ;;  %v1701_v21 = vpop.f32.mrb[6].mxu1 }
 0x105   : > { %v1630_v22 = vpop.f32.mrb[7].mxu0  ;;  %v1702_v23 = vpop.f32.mrb[7].mxu1 }
 0x106   : > { %v1631_v24 = vadd.f32 %v1630_v22, %v1629_v19  ;;  %v2087_v25 = vadd.f32 %v1702_v23, %v1701_v21  ;;  %v776_v51 = vadd.f32 %v1628_v18, %v2100_v50 }
 0x108   : > { %v779_v58 = vadd.f32 %v1631_v24, %v2100_v50 }
 0x10a   : > { %v1632_v26 = vpop.f32.mrb[8].mxu0  ;;  %v1704_v27 = vpop.f32.mrb[8].mxu1 }
 0x10b   : > { %v1633_v28 = vpop.f32.mrb[9].mxu0  ;;  %v1705_v29 = vpop.f32.mrb[9].mxu1 }
 0x10c   : > { %v1634_v30 = vadd.f32 %v1633_v28, %v1632_v26  ;;  %v1635_v31 = vpop.f32.mrb[10].mxu0  ;;  %v2089_v32 = vadd.f32 %v1705_v29, %v1704_v27  ;;  %v1707_v33 = vpop.f32.mrb[10].mxu1 }
 0x10d   : > { %v1636_v34 = vpop.f32.mrb[11].mxu0  ;;  %v1708_v35 = vpop.f32.mrb[11].mxu1 }
 0x10e   : > { %v1637_v36 = vadd.f32 %v1636_v34, %v1635_v31  ;;  %v2091_v37 = vadd.f32 %v1708_v35, %v1707_v33  ;;  %v784_v16 = vadd.f32 %v1634_v30, %v2100_v50 }
 0x110   : > { %v787_v27 = vadd.f32 %v1637_v36, %v2100_v50 }
 0x112   : > { %v1638_v38 = vpop.f32.mrb[12].mxu0  ;;  %v1710_v39 = vpop.f32.mrb[12].mxu1 }
 0x113   : > { %v1639_v40 = vpop.f32.mrb[13].mxu0  ;;  %v1711_v41 = vpop.f32.mrb[13].mxu1 }
 0x114   : > { %v1640_v42 = vadd.f32 %v1639_v40, %v1638_v38  ;;  %v1641_v43 = vpop.f32.mrb[14].mxu0  ;;  %v2093_v44 = vadd.f32 %v1711_v41, %v1710_v39  ;;  %v1713_v45 = vpop.f32.mrb[14].mxu1 }
 0x115   : > { %v1642_v46 = vpop.f32.mrb[15].mxu0  ;;  %v1714_v47 = vpop.f32.mrb[15].mxu1 }
 0x116   : > { %v1643_v48 = vadd.f32 %v1642_v46, %v1641_v43  ;;  %v2095_v49 = vadd.f32 %v1714_v47, %v1713_v45  ;;  %v792_v11 = vadd.f32 %v1640_v42, %v2100_v50 }
 0x118   : > { %v795_v21 = vadd.f32 %v1643_v48, %v2100_v50 }
 0x11a   : > { %v1644_v52 = vpop.f32.mrb[16].mxu0  ;;  %v1740_v53 = vpop.f32.mrb[16].mxu1 }
 0x11b   : > { %v937_v55 = vadd.f32 %v1740_v53, %v776_v51  ;;  %v1645_v56 = vpop.f32.mrb[17].mxu0  ;;  %v928_v57 = vpop.f32.mrb[17].mxu1 }
 0x11c   : > { %v1646_v59 = vadd.f32 %v1645_v56, %v1644_v52  ;;  %v929_v60 = vadd.f32 %v928_v57, %v768_v54  ;;  %v1647_v61 = vpop.f32.mrb[18].mxu0  ;;  %v1741_v62 = vpop.f32.mrb[18].mxu1 }
 0x11d   : > { %v940_v0 = vadd.f32 %v1741_v62, %v779_v58  ;;  %v1648_v1 = vpop.f32.mrb[19].mxu0  ;;  %v931_v2 = vpop.f32.mrb[19].mxu1  ;;  %v1057_v5 = vmax.f32 %v937_v55, 0.0 }
 0x11e   : > { %v1649_v3 = vadd.f32 %v1648_v1, %v1647_v61  ;;  %v932_v4 = vadd.f32 %v931_v2, %v771_v63  ;;  %v1055_v6 = vmax.f32 %v929_v60, 0.0  ;;  %v800_v46 = vadd.f32 %v1646_v59, %v2100_v50 }
 0x11f   : > { %v1058_v7 = vmax.f32 %v940_v0, 0.0 }
 0x120   : > { %v1056_v9 = vmax.f32 %v932_v4, 0.0  ;;  %v803_v56 = vadd.f32 %v1649_v3, %v2100_v50 }
 0x121   : > { %v1517_v10 = vpack.c.bf16 %v1058_v7, %v1057_v5 }
 0x122   : > { %v1512_v12 = vpack.c.bf16 %v1056_v9, %v1055_v6  ;;  %v1650_v14 = vpop.f32.mrb[20].mxu0  ;;  %v1744_v15 = vpop.f32.mrb[20].mxu1 }
 0x123   : > { %1589 = vst [vmem:[%s2110_s12 + $0x8] sm:$0xff] %v1517_v10   ;;  %v953_v17 = vadd.f32 %v1744_v15, %v792_v11  ;;  %v1651_v18 = vpop.f32.mrb[21].mxu0  ;;  %v944_v19 = vpop.f32.mrb[21].mxu1 }
 0x124   : > { %1513 = vst [vmem:[%s2110_s12] sm:$0xff] %v1512_v12   ;;  %v1652_v22 = vadd.f32 %v1651_v18, %v1650_v14  ;;  %v945_v23 = vadd.f32 %v944_v19, %v784_v16  ;;  %v1653_v24 = vpop.f32.mrb[22].mxu0  ;;  %v1745_v26 = vpop.f32.mrb[22].mxu1 }
 0x125   : > { %v956_v28 = vadd.f32 %v1745_v26, %v795_v21  ;;  %v1654_v29 = vpop.f32.mrb[23].mxu0  ;;  %v947_v31 = vpop.f32.mrb[23].mxu1  ;;  %v1061_v30 = vmax.f32 %v953_v17, 0.0 }
 0x126   : > { %v1655_v33 = vadd.f32 %v1654_v29, %v1653_v24  ;;  %v948_v34 = vadd.f32 %v947_v31, %v787_v27  ;;  %v1059_v38 = vmax.f32 %v945_v23, 0.0  ;;  %v808_v41 = vadd.f32 %v1652_v22, %v2100_v50 }
 0x127   : > { %v1062_v35 = vmax.f32 %v956_v28, 0.0 }
 0x128   : > { %v1060_v39 = vmax.f32 %v948_v34, 0.0  ;;  %v811_v51 = vadd.f32 %v1655_v33, %v2100_v50 }
 0x129   : > { %v1527_v40 = vpack.c.bf16 %v1062_v35, %v1061_v30 }
 0x12a   : > { %v1522_v42 = vpack.c.bf16 %v1060_v39, %v1059_v38  ;;  %v1656_v43 = vpop.f32.mrb[24].mxu0  ;;  %v1748_v45 = vpop.f32.mrb[24].mxu1 }
 0x12b   : > { %1591 = vst [vmem:[%s2110_s12 + $0x18] sm:$0xff] %v1527_v40   ;;  %v969_v36 = vadd.f32 %v1748_v45, %v808_v41  ;;  %v1657_v47 = vpop.f32.mrb[25].mxu0  ;;  %v960_v48 = vpop.f32.mrb[25].mxu1 }
 0x12c   : > { %1590 = vst [vmem:[%s2110_s12 + $0x10] sm:$0xff] %v1522_v42   ;;  %v1658_v52 = vadd.f32 %v1657_v47, %v1656_v43  ;;  %v961_v53 = vadd.f32 %v960_v48, %v800_v46  ;;  %v1659_v54 = vpop.f32.mrb[26].mxu0  ;;  %v1749_v55 = vpop.f32.mrb[26].mxu1 }
 0x12d   : > { %v972_v57 = vadd.f32 %v1749_v55, %v811_v51  ;;  %v1660_v58 = vpop.f32.mrb[27].mxu0  ;;  %v963_v60 = vpop.f32.mrb[27].mxu1  ;;  %v1065_v62 = vmax.f32 %v969_v36, 0.0 }
 0x12e   : > { %v1661_v61 = vadd.f32 %v1660_v58, %v1659_v54  ;;  %v964_v59 = vadd.f32 %v963_v60, %v803_v56  ;;  %v1063_v0 = vmax.f32 %v961_v53, 0.0  ;;  %v816_v6 = vadd.f32 %v1658_v52, %v2100_v50 }
 0x12f   : > { %v1066_v63 = vmax.f32 %v972_v57, 0.0 }
 0x130   : > { %v1064_v1 = vmax.f32 %v964_v59, 0.0  ;;  %v819_v15 = vadd.f32 %v1661_v61, %v2100_v50 }
 0x131   : > { %v1537_v2 = vpack.c.bf16 %v1066_v63, %v1065_v62 }
 0x132   : > { %v1532_v4 = vpack.c.bf16 %v1064_v1, %v1063_v0  ;;  %v1662_v5 = vpop.f32.mrb[28].mxu0  ;;  %v1752_v7 = vpop.f32.mrb[28].mxu1 }
 0x133   : > { %1593 = vst [vmem:[%s2110_s12 + $0x28] sm:$0xff] %v1537_v2   ;;  %v1663_v9 = vpop.f32.mrb[29].mxu0  ;;  %v976_v10 = vpop.f32.mrb[29].mxu1 }
 0x134   : > { %1592 = vst [vmem:[%s2110_s12 + $0x20] sm:$0xff] %v1532_v4   ;;  %v1664_v3 = vadd.f32 %v1663_v9, %v1662_v5  ;;  %v977_v11 = vadd.f32 %v976_v10, %v816_v6  ;;  %v1665_v12 = vpop.f32.mrb[30].mxu0  ;;  %v1753_v14 = vpop.f32.mrb[30].mxu1  ;;  %v872_v4 = vadd.f32 %v2085_v20, %v2100_v50  ;;  %v864_v9 = vadd.f32 %v2081_v8, %v2100_v50 }
 0x135   : > { %v1666_v16 = vpop.f32.mrb[31].mxu0  ;;  %v979_v17 = vpop.f32.mrb[31].mxu1 }
 0x136   : > { %v824_v18 = vadd.f32 %v1664_v3, %v2100_v50  ;;  %v1667_v19 = vadd.f32 %v1666_v16, %v1665_v12  ;;  %v980_v21 = vadd.f32 %v979_v17, %v819_v15  ;;  %v1067_v23 = vmax.f32 %v977_v11, 0.0 }
 0x137   : > { %v875_v12 = vadd.f32 %v2087_v25, %v2100_v50 }
 0x138   : > { %v985_v22 = vadd.f32 %v1752_v7, %v824_v18  ;;  %v827_v24 = vadd.f32 %v1667_v19, %v2100_v50  ;;  %v1068_v26 = vmax.f32 %v980_v21, 0.0 }
 0x13a   : > { %v988_v27 = vadd.f32 %v1753_v14, %v827_v24  ;;  %v1542_v28 = vpack.c.bf16 %v1068_v26, %v1067_v23  ;;  %v1668_v29 = vpop.f32.mrb[32].mxu0  ;;  %v1756_v31 = vpop.f32.mrb[32].mxu1  ;;  %v1069_v30 = vmax.f32 %v985_v22, 0.0  ;;  %v867_v22 = vadd.f32 %v2083_v13, %v2100_v50 }
 0x13b   : > { %v1669_v33 = vpop.f32.mrb[33].mxu0  ;;  %v992_v34 = vpop.f32.mrb[33].mxu1 }
 0x13c   : > { %v1070_v35 = vmax.f32 %v988_v27, 0.0  ;;  %1594 = vst [vmem:[%s2110_s12 + $0x30] sm:$0xff] %v1542_v28   ;;  %v1670_v38 = vadd.f32 %v1669_v33, %v1668_v29  ;;  %v1671_v39 = vpop.f32.mrb[34].mxu0  ;;  %v1757_v40 = vpop.f32.mrb[34].mxu1 }
 0x13d   : > { %v1672_v41 = vpop.f32.mrb[35].mxu0  ;;  %v995_v42 = vpop.f32.mrb[35].mxu1 }
 0x13e   : > { %v1547_v43 = vpack.c.bf16 %v1070_v35, %v1069_v30  ;;  %v832_v45 = vadd.f32 %v1670_v38, %v2100_v50  ;;  %v1673_v46 = vadd.f32 %v1672_v41, %v1671_v39  ;;  %v888_v35 = vadd.f32 %v2093_v44, %v2100_v50 }
 0x140   : > { %1595 = vst [vmem:[%s2110_s12 + $0x38] sm:$0xff] %v1547_v43   ;;  %v993_v36 = vadd.f32 %v992_v34, %v832_v45  ;;  %v835_v47 = vadd.f32 %v1673_v46, %v2100_v50  ;;  %v891_v46 = vadd.f32 %v2095_v49, %v2100_v50 }
 0x142   : > { %v996_v48 = vadd.f32 %v995_v42, %v835_v47  ;;  %v1674_v51 = vpop.f32.mrb[36].mxu0  ;;  %v2134_v52 = vpop.f32.mrb[36].mxu1  ;;  %v1071_v55 = vmax.f32 %v993_v36, 0.0 }
 0x143   : > { %v1675_v53 = vpop.f32.mrb[37].mxu0  ;;  %v1008_v54 = vpop.f32.mrb[37].mxu1 }
 0x144   : > { %v1072_v56 = vmax.f32 %v996_v48, 0.0  ;;  %v1676_v57 = vadd.f32 %v1675_v53, %v1674_v51  ;;  %v1677_v58 = vpop.f32.mrb[38].mxu0  ;;  %v2136_v60 = vpop.f32.mrb[38].mxu1 }
 0x145   : > { %v1678_v61 = vpop.f32.mrb[39].mxu0  ;;  %v1011_v59 = vpop.f32.mrb[39].mxu1 }
 0x146   : > { %v1552_v62 = vpack.c.bf16 %v1072_v56, %v1071_v55  ;;  %v840_v63 = vadd.f32 %v1676_v57, %v2100_v50  ;;  %v1679_v0 = vadd.f32 %v1678_v61, %v1677_v58 }
 0x148   : > { %1596 = vst [vmem:[%s2110_s12 + $0x40] sm:$0xff] %v1552_v62   ;;  %v1001_v1 = vadd.f32 %v1756_v31, %v840_v63  ;;  %v843_v2 = vadd.f32 %v1679_v0, %v2100_v50 }
 0x14a   : > { %v1004_v5 = vadd.f32 %v1757_v40, %v843_v2  ;;  %v1680_v7 = vpop.f32.mrb[40].mxu0  ;;  %v1764_v6 = vpop.f32.mrb[40].mxu1  ;;  %v1073_v14 = vmax.f32 %v1001_v1, 0.0  ;;  %v880_v40 = vadd.f32 %v2089_v32, %v2100_v50  ;;  %v883_v32 = vadd.f32 %v2091_v37, %v2100_v50 }
 0x14b   : > { %v1033_v10 = vadd.f32 %v1764_v6, %v872_v4  ;;  %v1681_v3 = vpop.f32.mrb[41].mxu0  ;;  %v1024_v11 = vpop.f32.mrb[41].mxu1 }
 0x14c   : > { %v1074_v15 = vmax.f32 %v1004_v5, 0.0  ;;  %v1682_v16 = vadd.f32 %v1681_v3, %v1680_v7  ;;  %v1025_v17 = vadd.f32 %v1024_v11, %v864_v9  ;;  %v1683_v18 = vpop.f32.mrb[42].mxu0  ;;  %v1765_v19 = vpop.f32.mrb[42].mxu1 }
 0x14d   : > { %v1036_v20 = vadd.f32 %v1765_v19, %v875_v12  ;;  %v1684_v21 = vpop.f32.mrb[43].mxu0  ;;  %v1027_v23 = vpop.f32.mrb[43].mxu1  ;;  %v1081_v27 = vmax.f32 %v1033_v10, 0.0 }
 0x14e   : > { %v1557_v8 = vpack.c.bf16 %v1074_v15, %v1073_v14  ;;  %v848_v24 = vadd.f32 %v1682_v16, %v2100_v50  ;;  %v1685_v26 = vadd.f32 %v1684_v21, %v1683_v18  ;;  %v1028_v28 = vadd.f32 %v1027_v23, %v867_v22 }
 0x14f   : > { %v1082_v25 = vmax.f32 %v1036_v20, 0.0  ;;  %v1079_v33 = vmax.f32 %v1025_v17, 0.0 }
 0x150   : > { %1597 = vst [vmem:[%s2110_s12 + $0x48] sm:$0xff] %v1557_v8   ;;  %v1009_v29 = vadd.f32 %v1008_v54, %v848_v24  ;;  %v851_v31 = vadd.f32 %v1685_v26, %v2100_v50  ;;  %v1080_v30 = vmax.f32 %v1028_v28, 0.0 }
 0x151   : > { %v1577_v34 = vpack.c.bf16 %v1082_v25, %v1081_v27 }
 0x152   : > { %v1012_v13 = vadd.f32 %v1011_v59, %v851_v31  ;;  %v1686_v38 = vpop.f32.mrb[44].mxu0  ;;  %v1768_v39 = vpop.f32.mrb[44].mxu1  ;;  %v1572_v41 = vpack.c.bf16 %v1080_v30, %v1079_v33  ;;  %v1075_v36 = vmax.f32 %v1009_v29, 0.0 }
 0x153   : > { %1601 = vst [vmem:[%s2110_s12 + $0x68] sm:$0xff] %v1577_v34   ;;  %v1049_v42 = vadd.f32 %v1768_v39, %v888_v35  ;;  %v1687_v43 = vpop.f32.mrb[45].mxu0  ;;  %v1040_v45 = vpop.f32.mrb[45].mxu1 }
 0x154   : > { %v1076_v47 = vmax.f32 %v1012_v13, 0.0  ;;  %v1688_v48 = vadd.f32 %v1687_v43, %v1686_v38  ;;  %v1041_v44 = vadd.f32 %v1040_v45, %v880_v40  ;;  %v1689_v51 = vpop.f32.mrb[46].mxu0  ;;  %v1769_v53 = vpop.f32.mrb[46].mxu1  ;;  %1600 = vst [vmem:[%s2110_s12 + $0x60] sm:$0xff] %v1572_v41  }
 0x155   : > { %v1052_v54 = vadd.f32 %v1769_v53, %v891_v46  ;;  %v1690_v55 = vpop.f32.mrb[47].mxu0  ;;  %v1043_v56 = vpop.f32.mrb[47].mxu1  ;;  %v1085_v61 = vmax.f32 %v1049_v42, 0.0 }
 0x156   : > { %v1562_v57 = vpack.c.bf16 %v1076_v47, %v1075_v36  ;;  %v856_v58 = vadd.f32 %v1688_v48, %v2100_v50  ;;  %v1691_v49 = vadd.f32 %v1690_v55, %v1689_v51  ;;  %v1044_v62 = vadd.f32 %v1043_v56, %v883_v32 }
 0x157   : > { %v1086_v59 = vmax.f32 %v1052_v54, 0.0  ;;  %v1083_v1 = vmax.f32 %v1041_v44, 0.0 }
 0x158   : > { %1598 = vst [vmem:[%s2110_s12 + $0x50] sm:$0xff] %v1562_v57   ;;  %v1017_v63 = vadd.f32 %v2134_v52, %v856_v58  ;;  %v859_v0 = vadd.f32 %v1691_v49, %v2100_v50  ;;  %v1084_v4 = vmax.f32 %v1044_v62, 0.0 }
 0x159   : > { %v1587_v2 = vpack.c.bf16 %v1086_v59, %v1085_v61 }
 0x15a   : > { %v1020_v37 = vadd.f32 %v2136_v60, %v859_v0  ;;  %v1582_v5 = vpack.c.bf16 %v1084_v4, %v1083_v1  ;;  %v1077_v7 = vmax.f32 %v1017_v63, 0.0 }
 0x15b   : > { %1603 = vst [vmem:[%s2110_s12 + $0x78] sm:$0xff] %v1587_v2  }
 0x15c   : > { %v1078_v6 = vmax.f32 %v1020_v37, 0.0  ;;  %1602 = vst [vmem:[%s2110_s12 + $0x70] sm:$0xff] %v1582_v5  }
 0x15e   : > { %v1567_v9 = vpack.c.bf16 %v1078_v6, %v1077_v7 }
 0x160   : > { %1599 = vst [vmem:[%s2110_s12 + $0x58] sm:$0xff] %v1567_v9  }
 0x161 PF: > { %s13_s14 = sadd.s32 1, %s1915_s14   ;;  %s2183_s12 = smov %s1911_s13 }
 0x162   : > { %p10_p5 = scmp.ge.s32.totalorder %s13_s14, 8   ;;  %s2184_s13 = smov %s2186_s15 }
 0x164   :  { %12 = sbr.rel (!%p10_p5) target bundleno = 2 (0x2), region = 68 }

// kernel: _lambda_.17
= control target key start
LH: loop header
LB: loop body
LE: loop exit
PB: predicated region body
PF: predicated region fallthrough
CT: control target
= control target key end

     0   :  { %s1937_s12 = smov 0   ;;  %s1939_s13 = smov 0   ;;  %s2179_s0 = inlined_call_operand.vmem [shape: bf16[1792,288], index: 0, kind: input, shape index: {}]   ;;  %s2180_s1 = inlined_call_operand.vmem [shape: bf16[288,128], index: 1, kind: input, shape index: {}]   ;;  %s2181_s2 = inlined_call_operand.vmem [shape: f32[1,128], index: 2, kind: input, shape index: {}]   ;;  %s2182_s3 = inlined_call_operand.vmem [shape: bf16[1792,128], index: 3, kind: output, shape index: {}]  }
   0x1   :  { %s1941_s14 = smov 0  }
   0x2 LB: > { %s25_s15 = sadd.s32 1, %s1911_s13  ;;  %p1355_p0 = scmp.ge.s32.totalorder %s1915_s14, 1  ;;  %s1915_s14 = sphi %s1941_s14, %s13_s14   ;;  %s1911_s13 = sphi %s1939_s13, %s2184_s13   ;;  %s1907_s12 = sphi %s1937_s12, %s2183_s12  }
   0x3   : > { %p27_p1 = scmp.ge.s32.totalorder %s25_s15, 7  ;;  %p170_p2 = scmp.lt.s32.totalorder %s1915_s14, 8 }
   0x5   : > { %s2186_s15 = smov (%p27_p1, %s25_s15), 0  ;;  %p171_p3 = pnand %p1355_p0, %p170_p2 }
   0x6   : > { %v1811_v0 = vld [vmem:[%s2180_s1 + $0x40] sm:$0xff] (!%p171_p3)   ;;  %s1356_s18 = sshll.u32 (!%p171_p3), %s1907_s12, 5  ;;  %v1813_v2 = vld [vmem:[%s2180_s1 + $0x48] sm:$0xff] (!%p171_p3)   ;;  %v1815_v4 = vld [vmem:[%s2180_s1 + $0x50] sm:$0xff] (!%p171_p3)   ;;  %vm684_vm0 = vcmask (!%p171_p3), 261120  }
   0x7   : > { %174 = sbr.rel (%p171_p3) target bundleno = 353 (0x161), region = 32  ;;  %v1812_v1 = vld [vmem:[%s2180_s1] sm:$0xff] (!%p171_p3)   ;;  %1604 = vmatprep.subr.bf16.mxu0 (!%p171_p3), %v1811_v0  ;;  %1770 = vmatprep.subr.bf16.mxu1 (!%p171_p3), %v1811_v0  ;;  %p206_p4 = scmp.lt.s32.totalorder (!%p171_p3), %s1356_s18, 223  ;;  %v1814_v3 = vld [vmem:[%s2180_s1 + $0x8] sm:$0xff] (!%p171_p3)   ;;  %v1816_v5 = vld [vmem:[%s2180_s1 + $0x10] sm:$0xff] (!%p171_p3)  }
   0x8   : > { %1605 = vmatpush3.bf16.msra.mxu0 (!%p171_p3), %v1812_v1  ;;  %1778 = vmatpush3.bf16.msra.mxu1 (!%p171_p3), %v1812_v1  ;;  %v1817_v6 = vld [vmem:[%s2180_s1 + $0x58] sm:$0xff] (!%p171_p3)   ;;  %v1819_v8 = vld [vmem:[%s2180_s1 + $0x60] sm:$0xff] (!%p171_p3)   ;;  %v1821_v10 = vld [vmem:[%s2180_s1 + $0x68] sm:$0xff] (!%p171_p3)  }
   0x9   : > { %1606 = vmatprep.subr.bf16.mxu0 (!%p171_p3), %v1813_v2  ;;  %1771 = vmatprep.subr.bf16.mxu1 (!%p171_p3), %v1813_v2  ;;  %v1818_v7 = vld [vmem:[%s2180_s1 + $0x18] sm:$0xff] (!%p171_p3)   ;;  %v1820_v9 = vld [vmem:[%s2180_s1 + $0x20] sm:$0xff] (!%p171_p3)   ;;  %v1822_v13 = vld [vmem:[%s2180_s1 + $0x28] sm:$0xff] (!%p171_p3)  }
   0xa   : > { %v1823_v14 = vld [vmem:[%s2180_s1 + $0x70] sm:$0xff] (!%p171_p3)   ;;  %v1825_v16 = vld [vmem:[%s2180_s1 + $0x78] sm:$0xff] (!%p171_p3)   ;;  %v1833_v18 = vld [vmem:[%s2180_s1 + $0x80] sm:$0xff] (!%p171_p3)  }
   0xb   : > { %v1824_v15 = vld [vmem:[%s2180_s1 + $0x30] sm:$0xff] (!%p171_p3)   ;;  %v1826_v17 = vld [vmem:[%s2180_s1 + $0x38] sm:$0xff] (!%p171_p3)   ;;  %v1846_v23 = vld [vmem:[%s2180_s1 + $0x88] sm:$0xff] (!%p171_p3)  }
   0xc   : > { %1607 = vmatpush3.bf16.msra.mxu0 (!%p171_p3), %v1814_v3  ;;  %1779 = vmatpush3.bf16.msra.mxu1 (!%p171_p3), %v1814_v3 }
   0xd   : > { %1608 = vmatprep.subr.bf16.mxu0 (!%p171_p3), %v1815_v4  ;;  %1772 = vmatprep.subr.bf16.mxu1 (!%p171_p3), %v1815_v4 }
   0xe   : > { %s2188_s18 = smov (!%p206_p4, %s1356_s18), 223 }
   0xf   : > { %s1786_s4 = smul.u32 12, %s2188_s18  ;;  %s1359_s9 = sshll.u32 %s2188_s18, 2 }
  0x10   : > { %1609 = vmatpush3.bf16.msra.mxu0 %v1816_v5  ;;  %1780 = vmatpush3.bf16.msra.mxu1 %v1816_v5  ;;  %s2110_s12 = scalar_lea.vmem %s2182_s3, %s1359_s9 }
  0x11   : > { %1610 = vmatprep.subr.bf16.mxu0 %v1817_v6  ;;  %1773 = vmatprep.subr.bf16.mxu1 %v1817_v6  ;;  %s1988_s11 = scalar_lea.vmem %s2179_s0, %s1786_s4 }
  0x12   : > { %v1829_v11 = vld [vmem:[%s1988_s11 + $0x4] ss:$12 sps:$4 sm:$0xff]   ;;  %v1827_v19 = vld [vmem:[%s1988_s11] ss:$12 sps:$4 sm:$0xff]   ;;  %v1834_v21 = vld [vmem:[%s1988_s11 + $0x1c] ss:$12 sps:$4 sm:$0xff]  }
  0x13   : > { %v1832_v12 = vld [vmem:[%s1988_s11 + $0x124] ss:$12 sps:$4 sm:$0xff]   ;;  %765 = vmatprep.mubr.bf16.mxu0 %v1829_v11  ;;  %v1830_v20 = vld [vmem:[%s1988_s11 + $0x120] ss:$12 sps:$4 sm:$0xff]   ;;  %v1836_v22 = vld [vmem:[%s1988_s11 + $0x13c] ss:$12 sps:$4 sm:$0xff]  }
  0x14   : > { %1611 = vmatpush3.bf16.msra.mxu0 %v1818_v7  ;;  %1781 = vmatpush3.bf16.msra.mxu1 %v1818_v7  ;;  %v1838_v24 = vld [vmem:[%s1988_s11 + $0x18] ss:$12 sps:$4 sm:$0xff]   ;;  %v1840_v26 = vld [vmem:[%s1988_s11 + $0x34] ss:$12 sps:$4 sm:$0xff]   ;;  %v1844_v28 = vld [vmem:[%s1988_s11 + $0x30] ss:$12 sps:$4 sm:$0xff]  }
  0x15   : > { %1612 = vmatprep.subr.bf16.mxu0 %v1819_v8  ;;  %1774 = vmatprep.subr.bf16.mxu1 %v1819_v8  ;;  %v1839_v25 = vld [vmem:[%s1988_s11 + $0x138] ss:$12 sps:$4 sm:$0xff]   ;;  %v1842_v27 = vld [vmem:[%s1988_s11 + $0x154] ss:$12 sps:$4 sm:$0xff]   ;;  %v1845_v29 = vld [vmem:[%s1988_s11 + $0x150] ss:$12 sps:$4 sm:$0xff]  }
  0x16   : > { %861 = vmatprep.mubr.bf16.mxu1 %v1832_v12  ;;  %v1847_v30 = vld [vmem:[%s1988_s11 + $0x4c] ss:$12 sps:$4 sm:$0xff]   ;;  %v1851_v32 = vld [vmem:[%s1988_s11 + $0x48] ss:$12 sps:$4 sm:$0xff]   ;;  %v1853_v34 = vld [vmem:[%s1988_s11 + $0x64] ss:$12 sps:$4 sm:$0xff]  }
  0x17   : > { %v1849_v31 = vld [vmem:[%s1988_s11 + $0x16c] ss:$12 sps:$4 sm:$0xff]   ;;  %v1852_v33 = vld [vmem:[%s1988_s11 + $0x168] ss:$12 sps:$4 sm:$0xff]   ;;  %v1862_v41 = vld [vmem:[%s1988_s11 + $0x50] ss:$12 sps:$4 sm:$0xff]  }
  0x18   : > { %1613 = vmatpush3.bf16.msra.mxu0 %v1820_v9  ;;  %1782 = vmatpush3.bf16.msra.mxu1 %v1820_v9  ;;  %v1855_v35 = vld [vmem:[%s1988_s11 + $0x8] ss:$12 sps:$4 sm:$0xff]   ;;  %v1856_v36 = vld [vmem:[%s1988_s11 + $0x60] ss:$12 sps:$4 sm:$0xff]   ;;  %v1860_v39 = vld [vmem:[%s1988_s11 + $0x38] ss:$12 sps:$4 sm:$0xff]  }
  0x19   : > { %1614 = vmatprep.subr.bf16.mxu0 %v1821_v10  ;;  %1775 = vmatprep.subr.bf16.mxu1 %v1821_v10  ;;  %v1857_v37 = vld [vmem:[%s1988_s11 + $0x20] ss:$12 sps:$4 sm:$0xff]   ;;  %v1858_v38 = vld [vmem:[%s1988_s11 + $0x7c] ss:$12 sps:$4 sm:$0xff]   ;;  %v1861_v40 = vld [vmem:[%s1988_s11 + $0x78] ss:$12 sps:$4 sm:$0xff]  }
  0x1a   : > { %v1863_v42 = vld [vmem:[%s1988_s11 + $0x94] ss:$12 sps:$4 sm:$0xff]   ;;  %v1866_v44 = vld [vmem:[%s1988_s11 + $0x90] ss:$12 sps:$4 sm:$0xff]   ;;  %v1868_v46 = vld [vmem:[%s1988_s11 + $0xac] ss:$12 sps:$4 sm:$0xff]  }
  0x1b   : > { %v1865_v43 = vld [vmem:[%s1988_s11 + $0x68] ss:$12 sps:$4 sm:$0xff]   ;;  %v1867_v45 = vld [vmem:[%s1988_s11 + $0x80] ss:$12 sps:$4 sm:$0xff]   ;;  %v1870_v47 = vld [vmem:[%s1988_s11 + $0x98] ss:$12 sps:$4 sm:$0xff]  }
  0x1c   : > { %1615 = vmatpush3.bf16.msra.mxu0 %v1822_v13  ;;  %1783 = vmatpush3.bf16.msra.mxu1 %v1822_v13  ;;  %v1871_v48 = vld [vmem:[%s1988_s11 + $0xa8] ss:$12 sps:$4 sm:$0xff]   ;;  %v1872_v49 = vld [vmem:[%s1988_s11 + $0xb0] ss:$12 sps:$4 sm:$0xff]   ;;  %v1876_v52 = vld [vmem:[%s1988_s11 + $0xc0] ss:$12 sps:$4 sm:$0xff]  }
  0x1d   : > { %1616 = vmatprep.subr.bf16.mxu0 %v1823_v14  ;;  %1776 = vmatprep.subr.bf16.mxu1 %v1823_v14  ;;  %v1873_v50 = vld [vmem:[%s1988_s11 + $0xc4] ss:$12 sps:$4 sm:$0xff]   ;;  %v1875_v51 = vld [vmem:[%s1988_s11 + $0xc8] ss:$12 sps:$4 sm:$0xff]   ;;  %v1877_v53 = vld [vmem:[%s1988_s11 + $0xe0] ss:$12 sps:$4 sm:$0xff]  }
  0x1e   : > { %v1878_v54 = vld [vmem:[%s1988_s11 + $0xdc] ss:$12 sps:$4 sm:$0xff]   ;;  %v1880_v55 = vld [vmem:[%s1988_s11 + $0xf8] ss:$12 sps:$4 sm:$0xff]   ;;  %v1883_v58 = vld [vmem:[%s1988_s11 + $0xf4] ss:$12 sps:$4 sm:$0xff]  }
  0x1f   : > { %v1881_v56 = vld [vmem:[%s1988_s11 + $0xd8] ss:$12 sps:$4 sm:$0xff]   ;;  %v1882_v57 = vld [vmem:[%s1988_s11 + $0x110] ss:$12 sps:$4 sm:$0xff]   ;;  %v1885_v59 = vld [vmem:[%s1988_s11 + $0x128] ss:$12 sps:$4 sm:$0xff]  }
  0x20   : > { %1617 = vmatpush3.bf16.msra.mxu0 %v1824_v15  ;;  %1784 = vmatpush3.bf16.msra.mxu1 %v1824_v15  ;;  %v1886_v60 = vld [vmem:[%s1988_s11 + $0xf0] ss:$12 sps:$4 sm:$0xff]   ;;  %v1887_v61 = vld [vmem:[%s1988_s11 + $0x140] ss:$12 sps:$4 sm:$0xff]   ;;  %v1890_v63 = vld [vmem:[%s1988_s11 + $0x158] ss:$12 sps:$4 sm:$0xff]  }
  0x21   : > { %1618 = vmatprep.subr.bf16.mxu0 %v1825_v16  ;;  %1777 = vmatprep.subr.bf16.mxu1 %v1825_v16  ;;  %v1888_v62 = vld [vmem:[%s1988_s11 + $0x10c] ss:$12 sps:$4 sm:$0xff]   ;;  %v1891_v0 = vld [vmem:[%s1988_s11 + $0x108] ss:$12 sps:$4 sm:$0xff]   ;;  %v1892_v1 = vld [vmem:[%s1988_s11 + $0x170] ss:$12 sps:$4 sm:$0xff]  }
  0x24   : > { %1619 = vmatpush3.bf16.msra.mxu0 %v1826_v17  ;;  %1785 = vmatpush3.bf16.msra.mxu1 %v1826_v17 }
  0x25   : > { %1734 = vmatprep.subr.bf16.mxu1 %v1833_v18 }
  0x27   : > { %766 = vmatmul.mubr.bf16.vlgmr.msra.gmra.mrb[0].mxu0 %v1827_v19  ;;  %862 = vmatmul.mubr.bf16.vlgmr.msra.gmra.mrb[0].mxu1 %v1830_v20 }
  0x28   : > { %1735 = vmatpush3.bf16.msra.mxu1 %v1833_v18  ;;  %773 = vmatprep.mubr.bf16.mxu0 %v1834_v21 }
  0x29   : > { %869 = vmatprep.mubr.bf16.mxu1 %v1836_v22  ;;  %1736 = vmatprep.subr.bf16.mxu1 %v1846_v23 }
  0x2c   : > { %1737 = vmatpush3.bf16.msra.mxu1 %v1846_v23 }
  0x2f   : > { %774 = vmatmul.mubr.bf16.gmra.mrb[4].mxu0 %v1838_v24  ;;  %870 = vmatmul.mubr.bf16.gmra.mrb[4].mxu1 %v1839_v25 }
  0x30   : > { %781 = vmatprep.mubr.bf16.mxu0 %v1840_v26  ;;  %877 = vmatprep.mubr.bf16.mxu1 %v1842_v27 }
  0x37   : > { %782 = vmatmul.mubr.bf16.gmra.mrb[8].mxu0 %v1844_v28  ;;  %878 = vmatmul.mubr.bf16.gmra.mrb[8].mxu1 %v1845_v29 }
  0x38   : > { %789 = vmatprep.mubr.bf16.mxu0 %v1847_v30  ;;  %885 = vmatprep.mubr.bf16.mxu1 %v1849_v31 }
  0x3f   : > { %790 = vmatmul.mubr.bf16.gmra.mrb[12].mxu0 %v1851_v32  ;;  %886 = vmatmul.mubr.bf16.gmra.mrb[12].mxu1 %v1852_v33 }
  0x40   : > { %797 = vmatprep.mubr.bf16.mxu0 %v1853_v34  ;;  %1738 = vmatprep.mubr.msk.bf16.mxu1 %vm684_vm0, %v1855_v35 }
  0x47   : > { %798 = vmatmul.mubr.bf16.gmra.mrb[16].mxu0 %v1856_v36  ;;  %1739 = vmatmul.mubr.msk.bf16.vlgmr.msra.gmra.mrb[16].mxu1 %vm684_vm0, %v1857_v37 }
  0x48   : > { %805 = vmatprep.mubr.bf16.mxu0 %v1858_v38  ;;  %1742 = vmatprep.mubr.msk.bf16.mxu1 %vm684_vm0, %v1860_v39 }
  0x4f   : > { %806 = vmatmul.mubr.bf16.gmra.mrb[20].mxu0 %v1861_v40  ;;  %1743 = vmatmul.mubr.msk.bf16.gmra.mrb[20].mxu1 %vm684_vm0, %v1862_v41 }
  0x50   : > { %813 = vmatprep.mubr.bf16.mxu0 %v1863_v42  ;;  %1746 = vmatprep.mubr.msk.bf16.mxu1 %vm684_vm0, %v1865_v43 }
  0x57   : > { %814 = vmatmul.mubr.bf16.gmra.mrb[24].mxu0 %v1866_v44  ;;  %1747 = vmatmul.mubr.msk.bf16.gmra.mrb[24].mxu1 %vm684_vm0, %v1867_v45 }
  0x58   : > { %821 = vmatprep.mubr.bf16.mxu0 %v1868_v46  ;;  %1750 = vmatprep.mubr.msk.bf16.mxu1 %vm684_vm0, %v1870_v47 }
  0x5f   : > { %822 = vmatmul.mubr.bf16.gmra.mrb[28].mxu0 %v1871_v48  ;;  %1751 = vmatmul.mubr.msk.bf16.gmra.mrb[28].mxu1 %vm684_vm0, %v1872_v49 }
  0x60   : > { %829 = vmatprep.mubr.bf16.mxu0 %v1873_v50  ;;  %1754 = vmatprep.mubr.msk.bf16.mxu1 %vm684_vm0, %v1875_v51  ;;  %v2100_v50 = vld [vmem:[%s2181_s2] ss:$0 sm:$0xff] }
  0x67   : > { %830 = vmatmul.mubr.bf16.gmra.mrb[32].mxu0 %v1876_v52  ;;  %1755 = vmatmul.mubr.msk.bf16.gmra.mrb[32].mxu1 %vm684_vm0, %v1877_v53 }
  0x68   : > { %837 = vmatprep.mubr.bf16.mxu0 %v1878_v54  ;;  %1758 = vmatprep.mubr.msk.bf16.mxu1 %vm684_vm0, %v1880_v55 }
  0x6f   : > { %838 = vmatmul.mubr.bf16.gmra.mrb[36].mxu0 %v1881_v56  ;;  %1759 = vmatmul.mubr.msk.bf16.gmra.mrb[36].mxu1 %vm684_vm0, %v1882_v57 }
  0x70   : > { %845 = vmatprep.mubr.bf16.mxu0 %v1883_v58  ;;  %1762 = vmatprep.mubr.msk.bf16.mxu1 %vm684_vm0, %v1885_v59 }
  0x77   : > { %846 = vmatmul.mubr.bf16.gmra.mrb[40].mxu0 %v1886_v60  ;;  %1763 = vmatmul.mubr.msk.bf16.gmra.mrb[40].mxu1 %vm684_vm0, %v1887_v61 }
  0x78   : > { %853 = vmatprep.mubr.bf16.mxu0 %v1888_v62  ;;  %1766 = vmatprep.mubr.msk.bf16.mxu1 %vm684_vm0, %v1890_v63 }
  0x7f   : > { %854 = vmatmul.mubr.bf16.gmra.mrb[44].mxu0 %v1891_v0  ;;  %1767 = vmatmul.mubr.msk.bf16.gmra.mrb[44].mxu1 %vm684_vm0, %v1892_v1 }
  0xfa   : > { %v1620_v2 = vpop.f32.mrb[0].mxu0  ;;  %v1692_v3 = vpop.f32.mrb[0].mxu1 }
  0xfb   : > { %v1621_v4 = vpop.f32.mrb[1].mxu0  ;;  %v1693_v5 = vpop.f32.mrb[1].mxu1 }
  0xfc   : > { %v1622_v6 = vadd.f32 %v1621_v4, %v1620_v2  ;;  %v1623_v7 = vpop.f32.mrb[2].mxu0  ;;  %v2081_v8 = vadd.f32 %v1693_v5, %v1692_v3  ;;  %v1695_v9 = vpop.f32.mrb[2].mxu1 }
  0xfd   : > { %v1624_v10 = vpop.f32.mrb[3].mxu0  ;;  %v1696_v11 = vpop.f32.mrb[3].mxu1 }
  0xfe   : > { %v1625_v12 = vadd.f32 %v1624_v10, %v1623_v7  ;;  %v2083_v13 = vadd.f32 %v1696_v11, %v1695_v9  ;;  %v768_v54 = vadd.f32 %v1622_v6, %v2100_v50 }
 0x100   : > { %v771_v63 = vadd.f32 %v1625_v12, %v2100_v50 }
 0x102   : > { %v1626_v14 = vpop.f32.mrb[4].mxu0  ;;  %v1698_v15 = vpop.f32.mrb[4].mxu1 }
 0x103   : > { %v1627_v16 = vpop.f32.mrb[5].mxu0  ;;  %v1699_v17 = vpop.f32.mrb[5].mxu1 }
 0x104   : > { %v1628_v18 = vadd.f32 %v1627_v16, %v1626_v14  ;;  %v1629_v19 = vpop.f32.mrb[6].mxu0  ;;  %v2085_v20 = vadd.f32 %v1699_v17, %v1698_v15  ;;  %v1701_v21 = vpop.f32.mrb[6].mxu1 }
 0x105   : > { %v1630_v22 = vpop.f32.mrb[7].mxu0  ;;  %v1702_v23 = vpop.f32.mrb[7].mxu1 }
 0x106   : > { %v1631_v24 = vadd.f32 %v1630_v22, %v1629_v19  ;;  %v2087_v25 = vadd.f32 %v1702_v23, %v1701_v21  ;;  %v776_v51 = vadd.f32 %v1628_v18, %v2100_v50 }
 0x108   : > { %v779_v58 = vadd.f32 %v1631_v24, %v2100_v50 }
 0x10a   : > { %v1632_v26 = vpop.f32.mrb[8].mxu0  ;;  %v1704_v27 = vpop.f32.mrb[8].mxu1 }
 0x10b   : > { %v1633_v28 = vpop.f32.mrb[9].mxu0  ;;  %v1705_v29 = vpop.f32.mrb[9].mxu1 }
 0x10c   : > { %v1634_v30 = vadd.f32 %v1633_v28, %v1632_v26  ;;  %v1635_v31 = vpop.f32.mrb[10].mxu0  ;;  %v2089_v32 = vadd.f32 %v1705_v29, %v1704_v27  ;;  %v1707_v33 = vpop.f32.mrb[10].mxu1 }
 0x10d   : > { %v1636_v34 = vpop.f32.mrb[11].mxu0  ;;  %v1708_v35 = vpop.f32.mrb[11].mxu1 }
 0x10e   : > { %v1637_v36 = vadd.f32 %v1636_v34, %v1635_v31  ;;  %v2091_v37 = vadd.f32 %v1708_v35, %v1707_v33  ;;  %v784_v16 = vadd.f32 %v1634_v30, %v2100_v50 }
 0x110   : > { %v787_v27 = vadd.f32 %v1637_v36, %v2100_v50 }
 0x112   : > { %v1638_v38 = vpop.f32.mrb[12].mxu0  ;;  %v1710_v39 = vpop.f32.mrb[12].mxu1 }
 0x113   : > { %v1639_v40 = vpop.f32.mrb[13].mxu0  ;;  %v1711_v41 = vpop.f32.mrb[13].mxu1 }
 0x114   : > { %v1640_v42 = vadd.f32 %v1639_v40, %v1638_v38  ;;  %v1641_v43 = vpop.f32.mrb[14].mxu0  ;;  %v2093_v44 = vadd.f32 %v1711_v41, %v1710_v39  ;;  %v1713_v45 = vpop.f32.mrb[14].mxu1 }
 0x115   : > { %v1642_v46 = vpop.f32.mrb[15].mxu0  ;;  %v1714_v47 = vpop.f32.mrb[15].mxu1 }
 0x116   : > { %v1643_v48 = vadd.f32 %v1642_v46, %v1641_v43  ;;  %v2095_v49 = vadd.f32 %v1714_v47, %v1713_v45  ;;  %v792_v11 = vadd.f32 %v1640_v42, %v2100_v50 }
 0x118   : > { %v795_v21 = vadd.f32 %v1643_v48, %v2100_v50 }
 0x11a   : > { %v1644_v52 = vpop.f32.mrb[16].mxu0  ;;  %v1740_v53 = vpop.f32.mrb[16].mxu1 }
 0x11b   : > { %v937_v55 = vadd.f32 %v1740_v53, %v776_v51  ;;  %v1645_v56 = vpop.f32.mrb[17].mxu0  ;;  %v928_v57 = vpop.f32.mrb[17].mxu1 }
 0x11c   : > { %v1646_v59 = vadd.f32 %v1645_v56, %v1644_v52  ;;  %v929_v60 = vadd.f32 %v928_v57, %v768_v54  ;;  %v1647_v61 = vpop.f32.mrb[18].mxu0  ;;  %v1741_v62 = vpop.f32.mrb[18].mxu1 }
 0x11d   : > { %v940_v0 = vadd.f32 %v1741_v62, %v779_v58  ;;  %v1648_v1 = vpop.f32.mrb[19].mxu0  ;;  %v931_v2 = vpop.f32.mrb[19].mxu1  ;;  %v1057_v5 = vmax.f32 %v937_v55, 0.0 }
 0x11e   : > { %v1649_v3 = vadd.f32 %v1648_v1, %v1647_v61  ;;  %v932_v4 = vadd.f32 %v931_v2, %v771_v63  ;;  %v1055_v6 = vmax.f32 %v929_v60, 0.0  ;;  %v800_v46 = vadd.f32 %v1646_v59, %v2100_v50 }
 0x11f   : > { %v1058_v7 = vmax.f32 %v940_v0, 0.0 }
 0x120   : > { %v1056_v9 = vmax.f32 %v932_v4, 0.0  ;;  %v803_v56 = vadd.f32 %v1649_v3, %v2100_v50 }
 0x121   : > { %v1517_v10 = vpack.c.bf16 %v1058_v7, %v1057_v5 }
 0x122   : > { %v1512_v12 = vpack.c.bf16 %v1056_v9, %v1055_v6  ;;  %v1650_v14 = vpop.f32.mrb[20].mxu0  ;;  %v1744_v15 = vpop.f32.mrb[20].mxu1 }
 0x123   : > { %1589 = vst [vmem:[%s2110_s12 + $0x8] sm:$0xff] %v1517_v10   ;;  %v953_v17 = vadd.f32 %v1744_v15, %v792_v11  ;;  %v1651_v18 = vpop.f32.mrb[21].mxu0  ;;  %v944_v19 = vpop.f32.mrb[21].mxu1 }
 0x124   : > { %1513 = vst [vmem:[%s2110_s12] sm:$0xff] %v1512_v12   ;;  %v1652_v22 = vadd.f32 %v1651_v18, %v1650_v14  ;;  %v945_v23 = vadd.f32 %v944_v19, %v784_v16  ;;  %v1653_v24 = vpop.f32.mrb[22].mxu0  ;;  %v1745_v26 = vpop.f32.mrb[22].mxu1 }
 0x125   : > { %v956_v28 = vadd.f32 %v1745_v26, %v795_v21  ;;  %v1654_v29 = vpop.f32.mrb[23].mxu0  ;;  %v947_v31 = vpop.f32.mrb[23].mxu1  ;;  %v1061_v30 = vmax.f32 %v953_v17, 0.0 }
 0x126   : > { %v1655_v33 = vadd.f32 %v1654_v29, %v1653_v24  ;;  %v948_v34 = vadd.f32 %v947_v31, %v787_v27  ;;  %v1059_v38 = vmax.f32 %v945_v23, 0.0  ;;  %v808_v41 = vadd.f32 %v1652_v22, %v2100_v50 }
 0x127   : > { %v1062_v35 = vmax.f32 %v956_v28, 0.0 }
 0x128   : > { %v1060_v39 = vmax.f32 %v948_v34, 0.0  ;;  %v811_v51 = vadd.f32 %v1655_v33, %v2100_v50 }
 0x129   : > { %v1527_v40 = vpack.c.bf16 %v1062_v35, %v1061_v30 }
 0x12a   : > { %v1522_v42 = vpack.c.bf16 %v1060_v39, %v1059_v38  ;;  %v1656_v43 = vpop.f32.mrb[24].mxu0  ;;  %v1748_v45 = vpop.f32.mrb[24].mxu1 }
 0x12b   : > { %1591 = vst [vmem:[%s2110_s12 + $0x18] sm:$0xff] %v1527_v40   ;;  %v969_v36 = vadd.f32 %v1748_v45, %v808_v41  ;;  %v1657_v47 = vpop.f32.mrb[25].mxu0  ;;  %v960_v48 = vpop.f32.mrb[25].mxu1 }
 0x12c   : > { %1590 = vst [vmem:[%s2110_s12 + $0x10] sm:$0xff] %v1522_v42   ;;  %v1658_v52 = vadd.f32 %v1657_v47, %v1656_v43  ;;  %v961_v53 = vadd.f32 %v960_v48, %v800_v46  ;;  %v1659_v54 = vpop.f32.mrb[26].mxu0  ;;  %v1749_v55 = vpop.f32.mrb[26].mxu1 }
 0x12d   : > { %v972_v57 = vadd.f32 %v1749_v55, %v811_v51  ;;  %v1660_v58 = vpop.f32.mrb[27].mxu0  ;;  %v963_v60 = vpop.f32.mrb[27].mxu1  ;;  %v1065_v62 = vmax.f32 %v969_v36, 0.0 }
 0x12e   : > { %v1661_v61 = vadd.f32 %v1660_v58, %v1659_v54  ;;  %v964_v59 = vadd.f32 %v963_v60, %v803_v56  ;;  %v1063_v0 = vmax.f32 %v961_v53, 0.0  ;;  %v816_v6 = vadd.f32 %v1658_v52, %v2100_v50 }
 0x12f   : > { %v1066_v63 = vmax.f32 %v972_v57, 0.0 }
 0x130   : > { %v1064_v1 = vmax.f32 %v964_v59, 0.0  ;;  %v819_v15 = vadd.f32 %v1661_v61, %v2100_v50 }
 0x131   : > { %v1537_v2 = vpack.c.bf16 %v1066_v63, %v1065_v62 }
 0x132   : > { %v1532_v4 = vpack.c.bf16 %v1064_v1, %v1063_v0  ;;  %v1662_v5 = vpop.f32.mrb[28].mxu0  ;;  %v1752_v7 = vpop.f32.mrb[28].mxu1 }
 0x133   : > { %1593 = vst [vmem:[%s2110_s12 + $0x28] sm:$0xff] %v1537_v2   ;;  %v1663_v9 = vpop.f32.mrb[29].mxu0  ;;  %v976_v10 = vpop.f32.mrb[29].mxu1 }
 0x134   : > { %1592 = vst [vmem:[%s2110_s12 + $0x20] sm:$0xff] %v1532_v4   ;;  %v1664_v3 = vadd.f32 %v1663_v9, %v1662_v5  ;;  %v977_v11 = vadd.f32 %v976_v10, %v816_v6  ;;  %v1665_v12 = vpop.f32.mrb[30].mxu0  ;;  %v1753_v14 = vpop.f32.mrb[30].mxu1  ;;  %v872_v4 = vadd.f32 %v2085_v20, %v2100_v50  ;;  %v864_v9 = vadd.f32 %v2081_v8, %v2100_v50 }
 0x135   : > { %v1666_v16 = vpop.f32.mrb[31].mxu0  ;;  %v979_v17 = vpop.f32.mrb[31].mxu1 }
 0x136   : > { %v824_v18 = vadd.f32 %v1664_v3, %v2100_v50  ;;  %v1667_v19 = vadd.f32 %v1666_v16, %v1665_v12  ;;  %v980_v21 = vadd.f32 %v979_v17, %v819_v15  ;;  %v1067_v23 = vmax.f32 %v977_v11, 0.0 }
 0x137   : > { %v875_v12 = vadd.f32 %v2087_v25, %v2100_v50 }
 0x138   : > { %v985_v22 = vadd.f32 %v1752_v7, %v824_v18  ;;  %v827_v24 = vadd.f32 %v1667_v19, %v2100_v50  ;;  %v1068_v26 = vmax.f32 %v980_v21, 0.0 }
 0x13a   : > { %v988_v27 = vadd.f32 %v1753_v14, %v827_v24  ;;  %v1542_v28 = vpack.c.bf16 %v1068_v26, %v1067_v23  ;;  %v1668_v29 = vpop.f32.mrb[32].mxu0  ;;  %v1756_v31 = vpop.f32.mrb[32].mxu1  ;;  %v1069_v30 = vmax.f32 %v985_v22, 0.0  ;;  %v867_v22 = vadd.f32 %v2083_v13, %v2100_v50 }
 0x13b   : > { %v1669_v33 = vpop.f32.mrb[33].mxu0  ;;  %v992_v34 = vpop.f32.mrb[33].mxu1 }
 0x13c   : > { %v1070_v35 = vmax.f32 %v988_v27, 0.0  ;;  %1594 = vst [vmem:[%s2110_s12 + $0x30] sm:$0xff] %v1542_v28   ;;  %v1670_v38 = vadd.f32 %v1669_v33, %v1668_v29  ;;  %v1671_v39 = vpop.f32.mrb[34].mxu0  ;;  %v1757_v40 = vpop.f32.mrb[34].mxu1 }
 0x13d   : > { %v1672_v41 = vpop.f32.mrb[35].mxu0  ;;  %v995_v42 = vpop.f32.mrb[35].mxu1 }
 0x13e   : > { %v1547_v43 = vpack.c.bf16 %v1070_v35, %v1069_v30  ;;  %v832_v45 = vadd.f32 %v1670_v38, %v2100_v50  ;;  %v1673_v46 = vadd.f32 %v1672_v41, %v1671_v39  ;;  %v888_v35 = vadd.f32 %v2093_v44, %v2100_v50 }
 0x140   : > { %1595 = vst [vmem:[%s2110_s12 + $0x38] sm:$0xff] %v1547_v43   ;;  %v993_v36 = vadd.f32 %v992_v34, %v832_v45  ;;  %v835_v47 = vadd.f32 %v1673_v46, %v2100_v50  ;;  %v891_v46 = vadd.f32 %v2095_v49, %v2100_v50 }
 0x142   : > { %v996_v48 = vadd.f32 %v995_v42, %v835_v47  ;;  %v1674_v51 = vpop.f32.mrb[36].mxu0  ;;  %v2134_v52 = vpop.f32.mrb[36].mxu1  ;;  %v1071_v55 = vmax.f32 %v993_v36, 0.0 }
 0x143   : > { %v1675_v53 = vpop.f32.mrb[37].mxu0  ;;  %v1008_v54 = vpop.f32.mrb[37].mxu1 }
 0x144   : > { %v1072_v56 = vmax.f32 %v996_v48, 0.0  ;;  %v1676_v57 = vadd.f32 %v1675_v53, %v1674_v51  ;;  %v1677_v58 = vpop.f32.mrb[38].mxu0  ;;  %v2136_v60 = vpop.f32.mrb[38].mxu1 }
 0x145   : > { %v1678_v61 = vpop.f32.mrb[39].mxu0  ;;  %v1011_v59 = vpop.f32.mrb[39].mxu1 }
 0x146   : > { %v1552_v62 = vpack.c.bf16 %v1072_v56, %v1071_v55  ;;  %v840_v63 = vadd.f32 %v1676_v57, %v2100_v50  ;;  %v1679_v0 = vadd.f32 %v1678_v61, %v1677_v58 }
 0x148   : > { %1596 = vst [vmem:[%s2110_s12 + $0x40] sm:$0xff] %v1552_v62   ;;  %v1001_v1 = vadd.f32 %v1756_v31, %v840_v63  ;;  %v843_v2 = vadd.f32 %v1679_v0, %v2100_v50 }
 0x14a   : > { %v1004_v5 = vadd.f32 %v1757_v40, %v843_v2  ;;  %v1680_v7 = vpop.f32.mrb[40].mxu0  ;;  %v1764_v6 = vpop.f32.mrb[40].mxu1  ;;  %v1073_v14 = vmax.f32 %v1001_v1, 0.0  ;;  %v880_v40 = vadd.f32 %v2089_v32, %v2100_v50  ;;  %v883_v32 = vadd.f32 %v2091_v37, %v2100_v50 }
 0x14b   : > { %v1033_v10 = vadd.f32 %v1764_v6, %v872_v4  ;;  %v1681_v3 = vpop.f32.mrb[41].mxu0  ;;  %v1024_v11 = vpop.f32.mrb[41].mxu1 }
 0x14c   : > { %v1074_v15 = vmax.f32 %v1004_v5, 0.0  ;;  %v1682_v16 = vadd.f32 %v1681_v3, %v1680_v7  ;;  %v1025_v17 = vadd.f32 %v1024_v11, %v864_v9  ;;  %v1683_v18 = vpop.f32.mrb[42].mxu0  ;;  %v1765_v19 = vpop.f32.mrb[42].mxu1 }
 0x14d   : > { %v1036_v20 = vadd.f32 %v1765_v19, %v875_v12  ;;  %v1684_v21 = vpop.f32.mrb[43].mxu0  ;;  %v1027_v23 = vpop.f32.mrb[43].mxu1  ;;  %v1081_v27 = vmax.f32 %v1033_v10, 0.0 }
 0x14e   : > { %v1557_v8 = vpack.c.bf16 %v1074_v15, %v1073_v14  ;;  %v848_v24 = vadd.f32 %v1682_v16, %v2100_v50  ;;  %v1685_v26 = vadd.f32 %v1684_v21, %v1683_v18  ;;  %v1028_v28 = vadd.f32 %v1027_v23, %v867_v22 }
 0x14f   : > { %v1082_v25 = vmax.f32 %v1036_v20, 0.0  ;;  %v1079_v33 = vmax.f32 %v1025_v17, 0.0 }
 0x150   : > { %1597 = vst [vmem:[%s2110_s12 + $0x48] sm:$0xff] %v1557_v8   ;;  %v1009_v29 = vadd.f32 %v1008_v54, %v848_v24  ;;  %v851_v31 = vadd.f32 %v1685_v26, %v2100_v50  ;;  %v1080_v30 = vmax.f32 %v1028_v28, 0.0 }
 0x151   : > { %v1577_v34 = vpack.c.bf16 %v1082_v25, %v1081_v27 }
 0x152   : > { %v1012_v13 = vadd.f32 %v1011_v59, %v851_v31  ;;  %v1686_v38 = vpop.f32.mrb[44].mxu0  ;;  %v1768_v39 = vpop.f32.mrb[44].mxu1  ;;  %v1572_v41 = vpack.c.bf16 %v1080_v30, %v1079_v33  ;;  %v1075_v36 = vmax.f32 %v1009_v29, 0.0 }
 0x153   : > { %1601 = vst [vmem:[%s2110_s12 + $0x68] sm:$0xff] %v1577_v34   ;;  %v1049_v42 = vadd.f32 %v1768_v39, %v888_v35  ;;  %v1687_v43 = vpop.f32.mrb[45].mxu0  ;;  %v1040_v45 = vpop.f32.mrb[45].mxu1 }
 0x154   : > { %v1076_v47 = vmax.f32 %v1012_v13, 0.0  ;;  %v1688_v48 = vadd.f32 %v1687_v43, %v1686_v38  ;;  %v1041_v44 = vadd.f32 %v1040_v45, %v880_v40  ;;  %v1689_v51 = vpop.f32.mrb[46].mxu0  ;;  %v1769_v53 = vpop.f32.mrb[46].mxu1  ;;  %1600 = vst [vmem:[%s2110_s12 + $0x60] sm:$0xff] %v1572_v41  }
 0x155   : > { %v1052_v54 = vadd.f32 %v1769_v53, %v891_v46  ;;  %v1690_v55 = vpop.f32.mrb[47].mxu0  ;;  %v1043_v56 = vpop.f32.mrb[47].mxu1  ;;  %v1085_v61 = vmax.f32 %v1049_v42, 0.0 }
 0x156   : > { %v1562_v57 = vpack.c.bf16 %v1076_v47, %v1075_v36  ;;  %v856_v58 = vadd.f32 %v1688_v48, %v2100_v50  ;;  %v1691_v49 = vadd.f32 %v1690_v55, %v1689_v51  ;;  %v1044_v62 = vadd.f32 %v1043_v56, %v883_v32 }
 0x157   : > { %v1086_v59 = vmax.f32 %v1052_v54, 0.0  ;;  %v1083_v1 = vmax.f32 %v1041_v44, 0.0 }
 0x158   : > { %1598 = vst [vmem:[%s2110_s12 + $0x50] sm:$0xff] %v1562_v57   ;;  %v1017_v63 = vadd.f32 %v2134_v52, %v856_v58  ;;  %v859_v0 = vadd.f32 %v1691_v49, %v2100_v50  ;;  %v1084_v4 = vmax.f32 %v1044_v62, 0.0 }
 0x159   : > { %v1587_v2 = vpack.c.bf16 %v1086_v59, %v1085_v61 }
 0x15a   : > { %v1020_v37 = vadd.f32 %v2136_v60, %v859_v0  ;;  %v1582_v5 = vpack.c.bf16 %v1084_v4, %v1083_v1  ;;  %v1077_v7 = vmax.f32 %v1017_v63, 0.0 }
 0x15b   : > { %1603 = vst [vmem:[%s2110_s12 + $0x78] sm:$0xff] %v1587_v2  }
 0x15c   : > { %v1078_v6 = vmax.f32 %v1020_v37, 0.0  ;;  %1602 = vst [vmem:[%s2110_s12 + $0x70] sm:$0xff] %v1582_v5  }
 0x15e   : > { %v1567_v9 = vpack.c.bf16 %v1078_v6, %v1077_v7 }
 0x160   : > { %1599 = vst [vmem:[%s2110_s12 + $0x58] sm:$0xff] %v1567_v9  }
 0x161 PF: > { %s13_s14 = sadd.s32 1, %s1915_s14   ;;  %s2183_s12 = smov %s1911_s13 }
 0x162   : > { %p10_p5 = scmp.ge.s32.totalorder %s13_s14, 9   ;;  %s2184_s13 = smov %s2186_s15 }
 0x164   :  { %12 = sbr.rel (!%p10_p5) target bundleno = 2 (0x2), region = 68 }

// kernel: _lambda_.18
= control target key start
LH: loop header
LB: loop body
LE: loop exit
PB: predicated region body
PF: predicated region fallthrough
CT: control target
= control target key end

     0   :  { %s1365_s12 = smov 0   ;;  %s1367_s13 = smov 0   ;;  %s1534_s0 = inlined_call_operand.vmem [shape: bf16[2048,144], index: 0, kind: input, shape index: {}]   ;;  %s1535_s1 = inlined_call_operand.vmem [shape: bf16[144,128], index: 1, kind: input, shape index: {}]   ;;  %s1536_s2 = inlined_call_operand.vmem [shape: f32[1,128], index: 2, kind: input, shape index: {}]   ;;  %s1537_s3 = inlined_call_operand.vmem [shape: bf16[2048,128], index: 3, kind: output, shape index: {}]  }
   0x1   :  { %s1369_s14 = smov 0  }
   0x2 LB: > { %s25_s15 = sadd.s32 1, %s1338_s13  ;;  %p994_p0 = scmp.ge.s32.totalorder %s1342_s14, 1  ;;  %s1342_s14 = sphi %s1369_s14, %s13_s14   ;;  %s1338_s13 = sphi %s1367_s13, %s1539_s13   ;;  %s1334_s12 = sphi %s1365_s12, %s1538_s12  }
   0x3   : > { %p27_p1 = scmp.ge.s32.totalorder %s25_s15, 8  ;;  %p170_p2 = scmp.lt.s32.totalorder %s1342_s14, 9 }
   0x5   : > { %s1541_s15 = smov (%p27_p1, %s25_s15), 0  ;;  %p171_p3 = pnand %p994_p0, %p170_p2 }
   0x6   : > { %v1263_v0 = vld [vmem:[%s1535_s1] sm:$0xff] (!%p171_p3)   ;;  %v1344_v1 = vmov (!%p171_p3), 0   ;;  %s995_s18 = sshll.u32 (!%p171_p3), %s1334_s12, 5  ;;  %v1264_v2 = vld [vmem:[%s1535_s1 + $0x8] sm:$0xff] (!%p171_p3)   ;;  %v1265_v3 = vld [vmem:[%s1535_s1 + $0x10] sm:$0xff] (!%p171_p3)   ;;  %vm484_vm0 = vcmask (!%p171_p3), 130048  }
   0x7   : > { %174 = sbr.rel (%p171_p3) target bundleno = 320 (0x140), region = 32  ;;  %533 = vmatprep.subr.bf16.mxu0 (!%p171_p3), %v1344_v1  ;;  %1220 = vmatprep.subr.bf16.mxu1 (!%p171_p3), %v1344_v1  ;;  %p206_p4 = scmp.lt.s32.totalorder (!%p171_p3), %s995_s18, 255  ;;  %v1266_v4 = vld [vmem:[%s1535_s1 + $0x18] sm:$0xff] (!%p171_p3)   ;;  %v1267_v7 = vld [vmem:[%s1535_s1 + $0x20] sm:$0xff] (!%p171_p3)   ;;  %v1268_v8 = vld [vmem:[%s1535_s1 + $0x28] sm:$0xff] (!%p171_p3)  }
   0x8   : > { %534 = vmatpush1.bf16.msra.mxu0 (!%p171_p3), %v1263_v0  ;;  %1229 = vmatpush1.bf16.msra.mxu1 (!%p171_p3), %v1263_v0  ;;  %v1269_v9 = vld [vmem:[%s1535_s1 + $0x30] sm:$0xff] (!%p171_p3)   ;;  %v1270_v10 = vld [vmem:[%s1535_s1 + $0x38] sm:$0xff] (!%p171_p3)   ;;  %v1271_v11 = vld [vmem:[%s1535_s1 + $0x40] sm:$0xff] (!%p171_p3)  }
   0x9   : > { %535 = vmatprep.subr.bf16.mxu0 (!%p171_p3), %v1344_v1  ;;  %1221 = vmatprep.subr.bf16.mxu1 (!%p171_p3), %v1344_v1  ;;  %v1469_v42 = vld [vmem:[%s1536_s2] ss:$0 sm:$0xff] (!%p171_p3) }
   0xc   : > { %536 = vmatpush1.bf16.msra.mxu0 (!%p171_p3), %v1264_v2  ;;  %1230 = vmatpush1.bf16.msra.mxu1 (!%p171_p3), %v1264_v2 }
   0xd   : > { %537 = vmatprep.subr.bf16.mxu0 (!%p171_p3), %v1344_v1  ;;  %1222 = vmatprep.subr.bf16.mxu1 (!%p171_p3), %v1344_v1 }
   0xe   : > { %s1543_s18 = smov (!%p206_p4, %s995_s18), 255 }
   0xf   : > { %s1092_s23 = sshll.u32 %s1543_s18, 3  ;;  %s999_s17 = sshll.u32 %s1543_s18, 2 }
  0x10   : > { %s1398_s26 = scalar_lea.vmem %s1534_s0, %s1092_s23  ;;  %538 = vmatpush1.bf16.msra.mxu0 %v1265_v3  ;;  %1231 = vmatpush1.bf16.msra.mxu1 %v1265_v3  ;;  %s1479_s21 = scalar_lea.vmem %s1537_s3, %s999_s17 }
  0x11   : > { %v1274_v5 = vld [vmem:[%s1398_s26 + $0x4] ss:$8 sps:$4 sm:$0xff]   ;;  %539 = vmatprep.subr.bf16.mxu0 %v1344_v1  ;;  %1223 = vmatprep.subr.bf16.mxu1 %v1344_v1  ;;  %v1272_v12 = vld [vmem:[%s1398_s26] ss:$8 sps:$4 sm:$0xff]   ;;  %v1278_v14 = vld [vmem:[%s1398_s26 + $0x14] ss:$8 sps:$4 sm:$0xff]  }
  0x12   : > { %v1277_v6 = vld [vmem:[%s1398_s26 + $0x84] ss:$8 sps:$4 sm:$0xff]   ;;  %1042 = vmatprep.mubr.msk.bf16.mxu0 %vm484_vm0, %v1274_v5  ;;  %v1275_v13 = vld [vmem:[%s1398_s26 + $0x80] ss:$8 sps:$4 sm:$0xff]   ;;  %v1280_v15 = vld [vmem:[%s1398_s26 + $0x94] ss:$8 sps:$4 sm:$0xff]  }
  0x13   : > { %1050 = vmatprep.mubr.msk.bf16.mxu1 %vm484_vm0, %v1277_v6  ;;  %v1282_v16 = vld [vmem:[%s1398_s26 + $0x10] ss:$8 sps:$4 sm:$0xff]   ;;  %v1284_v18 = vld [vmem:[%s1398_s26 + $0x24] ss:$8 sps:$4 sm:$0xff]   ;;  %v1288_v20 = vld [vmem:[%s1398_s26 + $0x20] ss:$8 sps:$4 sm:$0xff]  }
  0x14   : > { %540 = vmatpush1.bf16.msra.mxu0 %v1266_v4  ;;  %1232 = vmatpush1.bf16.msra.mxu1 %v1266_v4  ;;  %v1283_v17 = vld [vmem:[%s1398_s26 + $0x90] ss:$8 sps:$4 sm:$0xff]   ;;  %v1286_v19 = vld [vmem:[%s1398_s26 + $0xa4] ss:$8 sps:$4 sm:$0xff]   ;;  %v1289_v21 = vld [vmem:[%s1398_s26 + $0xa0] ss:$8 sps:$4 sm:$0xff]  }
  0x15   : > { %541 = vmatprep.subr.bf16.mxu0 %v1344_v1  ;;  %1224 = vmatprep.subr.bf16.mxu1 %v1344_v1  ;;  %v1290_v22 = vld [vmem:[%s1398_s26 + $0x34] ss:$8 sps:$4 sm:$0xff]   ;;  %v1294_v24 = vld [vmem:[%s1398_s26 + $0x30] ss:$8 sps:$4 sm:$0xff]   ;;  %v1296_v26 = vld [vmem:[%s1398_s26 + $0x44] ss:$8 sps:$4 sm:$0xff]  }
  0x16   : > { %v1292_v23 = vld [vmem:[%s1398_s26 + $0xb4] ss:$8 sps:$4 sm:$0xff]   ;;  %v1295_v25 = vld [vmem:[%s1398_s26 + $0xb0] ss:$8 sps:$4 sm:$0xff]   ;;  %v1298_v27 = vld [vmem:[%s1398_s26 + $0xc4] ss:$8 sps:$4 sm:$0xff]  }
  0x17   : > { %v1300_v28 = vld [vmem:[%s1398_s26 + $0x40] ss:$8 sps:$4 sm:$0xff]   ;;  %v1302_v30 = vld [vmem:[%s1398_s26 + $0x54] ss:$8 sps:$4 sm:$0xff]   ;;  %v1306_v32 = vld [vmem:[%s1398_s26 + $0x50] ss:$8 sps:$4 sm:$0xff]  }
  0x18   : > { %542 = vmatpush1.bf16.msra.mxu0 %v1267_v7  ;;  %1233 = vmatpush1.bf16.msra.mxu1 %v1267_v7  ;;  %v1301_v29 = vld [vmem:[%s1398_s26 + $0xc0] ss:$8 sps:$4 sm:$0xff]   ;;  %v1304_v31 = vld [vmem:[%s1398_s26 + $0xd4] ss:$8 sps:$4 sm:$0xff]   ;;  %v1307_v33 = vld [vmem:[%s1398_s26 + $0xd0] ss:$8 sps:$4 sm:$0xff]  }
  0x19   : > { %543 = vmatprep.subr.bf16.mxu0 %v1344_v1  ;;  %1225 = vmatprep.subr.bf16.mxu1 %v1344_v1  ;;  %v1308_v34 = vld [vmem:[%s1398_s26 + $0x64] ss:$8 sps:$4 sm:$0xff]   ;;  %v1312_v36 = vld [vmem:[%s1398_s26 + $0x60] ss:$8 sps:$4 sm:$0xff]   ;;  %v1314_v38 = vld [vmem:[%s1398_s26 + $0x74] ss:$8 sps:$4 sm:$0xff]  }
  0x1a   : > { %v1310_v35 = vld [vmem:[%s1398_s26 + $0xe4] ss:$8 sps:$4 sm:$0xff]   ;;  %v1313_v37 = vld [vmem:[%s1398_s26 + $0xe0] ss:$8 sps:$4 sm:$0xff]   ;;  %v1316_v39 = vld [vmem:[%s1398_s26 + $0xf4] ss:$8 sps:$4 sm:$0xff]  }
  0x1b   : > { %v1318_v40 = vld [vmem:[%s1398_s26 + $0x70] ss:$8 sps:$4 sm:$0xff]  }
  0x1c   : > { %544 = vmatpush1.bf16.msra.mxu0 %v1268_v8  ;;  %1234 = vmatpush1.bf16.msra.mxu1 %v1268_v8  ;;  %v1319_v41 = vld [vmem:[%s1398_s26 + $0xf0] ss:$8 sps:$4 sm:$0xff]  }
  0x1d   : > { %545 = vmatprep.subr.bf16.mxu0 %v1344_v1  ;;  %1226 = vmatprep.subr.bf16.mxu1 %v1344_v1 }
  0x20   : > { %546 = vmatpush1.bf16.msra.mxu0 %v1269_v9  ;;  %1235 = vmatpush1.bf16.msra.mxu1 %v1269_v9 }
  0x21   : > { %547 = vmatprep.subr.bf16.mxu0 %v1344_v1  ;;  %1227 = vmatprep.subr.bf16.mxu1 %v1344_v1 }
  0x24   : > { %548 = vmatpush1.bf16.msra.mxu0 %v1270_v10  ;;  %1236 = vmatpush1.bf16.msra.mxu1 %v1270_v10 }
  0x25   : > { %549 = vmatprep.subr.bf16.mxu0 %v1344_v1  ;;  %1228 = vmatprep.subr.bf16.mxu1 %v1344_v1 }
  0x28   : > { %550 = vmatpush1.bf16.msra.mxu0 %v1271_v11  ;;  %1237 = vmatpush1.bf16.msra.mxu1 %v1271_v11 }
  0x2b   : > { %566 = vmatmul.mubr.bf16.vlgmr.msra.gmra.mrb[0].mxu0 %v1272_v12  ;;  %630 = vmatmul.mubr.bf16.vlgmr.msra.gmra.mrb[0].mxu1 %v1275_v13 }
  0x2c   : > { %1043 = vmatprep.mubr.msk.bf16.mxu0 %vm484_vm0, %v1278_v14  ;;  %1051 = vmatprep.mubr.msk.bf16.mxu1 %vm484_vm0, %v1280_v15 }
  0x33   : > { %574 = vmatmul.mubr.bf16.gmra.mrb[4].mxu0 %v1282_v16  ;;  %638 = vmatmul.mubr.bf16.gmra.mrb[4].mxu1 %v1283_v17 }
  0x34   : > { %1044 = vmatprep.mubr.msk.bf16.mxu0 %vm484_vm0, %v1284_v18  ;;  %1052 = vmatprep.mubr.msk.bf16.mxu1 %vm484_vm0, %v1286_v19 }
  0x3b   : > { %582 = vmatmul.mubr.bf16.gmra.mrb[8].mxu0 %v1288_v20  ;;  %646 = vmatmul.mubr.bf16.gmra.mrb[8].mxu1 %v1289_v21 }
  0x3c   : > { %1045 = vmatprep.mubr.msk.bf16.mxu0 %vm484_vm0, %v1290_v22  ;;  %1053 = vmatprep.mubr.msk.bf16.mxu1 %vm484_vm0, %v1292_v23 }
  0x43   : > { %590 = vmatmul.mubr.bf16.gmra.mrb[12].mxu0 %v1294_v24  ;;  %654 = vmatmul.mubr.bf16.gmra.mrb[12].mxu1 %v1295_v25 }
  0x44   : > { %1046 = vmatprep.mubr.msk.bf16.mxu0 %vm484_vm0, %v1296_v26  ;;  %1054 = vmatprep.mubr.msk.bf16.mxu1 %vm484_vm0, %v1298_v27 }
  0x4b   : > { %598 = vmatmul.mubr.bf16.gmra.mrb[16].mxu0 %v1300_v28  ;;  %662 = vmatmul.mubr.bf16.gmra.mrb[16].mxu1 %v1301_v29 }
  0x4c   : > { %1047 = vmatprep.mubr.msk.bf16.mxu0 %vm484_vm0, %v1302_v30  ;;  %1055 = vmatprep.mubr.msk.bf16.mxu1 %vm484_vm0, %v1304_v31 }
  0x53   : > { %606 = vmatmul.mubr.bf16.gmra.mrb[20].mxu0 %v1306_v32  ;;  %670 = vmatmul.mubr.bf16.gmra.mrb[20].mxu1 %v1307_v33 }
  0x54   : > { %1048 = vmatprep.mubr.msk.bf16.mxu0 %vm484_vm0, %v1308_v34  ;;  %1056 = vmatprep.mubr.msk.bf16.mxu1 %vm484_vm0, %v1310_v35 }
  0x5b   : > { %614 = vmatmul.mubr.bf16.gmra.mrb[24].mxu0 %v1312_v36  ;;  %678 = vmatmul.mubr.bf16.gmra.mrb[24].mxu1 %v1313_v37 }
  0x5c   : > { %1049 = vmatprep.mubr.msk.bf16.mxu0 %vm484_vm0, %v1314_v38  ;;  %1057 = vmatprep.mubr.msk.bf16.mxu1 %vm484_vm0, %v1316_v39 }
  0x63   : > { %622 = vmatmul.mubr.bf16.gmra.mrb[28].mxu0 %v1318_v40  ;;  %686 = vmatmul.mubr.bf16.gmra.mrb[28].mxu1 %v1319_v41 }
  0xfe   : > { %v567_v43 = vpop.f32.mrb[0].mxu0  ;;  %v631_v44 = vpop.f32.mrb[0].mxu1 }
  0xff   : > { %v568_v45 = vadd.f32 %v1469_v42, %v567_v43  ;;  %v632_v46 = vadd.f32 %v1469_v42, %v631_v44  ;;  %v569_v47 = vpop.f32.mrb[1].mxu0  ;;  %v633_v48 = vpop.f32.mrb[1].mxu1 }
 0x100   : > { %v570_v49 = vpop.f32.mrb[2].mxu0  ;;  %v634_v50 = vpop.f32.mrb[2].mxu1 }
 0x101   : > { %v571_v51 = vadd.f32 %v1469_v42, %v570_v49  ;;  %v635_v52 = vadd.f32 %v1469_v42, %v634_v50  ;;  %v572_v53 = vpop.f32.mrb[3].mxu0  ;;  %v636_v54 = vpop.f32.mrb[3].mxu1  ;;  %v694_v55 = vmax.f32 %v568_v45, 0.0  ;;  %v710_v56 = vmax.f32 %v632_v46, 0.0 }
 0x103   : > { %v695_v57 = vmax.f32 %v571_v51, 0.0  ;;  %v711_v58 = vmax.f32 %v635_v52, 0.0 }
 0x105   : > { %v1128_v59 = vpack.c.bf16 %v695_v57, %v694_v55  ;;  %v1168_v60 = vpack.c.bf16 %v711_v58, %v710_v56 }
 0x106   : > { %v575_v61 = vpop.f32.mrb[4].mxu0  ;;  %v639_v62 = vpop.f32.mrb[4].mxu1 }
 0x107   : > { %1129 = vst [vmem:[%s1479_s21] sm:$0xff] %v1128_v59   ;;  %1212 = vst [vmem:[%s1479_s21 + $0x40] sm:$0xff] %v1168_v60   ;;  %v576_v63 = vadd.f32 %v1469_v42, %v575_v61  ;;  %v640_v0 = vadd.f32 %v1469_v42, %v639_v62  ;;  %v577_v1 = vpop.f32.mrb[5].mxu0  ;;  %v641_v2 = vpop.f32.mrb[5].mxu1 }
 0x108   : > { %v578_v3 = vpop.f32.mrb[6].mxu0  ;;  %v642_v4 = vpop.f32.mrb[6].mxu1 }
 0x109   : > { %v579_v5 = vadd.f32 %v1469_v42, %v578_v3  ;;  %v643_v6 = vadd.f32 %v1469_v42, %v642_v4  ;;  %v580_v7 = vpop.f32.mrb[7].mxu0  ;;  %v644_v8 = vpop.f32.mrb[7].mxu1  ;;  %v696_v9 = vmax.f32 %v576_v63, 0.0  ;;  %v712_v10 = vmax.f32 %v640_v0, 0.0 }
 0x10b   : > { %v697_v11 = vmax.f32 %v579_v5, 0.0  ;;  %v713_v12 = vmax.f32 %v643_v6, 0.0 }
 0x10d   : > { %v1133_v13 = vpack.c.bf16 %v697_v11, %v696_v9  ;;  %v1173_v14 = vpack.c.bf16 %v713_v12, %v712_v10 }
 0x10e   : > { %v583_v15 = vpop.f32.mrb[8].mxu0  ;;  %v647_v16 = vpop.f32.mrb[8].mxu1 }
 0x10f   : > { %1205 = vst [vmem:[%s1479_s21 + $0x8] sm:$0xff] %v1133_v13   ;;  %1213 = vst [vmem:[%s1479_s21 + $0x48] sm:$0xff] %v1173_v14   ;;  %v584_v17 = vadd.f32 %v1469_v42, %v583_v15  ;;  %v648_v18 = vadd.f32 %v1469_v42, %v647_v16  ;;  %v585_v19 = vpop.f32.mrb[9].mxu0  ;;  %v649_v20 = vpop.f32.mrb[9].mxu1 }
 0x110   : > { %v586_v21 = vpop.f32.mrb[10].mxu0  ;;  %v650_v22 = vpop.f32.mrb[10].mxu1 }
 0x111   : > { %v587_v23 = vadd.f32 %v1469_v42, %v586_v21  ;;  %v651_v24 = vadd.f32 %v1469_v42, %v650_v22  ;;  %v588_v25 = vpop.f32.mrb[11].mxu0  ;;  %v652_v26 = vpop.f32.mrb[11].mxu1  ;;  %v698_v27 = vmax.f32 %v584_v17, 0.0  ;;  %v714_v28 = vmax.f32 %v648_v18, 0.0 }
 0x113   : > { %v699_v29 = vmax.f32 %v587_v23, 0.0  ;;  %v715_v30 = vmax.f32 %v651_v24, 0.0 }
 0x115   : > { %v1138_v31 = vpack.c.bf16 %v699_v29, %v698_v27  ;;  %v1178_v32 = vpack.c.bf16 %v715_v30, %v714_v28 }
 0x116   : > { %v591_v33 = vpop.f32.mrb[12].mxu0  ;;  %v655_v34 = vpop.f32.mrb[12].mxu1 }
 0x117   : > { %1206 = vst [vmem:[%s1479_s21 + $0x10] sm:$0xff] %v1138_v31   ;;  %1214 = vst [vmem:[%s1479_s21 + $0x50] sm:$0xff] %v1178_v32   ;;  %v592_v35 = vadd.f32 %v1469_v42, %v591_v33  ;;  %v656_v36 = vadd.f32 %v1469_v42, %v655_v34  ;;  %v593_v37 = vpop.f32.mrb[13].mxu0  ;;  %v657_v38 = vpop.f32.mrb[13].mxu1 }
 0x118   : > { %v594_v39 = vpop.f32.mrb[14].mxu0  ;;  %v658_v40 = vpop.f32.mrb[14].mxu1 }
 0x119   : > { %v595_v41 = vadd.f32 %v1469_v42, %v594_v39  ;;  %v659_v43 = vadd.f32 %v1469_v42, %v658_v40  ;;  %v596_v44 = vpop.f32.mrb[15].mxu0  ;;  %v660_v45 = vpop.f32.mrb[15].mxu1  ;;  %v700_v46 = vmax.f32 %v592_v35, 0.0  ;;  %v716_v47 = vmax.f32 %v656_v36, 0.0 }
 0x11b   : > { %v701_v48 = vmax.f32 %v595_v41, 0.0  ;;  %v717_v49 = vmax.f32 %v659_v43, 0.0 }
 0x11d   : > { %v1143_v50 = vpack.c.bf16 %v701_v48, %v700_v46  ;;  %v1183_v51 = vpack.c.bf16 %v717_v49, %v716_v47 }
 0x11e   : > { %v599_v52 = vpop.f32.mrb[16].mxu0  ;;  %v663_v53 = vpop.f32.mrb[16].mxu1 }
 0x11f   : > { %1207 = vst [vmem:[%s1479_s21 + $0x18] sm:$0xff] %v1143_v50   ;;  %1215 = vst [vmem:[%s1479_s21 + $0x58] sm:$0xff] %v1183_v51   ;;  %v600_v54 = vadd.f32 %v1469_v42, %v599_v52  ;;  %v664_v55 = vadd.f32 %v1469_v42, %v663_v53  ;;  %v601_v56 = vpop.f32.mrb[17].mxu0  ;;  %v665_v57 = vpop.f32.mrb[17].mxu1 }
 0x120   : > { %v602_v58 = vpop.f32.mrb[18].mxu0  ;;  %v666_v59 = vpop.f32.mrb[18].mxu1 }
 0x121   : > { %v603_v60 = vadd.f32 %v1469_v42, %v602_v58  ;;  %v667_v61 = vadd.f32 %v1469_v42, %v666_v59  ;;  %v604_v62 = vpop.f32.mrb[19].mxu0  ;;  %v668_v63 = vpop.f32.mrb[19].mxu1  ;;  %v702_v0 = vmax.f32 %v600_v54, 0.0  ;;  %v718_v1 = vmax.f32 %v664_v55, 0.0 }
 0x123   : > { %v703_v2 = vmax.f32 %v603_v60, 0.0  ;;  %v719_v3 = vmax.f32 %v667_v61, 0.0 }
 0x125   : > { %v1148_v4 = vpack.c.bf16 %v703_v2, %v702_v0  ;;  %v1188_v5 = vpack.c.bf16 %v719_v3, %v718_v1 }
 0x126   : > { %v607_v6 = vpop.f32.mrb[20].mxu0  ;;  %v671_v7 = vpop.f32.mrb[20].mxu1 }
 0x127   : > { %1208 = vst [vmem:[%s1479_s21 + $0x20] sm:$0xff] %v1148_v4   ;;  %1216 = vst [vmem:[%s1479_s21 + $0x60] sm:$0xff] %v1188_v5   ;;  %v608_v8 = vadd.f32 %v1469_v42, %v607_v6  ;;  %v672_v9 = vadd.f32 %v1469_v42, %v671_v7  ;;  %v609_v10 = vpop.f32.mrb[21].mxu0  ;;  %v673_v11 = vpop.f32.mrb[21].mxu1 }
 0x128   : > { %v610_v12 = vpop.f32.mrb[22].mxu0  ;;  %v674_v13 = vpop.f32.mrb[22].mxu1 }
 0x129   : > { %v611_v14 = vadd.f32 %v1469_v42, %v610_v12  ;;  %v675_v15 = vadd.f32 %v1469_v42, %v674_v13  ;;  %v612_v16 = vpop.f32.mrb[23].mxu0  ;;  %v676_v17 = vpop.f32.mrb[23].mxu1  ;;  %v704_v18 = vmax.f32 %v608_v8, 0.0  ;;  %v720_v19 = vmax.f32 %v672_v9, 0.0 }
 0x12b   : > { %v705_v20 = vmax.f32 %v611_v14, 0.0  ;;  %v721_v21 = vmax.f32 %v675_v15, 0.0 }
 0x12d   : > { %v1153_v22 = vpack.c.bf16 %v705_v20, %v704_v18  ;;  %v1193_v23 = vpack.c.bf16 %v721_v21, %v720_v19 }
 0x12e   : > { %v615_v24 = vpop.f32.mrb[24].mxu0  ;;  %v679_v25 = vpop.f32.mrb[24].mxu1 }
 0x12f   : > { %1209 = vst [vmem:[%s1479_s21 + $0x28] sm:$0xff] %v1153_v22   ;;  %1217 = vst [vmem:[%s1479_s21 + $0x68] sm:$0xff] %v1193_v23   ;;  %v616_v26 = vadd.f32 %v1469_v42, %v615_v24  ;;  %v680_v27 = vadd.f32 %v1469_v42, %v679_v25  ;;  %v617_v28 = vpop.f32.mrb[25].mxu0  ;;  %v681_v29 = vpop.f32.mrb[25].mxu1 }
 0x130   : > { %v618_v30 = vpop.f32.mrb[26].mxu0  ;;  %v682_v31 = vpop.f32.mrb[26].mxu1 }
 0x131   : > { %v619_v32 = vadd.f32 %v1469_v42, %v618_v30  ;;  %v683_v33 = vadd.f32 %v1469_v42, %v682_v31  ;;  %v620_v34 = vpop.f32.mrb[27].mxu0  ;;  %v684_v35 = vpop.f32.mrb[27].mxu1  ;;  %v706_v36 = vmax.f32 %v616_v26, 0.0  ;;  %v722_v37 = vmax.f32 %v680_v27, 0.0 }
 0x133   : > { %v707_v38 = vmax.f32 %v619_v32, 0.0  ;;  %v723_v39 = vmax.f32 %v683_v33, 0.0 }
 0x135   : > { %v1158_v40 = vpack.c.bf16 %v707_v38, %v706_v36  ;;  %v1198_v41 = vpack.c.bf16 %v723_v39, %v722_v37 }
 0x136   : > { %v623_v43 = vpop.f32.mrb[28].mxu0  ;;  %v687_v44 = vpop.f32.mrb[28].mxu1 }
 0x137   : > { %1210 = vst [vmem:[%s1479_s21 + $0x30] sm:$0xff] %v1158_v40   ;;  %1218 = vst [vmem:[%s1479_s21 + $0x70] sm:$0xff] %v1198_v41   ;;  %v624_v45 = vadd.f32 %v1469_v42, %v623_v43  ;;  %v688_v46 = vadd.f32 %v1469_v42, %v687_v44  ;;  %v625_v47 = vpop.f32.mrb[29].mxu0  ;;  %v689_v48 = vpop.f32.mrb[29].mxu1 }
 0x138   : > { %v626_v49 = vpop.f32.mrb[30].mxu0  ;;  %v690_v50 = vpop.f32.mrb[30].mxu1 }
 0x139   : > { %v627_v51 = vadd.f32 %v1469_v42, %v626_v49  ;;  %v691_v52 = vadd.f32 %v1469_v42, %v690_v50  ;;  %v628_v53 = vpop.f32.mrb[31].mxu0  ;;  %v692_v54 = vpop.f32.mrb[31].mxu1  ;;  %v708_v55 = vmax.f32 %v624_v45, 0.0  ;;  %v724_v56 = vmax.f32 %v688_v46, 0.0 }
 0x13b   : > { %v709_v57 = vmax.f32 %v627_v51, 0.0  ;;  %v725_v58 = vmax.f32 %v691_v52, 0.0 }
 0x13d   : > { %v1163_v59 = vpack.c.bf16 %v709_v57, %v708_v55  ;;  %v1203_v60 = vpack.c.bf16 %v725_v58, %v724_v56 }
 0x13f   : > { %1211 = vst [vmem:[%s1479_s21 + $0x38] sm:$0xff] %v1163_v59   ;;  %1219 = vst [vmem:[%s1479_s21 + $0x78] sm:$0xff] %v1203_v60  }
 0x140 PF: > { %s13_s14 = sadd.s32 1, %s1342_s14   ;;  %s1538_s12 = smov %s1338_s13 }
 0x141   : > { %p10_p5 = scmp.ge.s32.totalorder %s13_s14, 10   ;;  %s1539_s13 = smov %s1541_s15 }
 0x143   :  { %12 = sbr.rel (!%p10_p5) target bundleno = 2 (0x2), region = 68 }

// kernel: _lambda_.19
= control target key start
LH: loop header
LB: loop body
LE: loop exit
PB: predicated region body
PF: predicated region fallthrough
CT: control target
= control target key end

     0   :  { %s1142_s12 = smov 0   ;;  %s1144_s13 = smov 0   ;;  %s1330_s0 = inlined_call_operand.vmem [shape: bf16[1792,144], index: 0, kind: input, shape index: {}]   ;;  %s1331_s1 = inlined_call_operand.vmem [shape: bf16[144,128], index: 1, kind: input, shape index: {}]   ;;  %s1332_s2 = inlined_call_operand.vmem [shape: f32[1,128], index: 2, kind: input, shape index: {}]   ;;  %s1333_s3 = inlined_call_operand.vmem [shape: f32[1792,128], index: 3, kind: output, shape index: {}]  }
   0x1   :  { %s1146_s14 = smov 0  }
   0x2 LB: > { %s25_s15 = sadd.s32 1, %s1115_s13  ;;  %p866_p0 = scmp.ge.s32.totalorder %s1119_s14, 1  ;;  %s1119_s14 = sphi %s1146_s14, %s13_s14   ;;  %s1115_s13 = sphi %s1144_s13, %s1335_s13   ;;  %s1111_s12 = sphi %s1142_s12, %s1334_s12  }
   0x3   : > { %p27_p1 = scmp.ge.s32.totalorder %s25_s15, 7  ;;  %p170_p2 = scmp.lt.s32.totalorder %s1119_s14, 8 }
   0x5   : > { %s1337_s15 = smov (%p27_p1, %s25_s15), 0  ;;  %p171_p3 = pnand %p866_p0, %p170_p2 }
   0x6   : > { %v976_v0 = vld [vmem:[%s1331_s1] sm:$0xff] (!%p171_p3)   ;;  %v1121_v1 = vmov (!%p171_p3), 0   ;;  %s867_s18 = sshll.u32 (!%p171_p3), %s1111_s12, 5  ;;  %v977_v2 = vld [vmem:[%s1331_s1 + $0x8] sm:$0xff] (!%p171_p3)   ;;  %v978_v3 = vld [vmem:[%s1331_s1 + $0x10] sm:$0xff] (!%p171_p3)   ;;  %vm484_vm0 = vcmask (!%p171_p3), 130048  }
   0x7   : > { %174 = sbr.rel (%p171_p3) target bundleno = 328 (0x148), region = 32  ;;  %533 = vmatprep.subr.bf16.mxu0 (!%p171_p3), %v1121_v1  ;;  %933 = vmatprep.subr.bf16.mxu1 (!%p171_p3), %v1121_v1  ;;  %p206_p4 = scmp.lt.s32.totalorder (!%p171_p3), %s867_s18, 223  ;;  %v979_v4 = vld [vmem:[%s1331_s1 + $0x18] sm:$0xff] (!%p171_p3)   ;;  %v980_v7 = vld [vmem:[%s1331_s1 + $0x20] sm:$0xff] (!%p171_p3)   ;;  %v981_v8 = vld [vmem:[%s1331_s1 + $0x28] sm:$0xff] (!%p171_p3)  }
   0x8   : > { %534 = vmatpush1.bf16.msra.mxu0 (!%p171_p3), %v976_v0  ;;  %942 = vmatpush1.bf16.msra.mxu1 (!%p171_p3), %v976_v0  ;;  %v982_v9 = vld [vmem:[%s1331_s1 + $0x30] sm:$0xff] (!%p171_p3)   ;;  %v983_v10 = vld [vmem:[%s1331_s1 + $0x38] sm:$0xff] (!%p171_p3)   ;;  %v984_v11 = vld [vmem:[%s1331_s1 + $0x40] sm:$0xff] (!%p171_p3)  }
   0x9   : > { %535 = vmatprep.subr.bf16.mxu0 (!%p171_p3), %v1121_v1  ;;  %934 = vmatprep.subr.bf16.mxu1 (!%p171_p3), %v1121_v1  ;;  %v1248_v42 = vld [vmem:[%s1332_s2] ss:$0 sm:$0xff] (!%p171_p3) }
   0xc   : > { %536 = vmatpush1.bf16.msra.mxu0 (!%p171_p3), %v977_v2  ;;  %943 = vmatpush1.bf16.msra.mxu1 (!%p171_p3), %v977_v2 }
   0xd   : > { %537 = vmatprep.subr.bf16.mxu0 (!%p171_p3), %v1121_v1  ;;  %935 = vmatprep.subr.bf16.mxu1 (!%p171_p3), %v1121_v1 }
   0xe   : > { %s1339_s18 = smov (!%p206_p4, %s867_s18), 223 }
   0xf   : > { %s932_s23 = sshll.u32 %s1339_s18, 3 }
  0x10   : > { %s1177_s26 = scalar_lea.vmem %s1330_s0, %s932_s23  ;;  %538 = vmatpush1.bf16.msra.mxu0 %v978_v3  ;;  %944 = vmatpush1.bf16.msra.mxu1 %v978_v3  ;;  %s1261_s20 = scalar_lea.vmem %s1333_s3, %s932_s23 }
  0x11   : > { %v987_v5 = vld [vmem:[%s1177_s26 + $0x4] ss:$8 sps:$4 sm:$0xff]   ;;  %539 = vmatprep.subr.bf16.mxu0 %v1121_v1  ;;  %936 = vmatprep.subr.bf16.mxu1 %v1121_v1  ;;  %v985_v12 = vld [vmem:[%s1177_s26] ss:$8 sps:$4 sm:$0xff]   ;;  %v991_v14 = vld [vmem:[%s1177_s26 + $0x14] ss:$8 sps:$4 sm:$0xff]  }
  0x12   : > { %v990_v6 = vld [vmem:[%s1177_s26 + $0x84] ss:$8 sps:$4 sm:$0xff]   ;;  %914 = vmatprep.mubr.msk.bf16.mxu0 %vm484_vm0, %v987_v5  ;;  %v988_v13 = vld [vmem:[%s1177_s26 + $0x80] ss:$8 sps:$4 sm:$0xff]   ;;  %v993_v15 = vld [vmem:[%s1177_s26 + $0x94] ss:$8 sps:$4 sm:$0xff]  }
  0x13   : > { %922 = vmatprep.mubr.msk.bf16.mxu1 %vm484_vm0, %v990_v6  ;;  %v995_v16 = vld [vmem:[%s1177_s26 + $0x10] ss:$8 sps:$4 sm:$0xff]   ;;  %v997_v18 = vld [vmem:[%s1177_s26 + $0x24] ss:$8 sps:$4 sm:$0xff]   ;;  %v1001_v20 = vld [vmem:[%s1177_s26 + $0x20] ss:$8 sps:$4 sm:$0xff]  }
  0x14   : > { %540 = vmatpush1.bf16.msra.mxu0 %v979_v4  ;;  %945 = vmatpush1.bf16.msra.mxu1 %v979_v4  ;;  %v996_v17 = vld [vmem:[%s1177_s26 + $0x90] ss:$8 sps:$4 sm:$0xff]   ;;  %v999_v19 = vld [vmem:[%s1177_s26 + $0xa4] ss:$8 sps:$4 sm:$0xff]   ;;  %v1002_v21 = vld [vmem:[%s1177_s26 + $0xa0] ss:$8 sps:$4 sm:$0xff]  }
  0x15   : > { %541 = vmatprep.subr.bf16.mxu0 %v1121_v1  ;;  %937 = vmatprep.subr.bf16.mxu1 %v1121_v1  ;;  %v1003_v22 = vld [vmem:[%s1177_s26 + $0x34] ss:$8 sps:$4 sm:$0xff]   ;;  %v1007_v24 = vld [vmem:[%s1177_s26 + $0x30] ss:$8 sps:$4 sm:$0xff]   ;;  %v1009_v26 = vld [vmem:[%s1177_s26 + $0x44] ss:$8 sps:$4 sm:$0xff]  }
  0x16   : > { %v1005_v23 = vld [vmem:[%s1177_s26 + $0xb4] ss:$8 sps:$4 sm:$0xff]   ;;  %v1008_v25 = vld [vmem:[%s1177_s26 + $0xb0] ss:$8 sps:$4 sm:$0xff]   ;;  %v1011_v27 = vld [vmem:[%s1177_s26 + $0xc4] ss:$8 sps:$4 sm:$0xff]  }
  0x17   : > { %v1013_v28 = vld [vmem:[%s1177_s26 + $0x40] ss:$8 sps:$4 sm:$0xff]   ;;  %v1015_v30 = vld [vmem:[%s1177_s26 + $0x54] ss:$8 sps:$4 sm:$0xff]   ;;  %v1019_v32 = vld [vmem:[%s1177_s26 + $0x50] ss:$8 sps:$4 sm:$0xff]  }
  0x18   : > { %542 = vmatpush1.bf16.msra.mxu0 %v980_v7  ;;  %946 = vmatpush1.bf16.msra.mxu1 %v980_v7  ;;  %v1014_v29 = vld [vmem:[%s1177_s26 + $0xc0] ss:$8 sps:$4 sm:$0xff]   ;;  %v1017_v31 = vld [vmem:[%s1177_s26 + $0xd4] ss:$8 sps:$4 sm:$0xff]   ;;  %v1020_v33 = vld [vmem:[%s1177_s26 + $0xd0] ss:$8 sps:$4 sm:$0xff]  }
  0x19   : > { %543 = vmatprep.subr.bf16.mxu0 %v1121_v1  ;;  %938 = vmatprep.subr.bf16.mxu1 %v1121_v1  ;;  %v1021_v34 = vld [vmem:[%s1177_s26 + $0x64] ss:$8 sps:$4 sm:$0xff]   ;;  %v1025_v36 = vld [vmem:[%s1177_s26 + $0x60] ss:$8 sps:$4 sm:$0xff]   ;;  %v1027_v38 = vld [vmem:[%s1177_s26 + $0x74] ss:$8 sps:$4 sm:$0xff]  }
  0x1a   : > { %v1023_v35 = vld [vmem:[%s1177_s26 + $0xe4] ss:$8 sps:$4 sm:$0xff]   ;;  %v1026_v37 = vld [vmem:[%s1177_s26 + $0xe0] ss:$8 sps:$4 sm:$0xff]   ;;  %v1029_v39 = vld [vmem:[%s1177_s26 + $0xf4] ss:$8 sps:$4 sm:$0xff]  }
  0x1b   : > { %v1031_v40 = vld [vmem:[%s1177_s26 + $0x70] ss:$8 sps:$4 sm:$0xff]  }
  0x1c   : > { %544 = vmatpush1.bf16.msra.mxu0 %v981_v8  ;;  %947 = vmatpush1.bf16.msra.mxu1 %v981_v8  ;;  %v1032_v41 = vld [vmem:[%s1177_s26 + $0xf0] ss:$8 sps:$4 sm:$0xff]  }
  0x1d   : > { %545 = vmatprep.subr.bf16.mxu0 %v1121_v1  ;;  %939 = vmatprep.subr.bf16.mxu1 %v1121_v1 }
  0x20   : > { %546 = vmatpush1.bf16.msra.mxu0 %v982_v9  ;;  %948 = vmatpush1.bf16.msra.mxu1 %v982_v9 }
  0x21   : > { %547 = vmatprep.subr.bf16.mxu0 %v1121_v1  ;;  %940 = vmatprep.subr.bf16.mxu1 %v1121_v1 }
  0x24   : > { %548 = vmatpush1.bf16.msra.mxu0 %v983_v10  ;;  %949 = vmatpush1.bf16.msra.mxu1 %v983_v10 }
  0x25   : > { %549 = vmatprep.subr.bf16.mxu0 %v1121_v1  ;;  %941 = vmatprep.subr.bf16.mxu1 %v1121_v1 }
  0x28   : > { %550 = vmatpush1.bf16.msra.mxu0 %v984_v11  ;;  %950 = vmatpush1.bf16.msra.mxu1 %v984_v11 }
  0x2b   : > { %566 = vmatmul.mubr.bf16.vlgmr.msra.gmra.mrb[0].mxu0 %v985_v12  ;;  %630 = vmatmul.mubr.bf16.vlgmr.msra.gmra.mrb[0].mxu1 %v988_v13 }
  0x2c   : > { %915 = vmatprep.mubr.msk.bf16.mxu0 %vm484_vm0, %v991_v14  ;;  %923 = vmatprep.mubr.msk.bf16.mxu1 %vm484_vm0, %v993_v15 }
  0x33   : > { %574 = vmatmul.mubr.bf16.gmra.mrb[4].mxu0 %v995_v16  ;;  %638 = vmatmul.mubr.bf16.gmra.mrb[4].mxu1 %v996_v17 }
  0x34   : > { %916 = vmatprep.mubr.msk.bf16.mxu0 %vm484_vm0, %v997_v18  ;;  %924 = vmatprep.mubr.msk.bf16.mxu1 %vm484_vm0, %v999_v19 }
  0x3b   : > { %582 = vmatmul.mubr.bf16.gmra.mrb[8].mxu0 %v1001_v20  ;;  %646 = vmatmul.mubr.bf16.gmra.mrb[8].mxu1 %v1002_v21 }
  0x3c   : > { %917 = vmatprep.mubr.msk.bf16.mxu0 %vm484_vm0, %v1003_v22  ;;  %925 = vmatprep.mubr.msk.bf16.mxu1 %vm484_vm0, %v1005_v23 }
  0x43   : > { %590 = vmatmul.mubr.bf16.gmra.mrb[12].mxu0 %v1007_v24  ;;  %654 = vmatmul.mubr.bf16.gmra.mrb[12].mxu1 %v1008_v25 }
  0x44   : > { %918 = vmatprep.mubr.msk.bf16.mxu0 %vm484_vm0, %v1009_v26  ;;  %926 = vmatprep.mubr.msk.bf16.mxu1 %vm484_vm0, %v1011_v27 }
  0x4b   : > { %598 = vmatmul.mubr.bf16.gmra.mrb[16].mxu0 %v1013_v28  ;;  %662 = vmatmul.mubr.bf16.gmra.mrb[16].mxu1 %v1014_v29 }
  0x4c   : > { %919 = vmatprep.mubr.msk.bf16.mxu0 %vm484_vm0, %v1015_v30  ;;  %927 = vmatprep.mubr.msk.bf16.mxu1 %vm484_vm0, %v1017_v31 }
  0x53   : > { %606 = vmatmul.mubr.bf16.gmra.mrb[20].mxu0 %v1019_v32  ;;  %670 = vmatmul.mubr.bf16.gmra.mrb[20].mxu1 %v1020_v33 }
  0x54   : > { %920 = vmatprep.mubr.msk.bf16.mxu0 %vm484_vm0, %v1021_v34  ;;  %928 = vmatprep.mubr.msk.bf16.mxu1 %vm484_vm0, %v1023_v35 }
  0x5b   : > { %614 = vmatmul.mubr.bf16.gmra.mrb[24].mxu0 %v1025_v36  ;;  %678 = vmatmul.mubr.bf16.gmra.mrb[24].mxu1 %v1026_v37 }
  0x5c   : > { %921 = vmatprep.mubr.msk.bf16.mxu0 %vm484_vm0, %v1027_v38  ;;  %929 = vmatprep.mubr.msk.bf16.mxu1 %vm484_vm0, %v1029_v39 }
  0x63   : > { %622 = vmatmul.mubr.bf16.gmra.mrb[28].mxu0 %v1031_v40  ;;  %686 = vmatmul.mubr.bf16.gmra.mrb[28].mxu1 %v1032_v41 }
  0xfe   : > { %v567_v43 = vpop.f32.mrb[0].mxu0  ;;  %v631_v44 = vpop.f32.mrb[0].mxu1 }
  0xff   : > { %v568_v45 = vadd.f32 %v1248_v42, %v567_v43  ;;  %v632_v46 = vadd.f32 %v1248_v42, %v631_v44  ;;  %v569_v47 = vpop.f32.mrb[1].mxu0  ;;  %v633_v48 = vpop.f32.mrb[1].mxu1 }
 0x100   : > { %v570_v49 = vpop.f32.mrb[2].mxu0  ;;  %v634_v50 = vpop.f32.mrb[2].mxu1 }
 0x101   : > { %1033 = vtanh.f32 %v568_v45  ;;  %v571_v51 = vadd.f32 %v1248_v42, %v570_v49  ;;  %v635_v52 = vadd.f32 %v1248_v42, %v634_v50  ;;  %v572_v53 = vpop.f32.mrb[3].mxu0  ;;  %v636_v54 = vpop.f32.mrb[3].mxu1 }
 0x102   : > { %1035 = vtanh.f32 %v632_v46 }
 0x103   : > { %1037 = vtanh.f32 %v571_v51 }
 0x104   : > { %1039 = vtanh.f32 %v635_v52 }
 0x106   : > { %v575_v55 = vpop.f32.mrb[4].mxu0  ;;  %v639_v56 = vpop.f32.mrb[4].mxu1 }
 0x107   : > { %v576_v57 = vadd.f32 %v1248_v42, %v575_v55  ;;  %v640_v58 = vadd.f32 %v1248_v42, %v639_v56  ;;  %v577_v59 = vpop.f32.mrb[5].mxu0  ;;  %v641_v60 = vpop.f32.mrb[5].mxu1 }
 0x108   : > { %v578_v61 = vpop.f32.mrb[6].mxu0  ;;  %v642_v62 = vpop.f32.mrb[6].mxu1 }
 0x109   : > { %1041 = vtanh.f32 %v576_v57  ;;  %v579_v63 = vadd.f32 %v1248_v42, %v578_v61  ;;  %v643_v0 = vadd.f32 %v1248_v42, %v642_v62  ;;  %v580_v1 = vpop.f32.mrb[7].mxu0  ;;  %v644_v2 = vpop.f32.mrb[7].mxu1 }
 0x10a   : > { %1043 = vtanh.f32 %v640_v58 }
 0x10b   : > { %v1034_v3 = vpop.eup %1033  ;;  %1045 = vtanh.f32 %v579_v63 }
 0x10c   : > { %v1036_v4 = vpop.eup %1035  ;;  %726 = vst [vmem:[%s1261_s20] sm:$0xff] %v1034_v3  ;;  %1047 = vtanh.f32 %v643_v0 }
 0x10d   : > { %v1038_v5 = vpop.eup %1037  ;;  %742 = vst [vmem:[%s1261_s20 + $0x80] sm:$0xff] %v1036_v4 }
 0x10e   : > { %v1040_v6 = vpop.eup %1039  ;;  %727 = vst [vmem:[%s1261_s20 + $0x8] sm:$0xff] %v1038_v5  ;;  %v583_v7 = vpop.f32.mrb[8].mxu0 }
 0x10f   : > { %v647_v8 = vpop.f32.mrb[8].mxu1  ;;  %743 = vst [vmem:[%s1261_s20 + $0x88] sm:$0xff] %v1040_v6  ;;  %v584_v9 = vadd.f32 %v1248_v42, %v583_v7  ;;  %v585_v11 = vpop.f32.mrb[9].mxu0 }
 0x110   : > { %v648_v10 = vadd.f32 %v1248_v42, %v647_v8  ;;  %v649_v12 = vpop.f32.mrb[9].mxu1  ;;  %v586_v13 = vpop.f32.mrb[10].mxu0 }
 0x111   : > { %v650_v14 = vpop.f32.mrb[10].mxu1  ;;  %1049 = vtanh.f32 %v584_v9  ;;  %v587_v15 = vadd.f32 %v1248_v42, %v586_v13  ;;  %v588_v17 = vpop.f32.mrb[11].mxu0 }
 0x112   : > { %v651_v16 = vadd.f32 %v1248_v42, %v650_v14  ;;  %v652_v18 = vpop.f32.mrb[11].mxu1  ;;  %1051 = vtanh.f32 %v648_v10 }
 0x113   : > { %v1042_v19 = vpop.eup %1041  ;;  %1053 = vtanh.f32 %v587_v15 }
 0x114   : > { %v1044_v20 = vpop.eup %1043  ;;  %728 = vst [vmem:[%s1261_s20 + $0x10] sm:$0xff] %v1042_v19  ;;  %1055 = vtanh.f32 %v651_v16 }
 0x115   : > { %v1046_v21 = vpop.eup %1045  ;;  %744 = vst [vmem:[%s1261_s20 + $0x90] sm:$0xff] %v1044_v20 }
 0x116   : > { %v1048_v22 = vpop.eup %1047  ;;  %729 = vst [vmem:[%s1261_s20 + $0x18] sm:$0xff] %v1046_v21  ;;  %v591_v23 = vpop.f32.mrb[12].mxu0 }
 0x117   : > { %v655_v24 = vpop.f32.mrb[12].mxu1  ;;  %745 = vst [vmem:[%s1261_s20 + $0x98] sm:$0xff] %v1048_v22  ;;  %v592_v25 = vadd.f32 %v1248_v42, %v591_v23  ;;  %v593_v27 = vpop.f32.mrb[13].mxu0 }
 0x118   : > { %v656_v26 = vadd.f32 %v1248_v42, %v655_v24  ;;  %v657_v28 = vpop.f32.mrb[13].mxu1  ;;  %v594_v29 = vpop.f32.mrb[14].mxu0 }
 0x119   : > { %v658_v30 = vpop.f32.mrb[14].mxu1  ;;  %1057 = vtanh.f32 %v592_v25  ;;  %v595_v31 = vadd.f32 %v1248_v42, %v594_v29  ;;  %v596_v33 = vpop.f32.mrb[15].mxu0 }
 0x11a   : > { %v659_v32 = vadd.f32 %v1248_v42, %v658_v30  ;;  %v660_v34 = vpop.f32.mrb[15].mxu1  ;;  %1059 = vtanh.f32 %v656_v26 }
 0x11b   : > { %v1050_v35 = vpop.eup %1049  ;;  %1061 = vtanh.f32 %v595_v31 }
 0x11c   : > { %v1052_v36 = vpop.eup %1051  ;;  %730 = vst [vmem:[%s1261_s20 + $0x20] sm:$0xff] %v1050_v35  ;;  %1063 = vtanh.f32 %v659_v32 }
 0x11d   : > { %v1054_v37 = vpop.eup %1053  ;;  %746 = vst [vmem:[%s1261_s20 + $0xa0] sm:$0xff] %v1052_v36 }
 0x11e   : > { %v1056_v38 = vpop.eup %1055  ;;  %731 = vst [vmem:[%s1261_s20 + $0x28] sm:$0xff] %v1054_v37  ;;  %v599_v39 = vpop.f32.mrb[16].mxu0 }
 0x11f   : > { %v663_v40 = vpop.f32.mrb[16].mxu1  ;;  %747 = vst [vmem:[%s1261_s20 + $0xa8] sm:$0xff] %v1056_v38  ;;  %v600_v41 = vadd.f32 %v1248_v42, %v599_v39  ;;  %v601_v44 = vpop.f32.mrb[17].mxu0 }
 0x120   : > { %v664_v43 = vadd.f32 %v1248_v42, %v663_v40  ;;  %v665_v45 = vpop.f32.mrb[17].mxu1  ;;  %v602_v46 = vpop.f32.mrb[18].mxu0 }
 0x121   : > { %v666_v47 = vpop.f32.mrb[18].mxu1  ;;  %1065 = vtanh.f32 %v600_v41  ;;  %v603_v48 = vadd.f32 %v1248_v42, %v602_v46  ;;  %v604_v50 = vpop.f32.mrb[19].mxu0 }
 0x122   : > { %v667_v49 = vadd.f32 %v1248_v42, %v666_v47  ;;  %v668_v51 = vpop.f32.mrb[19].mxu1  ;;  %1067 = vtanh.f32 %v664_v43 }
 0x123   : > { %v1058_v52 = vpop.eup %1057  ;;  %1069 = vtanh.f32 %v603_v48 }
 0x124   : > { %v1060_v53 = vpop.eup %1059  ;;  %732 = vst [vmem:[%s1261_s20 + $0x30] sm:$0xff] %v1058_v52  ;;  %1071 = vtanh.f32 %v667_v49 }
 0x125   : > { %v1062_v54 = vpop.eup %1061  ;;  %748 = vst [vmem:[%s1261_s20 + $0xb0] sm:$0xff] %v1060_v53 }
 0x126   : > { %v1064_v55 = vpop.eup %1063  ;;  %733 = vst [vmem:[%s1261_s20 + $0x38] sm:$0xff] %v1062_v54  ;;  %v607_v56 = vpop.f32.mrb[20].mxu0 }
 0x127   : > { %v671_v57 = vpop.f32.mrb[20].mxu1  ;;  %749 = vst [vmem:[%s1261_s20 + $0xb8] sm:$0xff] %v1064_v55  ;;  %v608_v58 = vadd.f32 %v1248_v42, %v607_v56  ;;  %v609_v60 = vpop.f32.mrb[21].mxu0 }
 0x128   : > { %v672_v59 = vadd.f32 %v1248_v42, %v671_v57  ;;  %v673_v61 = vpop.f32.mrb[21].mxu1  ;;  %v610_v62 = vpop.f32.mrb[22].mxu0 }
 0x129   : > { %v674_v63 = vpop.f32.mrb[22].mxu1  ;;  %1073 = vtanh.f32 %v608_v58  ;;  %v611_v0 = vadd.f32 %v1248_v42, %v610_v62  ;;  %v612_v2 = vpop.f32.mrb[23].mxu0 }
 0x12a   : > { %v675_v1 = vadd.f32 %v1248_v42, %v674_v63  ;;  %v676_v3 = vpop.f32.mrb[23].mxu1  ;;  %1075 = vtanh.f32 %v672_v59 }
 0x12b   : > { %v1066_v4 = vpop.eup %1065  ;;  %1077 = vtanh.f32 %v611_v0 }
 0x12c   : > { %v1068_v5 = vpop.eup %1067  ;;  %734 = vst [vmem:[%s1261_s20 + $0x40] sm:$0xff] %v1066_v4  ;;  %1079 = vtanh.f32 %v675_v1 }
 0x12d   : > { %v1070_v6 = vpop.eup %1069  ;;  %750 = vst [vmem:[%s1261_s20 + $0xc0] sm:$0xff] %v1068_v5 }
 0x12e   : > { %v1072_v7 = vpop.eup %1071  ;;  %735 = vst [vmem:[%s1261_s20 + $0x48] sm:$0xff] %v1070_v6  ;;  %v615_v8 = vpop.f32.mrb[24].mxu0 }
 0x12f   : > { %v679_v9 = vpop.f32.mrb[24].mxu1  ;;  %751 = vst [vmem:[%s1261_s20 + $0xc8] sm:$0xff] %v1072_v7  ;;  %v616_v10 = vadd.f32 %v1248_v42, %v615_v8  ;;  %v617_v12 = vpop.f32.mrb[25].mxu0 }
 0x130   : > { %v680_v11 = vadd.f32 %v1248_v42, %v679_v9  ;;  %v681_v13 = vpop.f32.mrb[25].mxu1  ;;  %v618_v14 = vpop.f32.mrb[26].mxu0 }
 0x131   : > { %v682_v15 = vpop.f32.mrb[26].mxu1  ;;  %1081 = vtanh.f32 %v616_v10  ;;  %v619_v16 = vadd.f32 %v1248_v42, %v618_v14  ;;  %v620_v18 = vpop.f32.mrb[27].mxu0 }
 0x132   : > { %v683_v17 = vadd.f32 %v1248_v42, %v682_v15  ;;  %v684_v19 = vpop.f32.mrb[27].mxu1  ;;  %1083 = vtanh.f32 %v680_v11 }
 0x133   : > { %v1074_v20 = vpop.eup %1073  ;;  %1085 = vtanh.f32 %v619_v16 }
 0x134   : > { %v1076_v21 = vpop.eup %1075  ;;  %736 = vst [vmem:[%s1261_s20 + $0x50] sm:$0xff] %v1074_v20  ;;  %1087 = vtanh.f32 %v683_v17 }
 0x135   : > { %v1078_v22 = vpop.eup %1077  ;;  %752 = vst [vmem:[%s1261_s20 + $0xd0] sm:$0xff] %v1076_v21 }
 0x136   : > { %v1080_v23 = vpop.eup %1079  ;;  %737 = vst [vmem:[%s1261_s20 + $0x58] sm:$0xff] %v1078_v22  ;;  %v623_v24 = vpop.f32.mrb[28].mxu0 }
 0x137   : > { %v687_v25 = vpop.f32.mrb[28].mxu1  ;;  %753 = vst [vmem:[%s1261_s20 + $0xd8] sm:$0xff] %v1080_v23  ;;  %v624_v26 = vadd.f32 %v1248_v42, %v623_v24  ;;  %v625_v28 = vpop.f32.mrb[29].mxu0 }
 0x138   : > { %v688_v27 = vadd.f32 %v1248_v42, %v687_v25  ;;  %v689_v29 = vpop.f32.mrb[29].mxu1  ;;  %v626_v30 = vpop.f32.mrb[30].mxu0 }
 0x139   : > { %v690_v31 = vpop.f32.mrb[30].mxu1  ;;  %1089 = vtanh.f32 %v624_v26  ;;  %v627_v32 = vadd.f32 %v1248_v42, %v626_v30  ;;  %v628_v34 = vpop.f32.mrb[31].mxu0 }
 0x13a   : > { %v691_v33 = vadd.f32 %v1248_v42, %v690_v31  ;;  %v692_v35 = vpop.f32.mrb[31].mxu1  ;;  %1091 = vtanh.f32 %v688_v27 }
 0x13b   : > { %v1082_v36 = vpop.eup %1081  ;;  %1093 = vtanh.f32 %v627_v32 }
 0x13c   : > { %v1084_v37 = vpop.eup %1083  ;;  %738 = vst [vmem:[%s1261_s20 + $0x60] sm:$0xff] %v1082_v36  ;;  %1095 = vtanh.f32 %v691_v33 }
 0x13d   : > { %v1086_v38 = vpop.eup %1085  ;;  %754 = vst [vmem:[%s1261_s20 + $0xe0] sm:$0xff] %v1084_v37 }
 0x13e   : > { %v1088_v39 = vpop.eup %1087  ;;  %739 = vst [vmem:[%s1261_s20 + $0x68] sm:$0xff] %v1086_v38 }
 0x13f   : > { %755 = vst [vmem:[%s1261_s20 + $0xe8] sm:$0xff] %v1088_v39 }
 0x143   : > { %v1090_v40 = vpop.eup %1089 }
 0x144   : > { %v1092_v41 = vpop.eup %1091  ;;  %740 = vst [vmem:[%s1261_s20 + $0x70] sm:$0xff] %v1090_v40 }
 0x145   : > { %v1094_v42 = vpop.eup %1093  ;;  %756 = vst [vmem:[%s1261_s20 + $0xf0] sm:$0xff] %v1092_v41 }
 0x146   : > { %v1096_v43 = vpop.eup %1095  ;;  %741 = vst [vmem:[%s1261_s20 + $0x78] sm:$0xff] %v1094_v42 }
 0x147   : > { %757 = vst [vmem:[%s1261_s20 + $0xf8] sm:$0xff] %v1096_v43 }
 0x148 PF: > { %s13_s14 = sadd.s32 1, %s1119_s14   ;;  %s1334_s12 = smov %s1115_s13 }
 0x149   : > { %p10_p5 = scmp.ge.s32.totalorder %s13_s14, 9   ;;  %s1335_s13 = smov %s1337_s15 }
 0x14b   :  { %12 = sbr.rel (!%p10_p5) target bundleno = 2 (0x2), region = 68 }

</bundles_post_ra>
